<compile_context>
chip_gen: v5e
topology: v5e:2x2
jax: 0.10.0
libtpu: 0.0.40
codegen_flags: <defaults>
</compile_context>

<pallas_src>
import jax
import jax.numpy as jnp
from jax.experimental import pallas as pl
from jax.experimental.pallas import tpu as pltpu

# Problem sizes (small, consistent with the module)
B, L, HIDDEN = 2, 16, 32           # batch, seq length, hidden_size
HID = 512                          # SimpleConv hidden dim (hard-coded in the module)
NUM_LABELS = 8
K1, P1 = 5, 2                      # first conv: kernel 5, padding 2
K2, P2 = 3, 1                      # second conv: kernel 3, padding 1
EPS = 1e-5                         # BatchNorm1d eps
ROWS = B * L


def _make_kernel(compute_dtype):
    """Build the kernel with a static MXU operand dtype (bf16 or f32)."""
    # f32 path: force full-precision MXU passes so the exactness check is robust.
    prec = jax.lax.Precision.HIGHEST if compute_dtype == jnp.float32 else None

    def shift_rows(x, d):
        # y[r] = x[r + d] if 0 <= (r % L) + d < L else 0  (per-sequence zero padding).
        if d == 0:
            return x
        rolled = pltpu.roll(x, (-d) % ROWS, 0)      # row shift on the XLU (idle slot)
        t = jax.lax.broadcasted_iota(jnp.int32, x.shape, 0) % L
        valid = jnp.logical_and(t + d >= 0, t + d < L)
        return jnp.where(valid, rolled, jnp.zeros_like(rolled))

    def kernel(x_ref, gamma_ref, beta_ref, w1_ref, b1_ref, w2_ref, b2_ref, out_ref):
        # x_ref:      (B*L, HIDDEN)          f32 activations (flattened, channels-last)
        # gamma/beta: (1, HIDDEN)            f32 BatchNorm affine params
        # w1_ref:     (K1, HIDDEN, HID)      per-tap conv1 weights, compute_dtype
        # b1_ref:     (1, HID)               f32
        # w2_ref:     (K2, HID, NUM_LABELS)  per-tap conv2 weights, compute_dtype (UNPADDED)
        # b2_ref:     (1, NUM_LABELS)        f32
        # out_ref:    (B*L, NUM_LABELS)      f32 logits
        x = x_ref[...]                                               # (32, 32) f32

        # --- BatchNorm1d, training-mode batch statistics over (batch, length) ---
        mean = jnp.mean(x, axis=0, keepdims=True)                    # (1, H)
        var = jnp.mean((x - mean) ** 2, axis=0, keepdims=True)       # biased variance
        scale = gamma_ref[...] * jax.lax.rsqrt(var + EPS)
        shift = beta_ref[...] - mean * scale
        xn = x * scale + shift                                        # (32, 32) f32

        # --- Conv1d(hidden -> 512, k=5, pad=2): K1 per-tap MXU matmuls, f32 acc ---
        acc1 = jnp.zeros((ROWS, HID), jnp.float32)
        for k in range(K1):
            xk = shift_rows(xn, k - P1).astype(compute_dtype)         # (32, 32)
            acc1 = acc1 + jnp.dot(xk, w1_ref[k],
                                  preferred_element_type=jnp.float32,
                                  precision=prec)
        h = jnp.maximum(acc1 + b1_ref[...], 0.0)      # ReLU; Dropout(p=0) == identity
        h_c = h.astype(compute_dtype)                 # single (32, 512) cast

        # --- Conv1d(512 -> num_labels, k=3, pad=1): K2 per-tap matmuls,
        #     shift the tiny (32, NUM_LABELS) outputs instead of the (32, 512) input ---
        out = jnp.zeros((ROWS, NUM_LABELS), jnp.float32)
        for k in range(K2):
            yk = jnp.dot(h_c, w2_ref[k],
                         preferred_element_type=jnp.float32, precision=prec)
            out = out + shift_rows(yk, k - P2)
        out_ref[...] = (out + b2_ref[...]).astype(out_ref.dtype)

    return kernel


def seq2seq_classification_head(x, gamma, beta, w1, b1, w2, b2, *, use_bf16=True):
    """x: (B, L, HIDDEN); w1: (K1, HIDDEN, HID); w2: (K2, HID, NUM_LABELS)."""
    assert x.shape == (B, L, HIDDEN), x.shape
    assert w1.shape == (K1, HIDDEN, HID), w1.shape
    assert w2.shape == (K2, HID, NUM_LABELS), w2.shape

    compute_dtype = jnp.bfloat16 if use_bf16 else jnp.float32

    x2 = x.reshape(ROWS, HIDDEN).astype(jnp.float32)
    gamma2 = gamma.reshape(1, HIDDEN).astype(jnp.float32)
    beta2 = beta.reshape(1, HIDDEN).astype(jnp.float32)
    w1c = w1.astype(compute_dtype)                       # (5, 32, 512)
    b1_2 = b1.reshape(1, HID).astype(jnp.float32)
    w2c = w2.astype(compute_dtype)                       # (3, 512, 8) -- no lane padding
    b2_2 = b2.reshape(1, NUM_LABELS).astype(jnp.float32)

    args = (x2, gamma2, beta2, w1c, b1_2, w2c, b2_2)
    flops = 2 * ROWS * (K1 * HIDDEN * HID + K2 * HID * NUM_LABELS)
    bytes_accessed = sum(int(a.size) * a.dtype.itemsize for a in args) \
        + ROWS * NUM_LABELS * 4

    vmem = pl.BlockSpec(memory_space=pltpu.MemorySpace.VMEM)
    out = pl.pallas_call(
        _make_kernel(compute_dtype),
        out_shape=jax.ShapeDtypeStruct((ROWS, NUM_LABELS), jnp.float32),
        in_specs=[vmem] * 7,
        out_specs=vmem,
        cost_estimate=pl.CostEstimate(flops=flops, transcendentals=0,
                                      bytes_accessed=bytes_accessed),
    )(*args)

    return out.reshape(B, L, NUM_LABELS)


def reference_forward(x, gamma, beta, w1, b1, w2, b2):
    """Independent pure-JAX reference (lax conv, channels-last)."""
    mean = jnp.mean(x, axis=(0, 1))
    var = jnp.mean((x - mean) ** 2, axis=(0, 1))
    xn = (x - mean) / jnp.sqrt(var + EPS) * gamma + beta
    dn = ('NWC', 'WIO', 'NWC')
    h = jax.lax.conv_general_dilated(
        xn, w1, window_strides=(1,), padding=[(P1, P1)],
        dimension_numbers=dn, precision=jax.lax.Precision.HIGHEST) + b1
    h = jnp.maximum(h, 0.0)
    o = jax.lax.conv_general_dilated(
        h, w2, window_strides=(1,), padding=[(P2, P2)],
        dimension_numbers=dn, precision=jax.lax.Precision.HIGHEST) + b2
    return o


if __name__ == "__main__":
    key = jax.random.PRNGKey(0)
    kx, kv1, kb1, kv2, kb2, kg, kbeta = jax.random.split(key, 7)

    # Input activations (B, L, hidden)
    x = jax.random.normal(kx, (B, L, HIDDEN), jnp.float32)

    # Conv weights in PyTorch layout (out, in, k); weight_norm(dim=None):
    #   W_eff = g * v / ||v||_F , with g initialized to ||v||_F  =>  W_eff == v at init.
    v1 = jax.random.normal(kv1, (HID, HIDDEN, K1), jnp.float32) * 0.05
    g1 = jnp.sqrt(jnp.sum(v1 ** 2))
    w1_eff = g1 * v1 / jnp.sqrt(jnp.sum(v1 ** 2))
    b1 = jax.random.normal(kb1, (HID,), jnp.float32) * 0.02

    v2 = jax.random.normal(kv2, (NUM_LABELS, HID, K2), jnp.float32) * 0.05
    g2 = jnp.sqrt(jnp.sum(v2 ** 2))
    w2_eff = g2 * v2 / jnp.sqrt(jnp.sum(v2 ** 2))
    b2 = jax.random.normal(kb2, (NUM_LABELS,), jnp.float32) * 0.02

    # BatchNorm affine params
    gamma = 1.0 + 0.1 * jax.random.normal(kg, (HIDDEN,), jnp.float32)
    beta = 0.1 * jax.random.normal(kbeta, (HIDDEN,), jnp.float32)

    # Kernel weight layout: (K, C_in, C_out)
    w1_k = jnp.transpose(w1_eff, (2, 1, 0))   # (K1, HIDDEN, HID)
    w2_k = jnp.transpose(w2_eff, (2, 1, 0))   # (K2, HID, NUM_LABELS)

    ref = reference_forward(x, gamma, beta, w1_k, b1, w2_k, b2)

    # 1) Exact-precision check: f32 MXU operands (precision=HIGHEST) vs f32 reference.
    logits_f32 = seq2seq_classification_head(x, gamma, beta, w1_k, b1, w2_k, b2,
                                             use_bf16=False)
    logits_f32 = jax.block_until_ready(logits_f32)
    assert logits_f32.shape == (B, L, NUM_LABELS)
    assert jnp.allclose(logits_f32, ref, atol=1e-3, rtol=1e-3), (
        float(jnp.max(jnp.abs(logits_f32 - ref))))

    # 2) Fast path: bf16 MXU operands, f32 accumulation / elementwise math.
    logits_bf16 = seq2seq_classification_head(x, gamma, beta, w1_k, b1, w2_k, b2,
                                              use_bf16=True)
    logits_bf16 = jax.block_until_ready(logits_bf16)
    assert logits_bf16.shape == (B, L, NUM_LABELS)
    assert jnp.allclose(logits_bf16, ref, atol=5e-2, rtol=5e-2), (
        float(jnp.max(jnp.abs(logits_bf16 - ref))))

    print("KERNEL_OK")
</pallas_src>

<mosaic_0001>
module attributes {stable_mosaic.version = 11 : i64} {
  func.func @kernel(%arg0: memref<32x32xf32, #tpu.memory_space<vmem>>, %arg1: memref<1x32xf32, #tpu.memory_space<vmem>>, %arg2: memref<1x32xf32, #tpu.memory_space<vmem>>, %arg3: memref<5x32x512xf32, #tpu.memory_space<vmem>>, %arg4: memref<1x512xf32, #tpu.memory_space<vmem>>, %arg5: memref<3x512x8xf32, #tpu.memory_space<vmem>>, %arg6: memref<1x8xf32, #tpu.memory_space<vmem>>, %arg7: memref<32x8xf32, #tpu.memory_space<vmem>>) attributes {dimension_semantics = [], scalar_prefetch = 0 : i64, scratch_operands = 0 : i64, tpu.core_type = #tpu.core_type<tc>} {
    %c0 = arith.constant 0 : index
    %c0_0 = arith.constant 0 : index
    %0 = vector.load %arg0[%c0, %c0_0] : memref<32x32xf32, #tpu.memory_space<vmem>>, vector<32x32xf32>
    %cst = arith.constant dense<0.000000e+00> : vector<32xf32>
    %1 = vector.multi_reduction <add>, %0, %cst [0] : vector<32x32xf32> to vector<32xf32>
    %2 = vector.shape_cast %1 : vector<32xf32> to vector<1x32xf32>
    %cst_1 = arith.constant 3.200000e+01 : f32
    %3 = vector.broadcast %cst_1 : f32 to vector<1x32xf32>
    %4 = arith.divf %2, %3 : vector<1x32xf32>
    %5 = vector.broadcast %4 : vector<1x32xf32> to vector<32x32xf32>
    %6 = arith.subf %0, %5 : vector<32x32xf32>
    %7 = arith.mulf %6, %6 : vector<32x32xf32>
    %cst_2 = arith.constant dense<0.000000e+00> : vector<32xf32>
    %8 = vector.multi_reduction <add>, %7, %cst_2 [0] : vector<32x32xf32> to vector<32xf32>
    %9 = vector.shape_cast %8 : vector<32xf32> to vector<1x32xf32>
    %cst_3 = arith.constant 3.200000e+01 : f32
    %10 = vector.broadcast %cst_3 : f32 to vector<1x32xf32>
    %11 = arith.divf %9, %10 : vector<1x32xf32>
    %c0_4 = arith.constant 0 : index
    %c0_5 = arith.constant 0 : index
    %12 = vector.load %arg1[%c0_4, %c0_5] : memref<1x32xf32, #tpu.memory_space<vmem>>, vector<1x32xf32>
    %cst_6 = arith.constant 9.99999974E-6 : f32
    %13 = vector.broadcast %cst_6 : f32 to vector<1x32xf32>
    %14 = arith.addf %11, %13 : vector<1x32xf32>
    %15 = math.rsqrt %14 : vector<1x32xf32>
    %16 = arith.mulf %12, %15 : vector<1x32xf32>
    %c0_7 = arith.constant 0 : index
    %c0_8 = arith.constant 0 : index
    %17 = vector.load %arg2[%c0_7, %c0_8] : memref<1x32xf32, #tpu.memory_space<vmem>>, vector<1x32xf32>
    %18 = arith.mulf %4, %16 : vector<1x32xf32>
    %19 = arith.subf %17, %18 : vector<1x32xf32>
    %20 = vector.broadcast %16 : vector<1x32xf32> to vector<32x32xf32>
    %21 = arith.mulf %0, %20 : vector<32x32xf32>
    %22 = vector.broadcast %19 : vector<1x32xf32> to vector<32x32xf32>
    %23 = arith.addf %21, %22 : vector<32x32xf32>
    %cst_9 = arith.constant 0.000000e+00 : f32
    %24 = vector.broadcast %cst_9 : f32 to vector<32x512xf32>
    %c2_i32 = arith.constant 2 : i32
    %25 = tpu.dynamic_rotate %23 by %c2_i32 dim 0 : vector<32x32xf32>, i32 -> vector<32x32xf32>
    %26 = tpu.iota {dimensions = array<i32: 0>} : vector<32x32xi32>
    %c16_i32 = arith.constant 16 : i32
    %c0_i32 = arith.constant 0 : i32
    %27 = arith.cmpi eq, %c16_i32, %c0_i32 : i32
    %c1_i32 = arith.constant 1 : i32
    %28 = arith.select %27, %c1_i32, %c16_i32 : i32
    %29 = vector.broadcast %28 : i32 to vector<32x32xi32>
    %30 = arith.remsi %26, %29 : vector<32x32xi32>
    %c0_i32_10 = arith.constant 0 : i32
    %31 = vector.broadcast %c0_i32_10 : i32 to vector<32x32xi32>
    %32 = arith.cmpi ne, %30, %31 : vector<32x32xi32>
    %c0_i32_11 = arith.constant 0 : i32
    %33 = vector.broadcast %c0_i32_11 : i32 to vector<32x32xi32>
    %34 = arith.cmpi slt, %30, %33 : vector<32x32xi32>
    %c0_i32_12 = arith.constant 0 : i32
    %35 = arith.cmpi slt, %28, %c0_i32_12 : i32
    %36 = vector.broadcast %35 : i1 to vector<32x32xi1>
    %37 = vector.broadcast %36 : vector<32x32xi1> to vector<32x32xi1>
    %38 = arith.xori %34, %37 : vector<32x32xi1>
    %39 = arith.andi %38, %32 : vector<32x32xi1>
    %40 = vector.broadcast %28 : i32 to vector<32x32xi32>
    %41 = arith.addi %30, %40 : vector<32x32xi32>
    %42 = arith.select %39, %41, %30 : vector<32x32xi1>, vector<32x32xi32>
    %c-2_i32 = arith.constant -2 : i32
    %43 = vector.broadcast %c-2_i32 : i32 to vector<32x32xi32>
    %44 = arith.addi %42, %43 : vector<32x32xi32>
    %c0_i32_13 = arith.constant 0 : i32
    %45 = vector.broadcast %c0_i32_13 : i32 to vector<32x32xi32>
    %46 = arith.cmpi sge, %44, %45 : vector<32x32xi32>
    %c-2_i32_14 = arith.constant -2 : i32
    %47 = vector.broadcast %c-2_i32_14 : i32 to vector<32x32xi32>
    %48 = arith.addi %42, %47 : vector<32x32xi32>
    %c16_i32_15 = arith.constant 16 : i32
    %49 = vector.broadcast %c16_i32_15 : i32 to vector<32x32xi32>
    %50 = arith.cmpi slt, %48, %49 : vector<32x32xi32>
    %51 = arith.andi %46, %50 : vector<32x32xi1>
    %cst_16 = arith.constant 0.000000e+00 : f32
    %52 = vector.broadcast %cst_16 : f32 to vector<32x32xf32>
    %53 = arith.select %51, %25, %52 : vector<32x32xi1>, vector<32x32xf32>
    %c0_17 = arith.constant 0 : index
    %c0_18 = arith.constant 0 : index
    %c0_19 = arith.constant 0 : index
    %54 = vector.load %arg3[%c0_17, %c0_18, %c0_19] : memref<5x32x512xf32, #tpu.memory_space<vmem>>, vector<1x32x512xf32>
    %55 = vector.shape_cast %54 : vector<1x32x512xf32> to vector<32x512xf32>
    %cst_20 = arith.constant dense<0.000000e+00> : vector<32x512xf32>
    %56 = tpu.matmul %53, %55, %cst_20 {dimension_numbers = #tpu.dot_dimension_numbers<[1], [0], [0], [1], [0, 0, 1, 1], [], []>, precision = #tpu.contract_precision<fp32>} : vector<32x32xf32>, vector<32x512xf32>, vector<32x512xf32> -> vector<32x512xf32>
    %57 = arith.addf %24, %56 : vector<32x512xf32>
    %c1_i32_21 = arith.constant 1 : i32
    %58 = tpu.dynamic_rotate %23 by %c1_i32_21 dim 0 : vector<32x32xf32>, i32 -> vector<32x32xf32>
    %59 = tpu.iota {dimensions = array<i32: 0>} : vector<32x32xi32>
    %c16_i32_22 = arith.constant 16 : i32
    %c0_i32_23 = arith.constant 0 : i32
    %60 = arith.cmpi eq, %c16_i32_22, %c0_i32_23 : i32
    %c1_i32_24 = arith.constant 1 : i32
    %61 = arith.select %60, %c1_i32_24, %c16_i32_22 : i32
    %62 = vector.broadcast %61 : i32 to vector<32x32xi32>
    %63 = arith.remsi %59, %62 : vector<32x32xi32>
    %c0_i32_25 = arith.constant 0 : i32
    %64 = vector.broadcast %c0_i32_25 : i32 to vector<32x32xi32>
    %65 = arith.cmpi ne, %63, %64 : vector<32x32xi32>
    %c0_i32_26 = arith.constant 0 : i32
    %66 = vector.broadcast %c0_i32_26 : i32 to vector<32x32xi32>
    %67 = arith.cmpi slt, %63, %66 : vector<32x32xi32>
    %c0_i32_27 = arith.constant 0 : i32
    %68 = arith.cmpi slt, %61, %c0_i32_27 : i32
    %69 = vector.broadcast %68 : i1 to vector<32x32xi1>
    %70 = vector.broadcast %69 : vector<32x32xi1> to vector<32x32xi1>
    %71 = arith.xori %67, %70 : vector<32x32xi1>
    %72 = arith.andi %71, %65 : vector<32x32xi1>
    %73 = vector.broadcast %61 : i32 to vector<32x32xi32>
    %74 = arith.addi %63, %73 : vector<32x32xi32>
    %75 = arith.select %72, %74, %63 : vector<32x32xi1>, vector<32x32xi32>
    %c-1_i32 = arith.constant -1 : i32
    %76 = vector.broadcast %c-1_i32 : i32 to vector<32x32xi32>
    %77 = arith.addi %75, %76 : vector<32x32xi32>
    %c0_i32_28 = arith.constant 0 : i32
    %78 = vector.broadcast %c0_i32_28 : i32 to vector<32x32xi32>
    %79 = arith.cmpi sge, %77, %78 : vector<32x32xi32>
    %c-1_i32_29 = arith.constant -1 : i32
    %80 = vector.broadcast %c-1_i32_29 : i32 to vector<32x32xi32>
    %81 = arith.addi %75, %80 : vector<32x32xi32>
    %c16_i32_30 = arith.constant 16 : i32
    %82 = vector.broadcast %c16_i32_30 : i32 to vector<32x32xi32>
    %83 = arith.cmpi slt, %81, %82 : vector<32x32xi32>
    %84 = arith.andi %79, %83 : vector<32x32xi1>
    %cst_31 = arith.constant 0.000000e+00 : f32
    %85 = vector.broadcast %cst_31 : f32 to vector<32x32xf32>
    %86 = arith.select %84, %58, %85 : vector<32x32xi1>, vector<32x32xf32>
    %c1 = arith.constant 1 : index
    %c0_32 = arith.constant 0 : index
    %c0_33 = arith.constant 0 : index
    %87 = vector.load %arg3[%c1, %c0_32, %c0_33] : memref<5x32x512xf32, #tpu.memory_space<vmem>>, vector<1x32x512xf32>
    %88 = vector.shape_cast %87 : vector<1x32x512xf32> to vector<32x512xf32>
    %cst_34 = arith.constant dense<0.000000e+00> : vector<32x512xf32>
    %89 = tpu.matmul %86, %88, %cst_34 {dimension_numbers = #tpu.dot_dimension_numbers<[1], [0], [0], [1], [0, 0, 1, 1], [], []>, precision = #tpu.contract_precision<fp32>} : vector<32x32xf32>, vector<32x512xf32>, vector<32x512xf32> -> vector<32x512xf32>
    %90 = arith.addf %57, %89 : vector<32x512xf32>
    %c2 = arith.constant 2 : index
    %c0_35 = arith.constant 0 : index
    %c0_36 = arith.constant 0 : index
    %91 = vector.load %arg3[%c2, %c0_35, %c0_36] : memref<5x32x512xf32, #tpu.memory_space<vmem>>, vector<1x32x512xf32>
    %92 = vector.shape_cast %91 : vector<1x32x512xf32> to vector<32x512xf32>
    %cst_37 = arith.constant dense<0.000000e+00> : vector<32x512xf32>
    %93 = tpu.matmul %23, %92, %cst_37 {dimension_numbers = #tpu.dot_dimension_numbers<[1], [0], [0], [1], [0, 0, 1, 1], [], []>, precision = #tpu.contract_precision<fp32>} : vector<32x32xf32>, vector<32x512xf32>, vector<32x512xf32> -> vector<32x512xf32>
    %94 = arith.addf %90, %93 : vector<32x512xf32>
    %c31_i32 = arith.constant 31 : i32
    %95 = tpu.dynamic_rotate %23 by %c31_i32 dim 0 : vector<32x32xf32>, i32 -> vector<32x32xf32>
    %96 = tpu.iota {dimensions = array<i32: 0>} : vector<32x32xi32>
    %c16_i32_38 = arith.constant 16 : i32
    %c0_i32_39 = arith.constant 0 : i32
    %97 = arith.cmpi eq, %c16_i32_38, %c0_i32_39 : i32
    %c1_i32_40 = arith.constant 1 : i32
    %98 = arith.select %97, %c1_i32_40, %c16_i32_38 : i32
    %99 = vector.broadcast %98 : i32 to vector<32x32xi32>
    %100 = arith.remsi %96, %99 : vector<32x32xi32>
    %c0_i32_41 = arith.constant 0 : i32
    %101 = vector.broadcast %c0_i32_41 : i32 to vector<32x32xi32>
    %102 = arith.cmpi ne, %100, %101 : vector<32x32xi32>
    %c0_i32_42 = arith.constant 0 : i32
    %103 = vector.broadcast %c0_i32_42 : i32 to vector<32x32xi32>
    %104 = arith.cmpi slt, %100, %103 : vector<32x32xi32>
    %c0_i32_43 = arith.constant 0 : i32
    %105 = arith.cmpi slt, %98, %c0_i32_43 : i32
    %106 = vector.broadcast %105 : i1 to vector<32x32xi1>
    %107 = vector.broadcast %106 : vector<32x32xi1> to vector<32x32xi1>
    %108 = arith.xori %104, %107 : vector<32x32xi1>
    %109 = arith.andi %108, %102 : vector<32x32xi1>
    %110 = vector.broadcast %98 : i32 to vector<32x32xi32>
    %111 = arith.addi %100, %110 : vector<32x32xi32>
    %112 = arith.select %109, %111, %100 : vector<32x32xi1>, vector<32x32xi32>
    %c1_i32_44 = arith.constant 1 : i32
    %113 = vector.broadcast %c1_i32_44 : i32 to vector<32x32xi32>
    %114 = arith.addi %112, %113 : vector<32x32xi32>
    %c0_i32_45 = arith.constant 0 : i32
    %115 = vector.broadcast %c0_i32_45 : i32 to vector<32x32xi32>
    %116 = arith.cmpi sge, %114, %115 : vector<32x32xi32>
    %c1_i32_46 = arith.constant 1 : i32
    %117 = vector.broadcast %c1_i32_46 : i32 to vector<32x32xi32>
    %118 = arith.addi %112, %117 : vector<32x32xi32>
    %c16_i32_47 = arith.constant 16 : i32
    %119 = vector.broadcast %c16_i32_47 : i32 to vector<32x32xi32>
    %120 = arith.cmpi slt, %118, %119 : vector<32x32xi32>
    %121 = arith.andi %116, %120 : vector<32x32xi1>
    %cst_48 = arith.constant 0.000000e+00 : f32
    %122 = vector.broadcast %cst_48 : f32 to vector<32x32xf32>
    %123 = arith.select %121, %95, %122 : vector<32x32xi1>, vector<32x32xf32>
    %c3 = arith.constant 3 : index
    %c0_49 = arith.constant 0 : index
    %c0_50 = arith.constant 0 : index
    %124 = vector.load %arg3[%c3, %c0_49, %c0_50] : memref<5x32x512xf32, #tpu.memory_space<vmem>>, vector<1x32x512xf32>
    %125 = vector.shape_cast %124 : vector<1x32x512xf32> to vector<32x512xf32>
    %cst_51 = arith.constant dense<0.000000e+00> : vector<32x512xf32>
    %126 = tpu.matmul %123, %125, %cst_51 {dimension_numbers = #tpu.dot_dimension_numbers<[1], [0], [0], [1], [0, 0, 1, 1], [], []>, precision = #tpu.contract_precision<fp32>} : vector<32x32xf32>, vector<32x512xf32>, vector<32x512xf32> -> vector<32x512xf32>
    %127 = arith.addf %94, %126 : vector<32x512xf32>
    %c30_i32 = arith.constant 30 : i32
    %128 = tpu.dynamic_rotate %23 by %c30_i32 dim 0 : vector<32x32xf32>, i32 -> vector<32x32xf32>
    %129 = tpu.iota {dimensions = array<i32: 0>} : vector<32x32xi32>
    %c16_i32_52 = arith.constant 16 : i32
    %c0_i32_53 = arith.constant 0 : i32
    %130 = arith.cmpi eq, %c16_i32_52, %c0_i32_53 : i32
    %c1_i32_54 = arith.constant 1 : i32
    %131 = arith.select %130, %c1_i32_54, %c16_i32_52 : i32
    %132 = vector.broadcast %131 : i32 to vector<32x32xi32>
    %133 = arith.remsi %129, %132 : vector<32x32xi32>
    %c0_i32_55 = arith.constant 0 : i32
    %134 = vector.broadcast %c0_i32_55 : i32 to vector<32x32xi32>
    %135 = arith.cmpi ne, %133, %134 : vector<32x32xi32>
    %c0_i32_56 = arith.constant 0 : i32
    %136 = vector.broadcast %c0_i32_56 : i32 to vector<32x32xi32>
    %137 = arith.cmpi slt, %133, %136 : vector<32x32xi32>
    %c0_i32_57 = arith.constant 0 : i32
    %138 = arith.cmpi slt, %131, %c0_i32_57 : i32
    %139 = vector.broadcast %138 : i1 to vector<32x32xi1>
    %140 = vector.broadcast %139 : vector<32x32xi1> to vector<32x32xi1>
    %141 = arith.xori %137, %140 : vector<32x32xi1>
    %142 = arith.andi %141, %135 : vector<32x32xi1>
    %143 = vector.broadcast %131 : i32 to vector<32x32xi32>
    %144 = arith.addi %133, %143 : vector<32x32xi32>
    %145 = arith.select %142, %144, %133 : vector<32x32xi1>, vector<32x32xi32>
    %c2_i32_58 = arith.constant 2 : i32
    %146 = vector.broadcast %c2_i32_58 : i32 to vector<32x32xi32>
    %147 = arith.addi %145, %146 : vector<32x32xi32>
    %c0_i32_59 = arith.constant 0 : i32
    %148 = vector.broadcast %c0_i32_59 : i32 to vector<32x32xi32>
    %149 = arith.cmpi sge, %147, %148 : vector<32x32xi32>
    %c2_i32_60 = arith.constant 2 : i32
    %150 = vector.broadcast %c2_i32_60 : i32 to vector<32x32xi32>
    %151 = arith.addi %145, %150 : vector<32x32xi32>
    %c16_i32_61 = arith.constant 16 : i32
    %152 = vector.broadcast %c16_i32_61 : i32 to vector<32x32xi32>
    %153 = arith.cmpi slt, %151, %152 : vector<32x32xi32>
    %154 = arith.andi %149, %153 : vector<32x32xi1>
    %cst_62 = arith.constant 0.000000e+00 : f32
    %155 = vector.broadcast %cst_62 : f32 to vector<32x32xf32>
    %156 = arith.select %154, %128, %155 : vector<32x32xi1>, vector<32x32xf32>
    %c4 = arith.constant 4 : index
    %c0_63 = arith.constant 0 : index
    %c0_64 = arith.constant 0 : index
    %157 = vector.load %arg3[%c4, %c0_63, %c0_64] : memref<5x32x512xf32, #tpu.memory_space<vmem>>, vector<1x32x512xf32>
    %158 = vector.shape_cast %157 : vector<1x32x512xf32> to vector<32x512xf32>
    %cst_65 = arith.constant dense<0.000000e+00> : vector<32x512xf32>
    %159 = tpu.matmul %156, %158, %cst_65 {dimension_numbers = #tpu.dot_dimension_numbers<[1], [0], [0], [1], [0, 0, 1, 1], [], []>, precision = #tpu.contract_precision<fp32>} : vector<32x32xf32>, vector<32x512xf32>, vector<32x512xf32> -> vector<32x512xf32>
    %160 = arith.addf %127, %159 : vector<32x512xf32>
    %c0_66 = arith.constant 0 : index
    %c0_67 = arith.constant 0 : index
    %161 = vector.load %arg4[%c0_66, %c0_67] : memref<1x512xf32, #tpu.memory_space<vmem>>, vector<1x512xf32>
    %162 = vector.broadcast %161 : vector<1x512xf32> to vector<32x512xf32>
    %163 = arith.addf %160, %162 : vector<32x512xf32>
    %cst_68 = arith.constant 0.000000e+00 : f32
    %164 = vector.broadcast %cst_68 : f32 to vector<32x512xf32>
    %165 = arith.maximumf %163, %164 : vector<32x512xf32>
    %cst_69 = arith.constant 0.000000e+00 : f32
    %166 = vector.broadcast %cst_69 : f32 to vector<32x8xf32>
    %c0_70 = arith.constant 0 : index
    %c0_71 = arith.constant 0 : index
    %c0_72 = arith.constant 0 : index
    %167 = vector.load %arg5[%c0_70, %c0_71, %c0_72] : memref<3x512x8xf32, #tpu.memory_space<vmem>>, vector<1x512x8xf32>
    %168 = vector.shape_cast %167 : vector<1x512x8xf32> to vector<512x8xf32>
    %cst_73 = arith.constant dense<0.000000e+00> : vector<32x8xf32>
    %169 = tpu.matmul %165, %168, %cst_73 {dimension_numbers = #tpu.dot_dimension_numbers<[1], [0], [0], [1], [0, 0, 1, 1], [], []>, precision = #tpu.contract_precision<fp32>} : vector<32x512xf32>, vector<512x8xf32>, vector<32x8xf32> -> vector<32x8xf32>
    %c1_i32_74 = arith.constant 1 : i32
    %170 = tpu.dynamic_rotate %169 by %c1_i32_74 dim 0 : vector<32x8xf32>, i32 -> vector<32x8xf32>
    %171 = tpu.iota {dimensions = array<i32: 0>} : vector<32x8xi32>
    %c16_i32_75 = arith.constant 16 : i32
    %c0_i32_76 = arith.constant 0 : i32
    %172 = arith.cmpi eq, %c16_i32_75, %c0_i32_76 : i32
    %c1_i32_77 = arith.constant 1 : i32
    %173 = arith.select %172, %c1_i32_77, %c16_i32_75 : i32
    %174 = vector.broadcast %173 : i32 to vector<32x8xi32>
    %175 = arith.remsi %171, %174 : vector<32x8xi32>
    %c0_i32_78 = arith.constant 0 : i32
    %176 = vector.broadcast %c0_i32_78 : i32 to vector<32x8xi32>
    %177 = arith.cmpi ne, %175, %176 : vector<32x8xi32>
    %c0_i32_79 = arith.constant 0 : i32
    %178 = vector.broadcast %c0_i32_79 : i32 to vector<32x8xi32>
    %179 = arith.cmpi slt, %175, %178 : vector<32x8xi32>
    %c0_i32_80 = arith.constant 0 : i32
    %180 = arith.cmpi slt, %173, %c0_i32_80 : i32
    %181 = vector.broadcast %180 : i1 to vector<32x8xi1>
    %182 = vector.broadcast %181 : vector<32x8xi1> to vector<32x8xi1>
    %183 = arith.xori %179, %182 : vector<32x8xi1>
    %184 = arith.andi %183, %177 : vector<32x8xi1>
    %185 = vector.broadcast %173 : i32 to vector<32x8xi32>
    %186 = arith.addi %175, %185 : vector<32x8xi32>
    %187 = arith.select %184, %186, %175 : vector<32x8xi1>, vector<32x8xi32>
    %c-1_i32_81 = arith.constant -1 : i32
    %188 = vector.broadcast %c-1_i32_81 : i32 to vector<32x8xi32>
    %189 = arith.addi %187, %188 : vector<32x8xi32>
    %c0_i32_82 = arith.constant 0 : i32
    %190 = vector.broadcast %c0_i32_82 : i32 to vector<32x8xi32>
    %191 = arith.cmpi sge, %189, %190 : vector<32x8xi32>
    %c-1_i32_83 = arith.constant -1 : i32
    %192 = vector.broadcast %c-1_i32_83 : i32 to vector<32x8xi32>
    %193 = arith.addi %187, %192 : vector<32x8xi32>
    %c16_i32_84 = arith.constant 16 : i32
    %194 = vector.broadcast %c16_i32_84 : i32 to vector<32x8xi32>
    %195 = arith.cmpi slt, %193, %194 : vector<32x8xi32>
    %196 = arith.andi %191, %195 : vector<32x8xi1>
    %cst_85 = arith.constant 0.000000e+00 : f32
    %197 = vector.broadcast %cst_85 : f32 to vector<32x8xf32>
    %198 = arith.select %196, %170, %197 : vector<32x8xi1>, vector<32x8xf32>
    %199 = arith.addf %166, %198 : vector<32x8xf32>
    %c1_86 = arith.constant 1 : index
    %c0_87 = arith.constant 0 : index
    %c0_88 = arith.constant 0 : index
    %200 = vector.load %arg5[%c1_86, %c0_87, %c0_88] : memref<3x512x8xf32, #tpu.memory_space<vmem>>, vector<1x512x8xf32>
    %201 = vector.shape_cast %200 : vector<1x512x8xf32> to vector<512x8xf32>
    %cst_89 = arith.constant dense<0.000000e+00> : vector<32x8xf32>
    %202 = tpu.matmul %165, %201, %cst_89 {dimension_numbers = #tpu.dot_dimension_numbers<[1], [0], [0], [1], [0, 0, 1, 1], [], []>, precision = #tpu.contract_precision<fp32>} : vector<32x512xf32>, vector<512x8xf32>, vector<32x8xf32> -> vector<32x8xf32>
    %203 = arith.addf %199, %202 : vector<32x8xf32>
    %c2_90 = arith.constant 2 : index
    %c0_91 = arith.constant 0 : index
    %c0_92 = arith.constant 0 : index
    %204 = vector.load %arg5[%c2_90, %c0_91, %c0_92] : memref<3x512x8xf32, #tpu.memory_space<vmem>>, vector<1x512x8xf32>
    %205 = vector.shape_cast %204 : vector<1x512x8xf32> to vector<512x8xf32>
    %cst_93 = arith.constant dense<0.000000e+00> : vector<32x8xf32>
    %206 = tpu.matmul %165, %205, %cst_93 {dimension_numbers = #tpu.dot_dimension_numbers<[1], [0], [0], [1], [0, 0, 1, 1], [], []>, precision = #tpu.contract_precision<fp32>} : vector<32x512xf32>, vector<512x8xf32>, vector<32x8xf32> -> vector<32x8xf32>
    %c31_i32_94 = arith.constant 31 : i32
    %207 = tpu.dynamic_rotate %206 by %c31_i32_94 dim 0 : vector<32x8xf32>, i32 -> vector<32x8xf32>
    %208 = tpu.iota {dimensions = array<i32: 0>} : vector<32x8xi32>
    %c16_i32_95 = arith.constant 16 : i32
    %c0_i32_96 = arith.constant 0 : i32
    %209 = arith.cmpi eq, %c16_i32_95, %c0_i32_96 : i32
    %c1_i32_97 = arith.constant 1 : i32
    %210 = arith.select %209, %c1_i32_97, %c16_i32_95 : i32
    %211 = vector.broadcast %210 : i32 to vector<32x8xi32>
    %212 = arith.remsi %208, %211 : vector<32x8xi32>
    %c0_i32_98 = arith.constant 0 : i32
    %213 = vector.broadcast %c0_i32_98 : i32 to vector<32x8xi32>
    %214 = arith.cmpi ne, %212, %213 : vector<32x8xi32>
    %c0_i32_99 = arith.constant 0 : i32
    %215 = vector.broadcast %c0_i32_99 : i32 to vector<32x8xi32>
    %216 = arith.cmpi slt, %212, %215 : vector<32x8xi32>
    %c0_i32_100 = arith.constant 0 : i32
    %217 = arith.cmpi slt, %210, %c0_i32_100 : i32
    %218 = vector.broadcast %217 : i1 to vector<32x8xi1>
    %219 = vector.broadcast %218 : vector<32x8xi1> to vector<32x8xi1>
    %220 = arith.xori %216, %219 : vector<32x8xi1>
    %221 = arith.andi %220, %214 : vector<32x8xi1>
    %222 = vector.broadcast %210 : i32 to vector<32x8xi32>
    %223 = arith.addi %212, %222 : vector<32x8xi32>
    %224 = arith.select %221, %223, %212 : vector<32x8xi1>, vector<32x8xi32>
    %c1_i32_101 = arith.constant 1 : i32
    %225 = vector.broadcast %c1_i32_101 : i32 to vector<32x8xi32>
    %226 = arith.addi %224, %225 : vector<32x8xi32>
    %c0_i32_102 = arith.constant 0 : i32
    %227 = vector.broadcast %c0_i32_102 : i32 to vector<32x8xi32>
    %228 = arith.cmpi sge, %226, %227 : vector<32x8xi32>
    %c1_i32_103 = arith.constant 1 : i32
    %229 = vector.broadcast %c1_i32_103 : i32 to vector<32x8xi32>
    %230 = arith.addi %224, %229 : vector<32x8xi32>
    %c16_i32_104 = arith.constant 16 : i32
    %231 = vector.broadcast %c16_i32_104 : i32 to vector<32x8xi32>
    %232 = arith.cmpi slt, %230, %231 : vector<32x8xi32>
    %233 = arith.andi %228, %232 : vector<32x8xi1>
    %cst_105 = arith.constant 0.000000e+00 : f32
    %234 = vector.broadcast %cst_105 : f32 to vector<32x8xf32>
    %235 = arith.select %233, %207, %234 : vector<32x8xi1>, vector<32x8xf32>
    %236 = arith.addf %203, %235 : vector<32x8xf32>
    %c0_106 = arith.constant 0 : index
    %c0_107 = arith.constant 0 : index
    %237 = vector.load %arg6[%c0_106, %c0_107] : memref<1x8xf32, #tpu.memory_space<vmem>>, vector<1x8xf32>
    %238 = vector.broadcast %237 : vector<1x8xf32> to vector<32x8xf32>
    %239 = arith.addf %236, %238 : vector<32x8xf32>
    %c0_108 = arith.constant 0 : index
    %c0_109 = arith.constant 0 : index
    %240 = vector.load %arg7[%c0_108, %c0_109] : memref<32x8xf32, #tpu.memory_space<vmem>>, vector<32x8xf32>
    tpu.vector_store %arg7[%c0_108, %c0_109], %239 {strides = array<i32>} : memref<32x8xf32, #tpu.memory_space<vmem>>, vector<32x8xf32>,
    return
  }
}

</mosaic_0001>

<bundles_post_ra>
// kernel: tpu_custom_call.1
= control target key start
LH: loop header
LB: loop body
LE: loop exit
PB: predicated region body
PF: predicated region fallthrough
CT: control target
= control target key end

     0   :  { %vm30_vm0 = vcmask 261120   ;;  %v11721_v3 = vmov 32.0   ;;  %s18774_s3 = inlined_call_operand.vmem [shape: f32[5,32,512], index: 3, kind: input, shape index: {}]   ;;  %s18775_s0 = inlined_call_operand.vmem [shape: f32[32,32], index: 0, kind: input, shape index: {}]   ;;  %s18776_s1 = inlined_call_operand.vmem [shape: f32[1,32], index: 1, kind: input, shape index: {}]   ;;  %s18777_s2 = inlined_call_operand.vmem [shape: f32[1,32], index: 2, kind: input, shape index: {}]   ;;  %s18778_s5 = inlined_call_operand.vmem [shape: f32[3,512,8], index: 5, kind: input, shape index: {}]   ;;  %s18779_s4 = inlined_call_operand.vmem [shape: f32[1,512], index: 4, kind: input, shape index: {}]   ;;  %s18780_s6 = inlined_call_operand.vmem [shape: f32[1,8], index: 6, kind: input, shape index: {}]   ;;  %s18781_s7 = inlined_call_operand.vmem [shape: f32[32,8], index: 7, kind: output, shape index: {}]  }
   0x1   :  { %v11534_v0 = vld [vmem:[%s18774_s3 + $0xe0] sm:$0xff]  ;;  %11716 = vrcp.f32 %v11721_v3  ;;  %v11788_v9 = vld [vmem:[%s18775_s0 + $0x8] sm:$0xff]  ;;  %v11795_v11 = vld [vmem:[%s18775_s0 + $0x10] sm:$0xff] }
   0x2   :  { %v11530_v1 = vld [vmem:[%s18774_s3 + $0xc0] sm:$0xff]  ;;  %v11771_v4 = vand.u32 4294901760, %v11534_v0  ;;  %v11800_v12 = vld [vmem:[%s18775_s0 + $0x18] sm:$0xff]  ;;  %v32_v14 = vsel %vm30_vm0, %v11788_v9, 0.0  ;;  %v34_v20 = vsel %vm30_vm0, %v11795_v11, 0.0 }
   0x3   :  { %v11526_v2 = vld [vmem:[%s18774_s3 + $0xa0] sm:$0xff]  ;;  %v11773_v5 = vand.u32 4294901760, %v11530_v1  ;;  %v36_v21 = vsel %vm30_vm0, %v11800_v12, 0.0 }
   0x4   :  { %v11775_v6 = vand.u32 4294901760, %v11526_v2  ;;  %v11522_v7 = vld [vmem:[%s18774_s3 + $0x80] sm:$0xff]  ;;  %v326_v15 = vsub.f32 %v11534_v0, %v11771_v4  ;;  %424 = vmatpush.msra.mxu3 %v11771_v4  ;;  %273 = vmatpush.msra.mxu0 %v11771_v4 }
   0x5   :  { %v11783_v8 = vld [vmem:[%s18775_s0] sm:$0xff]  ;;  %v11790_v10 = vand.u32 4294901760, %v11522_v7  ;;  %v332_v16 = vsub.f32 %v11530_v1, %v11773_v5 }
   0x6   :  { %v31_v13 = vsel %vm30_vm0, %v11783_v8, 0.0  ;;  %v338_v17 = vsub.f32 %v11526_v2, %v11775_v6  ;;  %v327_v22 = vand.u32 4294901760, %v326_v15  ;;  %380 = vmatpush.msra.mxu2 %v326_v15  ;;  %426 = vmatpush.msra.mxu3 %v11773_v5 }
   0x7   :  { %v33_v18 = vadd.f32 %v32_v14, %v31_v13  ;;  %v344_v19 = vsub.f32 %v11522_v7, %v11790_v10  ;;  %v333_v23 = vand.u32 4294901760, %v332_v16  ;;  %v11717_v26 = vpop.eup %11716  ;;  %275 = vmatpush.msra.mxu0 %v11773_v5  ;;  %v11535_v14 = vld [vmem:[%s18774_s3 + $0xe8] sm:$0xff] }
   0x8   :  { %v339_v24 = vand.u32 4294901760, %v338_v17  ;;  %v328_v28 = vsub.f32 %v326_v15, %v327_v22  ;;  %383 = vmatpush.msra.mxu2 %v332_v16  ;;  %v45_v32 = vmul.f32 32.0, %v11717_v26  ;;  %428 = vmatpush.msra.mxu3 %v11775_v6  ;;  %vm49_vm1 = vweird.f32 %v11717_v26 }
   0x9   :  { %v35_v25 = vadd.f32 %v34_v20, %v33_v18  ;;  %v345_v27 = vand.u32 4294901760, %v344_v19  ;;  %v334_v29 = vsub.f32 %v332_v16, %v333_v23  ;;  %277 = vmatpush.msra.mxu0 %v11775_v6  ;;  %v11837_v15 = vand.u32 4294901760, %v11535_v14 }
   0xa   :  { %v340_v30 = vsub.f32 %v338_v17, %v339_v24  ;;  %v329_v33 = vand.u32 4294901760, %v328_v28  ;;  %386 = vmatpush.msra.mxu2 %v338_v17  ;;  %v46_v37 = vsub.f32 1.0, %v45_v32  ;;  %430 = vmatpush.msra.mxu3 %v11790_v10  ;;  %v108_v17 = vlaneseq  ;;  %v87_v32 = vld [vmem:[%s18777_s2] sm:$0x1] }
   0xb   :  { %v37_v31 = vadd.f32 %v36_v21, %v35_v25  ;;  %v335_v34 = vand.u32 4294901760, %v334_v29  ;;  %v346_v35 = vsub.f32 %v344_v19, %v345_v27  ;;  %279 = vmatpush.msra.mxu0 %v11790_v10 }
   0xc   :  { %330 = vmatpush.msra.mxu1 %v329_v33  ;;  %v341_v38 = vand.u32 4294901760, %v340_v30  ;;  %389 = vmatpush.msra.mxu2 %v344_v19  ;;  %v47_v40 = vmul.f32 %v11717_v26, %v46_v37  ;;  %v11841_v19 = vsub.f32 %v11535_v14, %v11837_v15 }
   0xd   :  { %v38_v36 = vrot.slane %v37_v31, 4  ;;  %471 = vmatpush.msrb.mxu0 %v327_v22  ;;  %v347_v41 = vand.u32 4294901760, %v346_v35  ;;  %v74_v22 = vld [vmem:[%s18776_s1] sm:$0x1] }
   0xe   :  { %336 = vmatpush.msra.mxu1 %v335_v34  ;;  %v48_v43 = vadd.f32 %v11717_v26, %v47_v40  ;;  %551 = vmatpush.msrb.mxu2 %v11837_v15  ;;  %v605_v21 = vand.u32 4294901760, %v11841_v19 }
   0xf   :  { %v39_v39 = vadd.f32 %v38_v36, %v37_v31  ;;  %475 = vmatpush.msrb.mxu0 %v333_v23 }
  0x10   :  { %342 = vmatpush.msra.mxu1 %v341_v38  ;;  %v50_v46 = vsel %vm49_vm1, %v11717_v26, %v48_v43  ;;  %v606_v25 = vsub.f32 %v11841_v19, %v605_v21  ;;  %v11531_v26 = vld [vmem:[%s18774_s3 + $0xc8] sm:$0xff] }
  0x11   :  { %v40_v42 = vrot.slane %v39_v39, 2  ;;  %479 = vmatpush.msrb.mxu0 %v339_v24  ;;  %v11847_v24 = vshrl.u32 %v108_v17, 7 }
  0x12   :  { %348 = vmatpush.msra.mxu1 %v347_v41  ;;  %v607_v29 = vand.u32 4294901760, %v606_v25 }
  0x13   :  { %v41_v44 = vadd.f32 %v40_v42, %v39_v39  ;;  %483 = vmatpush.msrb.mxu0 %v345_v27  ;;  %19041 = vst [vmem:[#allocation2_spill] sm:$0xff] %v11847_v24  ;;  %v11855_v27 = vand.u32 4294901760, %v11531_v26  ;;  %v11858_v30 = vadd.s32 16, %v11847_v24  ;;  %v122_v33 = vand.u32 15, %v11847_v24 }
  0x14   :  { %514 = vmatpush.msrb.mxu1 %v11771_v4  ;;  %608 = vmatpush.msrb.mxu3 %v607_v29  ;;  %vm206_vm5 = vcmp.lt.s32.totalorder %v11847_v24, 1  ;;  %vm110_vm8 = vcmp.lt.s32.totalorder %v11847_v24, 2  ;;  %vm3657_vm11 = vcmp.lt.s32.totalorder %v11847_v24, 7  ;;  %vm4843_vm14 = vcmp.lt.s32.totalorder %v11847_v24, 6 }
  0x15   :  { %v42_v45 = vrot.slane %v41_v44, 1  ;;  %553 = vmatpush.msrb.mxu2 %v11855_v27  ;;  %v11866_v34 = vsub.f32 %v11531_v26, %v11855_v27  ;;  %v136_v37 = vand.u32 15, %v11858_v30  ;;  %v11875_v43 = vadd.s32 4294967295, %v122_v33 }
  0x16   :  { %516 = vmatpush.msrb.mxu1 %v11773_v5 }
  0x17   :  { %v43_v47 = vadd.f32 %v42_v45, %v41_v44  ;;  %v611_v38 = vand.u32 4294901760, %v11866_v34  ;;  %19042 = vst [vmem:[#allocation3_spill] sm:$0xff] %v11875_v43  ;;  %vm215_vm6 = vcmp.ge.s32.totalorder %v11875_v43, 0 }
  0x18   :  { %518 = vmatpush.msrb.mxu1 %v11775_v6 }
  0x19   :  { %v51_v48 = vmul.f32 %v50_v46, %v43_v47  ;;  %v612_v45 = vsub.f32 %v11866_v34, %v611_v38 }
  0x1a   :  { %520 = vmatpush.msrb.mxu1 %v11790_v10 }
  0x1b   :  { %v52_v49 = vsub.f32 %v11783_v8, %v51_v48  ;;  %v53_v50 = vsub.f32 %v11788_v9, %v51_v48  ;;  %v54_v51 = vsub.f32 %v11795_v11, %v51_v48  ;;  %v55_v52 = vsub.f32 %v11800_v12, %v51_v48 }
  0x1d   :  { %v56_v53 = vmul.f32 %v52_v49, %v52_v49  ;;  %v57_v54 = vmul.f32 %v53_v50, %v53_v50  ;;  %v58_v55 = vmul.f32 %v54_v51, %v54_v51  ;;  %v59_v56 = vmul.f32 %v55_v52, %v55_v52  ;;  %v11523_v52 = vld [vmem:[%s18774_s3 + $0x88] sm:$0xff] }
  0x1f   :  { %v60_v57 = vsel %vm30_vm0, %v56_v53, 0.0  ;;  %v61_v58 = vsel %vm30_vm0, %v57_v54, 0.0  ;;  %v63_v59 = vsel %vm30_vm0, %v58_v55, 0.0  ;;  %v65_v61 = vsel %vm30_vm0, %v59_v56, 0.0 }
  0x20   :  { %v62_v60 = vadd.f32 %v61_v58, %v60_v57  ;;  %v556_v58 = vand.u32 4294901760, %v11523_v52 }
  0x22   :  { %v64_v62 = vadd.f32 %v63_v59, %v62_v60 }
  0x24   :  { %v66_v63 = vadd.f32 %v65_v61, %v64_v62 }
  0x26   :  { %v67_v0 = vrot.slane %v66_v63, 4 }
  0x28   :  { %v68_v1 = vadd.f32 %v67_v0, %v66_v63 }
  0x2a   :  { %v69_v2 = vrot.slane %v68_v1, 2 }
  0x2c   :  { %v70_v3 = vadd.f32 %v69_v2, %v68_v1 }
  0x2e   :  { %v71_v4 = vrot.slane %v70_v3, 1 }
  0x30   :  { %v72_v5 = vadd.f32 %v71_v4, %v70_v3 }
  0x32   :  { %v73_v6 = vmul.f32 %v72_v5, %v50_v46  ;;  %v11527_v46 = vld [vmem:[%s18774_s3 + $0xa8] sm:$0xff]  ;;  %v622_v5 = vsub.f32 %v11523_v52, %v556_v58 }
  0x34   :  { %v75_v7 = vadd.f32 1e-05, %v73_v6 }
  0x36   :  { %11718 = vrsqrt.f32 %v75_v7  ;;  %vm82_vm2 = vweird.f32 %v75_v7 }
  0x3c   :  { %v11719_v10 = vpop.eup %11718 }
  0x3d   :  { %v77_v13 = vmul.f32 %v11719_v10, %v75_v7  ;;  %vm83_vm3 = vweird.f32 %v11719_v10 }
  0x3e   :  { %vm84_vm4 = vmor %vm82_vm2, %vm83_vm3 }
  0x3f   :  { %v78_v16 = vmul.f32 %v11719_v10, %v77_v13  ;;  %v623_v13 = vand.u32 4294901760, %v622_v5 }
  0x41   :  { %v79_v18 = vmul.f32 0.5, %v78_v16  ;;  %v624_v17 = vsub.f32 %v622_v5, %v623_v13 }
  0x43   :  { %v80_v20 = vsub.f32 1.5, %v79_v18 }
  0x45   :  { %v81_v23 = vmul.f32 %v11719_v10, %v80_v20 }
  0x47   :  { %v85_v28 = vsel %vm84_vm4, %v11719_v10, %v81_v23  ;;  %v625_v23 = vand.u32 4294901760, %v624_v17 }
  0x48   :  { %v86_v31 = vmul.f32 %v85_v28, %v74_v22 }
  0x4a   :  { %v88_v35 = vmul.f32 %v86_v31, %v51_v48  ;;  %v91_v36 = vperm.slane %v86_v31, 0  ;;  %v11882_v48 = vand.u32 4294901760, %v11527_v46 }
  0x4c   :  { %v89_v39 = vsub.f32 %v87_v32, %v88_v35  ;;  %v93_v40 = vmul.f32 %v91_v36, %v11783_v8  ;;  %v96_v41 = vmul.f32 %v91_v36, %v11800_v12  ;;  %v94_v42 = vmul.f32 %v91_v36, %v11788_v9  ;;  %555 = vmatpush.msrb.mxu2 %v11882_v48 }
  0x4d   :  { %v95_v44 = vmul.f32 %v91_v36, %v11795_v11  ;;  %v11886_v8 = vadd.s32 4294967295, %v136_v37  ;;  %v613_v9 = vand.u32 4294901760, %v612_v45  ;;  %v616_v51 = vsub.f32 %v11527_v46, %v11882_v48  ;;  %v11532_v45 = vld [vmem:[%s18774_s3 + $0xd0] sm:$0xff] }
  0x4e   :  { %v98_v47 = vperm.slane %v89_v39, 0  ;;  %557 = vmatpush.msrb.mxu2 %v556_v58  ;;  %v11536_v39 = vld [vmem:[%s18774_s3 + $0xf0] sm:$0xff]  ;;  %v830_v46 = vand.u32 4294901760, %v11532_v45 }
  0x4f   :  { %19043 = vst [vmem:[#allocation4_spill] sm:$0xff] %v11886_v8  ;;  %614 = vmatpush.msrb.mxu3 %v613_v9  ;;  %v617_v57 = vand.u32 4294901760, %v616_v51  ;;  %vm217_vm7 = vcmp.ge.s32.totalorder %v11886_v8, 0 }
  0x50   :  { %v11888_v12 = vadd.f32 %v98_v47, %v93_v40  ;;  %v11890_v49 = vadd.f32 %v98_v47, %v96_v41  ;;  %v11892_v50 = vadd.f32 %v98_v47, %v94_v42  ;;  %v11894_v11 = vadd.f32 %v98_v47, %v95_v44 }
  0x51   :  { %v618_v4 = vsub.f32 %v616_v51, %v617_v57  ;;  %v828_v40 = vand.u32 4294901760, %v11536_v39 }
  0x52   :  { %v202_v53 = vrot.slane %v11888_v12, 7  ;;  %v205_v54 = vrot.slane %v11890_v49, 7  ;;  %v203_v55 = vrot.slane %v11892_v50, 7  ;;  %v204_v56 = vrot.slane %v11894_v11, 7 }
  0x53   :  { %v619_v10 = vand.u32 4294901760, %v618_v4  ;;  %v12004_v41 = vsub.f32 %v11536_v39, %v828_v40 }
  0x54   :  { %v210_v59 = vsel %vm206_vm5, %v205_v54, %v202_v53  ;;  %v209_v60 = vsel %vm206_vm5, %v202_v53, %v203_v55  ;;  %v208_v61 = vsel %vm206_vm5, %v203_v55, %v204_v56 }
  0x55   :  { %v227_v62 = vsel %vm215_vm6, %v210_v59, 0.0  ;;  %v252_v63 = vsel %vm30_vm0, %v209_v60, 0  ;;  %v229_v3 = vsel %vm217_vm7, %v208_v61, 0.0  ;;  %620 = vmatpush.msrb.mxu3 %v619_v10  ;;  %v883_v42 = vand.u32 4294901760, %v12004_v41 }
  0x56   :  { %v249_v0 = vsel %vm30_vm0, %v227_v62, 0  ;;  %v11918_v1 = vand.u32 4294901760, %v252_v63  ;;  %v255_v14 = vsel %vm30_vm0, %v229_v3, 0  ;;  %v11537_v3 = vld [vmem:[%s18774_s3 + $0xf8] sm:$0xff] }
  0x57   :  { %v11920_v2 = vand.u32 4294901760, %v249_v0  ;;  %v11946_v22 = vand.u32 4294901760, %v255_v14  ;;  %626 = vmatpush.msrb.mxu3 %v625_v23  ;;  %v884_v44 = vsub.f32 %v12004_v41, %v883_v42  ;;  %v1106_v4 = vand.u32 4294901760, %v11537_v3 }
  0x58   :  { %v11929_v7 = vsub.f32 %v252_v63, %v11918_v1 }
  0x59   :  { %350 = vmatmul.f32.vlgmr.msra.gmra.mxu1 %v11920_v2  ;;  %v11926_v6 = vsub.f32 %v249_v0, %v11920_v2  ;;  %v11959_v28 = vsub.f32 %v255_v14, %v11946_v22  ;;  %v885_v47 = vand.u32 4294901760, %v884_v44  ;;  %v11533_v14 = vld [vmem:[%s18774_s3 + $0xd8] sm:$0xff] }
  0x5a   :  { %702 = vmatpush.msra.mxu1 %v11837_v15  ;;  %v11944_v20 = vand.u32 4294901760, %v11929_v7 }
  0x5b   :  { %392 = vmatmul.f32.vlgmr.msra.gmra.mxu2 %v11926_v6  ;;  %v11935_v16 = vand.u32 4294901760, %v11926_v6  ;;  %v11971_v31 = vand.u32 4294901760, %v11959_v28 }
  0x5c   :  { %749 = vmatpush.msra.mxu2 %v605_v21  ;;  %704 = vmatpush.msra.mxu1 %v11855_v27  ;;  %v207_v21 = vsel %vm206_vm5, %v204_v56, %v205_v54  ;;  %v291_v26 = vsub.f32 %v11929_v7, %v11944_v20  ;;  %v11524_v54 = vld [vmem:[%s18774_s3 + $0x90] sm:$0xff] }
  0x5d   :  { %434 = vmatmul.f32.vlgmr.msra.gmra.mxu3 %v11935_v16  ;;  %v283_v18 = vsub.f32 %v11926_v6, %v11935_v16  ;;  %v258_v29 = vsel %vm30_vm0, %v207_v21, 0  ;;  %v834_v56 = vand.u32 4294901760, %v11524_v54 }
  0x5e   :  { %753 = vmatpush.msra.mxu2 %v611_v38  ;;  %706 = vmatpush.msra.mxu1 %v11882_v48  ;;  %v11973_v32 = vand.u32 4294901760, %v258_v29 }
  0x5f   :  { %v11949_v25 = vand.u32 4294901760, %v283_v18  ;;  %792 = vmatpush.msra.mxu3 %v11837_v15  ;;  %v11968_v15 = vand.u32 4294901760, %v291_v26  ;;  %v900_v59 = vsub.f32 %v11524_v54, %v834_v56  ;;  %v1108_v18 = vand.u32 4294901760, %v11533_v14 }
  0x60   :  { %757 = vmatpush.msra.mxu2 %v617_v57  ;;  %708 = vmatpush.msra.mxu1 %v556_v58 }
  0x61   :  { %285 = vmatmul.f32.vlgmr.msra.gmra.mxu0 %v11949_v25  ;;  %354 = vmatmul.f32.gmra.mxu1 %v11918_v1  ;;  %v901_v61 = vand.u32 4294901760, %v900_v59  ;;  %v1166_v23 = vsub.f32 %v11533_v14, %v1108_v18 }
  0x62   :  { %658 = vmatpush.msra.mxu0 %v11841_v19  ;;  %794 = vmatpush.msra.mxu3 %v11855_v27  ;;  %v299_v19 = vsub.f32 %v11959_v28, %v11971_v31  ;;  %v11980_v27 = vsub.f32 %v258_v29, %v11973_v32  ;;  %v11529_v29 = vld [vmem:[%s18774_s3 + $0xb8] sm:$0xff] }
  0x63   :  { %397 = vmatmul.f32.gmra.mxu2 %v11929_v7  ;;  %v902_v63 = vsub.f32 %v900_v59, %v901_v61  ;;  %v1167_v21 = vand.u32 4294901760, %v1166_v23 }
  0x64   :  { %661 = vmatpush.msra.mxu0 %v11866_v34  ;;  %796 = vmatpush.msra.mxu3 %v11882_v48  ;;  %v11984_v34 = vand.u32 4294901760, %v299_v19  ;;  %v11987_v35 = vand.u32 4294901760, %v11980_v27  ;;  %v888_v48 = vsub.f32 %v11532_v45, %v830_v46  ;;  %v1110_v19 = vand.u32 4294901760, %v11529_v29 }
  0x65   :  { %440 = vmatmul.f32.gmra.mxu3 %v11944_v20  ;;  %761 = vmatpush.msra.mxu2 %v623_v13  ;;  %v903_v0 = vand.u32 4294901760, %v902_v63  ;;  %v1168_v26 = vsub.f32 %v1166_v23, %v1167_v21 }
  0x66   :  { %664 = vmatpush.msra.mxu0 %v616_v51  ;;  %798 = vmatpush.msra.mxu3 %v556_v58  ;;  %v307_v36 = vsub.f32 %v11980_v27, %v11987_v35  ;;  %v889_v9 = vand.u32 4294901760, %v888_v48  ;;  %v11528_v51 = vld [vmem:[%s18774_s3 + $0xb0] sm:$0xff]  ;;  %v1172_v39 = vsub.f32 %v11529_v29, %v1110_v19 }
  0x67   :  { %v832_v52 = vand.u32 4294901760, %v11528_v51 }
  0x68   :  { %667 = vmatpush.msra.mxu0 %v622_v5  ;;  %v11995_v38 = vand.u32 4294901760, %v307_v36  ;;  %v890_v53 = vsub.f32 %v888_v48, %v889_v9  ;;  %v1160_v5 = vsub.f32 %v11537_v3, %v1106_v4  ;;  %v1169_v36 = vand.u32 4294901760, %v1168_v26 }
  0x69   :  { %293 = vmatmul.f32.gmra.mxu0 %v11968_v15  ;;  %358 = vmatmul.f32.gmra.mxu1 %v11946_v22  ;;  %v894_v55 = vsub.f32 %v11528_v51, %v832_v52 }
  0x6a   :  { %v891_v57 = vand.u32 4294901760, %v890_v53  ;;  %v1161_v10 = vand.u32 4294901760, %v1160_v5 }
  0x6b   :  { %402 = vmatmul.f32.gmra.mxu2 %v11959_v28  ;;  %v895_v58 = vand.u32 4294901760, %v894_v55 }
  0x6c   :  { %v1162_v13 = vsub.f32 %v1160_v5, %v1161_v10 }
  0x6d   :  { %446 = vmatmul.f32.gmra.mxu3 %v11971_v31  ;;  %v896_v60 = vsub.f32 %v894_v55, %v895_v58 }
  0x6e   :  { %v1163_v17 = vand.u32 4294901760, %v1162_v13 }
  0x6f   :  { %v897_v62 = vand.u32 4294901760, %v896_v60 }
  0x71   :  { %301 = vmatmul.f32.gmra.mxu0 %v11984_v34  ;;  %362 = vmatmul.f32.gmra.mxu1 %v11973_v32 }
  0x73   :  { %407 = vmatmul.f32.gmra.mxu2 %v11980_v27 }
  0x75   :  { %452 = vmatmul.f32.gmra.mxu3 %v11987_v35 }
  0x79   :  { %309 = vmatmul.f32.gmra.mxu0 %v11995_v38  ;;  %522 = vmatmul.f32.vlgmr.msrb.gmra.mxu1 %v11920_v2 }
  0x7a   :  { %886 = vmatpush.msrb.mxu1 %v885_v47 }
  0x7b   :  { %563 = vmatmul.f32.vlgmr.msrb.gmra.mxu2 %v11949_v25 }
  0x7c   :  { %936 = vmatpush.msrb.mxu2 %v12004_v41  ;;  %892 = vmatpush.msrb.mxu1 %v891_v57 }
  0x7d   :  { %628 = vmatmul.f32.vlgmr.msrb.gmra.mxu3 %v11920_v2 }
  0x7e   :  { %980 = vmatpush.msrb.mxu3 %v828_v40  ;;  %939 = vmatpush.msrb.mxu2 %v888_v48 }
  0x7f   :  { %898 = vmatpush.msrb.mxu1 %v897_v62 }
  0x80   :  { %982 = vmatpush.msrb.mxu3 %v830_v46  ;;  %942 = vmatpush.msrb.mxu2 %v894_v55 }
  0x81   :  { %485 = vmatmul.f32.vlgmr.msrb.gmra.mxu0 %v11920_v2  ;;  %526 = vmatmul.f32.gmra.mxu1 %v11918_v1 }
  0x82   :  { %829 = vmatpush.msrb.mxu0 %v828_v40  ;;  %984 = vmatpush.msrb.mxu3 %v832_v52 }
  0x83   :  { %571 = vmatmul.f32.gmra.mxu2 %v11968_v15  ;;  %904 = vmatpush.msrb.mxu1 %v903_v0 }
  0x84   :  { %831 = vmatpush.msrb.mxu0 %v830_v46  ;;  %945 = vmatpush.msrb.mxu2 %v900_v59 }
  0x85   :  { %632 = vmatmul.f32.gmra.mxu3 %v11918_v1 }
  0x86   :  { %833 = vmatpush.msrb.mxu0 %v832_v52  ;;  %986 = vmatpush.msrb.mxu3 %v834_v56 }
  0x88   :  { %835 = vmatpush.msrb.mxu0 %v834_v56 }
  0x89   :  { %489 = vmatmul.f32.gmra.mxu0 %v11918_v1  ;;  %530 = vmatmul.f32.gmra.mxu1 %v11946_v22 }
  0x8b   :  { %579 = vmatmul.f32.gmra.mxu2 %v11984_v34 }
  0x8d   :  { %636 = vmatmul.f32.gmra.mxu3 %v11946_v22 }
  0x91   :  { %493 = vmatmul.f32.gmra.mxu0 %v11946_v22  ;;  %534 = vmatmul.f32.gmra.mxu1 %v11973_v32 }
  0x93   :  { %587 = vmatmul.f32.gmra.mxu2 %v11995_v38 }
  0x95   :  { %640 = vmatmul.f32.gmra.mxu3 %v11973_v32 }
  0x99   :  { %497 = vmatmul.f32.gmra.mxu0 %v11973_v32  ;;  %712 = vmatmul.f32.vlgmr.msra.gmra.mxu1 %v11935_v16 }
  0x9a   :  { %1070 = vmatpush.msra.mxu1 %v828_v40  ;;  %v11525_v40 = vld [vmem:[%s18774_s3 + $0x98] sm:$0xff] }
  0x9b   :  { %763 = vmatmul.f32.vlgmr.msra.gmra.mxu2 %v11920_v2  ;;  %v1112_v41 = vand.u32 4294901760, %v11525_v40 }
  0x9c   :  { %1072 = vmatpush.msra.mxu1 %v830_v46  ;;  %1107 = vmatpush.msra.mxu2 %v1106_v4 }
  0x9d   :  { %800 = vmatmul.f32.vlgmr.msra.gmra.mxu3 %v11920_v2  ;;  %v1178_v44 = vsub.f32 %v11525_v40, %v1112_v41 }
  0x9e   :  { %1074 = vmatpush.msra.mxu1 %v832_v52  ;;  %1164 = vmatpush.msra.mxu3 %v1163_v17 }
  0x9f   :  { %1109 = vmatpush.msra.mxu2 %v1108_v18  ;;  %v1179_v46 = vand.u32 4294901760, %v1178_v44 }
  0xa0   :  { %1076 = vmatpush.msra.mxu1 %v834_v56  ;;  %1170 = vmatpush.msra.mxu3 %v1169_v36  ;;  %v198_v56 = vld [vmem:[%s18774_s3 + $0x60] sm:$0xff] }
  0xa1   :  { %670 = vmatmul.f32.vlgmr.msra.gmra.mxu0 %v11926_v6  ;;  %718 = vmatmul.f32.gmra.mxu1 %v11944_v20  ;;  %v1180_v48 = vsub.f32 %v1178_v44, %v1179_v46 }
  0xa2   :  { %1027 = vmatpush.msra.mxu0 %v883_v42  ;;  %1111 = vmatpush.msra.mxu2 %v1110_v19  ;;  %v1173_v42 = vand.u32 4294901760, %v1172_v39 }
  0xa3   :  { %767 = vmatmul.f32.gmra.mxu2 %v11918_v1 }
  0xa4   :  { %1031 = vmatpush.msra.mxu0 %v889_v9  ;;  %1113 = vmatpush.msra.mxu2 %v1112_v41  ;;  %v1174_v45 = vsub.f32 %v1172_v39, %v1173_v42  ;;  %v1181_v9 = vand.u32 4294901760, %v1180_v48 }
  0xa5   :  { %804 = vmatmul.f32.gmra.mxu3 %v11918_v1 }
  0xa6   :  { %1035 = vmatpush.msra.mxu0 %v895_v58  ;;  %v1175_v47 = vand.u32 4294901760, %v1174_v45  ;;  %v12081_v58 = vand.u32 4294901760, %v198_v56 }
  0xa8   :  { %1039 = vmatpush.msra.mxu0 %v901_v61  ;;  %1176 = vmatpush.msra.mxu3 %v1175_v47 }
  0xa9   :  { %675 = vmatmul.f32.gmra.mxu0 %v11929_v7  ;;  %724 = vmatmul.f32.gmra.mxu1 %v11971_v31 }
  0xaa   :  { %1182 = vmatpush.msra.mxu3 %v1181_v9 }
  0xab   :  { %771 = vmatmul.f32.gmra.mxu2 %v11946_v22 }
  0xad   :  { %808 = vmatmul.f32.gmra.mxu3 %v11946_v22 }
  0xb1   :  { %680 = vmatmul.f32.gmra.mxu0 %v11959_v28  ;;  %730 = vmatmul.f32.gmra.mxu1 %v11987_v35 }
  0xb3   :  { %775 = vmatmul.f32.gmra.mxu2 %v11973_v32 }
  0xb5   :  { %812 = vmatmul.f32.gmra.mxu3 %v11973_v32 }
  0xb9   :  { %685 = vmatmul.f32.gmra.mxu0 %v11980_v27  ;;  %906 = vmatmul.f32.vlgmr.msrb.gmra.mxu1 %v11920_v2 }
  0xba   :  { %1258 = vmatpush.msrb.mxu1 %v1106_v4 }
  0xbb   :  { %948 = vmatmul.f32.vlgmr.msrb.gmra.mxu2 %v11926_v6 }
  0xbc   :  { %1305 = vmatpush.msrb.mxu2 %v1161_v10  ;;  %1260 = vmatpush.msrb.mxu1 %v1108_v18 }
  0xbd   :  { %990 = vmatmul.f32.vlgmr.msrb.gmra.mxu3 %v11935_v16 }
  0xbe   :  { %1348 = vmatpush.msrb.mxu3 %v1106_v4  ;;  %1309 = vmatpush.msrb.mxu2 %v1167_v21  ;;  %v190_v21 = vld [vmem:[%s18774_s3 + $0x20] sm:$0xff] }
  0xbf   :  { %1262 = vmatpush.msrb.mxu1 %v1110_v19  ;;  %v1400_v26 = vand.u32 4294901760, %v190_v21 }
  0xc0   :  { %1350 = vmatpush.msrb.mxu3 %v1108_v18  ;;  %1313 = vmatpush.msrb.mxu2 %v1173_v42 }
  0xc1   :  { %841 = vmatmul.f32.vlgmr.msrb.gmra.mxu0 %v11949_v25  ;;  %910 = vmatmul.f32.gmra.mxu1 %v11918_v1 }
  0xc2   :  { %1214 = vmatpush.msrb.mxu0 %v1160_v5  ;;  %1352 = vmatpush.msrb.mxu3 %v1110_v19  ;;  %v194_v5 = vld [vmem:[%s18774_s3 + $0x40] sm:$0xff] }
  0xc3   :  { %953 = vmatmul.f32.gmra.mxu2 %v11929_v7  ;;  %1264 = vmatpush.msrb.mxu1 %v1112_v41  ;;  %v1398_v13 = vand.u32 4294901760, %v194_v5 }
  0xc4   :  { %1217 = vmatpush.msrb.mxu0 %v1166_v23  ;;  %1317 = vmatpush.msrb.mxu2 %v1179_v46 }
  0xc5   :  { %996 = vmatmul.f32.gmra.mxu3 %v11944_v20  ;;  %v12104_v17 = vsub.f32 %v194_v5, %v1398_v13  ;;  %v104_v5 = vrot.slane %v11888_v12, 6 }
  0xc6   :  { %1220 = vmatpush.msrb.mxu0 %v1172_v39  ;;  %1354 = vmatpush.msrb.mxu3 %v1112_v41  ;;  %v12121_v41 = vsub.f32 %v190_v21, %v1400_v26 }
  0xc7   :  { %v1457_v23 = vand.u32 4294901760, %v12104_v17 }
  0xc8   :  { %1223 = vmatpush.msrb.mxu0 %v1178_v44  ;;  %v1463_v47 = vand.u32 4294901760, %v12121_v41 }
  0xc9   :  { %849 = vmatmul.f32.gmra.mxu0 %v11968_v15  ;;  %914 = vmatmul.f32.gmra.mxu1 %v11946_v22  ;;  %v1458_v36 = vsub.f32 %v12104_v17, %v1457_v23 }
  0xcb   :  { %958 = vmatmul.f32.gmra.mxu2 %v11959_v28  ;;  %v1459_v45 = vand.u32 4294901760, %v1458_v36 }
  0xcd   :  { %1002 = vmatmul.f32.gmra.mxu3 %v11971_v31 }
  0xd1   :  { %857 = vmatmul.f32.gmra.mxu0 %v11984_v34  ;;  %918 = vmatmul.f32.gmra.mxu1 %v11973_v32 }
  0xd3   :  { %963 = vmatmul.f32.gmra.mxu2 %v11980_v27 }
  0xd5   :  { %1008 = vmatmul.f32.gmra.mxu3 %v11987_v35 }
  0xd6   :  { %v351_v51 = vpop.f32.mrf.mxu1 }
  0xd9   :  { %865 = vmatmul.f32.gmra.mxu0 %v11995_v38  ;;  %1078 = vmatmul.f32.vlgmr.msra.gmra.mxu1 %v11920_v2 }
  0xdb   :  { %1119 = vmatmul.f32.vlgmr.msra.gmra.mxu2 %v11949_v25  ;;  %v12086_v25 = vsub.f32 %v198_v56, %v12081_v58 }
  0xdd   :  { %1184 = vmatmul.f32.vlgmr.msra.gmra.mxu3 %v11920_v2  ;;  %1504 = vmatpush.msra.mxu2 %v12086_v25  ;;  %v1451_v61 = vand.u32 4294901760, %v12086_v25 }
  0xde   :  { %v286_v52 = vpop.f32.mrf.mxu0  ;;  %v355_v53 = vpop.f32.mrf.mxu1  ;;  %1548 = vmatpush.msra.mxu3 %v12081_v58 }
  0xdf   :  { %v352_v54 = vadd.f32 %v351_v51, %v286_v52  ;;  %v393_v55 = vpop.f32.mrf.mxu2  ;;  %v1452_v0 = vsub.f32 %v12086_v25, %v1451_v61  ;;  %1507 = vmatpush.msra.mxu2 %v12104_v17  ;;  %v1464_v51 = vsub.f32 %v12121_v41, %v1463_v47 }
  0xe0   :  { %v435_v57 = vpop.f32.mrf.mxu3  ;;  %1550 = vmatpush.msra.mxu3 %v1398_v13 }
  0xe1   :  { %v394_v59 = vadd.f32 %v393_v55, %v352_v54  ;;  %1041 = vmatmul.f32.vlgmr.msra.gmra.mxu0 %v11920_v2  ;;  %1082 = vmatmul.f32.gmra.mxu1 %v11918_v1 }
  0xe2   :  { %1397 = vmatpush.msra.mxu0 %v12081_v58  ;;  %1552 = vmatpush.msra.mxu3 %v1400_v26 }
  0xe3   :  { %v12090_v60 = vadd.f32 %v435_v57, %v394_v59  ;;  %1127 = vmatmul.f32.gmra.mxu2 %v11968_v15  ;;  %v1453_v15 = vand.u32 4294901760, %v1452_v0 }
  0xe4   :  { %1399 = vmatpush.msra.mxu0 %v1398_v13  ;;  %1510 = vmatpush.msra.mxu2 %v12121_v41 }
  0xe5   :  { %1188 = vmatmul.f32.gmra.mxu3 %v11918_v1  ;;  %1454 = vmatpush.msra.mxu1 %v1453_v15  ;;  %v166_v15 = vadd.s32 4294967294, %v122_v33 }
  0xe6   :  { %v294_v62 = vpop.f32.mrf.mxu0  ;;  %v359_v63 = vpop.f32.mrf.mxu1  ;;  %1401 = vmatpush.msra.mxu0 %v1400_v26 }
  0xe7   :  { %v356_v3 = vadd.f32 %v355_v53, %v294_v62  ;;  %v398_v4 = vpop.f32.mrf.mxu2  ;;  %1460 = vmatpush.msra.mxu1 %v1459_v45  ;;  %v1465_v53 = vand.u32 4294901760, %v1464_v51  ;;  %vm170_vm9 = vcmp.ge.s32.totalorder %v166_v15, 0 }
  0xe8   :  { %v441_v10 = vpop.f32.mrf.mxu3 }
  0xe9   :  { %v399_v14 = vadd.f32 %v398_v4, %v356_v3  ;;  %1045 = vmatmul.f32.gmra.mxu0 %v11918_v1  ;;  %1086 = vmatmul.f32.gmra.mxu1 %v11946_v22 }
  0xea   :  { %1466 = vmatpush.msra.mxu1 %v1465_v53 }
  0xeb   :  { %v12106_v18 = vadd.f32 %v441_v10, %v399_v14  ;;  %1135 = vmatmul.f32.gmra.mxu2 %v11984_v34  ;;  %v186_v34 = vld [vmem:[%s18774_s3] sm:$0xff]  ;;  %v107_v10 = vrot.slane %v11890_v49, 6 }
  0xec   :  { %v1402_v42 = vand.u32 4294901760, %v186_v34 }
  0xed   :  { %1192 = vmatmul.f32.gmra.mxu3 %v11946_v22  ;;  %v114_v33 = vsel %vm110_vm8, %v107_v10, %v104_v5 }
  0xee   :  { %v302_v29 = vpop.f32.mrf.mxu0  ;;  %v363_v19 = vpop.f32.mrf.mxu1  ;;  %v12126_v48 = vsub.f32 %v186_v34, %v1402_v42  ;;  %1403 = vmatpush.msra.mxu0 %v1402_v42  ;;  %1554 = vmatpush.msra.mxu3 %v1402_v42  ;;  %v105_v34 = vrot.slane %v11892_v50, 6 }
  0xef   :  { %v360_v39 = vadd.f32 %v359_v63, %v302_v29  ;;  %v403_v40 = vpop.f32.mrf.mxu2 }
  0xf0   :  { %v447_v44 = vpop.f32.mrf.mxu3  ;;  %v1469_v52 = vand.u32 4294901760, %v12126_v48  ;;  %1513 = vmatpush.msra.mxu2 %v12126_v48 }
  0xf1   :  { %v404_v46 = vadd.f32 %v403_v40, %v360_v39  ;;  %1049 = vmatmul.f32.gmra.mxu0 %v11946_v22  ;;  %1090 = vmatmul.f32.gmra.mxu1 %v11973_v32  ;;  %v195_v40 = vld [vmem:[%s18774_s3 + $0x48] sm:$0xff] }
  0xf2   :  { %v1470_v54 = vsub.f32 %v12126_v48, %v1469_v52 }
  0xf3   :  { %v12129_v9 = vadd.f32 %v447_v44, %v404_v46  ;;  %1143 = vmatmul.f32.gmra.mxu2 %v11995_v38  ;;  %v113_v44 = vsel %vm110_vm8, %v104_v5, %v105_v34 }
  0xf4   :  { %v1471_v62 = vand.u32 4294901760, %v1470_v54  ;;  %v191_v54 = vld [vmem:[%s18774_s3 + $0x28] sm:$0xff] }
  0xf5   :  { %1196 = vmatmul.f32.gmra.mxu3 %v11973_v32 }
  0xf6   :  { %v310_v55 = vpop.f32.mrf.mxu0  ;;  %v523_v56 = vpop.f32.mrf.mxu1  ;;  %1472 = vmatpush.msra.mxu1 %v1471_v62 }
  0xf7   :  { %v364_v57 = vadd.f32 %v363_v19, %v310_v55  ;;  %v408_v59 = vpop.f32.mrf.mxu2 }
  0xf8   :  { %v453_v38 = vpop.f32.mrf.mxu3 }
  0xf9   :  { %v409_v63 = vadd.f32 %v408_v59, %v364_v57  ;;  %1053 = vmatmul.f32.gmra.mxu0 %v11973_v32  ;;  %1268 = vmatmul.f32.vlgmr.msrb.gmra.mxu1 %v11935_v16 }
  0xfa   :  { %1638 = vmatpush.msrb.mxu1 %v12081_v58 }
  0xfb   :  { %v12139_v0 = vadd.f32 %v453_v38, %v409_v63  ;;  %1319 = vmatmul.f32.vlgmr.msrb.gmra.mxu2 %v11920_v2 }
  0xfc   :  { %1640 = vmatpush.msrb.mxu1 %v1398_v13 }
  0xfd   :  { %1356 = vmatmul.f32.vlgmr.msrb.gmra.mxu3 %v11920_v2 }
  0xfe   :  { %v486_v3 = vpop.f32.mrf.mxu0  ;;  %v527_v4 = vpop.f32.mrf.mxu1  ;;  %1642 = vmatpush.msrb.mxu1 %v1400_v26 }
  0xff   :  { %v487_v16 = vadd.f32 %v486_v3, %v12090_v60  ;;  %v564_v14 = vpop.f32.mrf.mxu2 }
 0x100   :  { %v629_v21 = vpop.f32.mrf.mxu3  ;;  %1644 = vmatpush.msrb.mxu1 %v1402_v42 }
 0x101   :  { %v12150_v58 = vadd.f32 %v629_v21, %v564_v14  ;;  %1226 = vmatmul.f32.vlgmr.msrb.gmra.mxu0 %v11926_v6  ;;  %1274 = vmatmul.f32.gmra.mxu1 %v11944_v20  ;;  %v12154_v2 = vadd.f32 %v523_v56, %v487_v16  ;;  %v199_v6 = vld [vmem:[%s18774_s3 + $0x68] sm:$0xff]  ;;  %v182_v20 = vsel %vm170_vm9, %v114_v33, 0.0  ;;  %v12219_v56 = vand.u32 4294901760, %v191_v54 }
 0x102   :  { %1595 = vmatpush.msrb.mxu0 %v1451_v61  ;;  %v12166_v60 = vand.u32 4294901760, %v199_v6  ;;  %v1373_v36 = vsel %vm30_vm0, %v182_v20, 0 }
 0x103   :  { %1323 = vmatmul.f32.gmra.mxu2 %v11918_v1  ;;  %v12189_v39 = vand.u32 4294901760, %v1373_v36 }
 0x104   :  { %1599 = vmatpush.msrb.mxu0 %v1457_v23  ;;  %1675 = vmatpush.msrb.mxu2 %v12166_v60  ;;  %v12173_v25 = vsub.f32 %v199_v6, %v12166_v60 }
 0x105   :  { %1360 = vmatmul.f32.gmra.mxu3 %v11918_v1  ;;  %v12205_v48 = vsub.f32 %v1373_v36, %v12189_v39 }
 0x106   :  { %v490_v13 = vpop.f32.mrf.mxu0  ;;  %v531_v26 = vpop.f32.mrf.mxu1  ;;  %1603 = vmatpush.msrb.mxu0 %v1463_v47  ;;  %v1729_v17 = vand.u32 4294901760, %v12173_v25 }
 0x107   :  { %v491_v61 = vadd.f32 %v490_v13, %v12106_v18  ;;  %v572_v29 = vpop.f32.mrf.mxu2  ;;  %v12229_v59 = vand.u32 4294901760, %v12205_v48 }
 0x108   :  { %v633_v19 = vpop.f32.mrf.mxu3  ;;  %1607 = vmatpush.msrb.mxu0 %v1469_v52  ;;  %v1730_v18 = vsub.f32 %v12173_v25, %v1729_v17  ;;  %v168_v52 = vadd.s32 4294967294, %v136_v37  ;;  %v187_v37 = vld [vmem:[%s18774_s3 + $0x8] sm:$0xff] }
 0x109   :  { %v12178_v23 = vadd.f32 %v633_v19, %v572_v29  ;;  %1231 = vmatmul.f32.gmra.mxu0 %v11929_v7  ;;  %1280 = vmatmul.f32.gmra.mxu1 %v11971_v31  ;;  %v12182_v1 = vadd.f32 %v527_v4, %v491_v61  ;;  %v12194_v7 = vand.u32 4294901760, %v195_v40 }
 0x10a   :  { %v1731_v41 = vand.u32 4294901760, %v1730_v18  ;;  %vm172_vm10 = vcmp.ge.s32.totalorder %v168_v52, 0 }
 0x10b   :  { %1327 = vmatmul.f32.gmra.mxu2 %v11946_v22  ;;  %v12201_v45 = vsub.f32 %v195_v40, %v12194_v7 }
 0x10c   :  { %1732 = vmatpush.msrb.mxu3 %v1731_v41  ;;  %1677 = vmatpush.msrb.mxu2 %v12194_v7 }
 0x10d   :  { %1364 = vmatmul.f32.gmra.mxu3 %v11946_v22  ;;  %v106_v22 = vrot.slane %v11894_v11, 6  ;;  %v1735_v53 = vand.u32 4294901760, %v12201_v45 }
 0x10e   :  { %v494_v31 = vpop.f32.mrf.mxu0  ;;  %v535_v42 = vpop.f32.mrf.mxu1  ;;  %1679 = vmatpush.msrb.mxu2 %v12219_v56 }
 0x10f   :  { %v495_v46 = vadd.f32 %v494_v31, %v12129_v9  ;;  %v580_v47 = vpop.f32.mrf.mxu2  ;;  %v1376_v9 = vsel %vm30_vm0, %v113_v44, 0  ;;  %v1736_v30 = vsub.f32 %v12201_v45, %v1735_v53  ;;  %v112_v38 = vsel %vm110_vm8, %v105_v34, %v106_v22 }
 0x110   :  { %v637_v51 = vpop.f32.mrf.mxu3  ;;  %v12236_v62 = vand.u32 4294901760, %v1376_v9  ;;  %v184_v21 = vsel %vm172_vm10, %v112_v38, 0.0 }
 0x111   :  { %v12214_v55 = vadd.f32 %v637_v51, %v580_v47  ;;  %1236 = vmatmul.f32.gmra.mxu0 %v11959_v28  ;;  %1286 = vmatmul.f32.gmra.mxu1 %v11987_v35  ;;  %v12221_v57 = vadd.f32 %v531_v26, %v495_v46  ;;  %v12232_v28 = vsub.f32 %v191_v54, %v12219_v56  ;;  %v12234_v35 = vand.u32 4294901760, %v187_v37 }
 0x112   :  { %v1737_v63 = vand.u32 4294901760, %v1736_v30  ;;  %v12253_v13 = vsub.f32 %v1376_v9, %v12236_v62  ;;  %v1379_v19 = vsel %vm30_vm0, %v184_v21, 0 }
 0x113   :  { %1331 = vmatmul.f32.gmra.mxu2 %v11973_v32  ;;  %v1741_v3 = vand.u32 4294901760, %v12232_v28  ;;  %v12244_v4 = vsub.f32 %v187_v37, %v12234_v35  ;;  %v12274_v18 = vand.u32 4294901760, %v1379_v19 }
 0x114   :  { %1738 = vmatpush.msrb.mxu3 %v1737_v63  ;;  %1681 = vmatpush.msrb.mxu2 %v12234_v35  ;;  %v12272_v34 = vand.u32 4294901760, %v12253_v13 }
 0x115   :  { %1368 = vmatmul.f32.gmra.mxu3 %v11973_v32  ;;  %v1742_v33 = vsub.f32 %v12232_v28, %v1741_v3  ;;  %v1747_v6 = vand.u32 4294901760, %v12244_v4  ;;  %v1407_v32 = vsub.f32 %v12205_v48, %v12229_v59  ;;  %v12288_v47 = vsub.f32 %v1379_v19, %v12274_v18 }
 0x116   :  { %v498_v5 = vpop.f32.mrf.mxu0  ;;  %v713_v15 = vpop.f32.mrf.mxu1 }
 0x117   :  { %v499_v16 = vadd.f32 %v498_v5, %v12139_v0  ;;  %v588_v14 = vpop.f32.mrf.mxu2  ;;  %v1743_v0 = vand.u32 4294901760, %v1742_v33  ;;  %v1748_v61 = vsub.f32 %v12244_v4, %v1747_v6  ;;  %v12303_v52 = vand.u32 4294901760, %v12288_v47 }
 0x118   :  { %v641_v20 = vpop.f32.mrf.mxu3 }
 0x119   :  { %v12255_v26 = vadd.f32 %v641_v20, %v588_v14  ;;  %1241 = vmatmul.f32.gmra.mxu0 %v11980_v27  ;;  %1474 = vmatmul.f32.vlgmr.msra.gmra.mxu1 %v12189_v39  ;;  %v12260_v29 = vadd.f32 %v535_v42, %v499_v16  ;;  %v1749_v36 = vand.u32 4294901760, %v1748_v61  ;;  %v12269_v27 = vand.u32 4294901760, %v1407_v32 }
 0x11a   :  { %1826 = vmatpush.msra.mxu1 %v12166_v60  ;;  %1744 = vmatpush.msrb.mxu3 %v1743_v0  ;;  %v1423_v30 = vsub.f32 %v12288_v47, %v12303_v52 }
 0x11b   :  { %1516 = vmatmul.f32.vlgmr.msra.gmra.mxu2 %v12205_v48 }
 0x11c   :  { %1873 = vmatpush.msra.mxu2 %v1729_v17  ;;  %1828 = vmatpush.msra.mxu1 %v12194_v7  ;;  %v111_v17 = vsel %vm110_vm8, %v106_v22, %v107_v10 }
 0x11d   :  { %1558 = vmatmul.f32.vlgmr.msra.gmra.mxu3 %v12229_v59  ;;  %v1382_v51 = vsel %vm30_vm0, %v111_v17, 0 }
 0x11e   :  { %v671_v40 = vpop.f32.mrf.mxu0  ;;  %v719_v41 = vpop.f32.mrf.mxu1  ;;  %1750 = vmatpush.msrb.mxu3 %v1749_v36  ;;  %1877 = vmatpush.msra.mxu2 %v1735_v53 }
 0x11f   :  { %v672_v31 = vadd.f32 %v671_v40, %v12150_v58  ;;  %v764_v42 = vpop.f32.mrf.mxu2  ;;  %1830 = vmatpush.msra.mxu1 %v12219_v56  ;;  %v1415_v58 = vsub.f32 %v12253_v13, %v12272_v34 }
 0x120   :  { %1916 = vmatpush.msra.mxu3 %v12166_v60  ;;  %v801_v44 = vpop.f32.mrf.mxu3  ;;  %1881 = vmatpush.msra.mxu2 %v1741_v3 }
 0x121   :  { %v714_v46 = vadd.f32 %v713_v15, %v672_v31  ;;  %1409 = vmatmul.f32.vlgmr.msra.gmra.mxu0 %v12269_v27  ;;  %1478 = vmatmul.f32.gmra.mxu1 %v12236_v62  ;;  %v12300_v22 = vand.u32 4294901760, %v1415_v58 }
 0x122   :  { %1782 = vmatpush.msra.mxu0 %v12173_v25  ;;  %1918 = vmatpush.msra.mxu3 %v12194_v7  ;;  %v12305_v25 = vand.u32 4294901760, %v1382_v51 }
 0x123   :  { %v765_v10 = vadd.f32 %v764_v42, %v714_v46  ;;  %1521 = vmatmul.f32.gmra.mxu2 %v12253_v13  ;;  %1832 = vmatpush.msra.mxu1 %v12234_v35 }
 0x124   :  { %1785 = vmatpush.msra.mxu0 %v12201_v45  ;;  %1920 = vmatpush.msra.mxu3 %v12219_v56  ;;  %v12316_v37 = vsub.f32 %v1382_v51, %v12305_v25 }
 0x125   :  { %v12297_v60 = vadd.f32 %v801_v44, %v765_v10  ;;  %1564 = vmatmul.f32.gmra.mxu3 %v12272_v34  ;;  %1885 = vmatpush.msra.mxu2 %v1747_v6 }
 0x126   :  { %v676_v7 = vpop.f32.mrf.mxu0  ;;  %v725_v53 = vpop.f32.mrf.mxu1  ;;  %1788 = vmatpush.msra.mxu0 %v12232_v28  ;;  %1922 = vmatpush.msra.mxu3 %v12234_v35  ;;  %v12325_v38 = vand.u32 4294901760, %v12316_v37 }
 0x127   :  { %v677_v45 = vadd.f32 %v676_v7, %v12178_v23  ;;  %v768_v54 = vpop.f32.mrf.mxu2  ;;  %v12322_v23 = vand.u32 4294901760, %v1423_v30  ;;  %v196_v30 = vld [vmem:[%s18774_s3 + $0x50] sm:$0xff] }
 0x128   :  { %v805_v9 = vpop.f32.mrf.mxu3  ;;  %1791 = vmatpush.msra.mxu0 %v12244_v4  ;;  %v1431_v14 = vsub.f32 %v12316_v37, %v12325_v38 }
 0x129   :  { %v720_v56 = vadd.f32 %v719_v41, %v677_v45  ;;  %1417 = vmatmul.f32.gmra.mxu0 %v12300_v22  ;;  %1482 = vmatmul.f32.gmra.mxu1 %v12274_v18 }
 0x12a   :  { %v12336_v6 = vand.u32 4294901760, %v1431_v14  ;;  %v192_v14 = vld [vmem:[%s18774_s3 + $0x30] sm:$0xff] }
 0x12b   :  { %v769_v28 = vadd.f32 %v768_v54, %v720_v56  ;;  %1526 = vmatmul.f32.gmra.mxu2 %v12288_v47 }
 0x12d   :  { %v12319_v35 = vadd.f32 %v805_v9, %v769_v28  ;;  %1570 = vmatmul.f32.gmra.mxu3 %v12303_v52 }
 0x12e   :  { %v681_v63 = vpop.f32.mrf.mxu0  ;;  %v731_v3 = vpop.f32.mrf.mxu1 }
 0x12f   :  { %v682_v4 = vadd.f32 %v681_v63, %v12214_v55  ;;  %v772_v5 = vpop.f32.mrf.mxu2 }
 0x130   :  { %v809_v15 = vpop.f32.mrf.mxu3 }
 0x131   :  { %v726_v16 = vadd.f32 %v725_v53, %v682_v4  ;;  %1425 = vmatmul.f32.gmra.mxu0 %v12322_v23  ;;  %1486 = vmatmul.f32.gmra.mxu1 %v12305_v25 }
 0x133   :  { %v773_v21 = vadd.f32 %v772_v5, %v726_v16  ;;  %1531 = vmatmul.f32.gmra.mxu2 %v12316_v37 }
 0x135   :  { %v12333_v33 = vadd.f32 %v809_v15, %v773_v21  ;;  %1576 = vmatmul.f32.gmra.mxu3 %v12325_v38  ;;  %v1956_v21 = vand.u32 4294901760, %v192_v14 }
 0x136   :  { %v686_v55 = vpop.f32.mrf.mxu0  ;;  %v907_v20 = vpop.f32.mrf.mxu1 }
 0x137   :  { %v687_v32 = vadd.f32 %v686_v55, %v12255_v26  ;;  %v776_v0 = vpop.f32.mrf.mxu2  ;;  %v200_v26 = vld [vmem:[%s18774_s3 + $0x70] sm:$0xff] }
 0x138   :  { %v813_v61 = vpop.f32.mrf.mxu3  ;;  %v12348_v46 = vand.u32 4294901760, %v200_v26 }
 0x139   :  { %v732_v19 = vadd.f32 %v731_v3, %v687_v32  ;;  %1433 = vmatmul.f32.gmra.mxu0 %v12336_v6  ;;  %1646 = vmatmul.f32.vlgmr.msrb.gmra.mxu1 %v12189_v39  ;;  %v1954_v3 = vand.u32 4294901760, %v196_v30 }
 0x13a   :  { %v12353_v51 = vsub.f32 %v200_v26, %v12348_v46 }
 0x13b   :  { %v777_v36 = vadd.f32 %v776_v0, %v732_v19  ;;  %1687 = vmatmul.f32.vlgmr.msrb.gmra.mxu2 %v12269_v27  ;;  %v12371_v5 = vsub.f32 %v196_v30, %v1954_v3  ;;  %v188_v0 = vld [vmem:[%s18774_s3 + $0x10] sm:$0xff] }
 0x13c   :  { %2060 = vmatpush.msrb.mxu2 %v12353_v51  ;;  %v2007_v7 = vand.u32 4294901760, %v12353_v51 }
 0x13d   :  { %v12342_v40 = vadd.f32 %v813_v61, %v777_v36  ;;  %1752 = vmatmul.f32.vlgmr.msrb.gmra.mxu3 %v12189_v39  ;;  %v2013_v16 = vand.u32 4294901760, %v12371_v5  ;;  %v2018_v36 = vsub.f32 %v192_v14, %v1956_v21 }
 0x13e   :  { %v842_v41 = vpop.f32.mrf.mxu0  ;;  %v911_v31 = vpop.f32.mrf.mxu1  ;;  %2104 = vmatpush.msrb.mxu3 %v12348_v46  ;;  %v2008_v54 = vsub.f32 %v12353_v51, %v2007_v7  ;;  %2063 = vmatpush.msrb.mxu2 %v12371_v5 }
 0x13f   :  { %v908_v42 = vadd.f32 %v907_v20, %v842_v41  ;;  %v949_v17 = vpop.f32.mrf.mxu2  ;;  %v2014_v32 = vsub.f32 %v12371_v5, %v2013_v16  ;;  %v1958_v41 = vand.u32 4294901760, %v188_v0  ;;  %v2019_v26 = vand.u32 4294901760, %v2018_v36 }
 0x140   :  { %v991_v44 = vpop.f32.mrf.mxu3  ;;  %v2009_v63 = vand.u32 4294901760, %v2008_v54  ;;  %2106 = vmatpush.msrb.mxu3 %v1954_v3  ;;  %2066 = vmatpush.msrb.mxu2 %v2018_v36 }
 0x141   :  { %v950_v58 = vadd.f32 %v949_v17, %v908_v42  ;;  %1609 = vmatmul.f32.vlgmr.msrb.gmra.mxu0 %v12189_v39  ;;  %1650 = vmatmul.f32.gmra.mxu1 %v12236_v62  ;;  %v2015_v42 = vand.u32 4294901760, %v2014_v32 }
 0x142   :  { %1953 = vmatpush.msrb.mxu0 %v12348_v46  ;;  %2010 = vmatpush.msrb.mxu1 %v2009_v63 }
 0x143   :  { %v12357_v10 = vadd.f32 %v991_v44, %v950_v58  ;;  %1695 = vmatmul.f32.gmra.mxu2 %v12300_v22  ;;  %2108 = vmatpush.msrb.mxu3 %v1956_v21  ;;  %v2024_v44 = vsub.f32 %v188_v0, %v1958_v41 }
 0x144   :  { %1955 = vmatpush.msrb.mxu0 %v1954_v3  ;;  %2016 = vmatpush.msrb.mxu1 %v2015_v42 }
 0x145   :  { %1756 = vmatmul.f32.gmra.mxu3 %v12236_v62  ;;  %2069 = vmatpush.msrb.mxu2 %v2024_v44 }
 0x146   :  { %v850_v53 = vpop.f32.mrf.mxu0  ;;  %v915_v45 = vpop.f32.mrf.mxu1  ;;  %1957 = vmatpush.msrb.mxu0 %v1956_v21  ;;  %2110 = vmatpush.msrb.mxu3 %v1958_v41 }
 0x147   :  { %v912_v9 = vadd.f32 %v911_v31, %v850_v53  ;;  %v954_v56 = vpop.f32.mrf.mxu2  ;;  %v2020_v53 = vsub.f32 %v2018_v36, %v2019_v26 }
 0x148   :  { %v997_v28 = vpop.f32.mrf.mxu3  ;;  %1959 = vmatpush.msrb.mxu0 %v1958_v41 }
 0x149   :  { %v955_v4 = vadd.f32 %v954_v56, %v912_v9  ;;  %1613 = vmatmul.f32.gmra.mxu0 %v12236_v62  ;;  %1654 = vmatmul.f32.gmra.mxu1 %v12274_v18  ;;  %v2021_v54 = vand.u32 4294901760, %v2020_v53 }
 0x14b   :  { %v12373_v15 = vadd.f32 %v997_v28, %v955_v4  ;;  %1703 = vmatmul.f32.gmra.mxu2 %v12322_v23  ;;  %2022 = vmatpush.msrb.mxu1 %v2021_v54 }
 0x14d   :  { %1760 = vmatmul.f32.gmra.mxu3 %v12274_v18 }
 0x14e   :  { %v858_v55 = vpop.f32.mrf.mxu0  ;;  %v919_v20 = vpop.f32.mrf.mxu1 }
 0x14f   :  { %v916_v61 = vadd.f32 %v915_v45, %v858_v55  ;;  %v959_v19 = vpop.f32.mrf.mxu2  ;;  %v2025_v45 = vand.u32 4294901760, %v2024_v44 }
 0x150   :  { %v1003_v31 = vpop.f32.mrf.mxu3 }
 0x151   :  { %v960_v17 = vadd.f32 %v959_v19, %v916_v61  ;;  %1617 = vmatmul.f32.gmra.mxu0 %v12274_v18  ;;  %1658 = vmatmul.f32.gmra.mxu1 %v12305_v25  ;;  %v2026_v9 = vsub.f32 %v2024_v44, %v2025_v45 }
 0x153   :  { %v12390_v58 = vadd.f32 %v1003_v31, %v960_v17  ;;  %1711 = vmatmul.f32.gmra.mxu2 %v12336_v6  ;;  %v2027_v4 = vand.u32 4294901760, %v2026_v9 }
 0x155   :  { %1764 = vmatmul.f32.gmra.mxu3 %v12305_v25  ;;  %2028 = vmatpush.msrb.mxu1 %v2027_v4 }
 0x156   :  { %v866_v56 = vpop.f32.mrf.mxu0  ;;  %v1079_v30 = vpop.f32.mrf.mxu1 }
 0x157   :  { %v920_v28 = vadd.f32 %v919_v20, %v866_v56  ;;  %v964_v63 = vpop.f32.mrf.mxu2 }
 0x158   :  { %v1009_v14 = vpop.f32.mrf.mxu3 }
 0x159   :  { %v965_v55 = vadd.f32 %v964_v63, %v920_v28  ;;  %1621 = vmatmul.f32.gmra.mxu0 %v12305_v25  ;;  %1836 = vmatmul.f32.vlgmr.msra.gmra.mxu1 %v12229_v59 }
 0x15a   :  { %2194 = vmatpush.msra.mxu1 %v12348_v46  ;;  %v201_v46 = vld [vmem:[%s18774_s3 + $0x78] sm:$0xff] }
 0x15b   :  { %v12396_v32 = vadd.f32 %v1009_v14, %v965_v55  ;;  %1887 = vmatmul.f32.vlgmr.msra.gmra.mxu2 %v12189_v39  ;;  %v193_v14 = vld [vmem:[%s18774_s3 + $0x38] sm:$0xff] }
 0x15c   :  { %2196 = vmatpush.msra.mxu1 %v1954_v3 }
 0x15d   :  { %1924 = vmatmul.f32.vlgmr.msra.gmra.mxu3 %v12189_v39 }
 0x15e   :  { %v1042_v20 = vpop.f32.mrf.mxu0  ;;  %v1083_v0 = vpop.f32.mrf.mxu1  ;;  %2198 = vmatpush.msra.mxu1 %v1956_v21 }
 0x15f   :  { %v1043_v61 = vadd.f32 %v1042_v20, %v12357_v10  ;;  %v1120_v19 = vpop.f32.mrf.mxu2  ;;  %v12414_v10 = vand.u32 4294901760, %v201_v46  ;;  %v2234_v20 = vand.u32 4294901760, %v193_v14 }
 0x160   :  { %v1185_v36 = vpop.f32.mrf.mxu3  ;;  %2200 = vmatpush.msra.mxu1 %v1958_v41 }
 0x161   :  { %v12402_v31 = vadd.f32 %v1185_v36, %v1120_v19  ;;  %1794 = vmatmul.f32.vlgmr.msra.gmra.mxu0 %v12205_v48  ;;  %1842 = vmatmul.f32.gmra.mxu1 %v12272_v34  ;;  %v12406_v42 = vadd.f32 %v1079_v30, %v1043_v61  ;;  %v12421_v51 = vsub.f32 %v201_v46, %v12414_v10 }
 0x162   :  { %2151 = vmatpush.msra.mxu0 %v2007_v7  ;;  %2231 = vmatpush.msra.mxu2 %v12414_v10  ;;  %v2296_v19 = vsub.f32 %v193_v14, %v2234_v20 }
 0x163   :  { %1891 = vmatmul.f32.gmra.mxu2 %v12236_v62  ;;  %v2285_v44 = vand.u32 4294901760, %v12421_v51 }
 0x164   :  { %2155 = vmatpush.msra.mxu0 %v2013_v16 }
 0x165   :  { %1928 = vmatmul.f32.gmra.mxu3 %v12236_v62  ;;  %v2286_v16 = vsub.f32 %v12421_v51, %v2285_v44 }
 0x166   :  { %v1046_v3 = vpop.f32.mrf.mxu0  ;;  %v1087_v21 = vpop.f32.mrf.mxu1  ;;  %2159 = vmatpush.msra.mxu0 %v2019_v26 }
 0x167   :  { %v1047_v7 = vadd.f32 %v1046_v3, %v12373_v15  ;;  %v1128_v41 = vpop.f32.mrf.mxu2  ;;  %v197_v15 = vld [vmem:[%s18774_s3 + $0x58] sm:$0xff]  ;;  %v2287_v26 = vand.u32 4294901760, %v2286_v16  ;;  %v2297_v3 = vand.u32 4294901760, %v2296_v19 }
 0x168   :  { %v1189_v17 = vpop.f32.mrf.mxu3  ;;  %2163 = vmatpush.msra.mxu0 %v2025_v45  ;;  %v2232_v54 = vand.u32 4294901760, %v197_v15 }
 0x169   :  { %v12425_v53 = vadd.f32 %v1189_v17, %v1128_v41  ;;  %1799 = vmatmul.f32.gmra.mxu0 %v12253_v13  ;;  %1848 = vmatmul.f32.gmra.mxu1 %v12303_v52  ;;  %v12429_v5 = vadd.f32 %v1083_v0, %v1047_v7 }
 0x16a   :  { %2288 = vmatpush.msra.mxu3 %v2287_v26  ;;  %2233 = vmatpush.msra.mxu2 %v2232_v54  ;;  %v2290_v56 = vsub.f32 %v197_v15, %v2232_v54  ;;  %v2298_v15 = vsub.f32 %v2296_v19, %v2297_v3 }
 0x16b   :  { %1895 = vmatmul.f32.gmra.mxu2 %v12274_v18 }
 0x16c   :  { %v2291_v4 = vand.u32 4294901760, %v2290_v56  ;;  %2235 = vmatpush.msra.mxu2 %v2234_v20 }
 0x16d   :  { %1932 = vmatmul.f32.gmra.mxu3 %v12274_v18 }
 0x16e   :  { %v1050_v45 = vpop.f32.mrf.mxu0  ;;  %v1091_v9 = vpop.f32.mrf.mxu1  ;;  %v2292_v61 = vsub.f32 %v2290_v56, %v2291_v4 }
 0x16f   :  { %v1051_v30 = vadd.f32 %v1050_v45, %v12390_v58  ;;  %v1136_v28 = vpop.f32.mrf.mxu2  ;;  %v189_v58 = vld [vmem:[%s18774_s3 + $0x18] sm:$0xff] }
 0x170   :  { %v1193_v63 = vpop.f32.mrf.mxu3  ;;  %v2236_v36 = vand.u32 4294901760, %v189_v58  ;;  %v2293_v46 = vand.u32 4294901760, %v2292_v61 }
 0x171   :  { %v12441_v55 = vadd.f32 %v1193_v63, %v1136_v28  ;;  %1804 = vmatmul.f32.gmra.mxu0 %v12288_v47  ;;  %1854 = vmatmul.f32.gmra.mxu1 %v12325_v38  ;;  %v12445_v0 = vadd.f32 %v1087_v21, %v1051_v30  ;;  %v2299_v28 = vand.u32 4294901760, %v2298_v15 }
 0x172   :  { %v2302_v7 = vsub.f32 %v189_v58, %v2236_v36  ;;  %2294 = vmatpush.msra.mxu3 %v2293_v46  ;;  %2237 = vmatpush.msra.mxu2 %v2236_v36 }
 0x173   :  { %1899 = vmatmul.f32.gmra.mxu2 %v12305_v25 }
 0x174   :  { %v2303_v26 = vand.u32 4294901760, %v2302_v7  ;;  %2300 = vmatpush.msra.mxu3 %v2299_v28 }
 0x175   :  { %1936 = vmatmul.f32.gmra.mxu3 %v12305_v25 }
 0x176   :  { %v1054_v41 = vpop.f32.mrf.mxu0  ;;  %v1269_v17 = vpop.f32.mrf.mxu1  ;;  %v2304_v63 = vsub.f32 %v2302_v7, %v2303_v26 }
 0x177   :  { %v1055_v21 = vadd.f32 %v1054_v41, %v12396_v32  ;;  %v1144_v16 = vpop.f32.mrf.mxu2 }
 0x178   :  { %v1197_v45 = vpop.f32.mrf.mxu3  ;;  %v2305_v32 = vand.u32 4294901760, %v2304_v63 }
 0x179   :  { %v12453_v30 = vadd.f32 %v1197_v45, %v1144_v16  ;;  %1809 = vmatmul.f32.gmra.mxu0 %v12316_v37  ;;  %2030 = vmatmul.f32.vlgmr.msrb.gmra.mxu1 %v12189_v39  ;;  %v12457_v14 = vadd.f32 %v1091_v9, %v1055_v21 }
 0x17a   :  { %2382 = vmatpush.msrb.mxu1 %v12414_v10  ;;  %2306 = vmatpush.msra.mxu3 %v2305_v32 }
 0x17b   :  { %2072 = vmatmul.f32.vlgmr.msrb.gmra.mxu2 %v12205_v48 }
 0x17c   :  { %2429 = vmatpush.msrb.mxu2 %v2285_v44  ;;  %2384 = vmatpush.msrb.mxu1 %v2232_v54 }
 0x17d   :  { %2114 = vmatmul.f32.vlgmr.msrb.gmra.mxu3 %v12229_v59 }
 0x17e   :  { %v1227_v61 = vpop.f32.mrf.mxu0  ;;  %v1275_v58 = vpop.f32.mrf.mxu1  ;;  %2433 = vmatpush.msrb.mxu2 %v2291_v4  ;;  %2472 = vmatpush.msrb.mxu3 %v12414_v10 }
 0x17f   :  { %v1228_v46 = vadd.f32 %v1227_v61, %v12402_v31  ;;  %v1320_v41 = vpop.f32.mrf.mxu2  ;;  %2386 = vmatpush.msrb.mxu1 %v2234_v20 }
 0x180   :  { %v1357_v9 = vpop.f32.mrf.mxu3  ;;  %2437 = vmatpush.msrb.mxu2 %v2297_v3  ;;  %2474 = vmatpush.msrb.mxu3 %v2232_v54 }
 0x181   :  { %v1270_v21 = vadd.f32 %v1269_v17, %v1228_v46  ;;  %1965 = vmatmul.f32.vlgmr.msrb.gmra.mxu0 %v12269_v27  ;;  %2034 = vmatmul.f32.gmra.mxu1 %v12236_v62 }
 0x182   :  { %2338 = vmatpush.msrb.mxu0 %v12421_v51  ;;  %2388 = vmatpush.msrb.mxu1 %v2236_v36 }
 0x183   :  { %v1321_v44 = vadd.f32 %v1320_v41, %v1270_v21  ;;  %2077 = vmatmul.f32.gmra.mxu2 %v12253_v13  ;;  %2476 = vmatpush.msrb.mxu3 %v2234_v20 }
 0x184   :  { %2341 = vmatpush.msrb.mxu0 %v2290_v56  ;;  %2441 = vmatpush.msrb.mxu2 %v2303_v26 }
 0x185   :  { %v12468_v31 = vadd.f32 %v1357_v9, %v1321_v44  ;;  %2120 = vmatmul.f32.gmra.mxu3 %v12272_v34 }
 0x186   :  { %v1232_v10 = vpop.f32.mrf.mxu0  ;;  %v1281_v4 = vpop.f32.mrf.mxu1  ;;  %2344 = vmatpush.msrb.mxu0 %v2296_v19  ;;  %2478 = vmatpush.msrb.mxu3 %v2236_v36 }
 0x187   :  { %v1233_v3 = vadd.f32 %v1232_v10, %v12425_v53  ;;  %v1324_v17 = vpop.f32.mrf.mxu2 }
 0x188   :  { %v1361_v51 = vpop.f32.mrf.mxu3  ;;  %2347 = vmatpush.msrb.mxu0 %v2302_v7 }
 0x189   :  { %v1276_v54 = vadd.f32 %v1275_v58, %v1233_v3  ;;  %1973 = vmatmul.f32.gmra.mxu0 %v12300_v22  ;;  %2038 = vmatmul.f32.gmra.mxu1 %v12274_v18  ;;  %v11550_v3 = vld [vmem:[%s18774_s3 + $0x160] sm:$0xff] }
 0x18b   :  { %v1325_v56 = vadd.f32 %v1324_v17, %v1276_v54  ;;  %2082 = vmatmul.f32.gmra.mxu2 %v12288_v47 }
 0x18d   :  { %v12475_v20 = vadd.f32 %v1361_v51, %v1325_v56  ;;  %2126 = vmatmul.f32.gmra.mxu3 %v12303_v52 }
 0x18e   :  { %v1237_v16 = vpop.f32.mrf.mxu0  ;;  %v1287_v19 = vpop.f32.mrf.mxu1 }
 0x18f   :  { %v1238_v36 = vadd.f32 %v1237_v16, %v12441_v55  ;;  %v1328_v53 = vpop.f32.mrf.mxu2 }
 0x190   :  { %v1365_v15 = vpop.f32.mrf.mxu3 }
 0x191   :  { %v1282_v26 = vadd.f32 %v1281_v4, %v1238_v36  ;;  %1981 = vmatmul.f32.gmra.mxu0 %v12322_v23  ;;  %2042 = vmatmul.f32.gmra.mxu1 %v12305_v25 }
 0x193   :  { %v1329_v7 = vadd.f32 %v1328_v53, %v1282_v26  ;;  %2087 = vmatmul.f32.gmra.mxu2 %v12316_v37  ;;  %v11546_v26 = vld [vmem:[%s18774_s3 + $0x140] sm:$0xff] }
 0x195   :  { %v12482_v45 = vadd.f32 %v1365_v15, %v1329_v7  ;;  %2132 = vmatmul.f32.gmra.mxu3 %v12325_v38 }
 0x196   :  { %v1242_v28 = vpop.f32.mrf.mxu0  ;;  %v1475_v63 = vpop.f32.mrf.mxu1 }
 0x197   :  { %v1243_v32 = vadd.f32 %v1242_v28, %v12453_v30  ;;  %v1332_v61 = vpop.f32.mrf.mxu2  ;;  %v2539_v28 = vand.u32 4294901760, %v11546_v26 }
 0x198   :  { %v1369_v55 = vpop.f32.mrf.mxu3 }
 0x199   :  { %v1288_v58 = vadd.f32 %v1287_v19, %v1243_v32  ;;  %1989 = vmatmul.f32.gmra.mxu0 %v12336_v6  ;;  %2202 = vmatmul.f32.vlgmr.msra.gmra.mxu1 %v12189_v39  ;;  %v11542_v32 = vld [vmem:[%s18774_s3 + $0x120] sm:$0xff] }
 0x19b   :  { %v1333_v46 = vadd.f32 %v1332_v61, %v1288_v58  ;;  %2243 = vmatmul.f32.vlgmr.msra.gmra.mxu2 %v12269_v27  ;;  %v12498_v27 = vand.u32 4294901760, %v11550_v3 }
 0x19d   :  { %v12489_v41 = vadd.f32 %v1369_v55, %v1333_v46  ;;  %2308 = vmatmul.f32.vlgmr.msra.gmra.mxu3 %v12189_v39  ;;  %v12502_v51 = vsub.f32 %v11550_v3, %v12498_v27  ;;  %v2541_v55 = vand.u32 4294901760, %v11542_v32 }
 0x19e   :  { %v1410_v9 = vpop.f32.mrf.mxu0  ;;  %v1479_v21 = vpop.f32.mrf.mxu1  ;;  %2689 = vmatpush.msra.mxu3 %v12498_v27 }
 0x19f   :  { %v1411_v44 = vadd.f32 %v1410_v9, %v12154_v2  ;;  %v1517_v10 = vpop.f32.mrf.mxu2  ;;  %2645 = vmatpush.msra.mxu2 %v12502_v51  ;;  %v2592_v16 = vand.u32 4294901760, %v12502_v51  ;;  %v11538_v9 = vld [vmem:[%s18774_s3 + $0x100] sm:$0xff] }
 0x1a0   :  { %v1559_v30 = vpop.f32.mrf.mxu3  ;;  %2691 = vmatpush.msra.mxu3 %v2539_v28 }
 0x1a1   :  { %v1476_v4 = vadd.f32 %v1475_v63, %v1411_v44  ;;  %2165 = vmatmul.f32.vlgmr.msra.gmra.mxu0 %v12189_v39  ;;  %2206 = vmatmul.f32.gmra.mxu1 %v12236_v62  ;;  %v2593_v53 = vsub.f32 %v12502_v51, %v2592_v16 }
 0x1a2   :  { %2538 = vmatpush.msra.mxu0 %v12498_v27  ;;  %2693 = vmatpush.msra.mxu3 %v2541_v55 }
 0x1a3   :  { %v1518_v17 = vadd.f32 %v1517_v10, %v1476_v4  ;;  %2251 = vmatmul.f32.gmra.mxu2 %v12300_v22  ;;  %v2594_v7 = vand.u32 4294901760, %v2593_v53  ;;  %v12535_v10 = vsub.f32 %v11542_v32, %v2541_v55 }
 0x1a4   :  { %2540 = vmatpush.msra.mxu0 %v2539_v28 }
 0x1a5   :  { %v12506_v2 = vadd.f32 %v1559_v30, %v1518_v17  ;;  %2312 = vmatmul.f32.gmra.mxu3 %v12236_v62  ;;  %2595 = vmatpush.msra.mxu1 %v2594_v7  ;;  %v2543_v30 = vand.u32 4294901760, %v11538_v9 }
 0x1a6   :  { %v1418_v54 = vpop.f32.mrf.mxu0  ;;  %v1483_v56 = vpop.f32.mrf.mxu1  ;;  %2542 = vmatpush.msra.mxu0 %v2541_v55 }
 0x1a7   :  { %v1419_v19 = vadd.f32 %v1418_v54, %v12182_v1  ;;  %v1522_v22 = vpop.f32.mrf.mxu2  ;;  %v12521_v1 = vsub.f32 %v11546_v26, %v2539_v28  ;;  %v2604_v54 = vand.u32 4294901760, %v12535_v10  ;;  %2695 = vmatpush.msra.mxu3 %v2543_v30 }
 0x1a8   :  { %v1565_v36 = vpop.f32.mrf.mxu3  ;;  %2544 = vmatpush.msra.mxu0 %v2543_v30 }
 0x1a9   :  { %v1480_v15 = vadd.f32 %v1479_v21, %v1419_v19  ;;  %2169 = vmatmul.f32.gmra.mxu0 %v12236_v62  ;;  %2210 = vmatmul.f32.gmra.mxu1 %v12274_v18  ;;  %v2609_v19 = vsub.f32 %v11538_v9, %v2543_v30 }
 0x1aa   :  { %2648 = vmatpush.msra.mxu2 %v12521_v1 }
 0x1ab   :  { %v1523_v63 = vadd.f32 %v1522_v22, %v1480_v15  ;;  %2259 = vmatmul.f32.gmra.mxu2 %v12322_v23  ;;  %v2598_v23 = vand.u32 4294901760, %v12521_v1  ;;  %v2610_v53 = vand.u32 4294901760, %v2609_v19 }
 0x1ac   :  { %2651 = vmatpush.msra.mxu2 %v12535_v10 }
 0x1ad   :  { %v12526_v61 = vadd.f32 %v1565_v36, %v1523_v63  ;;  %2316 = vmatmul.f32.gmra.mxu3 %v12274_v18  ;;  %v2599_v3 = vsub.f32 %v12521_v1, %v2598_v23  ;;  %v2605_v36 = vsub.f32 %v12535_v10, %v2604_v54  ;;  %v2611_v26 = vsub.f32 %v2609_v19, %v2610_v53 }
 0x1ae   :  { %v1426_v58 = vpop.f32.mrf.mxu0  ;;  %v1487_v46 = vpop.f32.mrf.mxu1  ;;  %2654 = vmatpush.msra.mxu2 %v2609_v19 }
 0x1af   :  { %v1427_v21 = vadd.f32 %v1426_v58, %v12221_v57  ;;  %v1527_v44 = vpop.f32.mrf.mxu2  ;;  %v2600_v22 = vand.u32 4294901760, %v2599_v3  ;;  %v2606_v15 = vand.u32 4294901760, %v2605_v36  ;;  %v2612_v58 = vand.u32 4294901760, %v2611_v26 }
 0x1b0   :  { %v1571_v4 = vpop.f32.mrf.mxu3 }
 0x1b1   :  { %v1484_v17 = vadd.f32 %v1483_v56, %v1427_v21  ;;  %2173 = vmatmul.f32.gmra.mxu0 %v12274_v18  ;;  %2214 = vmatmul.f32.gmra.mxu1 %v12305_v25 }
 0x1b2   :  { %2601 = vmatpush.msra.mxu1 %v2600_v22 }
 0x1b3   :  { %v1528_v57 = vadd.f32 %v1527_v44, %v1484_v17  ;;  %2267 = vmatmul.f32.gmra.mxu2 %v12336_v6 }
 0x1b4   :  { %2607 = vmatpush.msra.mxu1 %v2606_v15 }
 0x1b5   :  { %v12544_v56 = vadd.f32 %v1571_v4, %v1528_v57  ;;  %2320 = vmatmul.f32.gmra.mxu3 %v12305_v25 }
 0x1b6   :  { %v1434_v7 = vpop.f32.mrf.mxu0  ;;  %v1647_v63 = vpop.f32.mrf.mxu1  ;;  %2613 = vmatpush.msra.mxu1 %v2612_v58 }
 0x1b7   :  { %v1435_v1 = vadd.f32 %v1434_v7, %v12260_v29  ;;  %v1532_v32 = vpop.f32.mrf.mxu2 }
 0x1b8   :  { %v1577_v6 = vpop.f32.mrf.mxu3 }
 0x1b9   :  { %v1488_v9 = vadd.f32 %v1487_v46, %v1435_v1  ;;  %2177 = vmatmul.f32.gmra.mxu0 %v12305_v25  ;;  %2392 = vmatmul.f32.vlgmr.msrb.gmra.mxu1 %v12229_v59 }
 0x1ba   :  { %2779 = vmatpush.msrb.mxu1 %v12498_v27 }
 0x1bb   :  { %v1533_v21 = vadd.f32 %v1532_v32, %v1488_v9  ;;  %2443 = vmatmul.f32.vlgmr.msrb.gmra.mxu2 %v12189_v39  ;;  %v11539_v9 = vld [vmem:[%s18774_s3 + $0x108] sm:$0xff] }
 0x1bc   :  { %2781 = vmatpush.msrb.mxu1 %v2539_v28 }
 0x1bd   :  { %v12552_v44 = vadd.f32 %v1577_v6, %v1533_v21  ;;  %2480 = vmatmul.f32.vlgmr.msrb.gmra.mxu3 %v12189_v39  ;;  %v11551_v39 = vld [vmem:[%s18774_s3 + $0x168] sm:$0xff] }
 0x1be   :  { %v1610_v29 = vpop.f32.mrf.mxu0  ;;  %v1651_v10 = vpop.f32.mrf.mxu1  ;;  %2783 = vmatpush.msrb.mxu1 %v2541_v55 }
 0x1bf   :  { %v1611_v4 = vadd.f32 %v1610_v29, %v12506_v2  ;;  %v1688_v46 = vpop.f32.mrf.mxu2 }
 0x1c0   :  { %v1689_v3 = vadd.f32 %v1688_v46, %v12297_v60  ;;  %v1753_v59 = vpop.f32.mrf.mxu3  ;;  %2785 = vmatpush.msrb.mxu1 %v2543_v30  ;;  %v12569_v60 = vand.u32 4294901760, %v11551_v39 }
 0x1c1   :  { %v12557_v17 = vadd.f32 %v1647_v63, %v1611_v4  ;;  %2350 = vmatmul.f32.vlgmr.msrb.gmra.mxu0 %v12205_v48  ;;  %2398 = vmatmul.f32.gmra.mxu1 %v12272_v34 }
 0x1c2   :  { %v12561_v27 = vadd.f32 %v1753_v59, %v1689_v3  ;;  %2736 = vmatpush.msrb.mxu0 %v2592_v16  ;;  %2816 = vmatpush.msrb.mxu2 %v12569_v60  ;;  %v12574_v34 = vsub.f32 %v11551_v39, %v12569_v60 }
 0x1c3   :  { %2447 = vmatmul.f32.gmra.mxu2 %v12236_v62 }
 0x1c4   :  { %2740 = vmatpush.msrb.mxu0 %v2598_v23  ;;  %v2870_v30 = vand.u32 4294901760, %v12574_v34 }
 0x1c5   :  { %2484 = vmatmul.f32.gmra.mxu3 %v12236_v62  ;;  %v2514_v62 = vsel %vm30_vm0, %v11888_v12, 0 }
 0x1c6   :  { %v1614_v48 = vpop.f32.mrf.mxu0  ;;  %v1655_v2 = vpop.f32.mrf.mxu1  ;;  %2744 = vmatpush.msrb.mxu0 %v2604_v54  ;;  %v12594_v54 = vand.u32 4294901760, %v2514_v62 }
 0x1c7   :  { %v1615_v51 = vadd.f32 %v1614_v48, %v12526_v61  ;;  %v1696_v16 = vpop.f32.mrf.mxu2  ;;  %v2871_v61 = vsub.f32 %v12574_v34, %v2870_v30 }
 0x1c8   :  { %v1697_v28 = vadd.f32 %v1696_v16, %v12319_v35  ;;  %v1757_v55 = vpop.f32.mrf.mxu3  ;;  %2748 = vmatpush.msrb.mxu0 %v2610_v53  ;;  %v11547_v35 = vld [vmem:[%s18774_s3 + $0x148] sm:$0xff]  ;;  %v12606_v63 = vsub.f32 %v2514_v62, %v12594_v54 }
 0x1c9   :  { %v12579_v23 = vadd.f32 %v1651_v10, %v1615_v51  ;;  %2355 = vmatmul.f32.gmra.mxu0 %v12253_v13  ;;  %2404 = vmatmul.f32.gmra.mxu1 %v12303_v52  ;;  %v2872_v13 = vand.u32 4294901760, %v2871_v61  ;;  %v12596_v22 = vand.u32 4294901760, %v11547_v35 }
 0x1ca   :  { %v12585_v19 = vadd.f32 %v1757_v55, %v1697_v28 }
 0x1cb   :  { %2451 = vmatmul.f32.gmra.mxu2 %v12274_v18  ;;  %2873 = vmatpush.msrb.mxu3 %v2872_v13  ;;  %v12601_v36 = vsub.f32 %v11547_v35, %v12596_v22 }
 0x1cc   :  { %2818 = vmatpush.msrb.mxu2 %v12596_v22 }
 0x1cd   :  { %2488 = vmatmul.f32.gmra.mxu3 %v12274_v18  ;;  %v2876_v1 = vand.u32 4294901760, %v12601_v36  ;;  %v11543_v18 = vld [vmem:[%s18774_s3 + $0x128] sm:$0xff] }
 0x1ce   :  { %v1618_v52 = vpop.f32.mrf.mxu0  ;;  %v1659_v57 = vpop.f32.mrf.mxu1 }
 0x1cf   :  { %v1619_v53 = vadd.f32 %v1618_v52, %v12544_v56  ;;  %v1704_v15 = vpop.f32.mrf.mxu2  ;;  %v12616_v56 = vand.u32 4294901760, %v11543_v18  ;;  %v2877_v6 = vsub.f32 %v12601_v36, %v2876_v1 }
 0x1d0   :  { %v1705_v26 = vadd.f32 %v1704_v15, %v12333_v33  ;;  %v1761_v7 = vpop.f32.mrf.mxu3  ;;  %v2517_v33 = vsel %vm30_vm0, %v11892_v50, 0 }
 0x1d1   :  { %v12612_v32 = vadd.f32 %v1655_v2, %v1619_v53  ;;  %2360 = vmatmul.f32.gmra.mxu0 %v12288_v47  ;;  %2410 = vmatmul.f32.gmra.mxu1 %v12325_v38  ;;  %v12628_v21 = vsub.f32 %v11543_v18, %v12616_v56  ;;  %v12630_v47 = vand.u32 4294901760, %v11539_v9  ;;  %v12633_v38 = vand.u32 4294901760, %v12606_v63 }
 0x1d2   :  { %v12618_v58 = vadd.f32 %v1761_v7, %v1705_v26  ;;  %v2878_v29 = vand.u32 4294901760, %v2877_v6  ;;  %2820 = vmatpush.msrb.mxu2 %v12616_v56  ;;  %v12637_v10 = vand.u32 4294901760, %v2517_v33 }
 0x1d3   :  { %2455 = vmatmul.f32.gmra.mxu2 %v12305_v25  ;;  %v2882_v4 = vand.u32 4294901760, %v12628_v21  ;;  %v12641_v46 = vsub.f32 %v11539_v9, %v12630_v47  ;;  %v2548_v28 = vsub.f32 %v12606_v63, %v12633_v38 }
 0x1d4   :  { %2879 = vmatpush.msrb.mxu3 %v2878_v29  ;;  %2822 = vmatpush.msrb.mxu2 %v12630_v47  ;;  %v12655_v62 = vsub.f32 %v2517_v33, %v12637_v10 }
 0x1d5   :  { %2492 = vmatmul.f32.gmra.mxu3 %v12305_v25  ;;  %v2883_v2 = vsub.f32 %v12628_v21, %v2882_v4  ;;  %v2888_v51 = vand.u32 4294901760, %v12641_v46 }
 0x1d6   :  { %v1622_v3 = vpop.f32.mrf.mxu0  ;;  %v1837_v59 = vpop.f32.mrf.mxu1  ;;  %v12671_v52 = vand.u32 4294901760, %v12655_v62 }
 0x1d7   :  { %v1623_v39 = vadd.f32 %v1622_v3, %v12552_v44  ;;  %v1712_v48 = vpop.f32.mrf.mxu2  ;;  %v2884_v44 = vand.u32 4294901760, %v2883_v2  ;;  %v2889_v61 = vsub.f32 %v12641_v46, %v2888_v51 }
 0x1d8   :  { %v1713_v25 = vadd.f32 %v1712_v48, %v12342_v40  ;;  %v1765_v16 = vpop.f32.mrf.mxu3  ;;  %v2520_v40 = vsel %vm30_vm0, %v11894_v11, 0  ;;  %v2556_v33 = vsub.f32 %v12655_v62, %v12671_v52 }
 0x1d9   :  { %v12650_v55 = vadd.f32 %v1659_v57, %v1623_v39  ;;  %2365 = vmatmul.f32.gmra.mxu0 %v12316_v37  ;;  %2615 = vmatmul.f32.vlgmr.msra.gmra.mxu1 %v12594_v54  ;;  %v2890_v13 = vand.u32 4294901760, %v2889_v61  ;;  %v12668_v37 = vand.u32 4294901760, %v2548_v28  ;;  %v12673_v57 = vand.u32 4294901760, %v2520_v40 }
 0x1da   :  { %v12658_v35 = vadd.f32 %v1765_v16, %v1713_v25  ;;  %2967 = vmatpush.msra.mxu1 %v12569_v60  ;;  %2885 = vmatpush.msrb.mxu3 %v2884_v44  ;;  %v12696_v9 = vand.u32 4294901760, %v2556_v33 }
 0x1db   :  { %2657 = vmatmul.f32.vlgmr.msra.gmra.mxu2 %v12606_v63  ;;  %v12683_v6 = vsub.f32 %v2520_v40, %v12673_v57 }
 0x1dc   :  { %3014 = vmatpush.msra.mxu2 %v2870_v30  ;;  %2969 = vmatpush.msra.mxu1 %v12596_v22 }
 0x1dd   :  { %2699 = vmatmul.f32.vlgmr.msra.gmra.mxu3 %v12633_v38  ;;  %v12699_v29 = vand.u32 4294901760, %v12683_v6 }
 0x1de   :  { %v1795_v53 = vpop.f32.mrf.mxu0  ;;  %v1843_v15 = vpop.f32.mrf.mxu1  ;;  %2891 = vmatpush.msrb.mxu3 %v2890_v13  ;;  %3018 = vmatpush.msra.mxu2 %v2876_v1 }
 0x1df   :  { %v1796_v26 = vadd.f32 %v1795_v53, %v12561_v27  ;;  %v1888_v7 = vpop.f32.mrf.mxu2  ;;  %2971 = vmatpush.msra.mxu1 %v12616_v56  ;;  %v2523_v27 = vsel %vm30_vm0, %v11890_v49, 0  ;;  %v2564_v39 = vsub.f32 %v12683_v6, %v12699_v29 }
 0x1e0   :  { %3057 = vmatpush.msra.mxu3 %v12569_v60  ;;  %v1925_v30 = vpop.f32.mrf.mxu3  ;;  %3022 = vmatpush.msra.mxu2 %v2882_v4 }
 0x1e1   :  { %v1838_v18 = vadd.f32 %v1837_v59, %v1796_v26  ;;  %2550 = vmatmul.f32.vlgmr.msra.gmra.mxu0 %v12668_v37  ;;  %2619 = vmatmul.f32.gmra.mxu1 %v12637_v10 }
 0x1e2   :  { %2923 = vmatpush.msra.mxu0 %v12574_v34  ;;  %3059 = vmatpush.msra.mxu3 %v12596_v22  ;;  %v12701_v34 = vand.u32 4294901760, %v2523_v27 }
 0x1e3   :  { %v1889_v60 = vadd.f32 %v1888_v7, %v1838_v18  ;;  %2662 = vmatmul.f32.gmra.mxu2 %v12655_v62  ;;  %2973 = vmatpush.msra.mxu1 %v12630_v47 }
 0x1e4   :  { %2926 = vmatpush.msra.mxu0 %v12601_v36  ;;  %3061 = vmatpush.msra.mxu3 %v12616_v56  ;;  %v12712_v48 = vsub.f32 %v2523_v27, %v12701_v34 }
 0x1e5   :  { %v12693_v1 = vadd.f32 %v1925_v30, %v1889_v60  ;;  %2705 = vmatmul.f32.gmra.mxu3 %v12671_v52  ;;  %3026 = vmatpush.msra.mxu2 %v2888_v51 }
 0x1e6   :  { %v1800_v22 = vpop.f32.mrf.mxu0  ;;  %v1849_v4 = vpop.f32.mrf.mxu1  ;;  %2929 = vmatpush.msra.mxu0 %v12628_v21  ;;  %3063 = vmatpush.msra.mxu3 %v12630_v47 }
 0x1e7   :  { %v1801_v36 = vadd.f32 %v1800_v22, %v12585_v19  ;;  %v1892_v56 = vpop.f32.mrf.mxu2  ;;  %v12718_v19 = vand.u32 4294901760, %v2564_v39 }
 0x1e8   :  { %v1929_v3 = vpop.f32.mrf.mxu3  ;;  %2932 = vmatpush.msra.mxu0 %v12641_v46  ;;  %v12721_v46 = vand.u32 4294901760, %v12712_v48 }
 0x1e9   :  { %v1844_v59 = vadd.f32 %v1843_v15, %v1801_v36  ;;  %2558 = vmatmul.f32.gmra.mxu0 %v12696_v9  ;;  %2623 = vmatmul.f32.gmra.mxu1 %v12673_v57 }
 0x1ea   :  { %v2572_v61 = vsub.f32 %v12712_v48, %v12721_v46 }
 0x1eb   :  { %v1893_v21 = vadd.f32 %v1892_v56, %v1844_v59  ;;  %2667 = vmatmul.f32.gmra.mxu2 %v12683_v6 }
 0x1ec   :  { %v12732_v53 = vand.u32 4294901760, %v2572_v61 }
 0x1ed   :  { %v12715_v47 = vadd.f32 %v1929_v3, %v1893_v21  ;;  %2711 = vmatmul.f32.gmra.mxu3 %v12699_v29  ;;  %v11552_v3 = vld [vmem:[%s18774_s3 + $0x170] sm:$0xff] }
 0x1ee   :  { %v1805_v2 = vpop.f32.mrf.mxu0  ;;  %v1855_v51 = vpop.f32.mrf.mxu1  ;;  %v12747_v59 = vand.u32 4294901760, %v11552_v3 }
 0x1ef   :  { %v1806_v25 = vadd.f32 %v1805_v2, %v12618_v58  ;;  %v1896_v16 = vpop.f32.mrf.mxu2 }
 0x1f0   :  { %v1933_v28 = vpop.f32.mrf.mxu3  ;;  %v12751_v21 = vsub.f32 %v11552_v3, %v12747_v59 }
 0x1f1   :  { %v1850_v44 = vadd.f32 %v1849_v4, %v1806_v25  ;;  %2566 = vmatmul.f32.gmra.mxu0 %v12718_v19  ;;  %2627 = vmatmul.f32.gmra.mxu1 %v12701_v34 }
 0x1f2   :  { %v3148_v25 = vand.u32 4294901760, %v12751_v21 }
 0x1f3   :  { %v1897_v40 = vadd.f32 %v1896_v16, %v1850_v44  ;;  %2672 = vmatmul.f32.gmra.mxu2 %v12712_v48 }
 0x1f4   :  { %v3149_v61 = vsub.f32 %v12751_v21, %v3148_v25 }
 0x1f5   :  { %v12729_v13 = vadd.f32 %v1933_v28, %v1897_v40  ;;  %2717 = vmatmul.f32.gmra.mxu3 %v12721_v46 }
 0x1f6   :  { %v1810_v58 = vpop.f32.mrf.mxu0  ;;  %v2031_v15 = vpop.f32.mrf.mxu1 }
 0x1f7   :  { %v1811_v26 = vadd.f32 %v1810_v58, %v12658_v35  ;;  %v1900_v7 = vpop.f32.mrf.mxu2  ;;  %v11548_v58 = vld [vmem:[%s18774_s3 + $0x150] sm:$0xff] }
 0x1f8   :  { %v1937_v30 = vpop.f32.mrf.mxu3 }
 0x1f9   :  { %v1856_v18 = vadd.f32 %v1855_v51, %v1811_v26  ;;  %2574 = vmatmul.f32.gmra.mxu0 %v12732_v53  ;;  %2787 = vmatmul.f32.vlgmr.msrb.gmra.mxu1 %v12594_v54  ;;  %v3095_v26 = vand.u32 4294901760, %v11548_v58 }
 0x1fb   :  { %v1901_v33 = vadd.f32 %v1900_v7, %v1856_v18  ;;  %2828 = vmatmul.f32.vlgmr.msrb.gmra.mxu2 %v12668_v37 }
 0x1fc   :  { %3201 = vmatpush.msrb.mxu2 %v12751_v21 }
 0x1fd   :  { %v12738_v27 = vadd.f32 %v1937_v30, %v1901_v33  ;;  %2893 = vmatmul.f32.vlgmr.msrb.gmra.mxu3 %v12594_v54  ;;  %v11544_v30 = vld [vmem:[%s18774_s3 + $0x130] sm:$0xff] }
 0x1fe   :  { %v1966_v60 = vpop.f32.mrf.mxu0  ;;  %v2035_v22 = vpop.f32.mrf.mxu1  ;;  %3245 = vmatpush.msrb.mxu3 %v12747_v59  ;;  %v3097_v33 = vand.u32 4294901760, %v11544_v30 }
 0x1ff   :  { %v1967_v4 = vadd.f32 %v1966_v60, %v12406_v42  ;;  %v2073_v36 = vpop.f32.mrf.mxu2 }
 0x200   :  { %v2115_v35 = vpop.f32.mrf.mxu3  ;;  %3247 = vmatpush.msrb.mxu3 %v3095_v26  ;;  %v12784_v3 = vsub.f32 %v11544_v30, %v3097_v33 }
 0x201   :  { %v2032_v56 = vadd.f32 %v2031_v15, %v1967_v4  ;;  %2750 = vmatmul.f32.vlgmr.msrb.gmra.mxu0 %v12594_v54  ;;  %2791 = vmatmul.f32.gmra.mxu1 %v12637_v10  ;;  %v3150_v15 = vand.u32 4294901760, %v3149_v61 }
 0x202   :  { %3094 = vmatpush.msrb.mxu0 %v12747_v59  ;;  %3249 = vmatpush.msrb.mxu3 %v3097_v33 }
 0x203   :  { %v2074_v39 = vadd.f32 %v2073_v36, %v2032_v56  ;;  %2836 = vmatmul.f32.gmra.mxu2 %v12696_v9  ;;  %3151 = vmatpush.msrb.mxu1 %v3150_v15  ;;  %v11540_v36 = vld [vmem:[%s18774_s3 + $0x110] sm:$0xff] }
 0x204   :  { %3096 = vmatpush.msrb.mxu0 %v3095_v26 }
 0x205   :  { %v12755_v42 = vadd.f32 %v2115_v35, %v2074_v39  ;;  %2897 = vmatmul.f32.gmra.mxu3 %v12637_v10  ;;  %v3099_v39 = vand.u32 4294901760, %v11540_v36 }
 0x206   :  { %v1974_v2 = vpop.f32.mrf.mxu0  ;;  %v2039_v51 = vpop.f32.mrf.mxu1  ;;  %3098 = vmatpush.msrb.mxu0 %v3097_v33 }
 0x207   :  { %v1975_v16 = vadd.f32 %v1974_v2, %v12429_v5  ;;  %v2078_v28 = vpop.f32.mrf.mxu2  ;;  %v12770_v5 = vsub.f32 %v11548_v58, %v3095_v26  ;;  %v3165_v61 = vsub.f32 %v11540_v36, %v3099_v39  ;;  %3251 = vmatpush.msrb.mxu3 %v3099_v39 }
 0x208   :  { %v2121_v44 = vpop.f32.mrf.mxu3  ;;  %3100 = vmatpush.msrb.mxu0 %v3099_v39 }
 0x209   :  { %v2036_v40 = vadd.f32 %v2035_v22, %v1975_v16  ;;  %2754 = vmatmul.f32.gmra.mxu0 %v12637_v10  ;;  %2795 = vmatmul.f32.gmra.mxu1 %v12673_v57  ;;  %v3154_v4 = vand.u32 4294901760, %v12770_v5  ;;  %v3166_v15 = vand.u32 4294901760, %v3165_v61 }
 0x20a   :  { %3204 = vmatpush.msrb.mxu2 %v12770_v5 }
 0x20b   :  { %v2079_v7 = vadd.f32 %v2078_v28, %v2036_v40  ;;  %2844 = vmatmul.f32.gmra.mxu2 %v12718_v19  ;;  %v3155_v16 = vsub.f32 %v12770_v5, %v3154_v4  ;;  %v3167_v5 = vsub.f32 %v3165_v61, %v3166_v15 }
 0x20c   :  { %3207 = vmatpush.msrb.mxu2 %v12784_v3 }
 0x20d   :  { %v12775_v18 = vadd.f32 %v2121_v44, %v2079_v7  ;;  %2901 = vmatmul.f32.gmra.mxu3 %v12673_v57  ;;  %v3160_v44 = vand.u32 4294901760, %v12784_v3  ;;  %v3156_v40 = vand.u32 4294901760, %v3155_v16 }
 0x20e   :  { %v1982_v60 = vpop.f32.mrf.mxu0  ;;  %v2043_v22 = vpop.f32.mrf.mxu1  ;;  %3210 = vmatpush.msrb.mxu2 %v3165_v61 }
 0x20f   :  { %v1983_v35 = vadd.f32 %v1982_v60, %v12445_v0  ;;  %v2083_v56 = vpop.f32.mrf.mxu2  ;;  %v3161_v58 = vsub.f32 %v12784_v3, %v3160_v44  ;;  %3157 = vmatpush.msrb.mxu1 %v3156_v40 }
 0x210   :  { %v2127_v2 = vpop.f32.mrf.mxu3 }
 0x211   :  { %v2040_v28 = vadd.f32 %v2039_v51, %v1983_v35  ;;  %2758 = vmatmul.f32.gmra.mxu0 %v12673_v57  ;;  %2799 = vmatmul.f32.gmra.mxu1 %v12701_v34  ;;  %v3162_v7 = vand.u32 4294901760, %v3161_v58 }
 0x213   :  { %v2084_v0 = vadd.f32 %v2083_v56, %v2040_v28  ;;  %2852 = vmatmul.f32.gmra.mxu2 %v12732_v53  ;;  %3163 = vmatpush.msrb.mxu1 %v3162_v7  ;;  %v3168_v56 = vand.u32 4294901760, %v3167_v5 }
 0x215   :  { %v12793_v51 = vadd.f32 %v2127_v2, %v2084_v0  ;;  %2905 = vmatmul.f32.gmra.mxu3 %v12701_v34  ;;  %3169 = vmatpush.msrb.mxu1 %v3168_v56 }
 0x216   :  { %v1990_v30 = vpop.f32.mrf.mxu0  ;;  %v2203_v60 = vpop.f32.mrf.mxu1 }
 0x217   :  { %v1991_v36 = vadd.f32 %v1990_v30, %v12457_v14  ;;  %v2088_v35 = vpop.f32.mrf.mxu2 }
 0x218   :  { %v2133_v16 = vpop.f32.mrf.mxu3 }
 0x219   :  { %v2044_v28 = vadd.f32 %v2043_v22, %v1991_v36  ;;  %2762 = vmatmul.f32.gmra.mxu0 %v12701_v34  ;;  %2977 = vmatmul.f32.vlgmr.msra.gmra.mxu1 %v12633_v38 }
 0x21a   :  { %3335 = vmatpush.msra.mxu1 %v12747_v59 }
 0x21b   :  { %v2089_v3 = vadd.f32 %v2088_v35, %v2044_v28  ;;  %3028 = vmatmul.f32.vlgmr.msra.gmra.mxu2 %v12594_v54 }
 0x21c   :  { %3337 = vmatpush.msra.mxu1 %v3095_v26 }
 0x21d   :  { %v12801_v2 = vadd.f32 %v2133_v16, %v2089_v3  ;;  %3065 = vmatmul.f32.vlgmr.msra.gmra.mxu3 %v12594_v54 }
 0x21e   :  { %v2166_v14 = vpop.f32.mrf.mxu0  ;;  %v2207_v61 = vpop.f32.mrf.mxu1  ;;  %3339 = vmatpush.msra.mxu1 %v3097_v33 }
 0x21f   :  { %v2167_v40 = vadd.f32 %v2166_v14, %v12755_v42  ;;  %v2244_v22 = vpop.f32.mrf.mxu2  ;;  %v11553_v42 = vld [vmem:[%s18774_s3 + $0x178] sm:$0xff] }
 0x220   :  { %v2245_v0 = vadd.f32 %v2244_v22, %v12468_v31  ;;  %v2309_v58 = vpop.f32.mrf.mxu3  ;;  %3341 = vmatpush.msra.mxu1 %v3099_v39  ;;  %v12818_v31 = vand.u32 4294901760, %v11553_v42  ;;  %v11545_v22 = vld [vmem:[%s18774_s3 + $0x138] sm:$0xff] }
 0x221   :  { %v12806_v7 = vadd.f32 %v2203_v60, %v2167_v40  ;;  %2935 = vmatmul.f32.vlgmr.msra.gmra.mxu0 %v12606_v63  ;;  %2983 = vmatmul.f32.gmra.mxu1 %v12671_v52 }
 0x222   :  { %v12810_v59 = vadd.f32 %v2309_v58, %v2245_v0  ;;  %3292 = vmatpush.msra.mxu0 %v3148_v25  ;;  %3372 = vmatpush.msra.mxu2 %v12818_v31  ;;  %v12823_v5 = vsub.f32 %v11553_v42, %v12818_v31  ;;  %v3375_v58 = vand.u32 4294901760, %v11545_v22 }
 0x223   :  { %3032 = vmatmul.f32.gmra.mxu2 %v12637_v10 }
 0x224   :  { %3296 = vmatpush.msra.mxu0 %v3154_v4  ;;  %v3426_v60 = vand.u32 4294901760, %v12823_v5 }
 0x225   :  { %3069 = vmatmul.f32.gmra.mxu3 %v12637_v10 }
 0x226   :  { %v2170_v26 = vpop.f32.mrf.mxu0  ;;  %v2211_v33 = vpop.f32.mrf.mxu1  ;;  %3300 = vmatpush.msra.mxu0 %v3160_v44  ;;  %v3427_v35 = vsub.f32 %v12823_v5, %v3426_v60 }
 0x227   :  { %v2171_v21 = vadd.f32 %v2170_v26, %v12775_v18  ;;  %v2252_v25 = vpop.f32.mrf.mxu2 }
 0x228   :  { %v2253_v39 = vadd.f32 %v2252_v25, %v12475_v20  ;;  %v2313_v30 = vpop.f32.mrf.mxu3  ;;  %3304 = vmatpush.msra.mxu0 %v3166_v15  ;;  %v11549_v20 = vld [vmem:[%s18774_s3 + $0x158] sm:$0xff]  ;;  %v3428_v18 = vand.u32 4294901760, %v3427_v35 }
 0x229   :  { %v12828_v4 = vadd.f32 %v2207_v61, %v2171_v21  ;;  %2940 = vmatmul.f32.gmra.mxu0 %v12655_v62  ;;  %2989 = vmatmul.f32.gmra.mxu1 %v12699_v29  ;;  %v12839_v44 = vand.u32 4294901760, %v11549_v20 }
 0x22a   :  { %v12832_v36 = vadd.f32 %v2313_v30, %v2253_v39  ;;  %3429 = vmatpush.msra.mxu3 %v3428_v18 }
 0x22b   :  { %3036 = vmatmul.f32.gmra.mxu2 %v12673_v57  ;;  %v3431_v16 = vsub.f32 %v11549_v20, %v12839_v44 }
 0x22c   :  { %3374 = vmatpush.msra.mxu2 %v12839_v44 }
 0x22d   :  { %3073 = vmatmul.f32.gmra.mxu3 %v12673_v57  ;;  %v3432_v40 = vand.u32 4294901760, %v3431_v16 }
 0x22e   :  { %v2174_v15 = vpop.f32.mrf.mxu0  ;;  %v2215_v56 = vpop.f32.mrf.mxu1  ;;  %3376 = vmatpush.msra.mxu2 %v3375_v58 }
 0x22f   :  { %v2175_v28 = vadd.f32 %v2174_v15, %v12793_v51  ;;  %v2260_v3 = vpop.f32.mrf.mxu2  ;;  %v3433_v26 = vsub.f32 %v3431_v16, %v3432_v40  ;;  %v3437_v51 = vsub.f32 %v11545_v22, %v3375_v58 }
 0x230   :  { %v2261_v14 = vadd.f32 %v2260_v3, %v12482_v45  ;;  %v2317_v61 = vpop.f32.mrf.mxu3  ;;  %v11541_v45 = vld [vmem:[%s18774_s3 + $0x118] sm:$0xff] }
 0x231   :  { %v12849_v0 = vadd.f32 %v2211_v33, %v2175_v28  ;;  %2945 = vmatmul.f32.gmra.mxu0 %v12683_v6  ;;  %2995 = vmatmul.f32.gmra.mxu1 %v12721_v46  ;;  %v3377_v21 = vand.u32 4294901760, %v11541_v45  ;;  %v3434_v25 = vand.u32 4294901760, %v3433_v26  ;;  %v3438_v33 = vand.u32 4294901760, %v3437_v51 }
 0x232   :  { %v12853_v42 = vadd.f32 %v2317_v61, %v2261_v14 }
 0x233   :  { %3040 = vmatmul.f32.gmra.mxu2 %v12701_v34  ;;  %v3443_v39 = vsub.f32 %v11541_v45, %v3377_v21  ;;  %3435 = vmatpush.msra.mxu3 %v3434_v25  ;;  %v3439_v15 = vsub.f32 %v3437_v51, %v3438_v33 }
 0x234   :  { %3378 = vmatpush.msra.mxu2 %v3377_v21 }
 0x235   :  { %3077 = vmatmul.f32.gmra.mxu3 %v12701_v34  ;;  %v3444_v28 = vand.u32 4294901760, %v3443_v39  ;;  %v3440_v22 = vand.u32 4294901760, %v3439_v15 }
 0x236   :  { %v2178_v30 = vpop.f32.mrf.mxu0  ;;  %v2393_v35 = vpop.f32.mrf.mxu1 }
 0x237   :  { %v2179_v20 = vadd.f32 %v2178_v30, %v12801_v2  ;;  %v2268_v18 = vpop.f32.mrf.mxu2  ;;  %v3445_v26 = vsub.f32 %v3443_v39, %v3444_v28  ;;  %3441 = vmatpush.msra.mxu3 %v3440_v22 }
 0x238   :  { %v2269_v3 = vadd.f32 %v2268_v18, %v12489_v41  ;;  %v2321_v14 = vpop.f32.mrf.mxu3 }
 0x239   :  { %v12862_v61 = vadd.f32 %v2215_v56, %v2179_v20  ;;  %2950 = vmatmul.f32.gmra.mxu0 %v12712_v48  ;;  %3171 = vmatmul.f32.vlgmr.msrb.gmra.mxu1 %v12594_v54  ;;  %v3446_v2 = vand.u32 4294901760, %v3445_v26 }
 0x23a   :  { %v2322_v45 = vadd.f32 %v2321_v14, %v2269_v3  ;;  %3523 = vmatpush.msrb.mxu1 %v12818_v31 }
 0x23b   :  { %3213 = vmatmul.f32.vlgmr.msrb.gmra.mxu2 %v12606_v63  ;;  %3447 = vmatpush.msra.mxu3 %v3446_v2 }
 0x23c   :  { %3570 = vmatpush.msrb.mxu2 %v3426_v60  ;;  %3525 = vmatpush.msrb.mxu1 %v12839_v44 }
 0x23d   :  { %3255 = vmatmul.f32.vlgmr.msrb.gmra.mxu3 %v12633_v38 }
 0x23e   :  { %v2351_v41 = vpop.f32.mrf.mxu0  ;;  %v2399_v56 = vpop.f32.mrf.mxu1  ;;  %3574 = vmatpush.msrb.mxu2 %v3432_v40  ;;  %3613 = vmatpush.msrb.mxu3 %v12818_v31 }
 0x23f   :  { %v2352_v25 = vadd.f32 %v2351_v41, %v12810_v59  ;;  %v2444_v30 = vpop.f32.mrf.mxu2  ;;  %3527 = vmatpush.msrb.mxu1 %v3375_v58 }
 0x240   :  { %v2481_v20 = vpop.f32.mrf.mxu3  ;;  %3578 = vmatpush.msrb.mxu2 %v3438_v33  ;;  %3615 = vmatpush.msrb.mxu3 %v12839_v44 }
 0x241   :  { %v2394_v18 = vadd.f32 %v2393_v35, %v2352_v25  ;;  %3106 = vmatmul.f32.vlgmr.msrb.gmra.mxu0 %v12668_v37  ;;  %3175 = vmatmul.f32.gmra.mxu1 %v12637_v10 }
 0x242   :  { %3479 = vmatpush.msrb.mxu0 %v12823_v5  ;;  %3529 = vmatpush.msrb.mxu1 %v3377_v21 }
 0x243   :  { %v2445_v60 = vadd.f32 %v2444_v30, %v2394_v18  ;;  %3218 = vmatmul.f32.gmra.mxu2 %v12655_v62  ;;  %3617 = vmatpush.msrb.mxu3 %v3375_v58 }
 0x244   :  { %3482 = vmatpush.msrb.mxu0 %v3431_v16  ;;  %3582 = vmatpush.msrb.mxu2 %v3444_v28 }
 0x245   :  { %v12877_v59 = vadd.f32 %v2481_v20, %v2445_v60  ;;  %3261 = vmatmul.f32.gmra.mxu3 %v12671_v52 }
 0x246   :  { %v2356_v31 = vpop.f32.mrf.mxu0  ;;  %v2405_v40 = vpop.f32.mrf.mxu1  ;;  %3485 = vmatpush.msrb.mxu0 %v3437_v51  ;;  %3619 = vmatpush.msrb.mxu3 %v3377_v21 }
 0x247   :  { %v2357_v33 = vadd.f32 %v2356_v31, %v12832_v36  ;;  %v2448_v5 = vpop.f32.mrf.mxu2 }
 0x248   :  { %v2485_v35 = vpop.f32.mrf.mxu3  ;;  %3488 = vmatpush.msrb.mxu0 %v3443_v39 }
 0x249   :  { %v2400_v44 = vadd.f32 %v2399_v56, %v2357_v33  ;;  %3114 = vmatmul.f32.gmra.mxu0 %v12696_v9  ;;  %3179 = vmatmul.f32.gmra.mxu1 %v12673_v57 }
 0x24b   :  { %v2449_v16 = vadd.f32 %v2448_v5, %v2400_v44  ;;  %3223 = vmatmul.f32.gmra.mxu2 %v12683_v6 }
 0x24d   :  { %v12884_v58 = vadd.f32 %v2485_v35, %v2449_v16  ;;  %3267 = vmatmul.f32.gmra.mxu3 %v12699_v29 }
 0x24e   :  { %v2361_v15 = vpop.f32.mrf.mxu0  ;;  %v2411_v51 = vpop.f32.mrf.mxu1 }
 0x24f   :  { %v2362_v21 = vadd.f32 %v2361_v15, %v12853_v42  ;;  %v2452_v36 = vpop.f32.mrf.mxu2 }
 0x250   :  { %v2489_v28 = vpop.f32.mrf.mxu3 }
 0x251   :  { %v2406_v3 = vadd.f32 %v2405_v40, %v2362_v21  ;;  %3122 = vmatmul.f32.gmra.mxu0 %v12718_v19  ;;  %3183 = vmatmul.f32.gmra.mxu1 %v12701_v34 }
 0x253   :  { %v2453_v39 = vadd.f32 %v2452_v36, %v2406_v3  ;;  %3228 = vmatmul.f32.gmra.mxu2 %v12712_v48  ;;  %v11562_v3 = vld [vmem:[%s18774_s3 + $0x1c0] sm:$0xff] }
 0x255   :  { %v12891_v14 = vadd.f32 %v2489_v28, %v2453_v39  ;;  %3273 = vmatmul.f32.gmra.mxu3 %v12721_v46 }
 0x256   :  { %v2366_v22 = vpop.f32.mrf.mxu0  ;;  %v2616_v26 = vpop.f32.mrf.mxu1 }
 0x257   :  { %v2367_v2 = vadd.f32 %v2366_v22, %v2322_v45  ;;  %v2456_v41 = vpop.f32.mrf.mxu2  ;;  %v3725_v22 = vand.u32 4294901760, %v11562_v3 }
 0x258   :  { %v2493_v56 = vpop.f32.mrf.mxu3 }
 0x259   :  { %v2412_v42 = vadd.f32 %v2411_v51, %v2367_v2  ;;  %3130 = vmatmul.f32.gmra.mxu0 %v12732_v53  ;;  %3343 = vmatmul.f32.vlgmr.msra.gmra.mxu1 %v12594_v54  ;;  %v11558_v2 = vld [vmem:[%s18774_s3 + $0x1a0] sm:$0xff] }
 0x25b   :  { %v2457_v25 = vadd.f32 %v2456_v41, %v2412_v42  ;;  %3384 = vmatmul.f32.vlgmr.msra.gmra.mxu2 %v12668_v37  ;;  %v11566_v37 = vld [vmem:[%s18774_s3 + $0x1e0] sm:$0xff]  ;;  %v12933_v41 = vsub.f32 %v11562_v3, %v3725_v22 }
 0x25c   :  { %v12908_v5 = vand.u32 4294901760, %v11566_v37 }
 0x25d   :  { %v12897_v30 = vadd.f32 %v2493_v56, %v2457_v25  ;;  %3449 = vmatmul.f32.vlgmr.msra.gmra.mxu3 %v12594_v54  ;;  %v3727_v56 = vand.u32 4294901760, %v11558_v2 }
 0x25e   :  { %v2551_v20 = vpop.f32.mrf.mxu0  ;;  %v2620_v18 = vpop.f32.mrf.mxu1  ;;  %v12912_v16 = vsub.f32 %v11566_v37, %v12908_v5  ;;  %3875 = vmatpush.msra.mxu3 %v12908_v5 }
 0x25f   :  { %v2617_v60 = vadd.f32 %v2616_v26, %v2551_v20  ;;  %v2658_v31 = vpop.f32.mrf.mxu2 }
 0x260   :  { %v2700_v40 = vpop.f32.mrf.mxu3  ;;  %3831 = vmatpush.msra.mxu2 %v12912_v16  ;;  %v3778_v21 = vand.u32 4294901760, %v12912_v16  ;;  %3877 = vmatpush.msra.mxu3 %v3725_v22 }
 0x261   :  { %v2659_v45 = vadd.f32 %v2658_v31, %v2617_v60  ;;  %3306 = vmatmul.f32.vlgmr.msra.gmra.mxu0 %v12594_v54  ;;  %3347 = vmatmul.f32.gmra.mxu1 %v12637_v10  ;;  %v3784_v60 = vand.u32 4294901760, %v12933_v41  ;;  %v12940_v31 = vsub.f32 %v11558_v2, %v3727_v56 }
 0x262   :  { %3724 = vmatpush.msra.mxu0 %v12908_v5  ;;  %v3779_v28 = vsub.f32 %v12912_v16, %v3778_v21  ;;  %3834 = vmatpush.msra.mxu2 %v12933_v41 }
 0x263   :  { %v12902_v33 = vadd.f32 %v2700_v40, %v2659_v45  ;;  %3392 = vmatmul.f32.gmra.mxu2 %v12696_v9  ;;  %3879 = vmatpush.msra.mxu3 %v3727_v56 }
 0x264   :  { %v3780_v26 = vand.u32 4294901760, %v3779_v28  ;;  %3726 = vmatpush.msra.mxu0 %v3725_v22  ;;  %3837 = vmatpush.msra.mxu2 %v12940_v31 }
 0x265   :  { %3453 = vmatmul.f32.gmra.mxu3 %v12637_v10 }
 0x266   :  { %v2559_v35 = vpop.f32.mrf.mxu0  ;;  %v2624_v44 = vpop.f32.mrf.mxu1  ;;  %3781 = vmatpush.msra.mxu1 %v3780_v26  ;;  %3728 = vmatpush.msra.mxu0 %v3727_v56 }
 0x267   :  { %v2621_v15 = vadd.f32 %v2620_v18, %v2559_v35  ;;  %v2663_v51 = vpop.f32.mrf.mxu2  ;;  %v3785_v35 = vsub.f32 %v12933_v41, %v3784_v60 }
 0x268   :  { %v2706_v9 = vpop.f32.mrf.mxu3 }
 0x269   :  { %v2664_v36 = vadd.f32 %v2663_v51, %v2621_v15  ;;  %3310 = vmatmul.f32.gmra.mxu0 %v12637_v10  ;;  %3351 = vmatmul.f32.gmra.mxu1 %v12673_v57 }
 0x26b   :  { %v12926_v39 = vadd.f32 %v2706_v9, %v2664_v36  ;;  %3400 = vmatmul.f32.gmra.mxu2 %v12718_v19  ;;  %v11554_v19 = vld [vmem:[%s18774_s3 + $0x180] sm:$0xff]  ;;  %v3786_v9 = vand.u32 4294901760, %v3785_v35 }
 0x26c   :  { %v3729_v40 = vand.u32 4294901760, %v11554_v19 }
 0x26d   :  { %3457 = vmatmul.f32.gmra.mxu3 %v12673_v57  ;;  %3787 = vmatpush.msra.mxu1 %v3786_v9 }
 0x26e   :  { %v2567_v42 = vpop.f32.mrf.mxu0  ;;  %v2628_v25 = vpop.f32.mrf.mxu1  ;;  %v12946_v15 = vsub.f32 %v11554_v19, %v3729_v40  ;;  %3730 = vmatpush.msra.mxu0 %v3729_v40  ;;  %3881 = vmatpush.msra.mxu3 %v3729_v40 }
 0x26f   :  { %v2625_v20 = vadd.f32 %v2624_v44, %v2567_v42  ;;  %v2668_v18 = vpop.f32.mrf.mxu2  ;;  %v3790_v44 = vand.u32 4294901760, %v12940_v31 }
 0x270   :  { %v2712_v45 = vpop.f32.mrf.mxu3  ;;  %v3796_v28 = vand.u32 4294901760, %v12946_v15  ;;  %3840 = vmatpush.msra.mxu2 %v12946_v15 }
 0x271   :  { %v2669_v37 = vadd.f32 %v2668_v18, %v2625_v20  ;;  %3314 = vmatmul.f32.gmra.mxu0 %v12673_v57  ;;  %3355 = vmatmul.f32.gmra.mxu1 %v12701_v34  ;;  %v3791_v36 = vsub.f32 %v12940_v31, %v3790_v44 }
 0x272   :  { %v3797_v26 = vsub.f32 %v12946_v15, %v3796_v28 }
 0x273   :  { %v12949_v51 = vadd.f32 %v2712_v45, %v2669_v37  ;;  %3408 = vmatmul.f32.gmra.mxu2 %v12732_v53  ;;  %v3792_v3 = vand.u32 4294901760, %v3791_v36  ;;  %v12965_v37 = vadd.s32 8, %v11847_v24 }
 0x274   :  { %v3798_v53 = vand.u32 4294901760, %v3797_v26 }
 0x275   :  { %3461 = vmatmul.f32.gmra.mxu3 %v12701_v34  ;;  %3793 = vmatpush.msra.mxu1 %v3792_v3 }
 0x276   :  { %v2575_v2 = vpop.f32.mrf.mxu0  ;;  %v2788_v41 = vpop.f32.mrf.mxu1 }
 0x277   :  { %v2629_v42 = vadd.f32 %v2628_v25, %v2575_v2  ;;  %v2673_v19 = vpop.f32.mrf.mxu2  ;;  %3799 = vmatpush.msra.mxu1 %v3798_v53 }
 0x278   :  { %v2718_v20 = vpop.f32.mrf.mxu3 }
 0x279   :  { %v2674_v18 = vadd.f32 %v2673_v19, %v2629_v42  ;;  %3318 = vmatmul.f32.gmra.mxu0 %v12701_v34  ;;  %3533 = vmatmul.f32.vlgmr.msrb.gmra.mxu1 %v12633_v38 }
 0x27a   :  { %3965 = vmatpush.msrb.mxu1 %v12908_v5  ;;  %v3654_v5 = vrot.slane %v11892_v50, 1 }
 0x27b   :  { %v12959_v31 = vadd.f32 %v2718_v20, %v2674_v18  ;;  %3584 = vmatmul.f32.vlgmr.msrb.gmra.mxu2 %v12594_v54 }
 0x27c   :  { %3967 = vmatpush.msrb.mxu1 %v3725_v22  ;;  %v18782_v22 = vand.u32 15, %v12965_v37 }
 0x27d   :  { %3621 = vmatmul.f32.vlgmr.msrb.gmra.mxu3 %v12594_v54  ;;  %v3653_v54 = vrot.slane %v11888_v12, 1 }
 0x27e   :  { %v2751_v25 = vpop.f32.mrf.mxu0  ;;  %v2792_v45 = vpop.f32.mrf.mxu1  ;;  %3969 = vmatpush.msrb.mxu1 %v3727_v56  ;;  %v12999_v3 = vadd.s32 1, %v18782_v22 }
 0x27f   :  { %v2752_v35 = vadd.f32 %v2751_v25, %v12902_v33  ;;  %v2829_v15 = vpop.f32.mrf.mxu2 }
 0x280   :  { %v2894_v38 = vpop.f32.mrf.mxu3  ;;  %3971 = vmatpush.msrb.mxu1 %v3729_v40  ;;  %v3655_v40 = vrot.slane %v11894_v11, 1  ;;  %19044 = vst [vmem:[#allocation5_spill] sm:$0xff] %v12999_v3  ;;  %vm3671_vm12 = vcmp.lt.s32.totalorder %v12999_v3, 16 }
 0x281   :  { %v2789_v9 = vadd.f32 %v2788_v41, %v2752_v35  ;;  %v12968_v36 = vadd.f32 %v2894_v38, %v2829_v15  ;;  %3491 = vmatmul.f32.vlgmr.msrb.gmra.mxu0 %v12606_v63  ;;  %3539 = vmatmul.f32.gmra.mxu1 %v12671_v52  ;;  %v11567_v63 = vld [vmem:[%s18774_s3 + $0x1e8] sm:$0xff] }
 0x282   :  { %3922 = vmatpush.msrb.mxu0 %v3778_v21  ;;  %v12985_v52 = vand.u32 4294901760, %v11567_v63 }
 0x283   :  { %v12978_v33 = vadd.f32 %v2789_v9, %v12557_v17  ;;  %3588 = vmatmul.f32.gmra.mxu2 %v12637_v10  ;;  %v3660_v17 = vsel %vm3657_vm11, %v3653_v54, %v3654_v5 }
 0x284   :  { %3926 = vmatpush.msrb.mxu0 %v3784_v60  ;;  %4002 = vmatpush.msrb.mxu2 %v12985_v52  ;;  %v12994_v21 = vsub.f32 %v11567_v63, %v12985_v52  ;;  %v3700_v19 = vsel %vm30_vm0, %v3660_v17, 0  ;;  %v13043_v63 = vadd.s32 24, %v11847_v24 }
 0x285   :  { %3625 = vmatmul.f32.gmra.mxu3 %v12637_v10 }
 0x286   :  { %v2755_v56 = vpop.f32.mrf.mxu0  ;;  %v2796_v16 = vpop.f32.mrf.mxu1  ;;  %3930 = vmatpush.msrb.mxu0 %v3790_v44  ;;  %v18783_v2 = vand.u32 4294901760, %v12994_v21  ;;  %v3659_v44 = vsel %vm3657_vm11, %v3654_v5, %v3655_v40  ;;  %v11559_v5 = vld [vmem:[%s18774_s3 + $0x1a8] sm:$0xff] }
 0x287   :  { %v2756_v10 = vadd.f32 %v2755_v56, %v12926_v39  ;;  %v2837_v60 = vpop.f32.mrf.mxu2  ;;  %v3679_v18 = vsel %vm3671_vm12, %v3659_v44, 0.0 }
 0x288   :  { %v2898_v26 = vpop.f32.mrf.mxu3  ;;  %3934 = vmatpush.msrb.mxu0 %v3796_v28  ;;  %v4057_v39 = vsub.f32 %v12994_v21, %v18783_v2 }
 0x289   :  { %v2793_v41 = vadd.f32 %v2792_v45, %v2756_v10  ;;  %v13003_v42 = vadd.f32 %v2898_v26, %v2837_v60  ;;  %3496 = vmatmul.f32.gmra.mxu0 %v12655_v62  ;;  %3545 = vmatmul.f32.gmra.mxu1 %v12699_v29  ;;  %v11563_v62 = vld [vmem:[%s18774_s3 + $0x1c8] sm:$0xff]  ;;  %v13023_v29 = vand.u32 4294901760, %v3700_v19  ;;  %v13050_v10 = vand.u32 4294901760, %v11559_v5 }
 0x28a   :  { %v4058_v53 = vand.u32 4294901760, %v4057_v39  ;;  %v13025_v20 = vand.u32 4294901760, %v11563_v62  ;;  %v3656_v60 = vrot.slane %v11890_v49, 1  ;;  %v11555_v26 = vld [vmem:[%s18774_s3 + $0x188] sm:$0xff]  ;;  %v18784_v39 = vand.u32 15, %v13043_v63 }
 0x28b   :  { %v13017_v28 = vadd.f32 %v2793_v41, %v12579_v23  ;;  %3592 = vmatmul.f32.gmra.mxu2 %v12673_v57  ;;  %v13036_v9 = vsub.f32 %v3700_v19, %v13023_v29 }
 0x28c   :  { %4059 = vmatpush.msrb.mxu3 %v4058_v53  ;;  %4004 = vmatpush.msrb.mxu2 %v13025_v20  ;;  %v13033_v15 = vsub.f32 %v11563_v62, %v13025_v20 }
 0x28d   :  { %3629 = vmatmul.f32.gmra.mxu3 %v12673_v57  ;;  %v3703_v57 = vsel %vm30_vm0, %v3679_v18, 0  ;;  %v13067_v19 = vand.u32 4294901760, %v13036_v9 }
 0x28e   :  { %v2759_v25 = vpop.f32.mrf.mxu0  ;;  %v2800_v45 = vpop.f32.mrf.mxu1  ;;  %v13069_v44 = vand.u32 4294901760, %v3703_v57  ;;  %4006 = vmatpush.msrb.mxu2 %v13050_v10 }
 0x28f   :  { %v2760_v23 = vadd.f32 %v2759_v25, %v12949_v51  ;;  %v2845_v35 = vpop.f32.mrf.mxu2  ;;  %v4062_v51 = vand.u32 4294901760, %v13033_v15 }
 0x290   :  { %v2902_v38 = vpop.f32.mrf.mxu3 }
 0x291   :  { %v2797_v56 = vadd.f32 %v2796_v16, %v2760_v23  ;;  %v13045_v17 = vadd.f32 %v2902_v38, %v2845_v35  ;;  %3501 = vmatmul.f32.gmra.mxu0 %v12683_v6  ;;  %3551 = vmatmul.f32.gmra.mxu1 %v12721_v46  ;;  %v4063_v16 = vsub.f32 %v13033_v15, %v4062_v51  ;;  %v13064_v46 = vand.u32 4294901760, %v11555_v26 }
 0x292   :  { %v13062_v6 = vsub.f32 %v11559_v5, %v13050_v10  ;;  %v3658_v38 = vsel %vm3657_vm11, %v3655_v40, %v3656_v60 }
 0x293   :  { %v13057_v41 = vadd.f32 %v2797_v56, %v12612_v32  ;;  %3596 = vmatmul.f32.gmra.mxu2 %v12701_v34  ;;  %v4064_v32 = vand.u32 4294901760, %v4063_v16  ;;  %v13076_v53 = vsub.f32 %v11555_v26, %v13064_v46  ;;  %v3734_v26 = vsub.f32 %v13036_v9, %v13067_v19 }
 0x294   :  { %v4068_v62 = vand.u32 4294901760, %v13062_v6  ;;  %4008 = vmatpush.msrb.mxu2 %v13064_v46  ;;  %v13089_v16 = vsub.f32 %v3703_v57, %v13069_v44  ;;  %v3706_v2 = vsel %vm30_vm0, %v3658_v38, 0 }
 0x295   :  { %3633 = vmatmul.f32.gmra.mxu3 %v12701_v34  ;;  %v4074_v5 = vand.u32 4294901760, %v13076_v53  ;;  %v13120_v38 = vand.u32 4294901760, %v3706_v2 }
 0x296   :  { %v2763_v18 = vpop.f32.mrf.mxu0  ;;  %v2978_v25 = vpop.f32.mrf.mxu1  ;;  %4065 = vmatpush.msrb.mxu3 %v4064_v32  ;;  %v4069_v34 = vsub.f32 %v13062_v6, %v4068_v62 }
 0x297   :  { %v2764_v23 = vadd.f32 %v2763_v18, %v12959_v31  ;;  %v2853_v35 = vpop.f32.mrf.mxu2  ;;  %v13093_v31 = vadd.s32 1, %v18784_v39  ;;  %v4075_v32 = vsub.f32 %v13076_v53, %v4074_v5 }
 0x298   :  { %v2906_v56 = vpop.f32.mrf.mxu3  ;;  %v4070_v40 = vand.u32 4294901760, %v4069_v34 }
 0x299   :  { %19045 = vst [vmem:[#allocation6_spill] sm:$0xff] %v13093_v31  ;;  %v2801_v18 = vadd.f32 %v2800_v45, %v2764_v23  ;;  %v13095_v22 = vadd.f32 %v2906_v56, %v2853_v35  ;;  %3506 = vmatmul.f32.gmra.mxu0 %v12712_v48  ;;  %3801 = vmatmul.f32.vlgmr.msra.gmra.mxu1 %v13023_v29  ;;  %v4076_v45 = vand.u32 4294901760, %v4075_v32  ;;  %vm3673_vm13 = vcmp.lt.s32.totalorder %v13093_v31, 16 }
 0x29a   :  { %4153 = vmatpush.msra.mxu1 %v12985_v52  ;;  %4071 = vmatpush.msrb.mxu3 %v4070_v40  ;;  %v3661_v48 = vsel %vm3657_vm11, %v3656_v60, %v3653_v54  ;;  %v19046_v23 = vand.u32 4294901760, %v12994_v21  ;;  %v13118_v35 = vand.u32 4294901760, %v13089_v16 }
 0x29b   :  { %v13103_v57 = vadd.f32 %v2801_v18, %v12650_v55  ;;  %3843 = vmatmul.f32.vlgmr.msra.gmra.mxu2 %v13036_v9  ;;  %v13115_v55 = vand.u32 4294901760, %v3734_v26  ;;  %v3681_v18 = vsel %vm3673_vm13, %v3661_v48, 0.0 }
 0x29c   :  { %4200 = vmatpush.msra.mxu2 %v19046_v23  ;;  %4155 = vmatpush.msra.mxu1 %v13025_v20  ;;  %v3709_v32 = vsel %vm30_vm0, %v3681_v18, 0 }
 0x29d   :  { %3885 = vmatmul.f32.vlgmr.msra.gmra.mxu3 %v13067_v19 }
 0x29e   :  { %v2936_v34 = vpop.f32.mrf.mxu0  ;;  %v2984_v56 = vpop.f32.mrf.mxu1  ;;  %4077 = vmatpush.msrb.mxu3 %v4076_v45  ;;  %4204 = vmatpush.msra.mxu2 %v4062_v51  ;;  %v3742_v51 = vsub.f32 %v13089_v16, %v13118_v35 }
 0x29f   :  { %v2937_v54 = vadd.f32 %v2936_v34, %v12968_v36  ;;  %v3029_v60 = vpop.f32.mrf.mxu2  ;;  %4157 = vmatpush.msra.mxu1 %v13050_v10  ;;  %v13132_v36 = vsub.f32 %v3706_v2, %v13120_v38 }
 0x2a0   :  { %4243 = vmatpush.msra.mxu3 %v12985_v52  ;;  %v3066_v26 = vpop.f32.mrf.mxu3  ;;  %4208 = vmatpush.msra.mxu2 %v4068_v62  ;;  %v13142_v2 = vand.u32 4294901760, %v3742_v51 }
 0x2a1   :  { %v2979_v40 = vadd.f32 %v2978_v25, %v2937_v54  ;;  %3736 = vmatmul.f32.vlgmr.msra.gmra.mxu0 %v13115_v55  ;;  %3805 = vmatmul.f32.gmra.mxu1 %v13069_v44  ;;  %v13145_v25 = vand.u32 4294901760, %v13132_v36 }
 0x2a2   :  { %4109 = vmatpush.msra.mxu0 %v12994_v21  ;;  %4245 = vmatpush.msra.mxu3 %v13025_v20  ;;  %v13147_v21 = vand.u32 4294901760, %v3709_v32 }
 0x2a3   :  { %v3030_v52 = vadd.f32 %v3029_v60, %v2979_v40  ;;  %3848 = vmatmul.f32.gmra.mxu2 %v13089_v16  ;;  %4159 = vmatpush.msra.mxu1 %v13064_v46 }
 0x2a4   :  { %4112 = vmatpush.msra.mxu0 %v13033_v15  ;;  %4247 = vmatpush.msra.mxu3 %v13050_v10 }
 0x2a5   :  { %v3067_v62 = vadd.f32 %v3066_v26, %v3030_v52  ;;  %3891 = vmatmul.f32.gmra.mxu3 %v13118_v35  ;;  %4212 = vmatpush.msra.mxu2 %v4074_v5  ;;  %v3750_v5 = vsub.f32 %v13132_v36, %v13145_v25 }
 0x2a6   :  { %v2941_v20 = vpop.f32.mrf.mxu0  ;;  %v2990_v45 = vpop.f32.mrf.mxu1  ;;  %4115 = vmatpush.msra.mxu0 %v13062_v6  ;;  %4249 = vmatpush.msra.mxu3 %v13064_v46  ;;  %v13161_v6 = vsub.f32 %v3709_v32, %v13147_v21 }
 0x2a7   :  { %v13152_v15 = vadd.f32 %v3067_v62, %v12693_v1  ;;  %v2942_v10 = vadd.f32 %v2941_v20, %v13003_v42  ;;  %v3033_v48 = vpop.f32.mrf.mxu2  ;;  %v13165_v42 = vand.u32 4294901760, %v3750_v5 }
 0x2a8   :  { %v3070_v23 = vpop.f32.mrf.mxu3  ;;  %4118 = vmatpush.msra.mxu0 %v13076_v53  ;;  %v13168_v53 = vand.u32 4294901760, %v13161_v6 }
 0x2a9   :  { %v2985_v34 = vadd.f32 %v2984_v56, %v2942_v10  ;;  %3744 = vmatmul.f32.gmra.mxu0 %v13142_v2  ;;  %3809 = vmatmul.f32.gmra.mxu1 %v13120_v38 }
 0x2aa   :  { %v3758_v32 = vsub.f32 %v13161_v6, %v13168_v53 }
 0x2ab   :  { %v3034_v46 = vadd.f32 %v3033_v48, %v2985_v34  ;;  %3853 = vmatmul.f32.gmra.mxu2 %v13132_v36 }
 0x2ad   :  { %v3071_v1 = vadd.f32 %v3070_v23, %v3034_v46  ;;  %3897 = vmatmul.f32.gmra.mxu3 %v13145_v25 }
 0x2ae   :  { %v2946_v56 = vpop.f32.mrf.mxu0  ;;  %v2996_v54 = vpop.f32.mrf.mxu1 }
 0x2af   :  { %v13171_v60 = vadd.f32 %v3071_v1, %v12715_v47  ;;  %v2947_v18 = vadd.f32 %v2946_v56, %v13045_v17  ;;  %v3037_v26 = vpop.f32.mrf.mxu2  ;;  %v13180_v47 = vand.u32 4294901760, %v3758_v32 }
 0x2b0   :  { %v3074_v40 = vpop.f32.mrf.mxu3 }
 0x2b1   :  { %v2991_v51 = vadd.f32 %v2990_v45, %v2947_v18  ;;  %3752 = vmatmul.f32.gmra.mxu0 %v13165_v42  ;;  %3813 = vmatmul.f32.gmra.mxu1 %v13147_v21 }
 0x2b3   :  { %v3038_v52 = vadd.f32 %v3037_v26, %v2991_v51  ;;  %3858 = vmatmul.f32.gmra.mxu2 %v13161_v6  ;;  %v11568_v51 = vld [vmem:[%s18774_s3 + $0x1f0] sm:$0xff] }
 0x2b4   :  { %v13201_v32 = vand.u32 4294901760, %v11568_v51 }
 0x2b5   :  { %v3075_v62 = vadd.f32 %v3074_v40, %v3038_v52  ;;  %3903 = vmatmul.f32.gmra.mxu3 %v13168_v53 }
 0x2b6   :  { %v2951_v20 = vpop.f32.mrf.mxu0  ;;  %v3172_v17 = vpop.f32.mrf.mxu1 }
 0x2b7   :  { %v13183_v10 = vadd.f32 %v3075_v62, %v12729_v13  ;;  %v2952_v45 = vadd.f32 %v2951_v20, %v13095_v22  ;;  %v3041_v48 = vpop.f32.mrf.mxu2  ;;  %v13205_v62 = vsub.f32 %v11568_v51, %v13201_v32 }
 0x2b8   :  { %v3078_v23 = vpop.f32.mrf.mxu3 }
 0x2b9   :  { %v2997_v34 = vadd.f32 %v2996_v54, %v2952_v45  ;;  %3760 = vmatmul.f32.gmra.mxu0 %v13180_v47  ;;  %3973 = vmatmul.f32.vlgmr.msrb.gmra.mxu1 %v13023_v29 }
 0x2bb   :  { %v3042_v5 = vadd.f32 %v3041_v48, %v2997_v34  ;;  %4014 = vmatmul.f32.vlgmr.msrb.gmra.mxu2 %v13115_v55  ;;  %v18785_v48 = vand.u32 4294901760, %v13205_v62 }
 0x2bc   :  { %4387 = vmatpush.msrb.mxu2 %v13205_v62 }
 0x2bd   :  { %v3079_v46 = vadd.f32 %v3078_v23, %v3042_v5  ;;  %4079 = vmatmul.f32.vlgmr.msrb.gmra.mxu3 %v13023_v29  ;;  %v4335_v34 = vsub.f32 %v13205_v62, %v18785_v48  ;;  %v11564_v5 = vld [vmem:[%s18774_s3 + $0x1d0] sm:$0xff] }
 0x2be   :  { %v3107_v1 = vpop.f32.mrf.mxu0  ;;  %v3176_v56 = vpop.f32.mrf.mxu1  ;;  %4431 = vmatpush.msrb.mxu3 %v13201_v32 }
 0x2bf   :  { %v13191_v13 = vadd.f32 %v3079_v46, %v12738_v27  ;;  %v3173_v18 = vadd.f32 %v3172_v17, %v3107_v1  ;;  %v3214_v22 = vpop.f32.mrf.mxu2  ;;  %v4281_v1 = vand.u32 4294901760, %v11564_v5 }
 0x2c0   :  { %v3256_v26 = vpop.f32.mrf.mxu3 }
 0x2c1   :  { %19047 = vst [vmem:[#allocation7_spill] sm:$0xff] %v13191_v13  ;;  %v3215_v40 = vadd.f32 %v3214_v22, %v3173_v18  ;;  %3936 = vmatmul.f32.vlgmr.msrb.gmra.mxu0 %v13023_v29  ;;  %3977 = vmatmul.f32.gmra.mxu1 %v13069_v44  ;;  %v11560_v18 = vld [vmem:[%s18774_s3 + $0x1b0] sm:$0xff]  ;;  %v13226_v22 = vsub.f32 %v11564_v5, %v4281_v1 }
 0x2c2   :  { %4280 = vmatpush.msrb.mxu0 %v13201_v32  ;;  %4433 = vmatpush.msrb.mxu3 %v4281_v1 }
 0x2c3   :  { %v13195_v54 = vadd.f32 %v3256_v26, %v3215_v40  ;;  %4022 = vmatmul.f32.gmra.mxu2 %v13142_v2  ;;  %v4283_v26 = vand.u32 4294901760, %v11560_v18 }
 0x2c4   :  { %4282 = vmatpush.msrb.mxu0 %v4281_v1  ;;  %4390 = vmatpush.msrb.mxu2 %v13226_v22 }
 0x2c5   :  { %4083 = vmatmul.f32.gmra.mxu3 %v13069_v44 }
 0x2c6   :  { %v3115_v27 = vpop.f32.mrf.mxu0  ;;  %v3180_v52 = vpop.f32.mrf.mxu1  ;;  %4284 = vmatpush.msrb.mxu0 %v4283_v26  ;;  %4435 = vmatpush.msrb.mxu3 %v4283_v26 }
 0x2c7   :  { %v3177_v20 = vadd.f32 %v3176_v56, %v3115_v27  ;;  %v3219_v17 = vpop.f32.mrf.mxu2  ;;  %v4336_v56 = vand.u32 4294901760, %v4335_v34  ;;  %v11556_v27 = vld [vmem:[%s18774_s3 + $0x190] sm:$0xff] }
 0x2c8   :  { %v3262_v45 = vpop.f32.mrf.mxu3  ;;  %v4285_v34 = vand.u32 4294901760, %v11556_v27 }
 0x2c9   :  { %v3220_v23 = vadd.f32 %v3219_v17, %v3177_v20  ;;  %3940 = vmatmul.f32.gmra.mxu0 %v13069_v44  ;;  %3981 = vmatmul.f32.gmra.mxu1 %v13120_v38 }
 0x2ca   :  { %4337 = vmatpush.msrb.mxu1 %v4336_v56  ;;  %v4351_v31 = vsub.f32 %v11556_v27, %v4285_v34  ;;  %4286 = vmatpush.msrb.mxu0 %v4285_v34 }
 0x2cb   :  { %v13219_v46 = vadd.f32 %v3262_v45, %v3220_v23  ;;  %4030 = vmatmul.f32.gmra.mxu2 %v13165_v42  ;;  %v4340_v45 = vand.u32 4294901760, %v13226_v22  ;;  %v4345_v23 = vsub.f32 %v11560_v18, %v4283_v26  ;;  %4437 = vmatpush.msrb.mxu3 %v4285_v34 }
 0x2cc   :  { %v4352_v8 = vand.u32 4294901760, %v4351_v31 }
 0x2cd   :  { %4087 = vmatmul.f32.gmra.mxu3 %v13120_v38  ;;  %v4341_v56 = vsub.f32 %v13226_v22, %v4340_v45  ;;  %v4346_v48 = vand.u32 4294901760, %v4345_v23  ;;  %4393 = vmatpush.msrb.mxu2 %v4345_v23 }
 0x2ce   :  { %v3123_v40 = vpop.f32.mrf.mxu0  ;;  %v3184_v51 = vpop.f32.mrf.mxu1 }
 0x2cf   :  { %v3181_v20 = vadd.f32 %v3180_v52, %v3123_v40  ;;  %v3224_v17 = vpop.f32.mrf.mxu2  ;;  %v4342_v18 = vand.u32 4294901760, %v4341_v56  ;;  %v4347_v40 = vsub.f32 %v4345_v23, %v4346_v48  ;;  %4396 = vmatpush.msrb.mxu2 %v4351_v31 }
 0x2d0   :  { %v3268_v5 = vpop.f32.mrf.mxu3 }
 0x2d1   :  { %v3225_v39 = vadd.f32 %v3224_v17, %v3181_v20  ;;  %3944 = vmatmul.f32.gmra.mxu0 %v13120_v38  ;;  %3985 = vmatmul.f32.gmra.mxu1 %v13147_v21  ;;  %v4348_v20 = vand.u32 4294901760, %v4347_v40  ;;  %v4353_v17 = vsub.f32 %v4351_v31, %v4352_v8 }
 0x2d2   :  { %4343 = vmatpush.msrb.mxu1 %v4342_v18 }
 0x2d3   :  { %v13236_v52 = vadd.f32 %v3268_v5, %v3225_v39  ;;  %4038 = vmatmul.f32.gmra.mxu2 %v13180_v47  ;;  %v4354_v13 = vand.u32 4294901760, %v4353_v17 }
 0x2d4   :  { %4349 = vmatpush.msrb.mxu1 %v4348_v20 }
 0x2d5   :  { %4091 = vmatmul.f32.gmra.mxu3 %v13147_v21 }
 0x2d6   :  { %v3131_v3 = vpop.f32.mrf.mxu0  ;;  %v3344_v22 = vpop.f32.mrf.mxu1  ;;  %4355 = vmatpush.msrb.mxu1 %v4354_v13  ;;  %v19048_v13 = vand.u32 4294901760, %v13205_v62 }
 0x2d7   :  { %v3185_v43 = vadd.f32 %v3184_v51, %v3131_v3  ;;  %v3229_v27 = vpop.f32.mrf.mxu2 }
 0x2d8   :  { %v3274_v39 = vpop.f32.mrf.mxu3 }
 0x2d9   :  { %v3230_v5 = vadd.f32 %v3229_v27, %v3185_v43  ;;  %3948 = vmatmul.f32.gmra.mxu0 %v13147_v21  ;;  %4163 = vmatmul.f32.vlgmr.msra.gmra.mxu1 %v13067_v19 }
 0x2da   :  { %4521 = vmatpush.msra.mxu1 %v13201_v32 }
 0x2db   :  { %v13242_v23 = vadd.f32 %v3274_v39, %v3230_v5  ;;  %4214 = vmatmul.f32.vlgmr.msra.gmra.mxu2 %v13023_v29 }
 0x2dc   :  { %4523 = vmatpush.msra.mxu1 %v4281_v1 }
 0x2dd   :  { %4251 = vmatmul.f32.vlgmr.msra.gmra.mxu3 %v13023_v29 }
 0x2de   :  { %v3307_v3 = vpop.f32.mrf.mxu0  ;;  %v3348_v31 = vpop.f32.mrf.mxu1  ;;  %4525 = vmatpush.msra.mxu1 %v4283_v26 }
 0x2df   :  { %v3308_v51 = vadd.f32 %v3307_v3, %v13195_v54  ;;  %v3385_v56 = vpop.f32.mrf.mxu2  ;;  %v11569_v54 = vld [vmem:[%s18774_s3 + $0x1f8] sm:$0xff] }
 0x2e0   :  { %v3450_v43 = vpop.f32.mrf.mxu3  ;;  %4527 = vmatpush.msra.mxu1 %v4285_v34  ;;  %v13261_v1 = vand.u32 4294901760, %v11569_v54 }
 0x2e1   :  { %v3345_v18 = vadd.f32 %v3344_v22, %v3308_v51  ;;  %v13248_v40 = vadd.f32 %v3450_v43, %v3385_v56  ;;  %4121 = vmatmul.f32.vlgmr.msra.gmra.mxu0 %v13036_v9  ;;  %4169 = vmatmul.f32.gmra.mxu1 %v13118_v35 }
 0x2e2   :  { %4478 = vmatpush.msra.mxu0 %v19048_v13  ;;  %4558 = vmatpush.msra.mxu2 %v13261_v1  ;;  %v13266_v62 = vsub.f32 %v11569_v54, %v13261_v1 }
 0x2e3   :  { %v13255_v32 = vadd.f32 %v3345_v18, %v12806_v7  ;;  %4218 = vmatmul.f32.gmra.mxu2 %v13069_v44  ;;  %v11561_v18 = vld [vmem:[%s18774_s3 + $0x1b8] sm:$0xff] }
 0x2e4   :  { %4482 = vmatpush.msra.mxu0 %v4340_v45  ;;  %v4612_v22 = vand.u32 4294901760, %v13266_v62 }
 0x2e5   :  { %19049 = vst [vmem:[#allocation8_spill] sm:$0xff] %v13255_v32  ;;  %4255 = vmatmul.f32.gmra.mxu3 %v13069_v44 }
 0x2e6   :  { %v3311_v26 = vpop.f32.mrf.mxu0  ;;  %v3352_v20 = vpop.f32.mrf.mxu1  ;;  %4486 = vmatpush.msra.mxu0 %v4346_v48  ;;  %v4613_v45 = vsub.f32 %v13266_v62, %v4612_v22  ;;  %v11565_v48 = vld [vmem:[%s18774_s3 + $0x1d8] sm:$0xff] }
 0x2e7   :  { %v3312_v7 = vadd.f32 %v3311_v26, %v13219_v46  ;;  %v3393_v34 = vpop.f32.mrf.mxu2 }
 0x2e8   :  { %v3454_v17 = vpop.f32.mrf.mxu3  ;;  %4490 = vmatpush.msra.mxu0 %v4352_v8  ;;  %v4614_v46 = vand.u32 4294901760, %v4613_v45  ;;  %v13282_v8 = vand.u32 4294901760, %v11565_v48 }
 0x2e9   :  { %v3349_v27 = vadd.f32 %v3348_v31, %v3312_v7  ;;  %v13270_v39 = vadd.f32 %v3454_v17, %v3393_v34  ;;  %4126 = vmatmul.f32.gmra.mxu0 %v13089_v16  ;;  %4175 = vmatmul.f32.gmra.mxu1 %v13145_v25  ;;  %v4561_v7 = vand.u32 4294901760, %v11561_v18 }
 0x2ea   :  { %4615 = vmatpush.msra.mxu3 %v4614_v46  ;;  %4560 = vmatpush.msra.mxu2 %v13282_v8  ;;  %v4617_v56 = vsub.f32 %v11565_v48, %v13282_v8 }
 0x2eb   :  { %v13276_v5 = vadd.f32 %v3349_v27, %v12828_v4  ;;  %4222 = vmatmul.f32.gmra.mxu2 %v13120_v38  ;;  %v4623_v27 = vsub.f32 %v11561_v18, %v4561_v7 }
 0x2ec   :  { %v4618_v26 = vand.u32 4294901760, %v4617_v56  ;;  %4562 = vmatpush.msra.mxu2 %v4561_v7 }
 0x2ed   :  { %19050 = vst [vmem:[#allocation9_spill] sm:$0xff] %v13276_v5  ;;  %4259 = vmatmul.f32.gmra.mxu3 %v13120_v38  ;;  %v4624_v48 = vand.u32 4294901760, %v4623_v27 }
 0x2ee   :  { %v3315_v3 = vpop.f32.mrf.mxu0  ;;  %v3356_v31 = vpop.f32.mrf.mxu1  ;;  %v4619_v17 = vsub.f32 %v4617_v56, %v4618_v26 }
 0x2ef   :  { %v3316_v51 = vadd.f32 %v3315_v3, %v13236_v52  ;;  %v3401_v4 = vpop.f32.mrf.mxu2  ;;  %v11557_v52 = vld [vmem:[%s18774_s3 + $0x198] sm:$0xff] }
 0x2f0   :  { %v3458_v43 = vpop.f32.mrf.mxu3  ;;  %v4620_v45 = vand.u32 4294901760, %v4619_v17 }
 0x2f1   :  { %v3353_v13 = vadd.f32 %v3352_v20, %v3316_v51  ;;  %v13291_v54 = vadd.f32 %v3458_v43, %v3401_v4  ;;  %4131 = vmatmul.f32.gmra.mxu0 %v13132_v36  ;;  %4181 = vmatmul.f32.gmra.mxu1 %v13168_v53  ;;  %v4563_v20 = vand.u32 4294901760, %v11557_v52 }
 0x2f2   :  { %4621 = vmatpush.msra.mxu3 %v4620_v45 }
 0x2f3   :  { %v13299_v34 = vadd.f32 %v3353_v13, %v12849_v0  ;;  %4226 = vmatmul.f32.gmra.mxu2 %v13147_v21  ;;  %v4629_v46 = vsub.f32 %v11557_v52, %v4563_v20  ;;  %v4625_v0 = vsub.f32 %v4623_v27, %v4624_v48 }
 0x2f4   :  { %4564 = vmatpush.msra.mxu2 %v4563_v20 }
 0x2f5   :  { %19051 = vst [vmem:[#allocation10_spill] sm:$0xff] %v13299_v34  ;;  %4263 = vmatmul.f32.gmra.mxu3 %v13147_v21  ;;  %v4630_v13 = vand.u32 4294901760, %v4629_v46  ;;  %v4626_v18 = vand.u32 4294901760, %v4625_v0 }
 0x2f6   :  { %v3319_v3 = vpop.f32.mrf.mxu0  ;;  %v3534_v51 = vpop.f32.mrf.mxu1 }
 0x2f7   :  { %v3320_v4 = vadd.f32 %v3319_v3, %v13242_v23  ;;  %v3409_v43 = vpop.f32.mrf.mxu2  ;;  %v4631_v17 = vsub.f32 %v4629_v46, %v4630_v13  ;;  %4627 = vmatpush.msra.mxu3 %v4626_v18 }
 0x2f8   :  { %v3462_v34 = vpop.f32.mrf.mxu3 }
 0x2f9   :  { %v3357_v5 = vadd.f32 %v3356_v31, %v3320_v4  ;;  %v13304_v32 = vadd.f32 %v3462_v34, %v3409_v43  ;;  %4136 = vmatmul.f32.gmra.mxu0 %v13161_v6  ;;  %4357 = vmatmul.f32.vlgmr.msrb.gmra.mxu1 %v13023_v29  ;;  %v4632_v23 = vand.u32 4294901760, %v4631_v17 }
 0x2fa   :  { %4709 = vmatpush.msrb.mxu1 %v13261_v1 }
 0x2fb   :  { %v13310_v52 = vadd.f32 %v3357_v5, %v12862_v61  ;;  %4399 = vmatmul.f32.vlgmr.msrb.gmra.mxu2 %v13036_v9  ;;  %4633 = vmatpush.msra.mxu3 %v4632_v23 }
 0x2fc   :  { %4756 = vmatpush.msrb.mxu2 %v4612_v22  ;;  %4711 = vmatpush.msrb.mxu1 %v13282_v8 }
 0x2fd   :  { %4441 = vmatmul.f32.vlgmr.msrb.gmra.mxu3 %v13067_v19 }
 0x2fe   :  { %v3492_v31 = vpop.f32.mrf.mxu0  ;;  %v3540_v34 = vpop.f32.mrf.mxu1  ;;  %4760 = vmatpush.msrb.mxu2 %v4618_v26  ;;  %4799 = vmatpush.msrb.mxu3 %v13261_v1 }
 0x2ff   :  { %v3493_v45 = vadd.f32 %v3492_v31, %v13248_v40  ;;  %v3585_v3 = vpop.f32.mrf.mxu2  ;;  %4713 = vmatpush.msrb.mxu1 %v4561_v7 }
 0x300   :  { %v3622_v61 = vpop.f32.mrf.mxu3  ;;  %4764 = vmatpush.msrb.mxu2 %v4624_v48  ;;  %4801 = vmatpush.msrb.mxu3 %v13282_v8 }
 0x301   :  { %v3535_v5 = vadd.f32 %v3534_v51, %v3493_v45  ;;  %4292 = vmatmul.f32.vlgmr.msrb.gmra.mxu0 %v13115_v55  ;;  %4361 = vmatmul.f32.gmra.mxu1 %v13069_v44 }
 0x302   :  { %4665 = vmatpush.msrb.mxu0 %v13266_v62  ;;  %4715 = vmatpush.msrb.mxu1 %v4563_v20 }
 0x303   :  { %v3586_v22 = vadd.f32 %v3585_v3, %v3535_v5  ;;  %4404 = vmatmul.f32.gmra.mxu2 %v13089_v16  ;;  %4803 = vmatpush.msrb.mxu3 %v4561_v7 }
 0x304   :  { %4668 = vmatpush.msrb.mxu0 %v4617_v56  ;;  %4768 = vmatpush.msrb.mxu2 %v4630_v13 }
 0x305   :  { %v3623_v40 = vadd.f32 %v3622_v61, %v3586_v22  ;;  %4447 = vmatmul.f32.gmra.mxu3 %v13118_v35 }
 0x306   :  { %v3497_v1 = vpop.f32.mrf.mxu0  ;;  %v3546_v26 = vpop.f32.mrf.mxu1  ;;  %4671 = vmatpush.msrb.mxu0 %v4623_v27  ;;  %4805 = vmatpush.msrb.mxu3 %v4563_v20 }
 0x307   :  { %v13324_v48 = vadd.f32 %v3623_v40, %v12877_v59  ;;  %v3498_v62 = vadd.f32 %v3497_v1, %v13270_v39  ;;  %v3589_v8 = vpop.f32.mrf.mxu2 }
 0x308   :  { %v3626_v51 = vpop.f32.mrf.mxu3  ;;  %4674 = vmatpush.msrb.mxu0 %v4629_v46 }
 0x309   :  { %v3541_v4 = vadd.f32 %v3540_v34, %v3498_v62  ;;  %4300 = vmatmul.f32.gmra.mxu0 %v13142_v2  ;;  %4365 = vmatmul.f32.gmra.mxu1 %v13120_v38 }
 0x30b   :  { %v3590_v56 = vadd.f32 %v3589_v8, %v3541_v4  ;;  %4409 = vmatmul.f32.gmra.mxu2 %v13132_v36 }
 0x30d   :  { %v3627_v7 = vadd.f32 %v3626_v51, %v3590_v56  ;;  %4453 = vmatmul.f32.gmra.mxu3 %v13145_v25 }
 0x30e   :  { %v3502_v27 = vpop.f32.mrf.mxu0  ;;  %v3552_v20 = vpop.f32.mrf.mxu1 }
 0x30f   :  { %v13332_v59 = vadd.f32 %v3627_v7, %v12884_v58  ;;  %v3503_v39 = vadd.f32 %v3502_v27, %v13291_v54  ;;  %v3593_v43 = vpop.f32.mrf.mxu2 }
 0x310   :  { %v3630_v46 = vpop.f32.mrf.mxu3 }
 0x311   :  { %v3547_v0 = vadd.f32 %v3546_v26, %v3503_v39  ;;  %4308 = vmatmul.f32.gmra.mxu0 %v13165_v42  ;;  %4369 = vmatmul.f32.gmra.mxu1 %v13147_v21 }
 0x313   :  { %v3594_v13 = vadd.f32 %v3593_v43, %v3547_v0  ;;  %4414 = vmatmul.f32.gmra.mxu2 %v13161_v6  ;;  %v11578_v43 = vld [vmem:[%s18774_s3 + $0x240] sm:$0xff] }
 0x314   :  { %v4911_v0 = vand.u32 4294901760, %v11578_v43 }
 0x315   :  { %v3631_v18 = vadd.f32 %v3630_v46, %v3594_v13  ;;  %4459 = vmatmul.f32.gmra.mxu3 %v13168_v53 }
 0x316   :  { %v3507_v17 = vpop.f32.mrf.mxu0  ;;  %v3802_v23 = vpop.f32.mrf.mxu1 }
 0x317   :  { %v13340_v58 = vadd.f32 %v3631_v18, %v12891_v14  ;;  %v3508_v54 = vadd.f32 %v3507_v17, %v13304_v32  ;;  %v3597_v31 = vpop.f32.mrf.mxu2  ;;  %v11574_v18 = vld [vmem:[%s18774_s3 + $0x220] sm:$0xff]  ;;  %v13383_v17 = vsub.f32 %v11578_v43, %v4911_v0 }
 0x318   :  { %v3634_v34 = vpop.f32.mrf.mxu3 }
 0x319   :  { %v3553_v45 = vadd.f32 %v3552_v20, %v3508_v54  ;;  %4316 = vmatmul.f32.gmra.mxu0 %v13180_v47  ;;  %4529 = vmatmul.f32.vlgmr.msra.gmra.mxu1 %v13023_v29 }
 0x31b   :  { %v3598_v3 = vadd.f32 %v3597_v31, %v3553_v45  ;;  %4570 = vmatmul.f32.vlgmr.msra.gmra.mxu2 %v13115_v55  ;;  %v11582_v55 = vld [vmem:[%s18774_s3 + $0x260] sm:$0xff] }
 0x31c   :  { %v13358_v8 = vand.u32 4294901760, %v11582_v55 }
 0x31d   :  { %v3635_v61 = vadd.f32 %v3634_v34, %v3598_v3  ;;  %4635 = vmatmul.f32.vlgmr.msra.gmra.mxu3 %v13023_v29  ;;  %v4970_v3 = vand.u32 4294901760, %v13383_v17 }
 0x31e   :  { %v3737_v5 = vpop.f32.mrf.mxu0  ;;  %v3806_v22 = vpop.f32.mrf.mxu1  ;;  %v13362_v4 = vsub.f32 %v11582_v55, %v13358_v8  ;;  %5061 = vmatpush.msra.mxu3 %v13358_v8 }
 0x31f   :  { %v13348_v14 = vadd.f32 %v3635_v61, %v12897_v30  ;;  %v3803_v40 = vadd.f32 %v3802_v23, %v3737_v5  ;;  %v3844_v32 = vpop.f32.mrf.mxu2  ;;  %v4913_v23 = vand.u32 4294901760, %v11574_v18 }
 0x320   :  { %v3886_v1 = vpop.f32.mrf.mxu3  ;;  %5017 = vmatpush.msra.mxu2 %v13362_v4  ;;  %v4964_v27 = vand.u32 4294901760, %v13362_v4  ;;  %5063 = vmatpush.msra.mxu3 %v4911_v0 }
 0x321   :  { %v3845_v26 = vadd.f32 %v3844_v32, %v3803_v40  ;;  %4492 = vmatmul.f32.vlgmr.msra.gmra.mxu0 %v13023_v29  ;;  %4533 = vmatmul.f32.gmra.mxu1 %v13069_v44  ;;  %v13390_v61 = vsub.f32 %v11574_v18, %v4913_v23  ;;  %v4971_v32 = vsub.f32 %v13383_v17, %v4970_v3 }
 0x322   :  { %4910 = vmatpush.msra.mxu0 %v13358_v8  ;;  %v4965_v39 = vsub.f32 %v13362_v4, %v4964_v27  ;;  %5020 = vmatpush.msra.mxu2 %v13383_v17 }
 0x323   :  { %v13352_v62 = vadd.f32 %v3886_v1, %v3845_v26  ;;  %4578 = vmatmul.f32.gmra.mxu2 %v13142_v2  ;;  %5065 = vmatpush.msra.mxu3 %v4913_v23  ;;  %v4976_v1 = vand.u32 4294901760, %v13390_v61 }
 0x324   :  { %v4966_v13 = vand.u32 4294901760, %v4965_v39  ;;  %4912 = vmatpush.msra.mxu0 %v4911_v0  ;;  %5023 = vmatpush.msra.mxu2 %v13390_v61 }
 0x325   :  { %4639 = vmatmul.f32.gmra.mxu3 %v13069_v44 }
 0x326   :  { %v3745_v30 = vpop.f32.mrf.mxu0  ;;  %v3810_v51 = vpop.f32.mrf.mxu1  ;;  %4967 = vmatpush.msra.mxu1 %v4966_v13  ;;  %4914 = vmatpush.msra.mxu0 %v4913_v23 }
 0x327   :  { %v3807_v56 = vadd.f32 %v3806_v22, %v3745_v30  ;;  %v3849_v7 = vpop.f32.mrf.mxu2  ;;  %v4972_v30 = vand.u32 4294901760, %v4971_v32 }
 0x328   :  { %v3892_v2 = vpop.f32.mrf.mxu3 }
 0x329   :  { %v3850_v20 = vadd.f32 %v3849_v7, %v3807_v56  ;;  %4496 = vmatmul.f32.gmra.mxu0 %v13069_v44  ;;  %4537 = vmatmul.f32.gmra.mxu1 %v13120_v38 }
 0x32a   :  { %4973 = vmatpush.msra.mxu1 %v4972_v30 }
 0x32b   :  { %v13376_v46 = vadd.f32 %v3892_v2, %v3850_v20  ;;  %4586 = vmatmul.f32.gmra.mxu2 %v13165_v42  ;;  %v11570_v42 = vld [vmem:[%s18774_s3 + $0x200] sm:$0xff] }
 0x32c   :  { %v4915_v5 = vand.u32 4294901760, %v11570_v42 }
 0x32d   :  { %4643 = vmatmul.f32.gmra.mxu3 %v13120_v38 }
 0x32e   :  { %v3753_v54 = vpop.f32.mrf.mxu0  ;;  %v3814_v31 = vpop.f32.mrf.mxu1  ;;  %v13396_v26 = vsub.f32 %v11570_v42, %v4915_v5  ;;  %4916 = vmatpush.msra.mxu0 %v4915_v5  ;;  %5067 = vmatpush.msra.mxu3 %v4915_v5 }
 0x32f   :  { %v3811_v34 = vadd.f32 %v3810_v51, %v3753_v54  ;;  %v3854_v45 = vpop.f32.mrf.mxu2  ;;  %v4977_v51 = vsub.f32 %v13390_v61, %v4976_v1 }
 0x330   :  { %v3898_v22 = vpop.f32.mrf.mxu3  ;;  %v4982_v56 = vand.u32 4294901760, %v13396_v26  ;;  %5026 = vmatpush.msra.mxu2 %v13396_v26 }
 0x331   :  { %v3855_v40 = vadd.f32 %v3854_v45, %v3811_v34  ;;  %4500 = vmatmul.f32.gmra.mxu0 %v13120_v38  ;;  %4541 = vmatmul.f32.gmra.mxu1 %v13147_v21  ;;  %v4978_v7 = vand.u32 4294901760, %v4977_v51 }
 0x332   :  { %v4983_v2 = vsub.f32 %v13396_v26, %v4982_v56 }
 0x333   :  { %v13399_v55 = vadd.f32 %v3898_v22, %v3855_v40  ;;  %4594 = vmatmul.f32.gmra.mxu2 %v13180_v47  ;;  %4979 = vmatpush.msra.mxu1 %v4978_v7 }
 0x334   :  { %v4984_v47 = vand.u32 4294901760, %v4983_v2 }
 0x335   :  { %4647 = vmatmul.f32.gmra.mxu3 %v13147_v21 }
 0x336   :  { %v3761_v20 = vpop.f32.mrf.mxu0  ;;  %v3974_v39 = vpop.f32.mrf.mxu1  ;;  %4985 = vmatpush.msra.mxu1 %v4984_v47 }
 0x337   :  { %v3815_v43 = vadd.f32 %v3814_v31, %v3761_v20  ;;  %v3859_v13 = vpop.f32.mrf.mxu2 }
 0x338   :  { %v3904_v18 = vpop.f32.mrf.mxu3 }
 0x339   :  { %v3860_v17 = vadd.f32 %v3859_v13, %v3815_v43  ;;  %4504 = vmatmul.f32.gmra.mxu0 %v13147_v21  ;;  %4719 = vmatmul.f32.vlgmr.msrb.gmra.mxu1 %v13067_v19  ;;  %v4839_v19 = vrot.slane %v11888_v12, 2 }
 0x33a   :  { %5151 = vmatpush.msrb.mxu1 %v13358_v8  ;;  %v4840_v8 = vrot.slane %v11892_v50, 2 }
 0x33b   :  { %v13409_v54 = vadd.f32 %v3904_v18, %v3860_v17  ;;  %4770 = vmatmul.f32.vlgmr.msrb.gmra.mxu2 %v13023_v29 }
 0x33c   :  { %5153 = vmatpush.msrb.mxu1 %v4911_v0  ;;  %v19052_v0 = vand.u32 15, %v12965_v37 }
 0x33d   :  { %4807 = vmatmul.f32.vlgmr.msrb.gmra.mxu3 %v13023_v29 }
 0x33e   :  { %v3937_v31 = vpop.f32.mrf.mxu0  ;;  %v3978_v42 = vpop.f32.mrf.mxu1  ;;  %5155 = vmatpush.msrb.mxu1 %v4913_v23  ;;  %v4849_v23 = vadd.s32 2, %v19052_v0 }
 0x33f   :  { %v3938_v34 = vadd.f32 %v3937_v31, %v13352_v62  ;;  %v4015_v45 = vpop.f32.mrf.mxu2 }
 0x340   :  { %v4080_v61 = vpop.f32.mrf.mxu3  ;;  %5157 = vmatpush.msrb.mxu1 %v4915_v5  ;;  %vm4857_vm15 = vcmp.lt.s32.totalorder %v4849_v23, 16 }
 0x341   :  { %v3975_v22 = vadd.f32 %v3974_v39, %v3938_v34  ;;  %v13415_v40 = vadd.f32 %v4080_v61, %v4015_v45  ;;  %4677 = vmatmul.f32.vlgmr.msrb.gmra.mxu0 %v13036_v9  ;;  %4725 = vmatmul.f32.gmra.mxu1 %v13118_v35  ;;  %v11583_v9 = vld [vmem:[%s18774_s3 + $0x268] sm:$0xff]  ;;  %v4842_v34 = vrot.slane %v11890_v49, 2 }
 0x342   :  { %5108 = vmatpush.msrb.mxu0 %v4964_v27  ;;  %v13431_v35 = vand.u32 4294901760, %v11583_v9  ;;  %v4841_v27 = vrot.slane %v11894_v11, 2  ;;  %v11571_v45 = vld [vmem:[%s18774_s3 + $0x208] sm:$0xff] }
 0x343   :  { %v13424_v29 = vadd.f32 %v3975_v22, %v12978_v33  ;;  %4774 = vmatmul.f32.gmra.mxu2 %v13069_v44  ;;  %v4846_v33 = vsel %vm4843_vm14, %v4839_v19, %v4840_v8 }
 0x344   :  { %5112 = vmatpush.msrb.mxu0 %v4970_v3  ;;  %5188 = vmatpush.msrb.mxu2 %v13431_v35  ;;  %v13440_v4 = vsub.f32 %v11583_v9, %v13431_v35  ;;  %v4886_v11 = vsel %vm30_vm0, %v4846_v33, 0  ;;  %v4845_v37 = vsel %vm4843_vm14, %v4840_v8, %v4841_v27 }
 0x345   :  { %4811 = vmatmul.f32.gmra.mxu3 %v13069_v44  ;;  %v4865_v7 = vsel %vm4857_vm15, %v4845_v37, 0.0  ;;  %v19053_v37 = vand.u32 15, %v13043_v63 }
 0x346   :  { %v3941_v50 = vpop.f32.mrf.mxu0  ;;  %v3982_v62 = vpop.f32.mrf.mxu1  ;;  %5116 = vmatpush.msrb.mxu0 %v4976_v1  ;;  %v5242_v32 = vand.u32 4294901760, %v13440_v4  ;;  %v4889_v18 = vsel %vm30_vm0, %v4865_v7, 0 }
 0x347   :  { %v3942_v44 = vadd.f32 %v3941_v50, %v13376_v46  ;;  %v4023_v3 = vpop.f32.mrf.mxu2  ;;  %v13505_v49 = vand.u32 4294901760, %v4889_v18 }
 0x348   :  { %v4084_v5 = vpop.f32.mrf.mxu3  ;;  %5120 = vmatpush.msrb.mxu0 %v4982_v56  ;;  %v5243_v46 = vsub.f32 %v13440_v4, %v5242_v32 }
 0x349   :  { %v3979_v26 = vadd.f32 %v3978_v42, %v3942_v44  ;;  %v13447_v30 = vadd.f32 %v4084_v5, %v4023_v3  ;;  %4682 = vmatmul.f32.gmra.mxu0 %v13089_v16  ;;  %4731 = vmatmul.f32.gmra.mxu1 %v13145_v25  ;;  %v11579_v16 = vld [vmem:[%s18774_s3 + $0x248] sm:$0xff]  ;;  %v13464_v25 = vand.u32 4294901760, %v4886_v11  ;;  %v4844_v44 = vsel %vm4843_vm14, %v4841_v27, %v4842_v34 }
 0x34a   :  { %v5244_v51 = vand.u32 4294901760, %v5243_v46  ;;  %v13466_v56 = vand.u32 4294901760, %v11579_v16  ;;  %v4851_v46 = vadd.s32 2, %v19053_v37  ;;  %v4892_v7 = vsel %vm30_vm0, %v4844_v44, 0 }
 0x34b   :  { %v13458_v1 = vadd.f32 %v3979_v26, %v13017_v28  ;;  %4778 = vmatmul.f32.gmra.mxu2 %v13120_v38  ;;  %v13475_v47 = vsub.f32 %v4886_v11, %v13464_v25  ;;  %v13522_v11 = vsub.f32 %v4889_v18, %v13505_v49 }
 0x34c   :  { %5245 = vmatpush.msrb.mxu3 %v5244_v51  ;;  %5190 = vmatpush.msrb.mxu2 %v13466_v56  ;;  %v13472_v43 = vsub.f32 %v11579_v16, %v13466_v56  ;;  %vm4859_vm1 = vcmp.lt.s32.totalorder %v4851_v46, 16 }
 0x34d   :  { %4815 = vmatmul.f32.gmra.mxu3 %v13120_v38  ;;  %v11575_v38 = vld [vmem:[%s18774_s3 + $0x228] sm:$0xff]  ;;  %v13503_v8 = vand.u32 4294901760, %v13475_v47 }
 0x34e   :  { %v3945_v2 = vpop.f32.mrf.mxu0  ;;  %v3986_v20 = vpop.f32.mrf.mxu1  ;;  %v13486_v42 = vand.u32 4294901760, %v11575_v38 }
 0x34f   :  { %v3946_v28 = vadd.f32 %v3945_v2, %v13399_v55  ;;  %v4031_v39 = vpop.f32.mrf.mxu2  ;;  %v5248_v55 = vand.u32 4294901760, %v13472_v43  ;;  %v4920_v26 = vsub.f32 %v13475_v47, %v13503_v8 }
 0x350   :  { %v4088_v13 = vpop.f32.mrf.mxu3  ;;  %5192 = vmatpush.msrb.mxu2 %v13486_v42 }
 0x351   :  { %v3983_v17 = vadd.f32 %v3982_v62, %v3946_v28  ;;  %v13481_v31 = vadd.f32 %v4088_v13, %v4031_v39  ;;  %4687 = vmatmul.f32.gmra.mxu0 %v13132_v36  ;;  %4737 = vmatmul.f32.gmra.mxu1 %v13168_v53  ;;  %v5249_v22 = vsub.f32 %v13472_v43, %v5248_v55  ;;  %v13500_v53 = vand.u32 4294901760, %v11571_v45 }
 0x352   :  { %v13498_v36 = vsub.f32 %v11575_v38, %v13486_v42  ;;  %v13550_v28 = vand.u32 4294901760, %v4892_v7 }
 0x353   :  { %v13493_v61 = vadd.f32 %v3983_v17, %v13057_v41  ;;  %4782 = vmatmul.f32.gmra.mxu2 %v13147_v21  ;;  %v5250_v41 = vand.u32 4294901760, %v5249_v22  ;;  %v13511_v50 = vsub.f32 %v11571_v45, %v13500_v53 }
 0x354   :  { %v5254_v9 = vand.u32 4294901760, %v13498_v36  ;;  %5194 = vmatpush.msrb.mxu2 %v13500_v53 }
 0x355   :  { %4819 = vmatmul.f32.gmra.mxu3 %v13147_v21  ;;  %v5260_v21 = vand.u32 4294901760, %v13511_v50 }
 0x356   :  { %v3949_v62 = vpop.f32.mrf.mxu0  ;;  %v4164_v33 = vpop.f32.mrf.mxu1  ;;  %5251 = vmatpush.msrb.mxu3 %v5250_v41  ;;  %v5255_v3 = vsub.f32 %v13498_v36, %v5254_v9 }
 0x357   :  { %v3950_v0 = vadd.f32 %v3949_v62, %v13409_v54  ;;  %v4039_v23 = vpop.f32.mrf.mxu2  ;;  %v5261_v51 = vsub.f32 %v13511_v50, %v5260_v21 }
 0x358   :  { %v4092_v5 = vpop.f32.mrf.mxu3  ;;  %v5256_v27 = vand.u32 4294901760, %v5255_v3 }
 0x359   :  { %v3987_v54 = vadd.f32 %v3986_v20, %v3950_v0  ;;  %v13526_v16 = vadd.f32 %v4092_v5, %v4039_v23  ;;  %4692 = vmatmul.f32.gmra.mxu0 %v13161_v6  ;;  %4987 = vmatmul.f32.vlgmr.msra.gmra.mxu1 %v13464_v25  ;;  %v5262_v63 = vand.u32 4294901760, %v5261_v51  ;;  %v4847_v6 = vsel %vm4843_vm14, %v4842_v34, %v4839_v19 }
 0x35a   :  { %5339 = vmatpush.msra.mxu1 %v13431_v35  ;;  %5257 = vmatpush.msrb.mxu3 %v5256_v27  ;;  %v13545_v20 = vand.u32 4294901760, %v4920_v26  ;;  %v4867_v18 = vsel %vm4859_vm1, %v4847_v6, 0.0 }
 0x35b   :  { %v13534_v2 = vadd.f32 %v3987_v54, %v13103_v57  ;;  %5029 = vmatmul.f32.vlgmr.msra.gmra.mxu2 %v13475_v47  ;;  %v13548_v57 = vand.u32 4294901760, %v13522_v11 }
 0x35c   :  { %5386 = vmatpush.msra.mxu2 %v5242_v32  ;;  %5341 = vmatpush.msra.mxu1 %v13466_v56 }
 0x35d   :  { %19054 = vst [vmem:[#allocation11_spill] sm:$0xff] %v13534_v2  ;;  %5071 = vmatmul.f32.vlgmr.msra.gmra.mxu3 %v13503_v8  ;;  %v4928_v17 = vsub.f32 %v13522_v11, %v13548_v57 }
 0x35e   :  { %v4122_v39 = vpop.f32.mrf.mxu0  ;;  %v4170_v12 = vpop.f32.mrf.mxu1  ;;  %5263 = vmatpush.msrb.mxu3 %v5262_v63  ;;  %5390 = vmatpush.msra.mxu2 %v5248_v55  ;;  %v13560_v55 = vsub.f32 %v4892_v7, %v13550_v28 }
 0x35f   :  { %v4123_v19 = vadd.f32 %v4122_v39, %v13415_v40  ;;  %v4215_v13 = vpop.f32.mrf.mxu2  ;;  %5343 = vmatpush.msra.mxu1 %v13486_v42  ;;  %v4895_v40 = vsel %vm30_vm0, %v4867_v18, 0  ;;  %v13570_v45 = vand.u32 4294901760, %v4928_v17  ;;  %vm11513_vm0 = vcmask 64512  }
 0x360   :  { %5429 = vmatpush.msra.mxu3 %v13431_v35  ;;  %v4252_v32 = vpop.f32.mrf.mxu3  ;;  %5394 = vmatpush.msra.mxu2 %v5254_v9  ;;  %v13573_v22 = vand.u32 4294901760, %v13560_v55 }
 0x361   :  { %v4165_v38 = vadd.f32 %v4164_v33, %v4123_v19  ;;  %4922 = vmatmul.f32.vlgmr.msra.gmra.mxu0 %v13545_v20  ;;  %4991 = vmatmul.f32.gmra.mxu1 %v13505_v49 }
 0x362   :  { %5295 = vmatpush.msra.mxu0 %v13440_v4  ;;  %5431 = vmatpush.msra.mxu3 %v13466_v56  ;;  %v13575_v4 = vand.u32 4294901760, %v4895_v40  ;;  %v4936_v0 = vsub.f32 %v13560_v55, %v13573_v22 }
 0x363   :  { %v4216_v35 = vadd.f32 %v4215_v13, %v4165_v38  ;;  %5034 = vmatmul.f32.gmra.mxu2 %v13522_v11  ;;  %5345 = vmatpush.msra.mxu1 %v13500_v53  ;;  %v19059_v38 = vld [vmem:[#allocation7_spill] sm:$0xff] }
 0x364   :  { %5298 = vmatpush.msra.mxu0 %v13472_v43  ;;  %5433 = vmatpush.msra.mxu3 %v13486_v42 }
 0x365   :  { %v4253_v34 = vadd.f32 %v4252_v32, %v4216_v35  ;;  %5077 = vmatmul.f32.gmra.mxu3 %v13548_v57  ;;  %5398 = vmatpush.msra.mxu2 %v5260_v21 }
 0x366   :  { %v4127_v56 = vpop.f32.mrf.mxu0  ;;  %v4176_v41 = vpop.f32.mrf.mxu1  ;;  %5301 = vmatpush.msra.mxu0 %v13498_v36  ;;  %5435 = vmatpush.msra.mxu3 %v13500_v53  ;;  %v13589_v36 = vsub.f32 %v4895_v40, %v13575_v4 }
 0x367   :  { %v13580_v43 = vadd.f32 %v4253_v34, %v13152_v15  ;;  %v4128_v42 = vadd.f32 %v4127_v56, %v13447_v30  ;;  %v4219_v9 = vpop.f32.mrf.mxu2  ;;  %v13593_v30 = vand.u32 4294901760, %v4936_v0  ;;  %v11584_v56 = vld [vmem:[%s18774_s3 + $0x270] sm:$0xff] }
 0x368   :  { %v4256_v62 = vpop.f32.mrf.mxu3  ;;  %5304 = vmatpush.msra.mxu0 %v13511_v50  ;;  %19056 = vst [vmem:[#allocation13_spill] sm:$0xff] %v13589_v36  ;;  %v13596_v50 = vand.u32 4294901760, %v13589_v36 }
 0x369   :  { %19055 = vst [vmem:[#allocation12_spill] sm:$0xff] %v13580_v43  ;;  %v4171_v33 = vadd.f32 %v4170_v12, %v4128_v42  ;;  %4930 = vmatmul.f32.gmra.mxu0 %v13570_v45  ;;  %4995 = vmatmul.f32.gmra.mxu1 %v13550_v28 }
 0x36a   :  { %v4944_v46 = vsub.f32 %v13589_v36, %v13596_v50 }
 0x36b   :  { %v4220_v53 = vadd.f32 %v4219_v9, %v4171_v33  ;;  %5039 = vmatmul.f32.gmra.mxu2 %v13560_v55 }
 0x36d   :  { %v4257_v15 = vadd.f32 %v4256_v62, %v4220_v53  ;;  %5083 = vmatmul.f32.gmra.mxu3 %v13573_v22 }
 0x36e   :  { %v4132_v23 = vpop.f32.mrf.mxu0  ;;  %v4182_v44 = vpop.f32.mrf.mxu1 }
 0x36f   :  { %v13599_v3 = vadd.f32 %v4257_v15, %v13171_v60  ;;  %v4133_v21 = vadd.f32 %v4132_v23, %v13481_v31  ;;  %v4223_v5 = vpop.f32.mrf.mxu2  ;;  %v13608_v60 = vand.u32 4294901760, %v4944_v46  ;;  %v11576_v46 = vld [vmem:[%s18774_s3 + $0x230] sm:$0xff] }
 0x370   :  { %v4260_v26 = vpop.f32.mrf.mxu3 }
 0x371   :  { %19057 = vst [vmem:[#allocation14_spill] sm:$0xff] %v13599_v3  ;;  %v4177_v37 = vadd.f32 %v4176_v41, %v4133_v21  ;;  %4938 = vmatmul.f32.gmra.mxu0 %v13593_v30  ;;  %4999 = vmatmul.f32.gmra.mxu1 %v13575_v4  ;;  %v13629_v41 = vand.u32 4294901760, %v11584_v56  ;;  %v11580_v21 = vld [vmem:[%s18774_s3 + $0x250] sm:$0xff] }
 0x373   :  { %v4224_v54 = vadd.f32 %v4223_v5, %v4177_v37  ;;  %5044 = vmatmul.f32.gmra.mxu2 %v13589_v36  ;;  %v13633_v62 = vsub.f32 %v11584_v56, %v13629_v41 }
 0x375   :  { %v4261_v27 = vadd.f32 %v4260_v26, %v4224_v54  ;;  %5089 = vmatmul.f32.gmra.mxu3 %v13596_v50  ;;  %v5520_v15 = vand.u32 4294901760, %v13633_v62  ;;  %v5467_v26 = vand.u32 4294901760, %v11580_v21 }
 0x376   :  { %v4137_v51 = vpop.f32.mrf.mxu0  ;;  %v4358_v31 = vpop.f32.mrf.mxu1 }
 0x377   :  { %v13611_v7 = vadd.f32 %v4261_v27, %v13183_v10  ;;  %v4138_v63 = vadd.f32 %v4137_v51, %v13526_v16  ;;  %v4227_v6 = vpop.f32.mrf.mxu2  ;;  %v13654_v54 = vsub.f32 %v11580_v21, %v5467_v26  ;;  %v5469_v27 = vand.u32 4294901760, %v11576_v46 }
 0x378   :  { %v4264_v39 = vpop.f32.mrf.mxu3 }
 0x379   :  { %19058 = vst [vmem:[#allocation15_spill] sm:$0xff] %v13611_v7  ;;  %v4183_v12 = vadd.f32 %v4182_v44, %v4138_v63  ;;  %4946 = vmatmul.f32.gmra.mxu0 %v13608_v60  ;;  %5159 = vmatmul.f32.vlgmr.msrb.gmra.mxu1 %v13464_v25  ;;  %v5521_v44 = vsub.f32 %v13633_v62, %v5520_v15  ;;  %v11572_v63 = vld [vmem:[%s18774_s3 + $0x210] sm:$0xff] }
 0x37b   :  { %v4228_v19 = vadd.f32 %v4227_v6, %v4183_v12  ;;  %5200 = vmatmul.f32.vlgmr.msrb.gmra.mxu2 %v13545_v20  ;;  %v5522_v37 = vand.u32 4294901760, %v5521_v44  ;;  %v5526_v12 = vand.u32 4294901760, %v13654_v54 }
 0x37c   :  { %5573 = vmatpush.msrb.mxu2 %v13633_v62 }
 0x37d   :  { %v4265_v13 = vadd.f32 %v4264_v39, %v4228_v19  ;;  %5265 = vmatmul.f32.vlgmr.msrb.gmra.mxu3 %v13464_v25  ;;  %5523 = vmatpush.msrb.mxu1 %v5522_v37  ;;  %v5531_v19 = vsub.f32 %v11576_v46, %v5469_v27 }
 0x37e   :  { %v4293_v18 = vpop.f32.mrf.mxu0  ;;  %v4362_v32 = vpop.f32.mrf.mxu1  ;;  %5617 = vmatpush.msrb.mxu3 %v13629_v41  ;;  %5576 = vmatpush.msrb.mxu2 %v13654_v54 }
 0x37f   :  { %v13619_v10 = vadd.f32 %v4265_v13, %v19059_v38  ;;  %v4359_v17 = vadd.f32 %v4358_v31, %v4293_v18  ;;  %v4400_v16 = vpop.f32.mrf.mxu2  ;;  %v5471_v13 = vand.u32 4294901760, %v11572_v63  ;;  %v5527_v38 = vsub.f32 %v13654_v54, %v5526_v12 }
 0x380   :  { %v4442_v40 = vpop.f32.mrf.mxu3  ;;  %5619 = vmatpush.msrb.mxu3 %v5467_v26  ;;  %5579 = vmatpush.msrb.mxu2 %v5531_v19 }
 0x381   :  { %19060 = vst [vmem:[#allocation7_spill] sm:$0xff] %v13619_v10  ;;  %v4401_v35 = vadd.f32 %v4400_v16, %v4359_v17  ;;  %5122 = vmatmul.f32.vlgmr.msrb.gmra.mxu0 %v13464_v25  ;;  %5163 = vmatmul.f32.gmra.mxu1 %v13505_v49  ;;  %v5532_v17 = vand.u32 4294901760, %v5531_v19  ;;  %v5537_v16 = vsub.f32 %v11572_v63, %v5471_v13  ;;  %v6069_v10 = vld [vmem:[%s18778_s5 + $0x10] sm:$0xff] }
 0x382   :  { %5466 = vmatpush.msrb.mxu0 %v13629_v41  ;;  %5621 = vmatpush.msrb.mxu3 %v5469_v27 }
 0x383   :  { %v13623_v34 = vadd.f32 %v4442_v40, %v4401_v35  ;;  %5208 = vmatmul.f32.gmra.mxu2 %v13570_v45  ;;  %v5528_v35 = vand.u32 4294901760, %v5527_v38  ;;  %v5533_v56 = vsub.f32 %v5531_v19, %v5532_v17 }
 0x384   :  { %5468 = vmatpush.msrb.mxu0 %v5467_v26  ;;  %5623 = vmatpush.msrb.mxu3 %v5471_v13 }
 0x385   :  { %5269 = vmatmul.f32.gmra.mxu3 %v13505_v49  ;;  %5582 = vmatpush.msrb.mxu2 %v5537_v16 }
 0x386   :  { %v4301_v42 = vpop.f32.mrf.mxu0  ;;  %v4366_v9 = vpop.f32.mrf.mxu1  ;;  %5470 = vmatpush.msrb.mxu0 %v5469_v27  ;;  %5529 = vmatpush.msrb.mxu1 %v5528_v35 }
 0x387   :  { %v4363_v33 = vadd.f32 %v4362_v32, %v4301_v42  ;;  %v4405_v0 = vpop.f32.mrf.mxu2  ;;  %v5538_v42 = vand.u32 4294901760, %v5537_v16 }
 0x388   :  { %v4448_v53 = vpop.f32.mrf.mxu3  ;;  %5472 = vmatpush.msrb.mxu0 %v5471_v13 }
 0x389   :  { %v4406_v23 = vadd.f32 %v4405_v0, %v4363_v33  ;;  %5126 = vmatmul.f32.gmra.mxu0 %v13505_v49  ;;  %5167 = vmatmul.f32.gmra.mxu1 %v13550_v28  ;;  %v5539_v33 = vsub.f32 %v5537_v16, %v5538_v42 }
 0x38b   :  { %v13647_v5 = vadd.f32 %v4448_v53, %v4406_v23  ;;  %5216 = vmatmul.f32.gmra.mxu2 %v13593_v30  ;;  %v5540_v21 = vand.u32 4294901760, %v5539_v33  ;;  %v19063_v33 = vld [vmem:[#allocation9_spill] sm:$0xff] }
 0x38d   :  { %5273 = vmatmul.f32.gmra.mxu3 %v13550_v28 }
 0x38e   :  { %v4309_v51 = vpop.f32.mrf.mxu0  ;;  %v4370_v31 = vpop.f32.mrf.mxu1 }
 0x38f   :  { %v4367_v6 = vadd.f32 %v4366_v9, %v4309_v51  ;;  %v4410_v39 = vpop.f32.mrf.mxu2  ;;  %v5534_v9 = vand.u32 4294901760, %v5533_v56 }
 0x390   :  { %v4454_v18 = vpop.f32.mrf.mxu3 }
 0x391   :  { %v4411_v32 = vadd.f32 %v4410_v39, %v4367_v6  ;;  %5130 = vmatmul.f32.gmra.mxu0 %v13550_v28  ;;  %5171 = vmatmul.f32.gmra.mxu1 %v13575_v4 }
 0x392   :  { %5535 = vmatpush.msrb.mxu1 %v5534_v9 }
 0x393   :  { %v13664_v40 = vadd.f32 %v4454_v18, %v4411_v32  ;;  %5224 = vmatmul.f32.gmra.mxu2 %v13608_v60 }
 0x394   :  { %5541 = vmatpush.msrb.mxu1 %v5540_v21 }
 0x395   :  { %5277 = vmatmul.f32.gmra.mxu3 %v13575_v4 }
 0x396   :  { %v4317_v0 = vpop.f32.mrf.mxu0  ;;  %v4530_v53 = vpop.f32.mrf.mxu1 }
 0x397   :  { %v4371_v23 = vadd.f32 %v4370_v31, %v4317_v0  ;;  %v4415_v44 = vpop.f32.mrf.mxu2 }
 0x398   :  { %v4460_v37 = vpop.f32.mrf.mxu3 }
 0x399   :  { %v4416_v46 = vadd.f32 %v4415_v44, %v4371_v23  ;;  %5134 = vmatmul.f32.gmra.mxu0 %v13575_v4  ;;  %5349 = vmatmul.f32.vlgmr.msra.gmra.mxu1 %v13503_v8 }
 0x39a   :  { %5707 = vmatpush.msra.mxu1 %v13629_v41  ;;  %v19061_v41 = vld [vmem:[#allocation8_spill] sm:$0xff] }
 0x39b   :  { %v13670_v54 = vadd.f32 %v4460_v37, %v4416_v46  ;;  %5400 = vmatmul.f32.vlgmr.msra.gmra.mxu2 %v13464_v25 }
 0x39c   :  { %5709 = vmatpush.msra.mxu1 %v5467_v26 }
 0x39d   :  { %5437 = vmatmul.f32.vlgmr.msra.gmra.mxu3 %v13464_v25 }
 0x39e   :  { %v4493_v51 = vpop.f32.mrf.mxu0  ;;  %v4534_v31 = vpop.f32.mrf.mxu1  ;;  %5711 = vmatpush.msra.mxu1 %v5469_v27 }
 0x39f   :  { %v4494_v63 = vadd.f32 %v4493_v51, %v13623_v34  ;;  %v4571_v6 = vpop.f32.mrf.mxu2  ;;  %v11585_v34 = vld [vmem:[%s18774_s3 + $0x278] sm:$0xff] }
 0x3a0   :  { %v4636_v39 = vpop.f32.mrf.mxu3  ;;  %5713 = vmatpush.msra.mxu1 %v5471_v13  ;;  %v13689_v27 = vand.u32 4294901760, %v11585_v34  ;;  %v11577_v51 = vld [vmem:[%s18774_s3 + $0x238] sm:$0xff] }
 0x3a1   :  { %v4531_v19 = vadd.f32 %v4530_v53, %v4494_v63  ;;  %v13676_v18 = vadd.f32 %v4636_v39, %v4571_v6  ;;  %5307 = vmatmul.f32.vlgmr.msra.gmra.mxu0 %v13475_v47  ;;  %5355 = vmatmul.f32.gmra.mxu1 %v13548_v57  ;;  %v5747_v39 = vand.u32 4294901760, %v11577_v51 }
 0x3a2   :  { %5664 = vmatpush.msra.mxu0 %v5520_v15  ;;  %5744 = vmatpush.msra.mxu2 %v13689_v27  ;;  %v13694_v62 = vsub.f32 %v11585_v34, %v13689_v27 }
 0x3a3   :  { %v13683_v26 = vadd.f32 %v4531_v19, %v19061_v41  ;;  %5404 = vmatmul.f32.gmra.mxu2 %v13505_v49  ;;  %v19065_v19 = vld [vmem:[#allocation10_spill] sm:$0xff] }
 0x3a4   :  { %5668 = vmatpush.msra.mxu0 %v5526_v12  ;;  %v5798_v35 = vand.u32 4294901760, %v13694_v62 }
 0x3a5   :  { %19062 = vst [vmem:[#allocation8_spill] sm:$0xff] %v13683_v26  ;;  %5441 = vmatmul.f32.gmra.mxu3 %v13505_v49 }
 0x3a6   :  { %v4497_v32 = vpop.f32.mrf.mxu0  ;;  %v4538_v38 = vpop.f32.mrf.mxu1  ;;  %5672 = vmatpush.msra.mxu0 %v5532_v17  ;;  %v5799_v12 = vsub.f32 %v13694_v62, %v5798_v35 }
 0x3a7   :  { %v4498_v15 = vadd.f32 %v4497_v32, %v13647_v5  ;;  %v4579_v13 = vpop.f32.mrf.mxu2  ;;  %v11581_v5 = vld [vmem:[%s18774_s3 + $0x258] sm:$0xff]  ;;  %v5809_v32 = vsub.f32 %v11577_v51, %v5747_v39 }
 0x3a8   :  { %v4640_v16 = vpop.f32.mrf.mxu3  ;;  %5676 = vmatpush.msra.mxu0 %v5538_v42  ;;  %v5800_v17 = vand.u32 4294901760, %v5799_v12  ;;  %v13710_v42 = vand.u32 4294901760, %v11581_v5 }
 0x3a9   :  { %v4535_v56 = vadd.f32 %v4534_v31, %v4498_v15  ;;  %v13698_v9 = vadd.f32 %v4640_v16, %v4579_v13  ;;  %5312 = vmatmul.f32.gmra.mxu0 %v13522_v11  ;;  %5361 = vmatmul.f32.gmra.mxu1 %v13573_v22  ;;  %v5810_v13 = vand.u32 4294901760, %v5809_v32 }
 0x3aa   :  { %5801 = vmatpush.msra.mxu3 %v5800_v17  ;;  %5746 = vmatpush.msra.mxu2 %v13710_v42  ;;  %v5803_v37 = vsub.f32 %v11581_v5, %v13710_v42 }
 0x3ab   :  { %v13704_v0 = vadd.f32 %v4535_v56, %v19063_v33  ;;  %5408 = vmatmul.f32.gmra.mxu2 %v13550_v28  ;;  %v5811_v17 = vsub.f32 %v5809_v32, %v5810_v13 }
 0x3ac   :  { %v5804_v6 = vand.u32 4294901760, %v5803_v37  ;;  %5748 = vmatpush.msra.mxu2 %v5747_v39 }
 0x3ad   :  { %19064 = vst [vmem:[#allocation9_spill] sm:$0xff] %v13704_v0  ;;  %5445 = vmatmul.f32.gmra.mxu3 %v13550_v28  ;;  %v5812_v51 = vand.u32 4294901760, %v5811_v17  ;;  %v6082_v17 = vld [vmem:[%s18778_s5 + $0x78] sm:$0xff] }
 0x3ae   :  { %v4501_v53 = vpop.f32.mrf.mxu0  ;;  %v4542_v23 = vpop.f32.mrf.mxu1  ;;  %v5805_v34 = vsub.f32 %v5803_v37, %v5804_v6  ;;  %v6070_v0 = vld [vmem:[%s18778_s5 + $0x18] sm:$0xff] }
 0x3af   :  { %v4502_v44 = vadd.f32 %v4501_v53, %v13664_v40  ;;  %v4587_v21 = vpop.f32.mrf.mxu2  ;;  %v11573_v40 = vld [vmem:[%s18774_s3 + $0x218] sm:$0xff]  ;;  %v13956_v26 = vand.u32 4294901760, %v6070_v0 }
 0x3b0   :  { %v4644_v46 = vpop.f32.mrf.mxu3  ;;  %v5806_v15 = vand.u32 4294901760, %v5805_v34 }
 0x3b1   :  { %v4539_v31 = vadd.f32 %v4538_v38, %v4502_v44  ;;  %v13719_v63 = vadd.f32 %v4644_v46, %v4587_v21  ;;  %5317 = vmatmul.f32.gmra.mxu0 %v13560_v55  ;;  %5367 = vmatmul.f32.gmra.mxu1 %v13596_v50  ;;  %v5749_v38 = vand.u32 4294901760, %v11573_v40  ;;  %v13971_v3 = vsub.f32 %v6070_v0, %v13956_v26 }
 0x3b2   :  { %5807 = vmatpush.msra.mxu3 %v5806_v15 }
 0x3b3   :  { %v13727_v41 = vadd.f32 %v4539_v31, %v19065_v19  ;;  %5412 = vmatmul.f32.gmra.mxu2 %v13575_v4  ;;  %v5815_v16 = vsub.f32 %v11573_v40, %v5749_v38  ;;  %19087 = vst [vmem:[#allocation33_spill] sm:$0xff] %v13971_v3 }
 0x3b4   :  { %5750 = vmatpush.msra.mxu2 %v5749_v38  ;;  %5813 = vmatpush.msra.mxu3 %v5812_v51 }
 0x3b5   :  { %19066 = vst [vmem:[#allocation10_spill] sm:$0xff] %v13727_v41  ;;  %5449 = vmatmul.f32.gmra.mxu3 %v13575_v4  ;;  %v5816_v53 = vand.u32 4294901760, %v5815_v16 }
 0x3b6   :  { %v4505_v56 = vpop.f32.mrf.mxu0  ;;  %v4720_v12 = vpop.f32.mrf.mxu1 }
 0x3b7   :  { %v4506_v33 = vadd.f32 %v4505_v56, %v13670_v54  ;;  %v4595_v5 = vpop.f32.mrf.mxu2  ;;  %v5817_v31 = vsub.f32 %v5815_v16, %v5816_v53 }
 0x3b8   :  { %v4648_v44 = vpop.f32.mrf.mxu3 }
 0x3b9   :  { %v4543_v21 = vadd.f32 %v4542_v23, %v4506_v33  ;;  %v13732_v46 = vadd.f32 %v4648_v44, %v4595_v5  ;;  %5322 = vmatmul.f32.gmra.mxu0 %v13589_v36  ;;  %5543 = vmatmul.f32.vlgmr.msrb.gmra.mxu1 %v13464_v25  ;;  %v5818_v54 = vand.u32 4294901760, %v5817_v31  ;;  %v13768_v44 = vand.u32 4294901760, %v6082_v17  ;;  %v6080_v31 = vld [vmem:[%s18778_s5 + $0x68] sm:$0xff] }
 0x3ba   :  { %5895 = vmatpush.msrb.mxu1 %v13689_v27 }
 0x3bb   :  { %v13738_v40 = vadd.f32 %v4543_v21, %v13310_v52  ;;  %5585 = vmatmul.f32.vlgmr.msrb.gmra.mxu2 %v13475_v47  ;;  %5819 = vmatpush.msra.mxu3 %v5818_v54 }
 0x3bc   :  { %5942 = vmatpush.msrb.mxu2 %v5798_v35  ;;  %5897 = vmatpush.msrb.mxu1 %v13710_v42 }
 0x3bd   :  { %19067 = vst [vmem:[#allocation16_spill] sm:$0xff] %v13738_v40  ;;  %5627 = vmatmul.f32.vlgmr.msrb.gmra.mxu3 %v13503_v8 }
 0x3be   :  { %v4678_v23 = vpop.f32.mrf.mxu0  ;;  %v4726_v19 = vpop.f32.mrf.mxu1  ;;  %5946 = vmatpush.msrb.mxu2 %v5804_v6  ;;  %5985 = vmatpush.msrb.mxu3 %v13689_v27 }
 0x3bf   :  { %v4679_v34 = vadd.f32 %v4678_v23, %v13676_v18  ;;  %v4771_v15 = vpop.f32.mrf.mxu2  ;;  %5899 = vmatpush.msrb.mxu1 %v5747_v39 }
 0x3c0   :  { %v4808_v52 = vpop.f32.mrf.mxu3  ;;  %5950 = vmatpush.msrb.mxu2 %v5810_v13  ;;  %5987 = vmatpush.msrb.mxu3 %v13710_v42 }
 0x3c1   :  { %v4721_v56 = vadd.f32 %v4720_v12, %v4679_v34  ;;  %5478 = vmatmul.f32.vlgmr.msrb.gmra.mxu0 %v13545_v20  ;;  %5547 = vmatmul.f32.gmra.mxu1 %v13505_v49  ;;  %v13787_v34 = vand.u32 4294901760, %v6080_v31 }
 0x3c2   :  { %5851 = vmatpush.msrb.mxu0 %v13694_v62  ;;  %5901 = vmatpush.msrb.mxu1 %v5749_v38 }
 0x3c3   :  { %v4772_v35 = vadd.f32 %v4771_v15, %v4721_v56  ;;  %5590 = vmatmul.f32.gmra.mxu2 %v13522_v11  ;;  %5989 = vmatpush.msrb.mxu3 %v5747_v39  ;;  %v6079_v56 = vld [vmem:[%s18778_s5 + $0x60] sm:$0xff] }
 0x3c4   :  { %5854 = vmatpush.msrb.mxu0 %v5803_v37  ;;  %5954 = vmatpush.msrb.mxu2 %v5816_v53 }
 0x3c5   :  { %v4809_v18 = vadd.f32 %v4808_v52, %v4772_v35  ;;  %5633 = vmatmul.f32.gmra.mxu3 %v13548_v57 }
 0x3c6   :  { %v4683_v27 = vpop.f32.mrf.mxu0  ;;  %v4732_v6 = vpop.f32.mrf.mxu1  ;;  %5857 = vmatpush.msrb.mxu0 %v5809_v32  ;;  %5991 = vmatpush.msrb.mxu3 %v5749_v38 }
 0x3c7   :  { %v13752_v13 = vadd.f32 %v4809_v18, %v13324_v48  ;;  %v4684_v62 = vadd.f32 %v4683_v27, %v13698_v9  ;;  %v4775_v42 = vpop.f32.mrf.mxu2 }
 0x3c8   :  { %v4812_v12 = vpop.f32.mrf.mxu3  ;;  %5860 = vmatpush.msrb.mxu0 %v5815_v16 }
 0x3c9   :  { %19068 = vst [vmem:[#allocation17_spill] sm:$0xff] %v13752_v13  ;;  %v4727_v33 = vadd.f32 %v4726_v19, %v4684_v62  ;;  %5486 = vmatmul.f32.gmra.mxu0 %v13570_v45  ;;  %5551 = vmatmul.f32.gmra.mxu1 %v13550_v28 }
 0x3cb   :  { %v4776_v37 = vadd.f32 %v4775_v42, %v4727_v33  ;;  %5595 = vmatmul.f32.gmra.mxu2 %v13560_v55  ;;  %v13805_v33 = vand.u32 4294901760, %v6079_v56 }
 0x3cd   :  { %v4813_v39 = vadd.f32 %v4812_v12, %v4776_v37  ;;  %5639 = vmatmul.f32.gmra.mxu3 %v13573_v22  ;;  %v13803_v12 = vsub.f32 %v6080_v31, %v13787_v34 }
 0x3ce   :  { %v4688_v32 = vpop.f32.mrf.mxu0  ;;  %v4738_v38 = vpop.f32.mrf.mxu1 }
 0x3cf   :  { %v13760_v48 = vadd.f32 %v4813_v39, %v13332_v59  ;;  %v4689_v9 = vadd.f32 %v4688_v32, %v13719_v63  ;;  %v4779_v5 = vpop.f32.mrf.mxu2  ;;  %v6081_v59 = vld [vmem:[%s18778_s5 + $0x70] sm:$0xff]  ;;  %v13775_v63 = vsub.f32 %v6082_v17, %v13768_v44 }
 0x3d0   :  { %v4816_v16 = vpop.f32.mrf.mxu3  ;;  %v13777_v51 = vand.u32 4294901760, %v6081_v59 }
 0x3d1   :  { %19069 = vst [vmem:[#allocation18_spill] sm:$0xff] %v13760_v48  ;;  %v4733_v53 = vadd.f32 %v4732_v6, %v4689_v9  ;;  %5494 = vmatmul.f32.gmra.mxu0 %v13593_v30  ;;  %5555 = vmatmul.f32.gmra.mxu1 %v13575_v4  ;;  %v18795_v23 = vand.u32 4294901760, %v13775_v63  ;;  %v18791_v9 = vand.u32 4294901760, %v13803_v12 }
 0x3d2   :  { %v13785_v19 = vsub.f32 %v6081_v59, %v13777_v51 }
 0x3d3   :  { %v4780_v21 = vadd.f32 %v4779_v5, %v4733_v53  ;;  %5600 = vmatmul.f32.gmra.mxu2 %v13589_v36  ;;  %v6199_v6 = vsub.f32 %v13775_v63, %v18795_v23  ;;  %v13819_v5 = vsub.f32 %v6079_v56, %v13805_v33 }
 0x3d4   :  { %v18793_v62 = vand.u32 4294901760, %v13785_v19 }
 0x3d5   :  { %v4817_v54 = vadd.f32 %v4816_v16, %v4780_v21  ;;  %5645 = vmatmul.f32.gmra.mxu3 %v13596_v50  ;;  %19071 = vst [vmem:[#allocation20_spill] sm:$0xff] %v13819_v5  ;;  %v6211_v21 = vsub.f32 %v13803_v12, %v18791_v9  ;;  %v18790_v31 = vand.u32 4294901760, %v13819_v5 }
 0x3d6   :  { %v4693_v15 = vpop.f32.mrf.mxu0  ;;  %v13789_v52 = vpop.f32.mrf.mxu1  ;;  %v6205_v39 = vsub.f32 %v13785_v19, %v18793_v62  ;;  %v6073_v62 = vld [vmem:[%s18778_s5 + $0x30] sm:$0xff] }
 0x3d7   :  { %v13795_v35 = vadd.f32 %v4817_v54, %v13340_v58  ;;  %v4694_v18 = vadd.f32 %v4693_v15, %v13732_v46  ;;  %v4783_v27 = vpop.f32.mrf.mxu2  ;;  %v6078_v58 = vld [vmem:[%s18778_s5 + $0x58] sm:$0xff]  ;;  %v6200_v46 = vand.u32 4294901760, %v6199_v6  ;;  %v6076_v54 = vld [vmem:[%s18778_s5 + $0x48] sm:$0xff] }
 0x3d8   :  { %v4820_v42 = vpop.f32.mrf.mxu3  ;;  %v13815_v32 = vand.u32 4294901760, %v6078_v58  ;;  %v6206_v17 = vand.u32 4294901760, %v6205_v39 }
 0x3d9   :  { %19070 = vst [vmem:[#allocation19_spill] sm:$0xff] %v13795_v35  ;;  %v4739_v37 = vadd.f32 %v4738_v38, %v4694_v18  ;;  %5502 = vmatmul.f32.gmra.mxu0 %v13608_v60  ;;  %5715 = vmatmul.f32.vlgmr.msra.gmra.mxu1 %v13464_v25  ;;  %v6077_v38 = vld [vmem:[%s18778_s5 + $0x50] sm:$0xff]  ;;  %v13843_v18 = vand.u32 4294901760, %v6076_v54 }
 0x3da   :  { %6201 = vmatpush.msra.mxu1 %v6200_v46  ;;  %v13826_v53 = vsub.f32 %v6078_v58, %v13815_v32  ;;  %v13828_v59 = vand.u32 4294901760, %v6077_v38  ;;  %v6212_v58 = vand.u32 4294901760, %v6211_v21 }
 0x3db   :  { %v4784_v16 = vadd.f32 %v4783_v27, %v4739_v37  ;;  %5756 = vmatmul.f32.vlgmr.msra.gmra.mxu2 %v13545_v20  ;;  %19074 = vst [vmem:[#allocation23_spill] sm:$0xff] %v13843_v18  ;;  %v6075_v37 = vld [vmem:[%s18778_s5 + $0x40] sm:$0xff] }
 0x3dc   :  { %19072 = vst [vmem:[#allocation21_spill] sm:$0xff] %v13826_v53  ;;  %6311 = vmatpush.msra.mxu2 %v13775_v63  ;;  %6207 = vmatpush.msra.mxu1 %v6206_v17  ;;  %v18792_v15 = vand.u32 4294901760, %v13826_v53  ;;  %v13841_v56 = vsub.f32 %v6077_v38, %v13828_v59  ;;  %v13872_v9 = vand.u32 4294901760, %v6075_v37 }
 0x3dd   :  { %v4821_v20 = vadd.f32 %v4820_v42, %v4784_v16  ;;  %5821 = vmatmul.f32.vlgmr.msra.gmra.mxu3 %v13464_v25  ;;  %v6217_v42 = vsub.f32 %v13819_v5, %v18790_v31  ;;  %v13870_v31 = vsub.f32 %v6076_v54, %v13843_v18 }
 0x3de   :  { %19073 = vst [vmem:[#allocation22_spill] sm:$0xff] %v13841_v56  ;;  %v13845_v27 = vpop.f32.mrf.mxu0  ;;  %v13847_v6 = vpop.f32.mrf.mxu1  ;;  %6314 = vmatpush.msra.mxu2 %v13785_v19  ;;  %6379 = vmatpush.msra.mxu3 %v13768_v44  ;;  %v6223_v38 = vsub.f32 %v13826_v53, %v18792_v15  ;;  %v18794_v16 = vand.u32 4294901760, %v13841_v56  ;;  %v13887_v15 = vsub.f32 %v6075_v37, %v13872_v9 }
 0x3df   :  { %v13858_v46 = vadd.f32 %v4821_v20, %v13348_v14  ;;  %v13860_v39 = vpop.f32.mrf.mxu2  ;;  %6213 = vmatpush.msra.mxu1 %v6212_v58  ;;  %v6218_v21 = vand.u32 4294901760, %v6217_v42  ;;  %19076 = vst [vmem:[#allocation25_spill] sm:$0xff] %v13870_v31  ;;  %v6074_v14 = vld [vmem:[%s18778_s5 + $0x38] sm:$0xff]  ;;  %v18798_v54 = vand.u32 4294901760, %v13870_v31 }
 0x3e0   :  { %v13866_v17 = vpop.f32.mrf.mxu3  ;;  %6317 = vmatpush.msra.mxu2 %v13803_v12  ;;  %19077 = vst [vmem:[#allocation26_spill] sm:$0xff] %v13872_v9  ;;  %v6224_v20 = vand.u32 4294901760, %v6223_v38  ;;  %v6229_v58 = vsub.f32 %v13841_v56, %v18794_v16  ;;  %v13882_v42 = vand.u32 4294901760, %v6074_v14  ;;  %6381 = vmatpush.msra.mxu3 %v13777_v51 }
 0x3e1   :  { %19075 = vst [vmem:[#allocation24_spill] sm:$0xff] %v13858_v46  ;;  %5678 = vmatmul.f32.vlgmr.msra.gmra.mxu0 %v13464_v25  ;;  %5719 = vmatmul.f32.gmra.mxu1 %v13505_v49  ;;  %v6235_v37 = vsub.f32 %v13870_v31, %v18798_v54  ;;  %v19082_v46 = vand.u32 4294901760, %v13887_v15 }
 0x3e2   :  { %6219 = vmatpush.msra.mxu1 %v6218_v21  ;;  %19078 = vst [vmem:[#allocation27_spill] sm:$0xff] %v13887_v15  ;;  %6132 = vmatpush.msra.mxu0 %v13768_v44  ;;  %v6230_v38 = vand.u32 4294901760, %v6229_v58  ;;  %v13895_v16 = vsub.f32 %v6074_v14, %v13882_v42  ;;  %v13897_v21 = vand.u32 4294901760, %v6073_v62  ;;  %v6071_v14 = vld [vmem:[%s18778_s5 + $0x20] sm:$0xff] }
 0x3e3   :  { %5764 = vmatmul.f32.gmra.mxu2 %v13570_v45  ;;  %v6072_v45 = vld [vmem:[%s18778_s5 + $0x28] sm:$0xff]  ;;  %6383 = vmatpush.msra.mxu3 %v13787_v34  ;;  %v6236_v23 = vand.u32 4294901760, %v6235_v37  ;;  %v6241_v35 = vsub.f32 %v13887_v15, %v19082_v46  ;;  %v13940_v41 = vand.u32 4294901760, %v6071_v14 }
 0x3e4   :  { %19079 = vst [vmem:[#allocation28_spill] sm:$0xff] %v13895_v16  ;;  %6225 = vmatpush.msra.mxu1 %v6224_v20  ;;  %6320 = vmatpush.msra.mxu2 %v13819_v5  ;;  %v13911_v20 = vsub.f32 %v6073_v62, %v13897_v21  ;;  %v13913_v58 = vand.u32 4294901760, %v6072_v45  ;;  %v19083_v48 = vand.u32 4294901760, %v13895_v16 }
 0x3e5   :  { %19080 = vst [vmem:[#allocation29_spill] sm:$0xff] %v13897_v21  ;;  %5825 = vmatmul.f32.gmra.mxu3 %v13505_v49  ;;  %6134 = vmatpush.msra.mxu0 %v13777_v51  ;;  %v6242_v40 = vand.u32 4294901760, %v6241_v35  ;;  %v13954_v35 = vsub.f32 %v6071_v14, %v13940_v41 }
 0x3e6   :  { %19081 = vst [vmem:[#allocation30_spill] sm:$0xff] %v13911_v20  ;;  %v13915_v24 = vpop.f32.mrf.mxu0  ;;  %v13917_v54 = vpop.f32.mrf.mxu1  ;;  %6231 = vmatpush.msra.mxu1 %v6230_v38  ;;  %6323 = vmatpush.msra.mxu2 %v13826_v53  ;;  %v6247_v13 = vsub.f32 %v13895_v16, %v19083_v48  ;;  %v18799_v38 = vand.u32 4294901760, %v13911_v20  ;;  %v13935_v37 = vsub.f32 %v6072_v45, %v13913_v58 }
 0x3e7   :  { %v13926_v62 = vpop.f32.mrf.mxu2  ;;  %6136 = vmatpush.msra.mxu0 %v13787_v34  ;;  %6385 = vmatpush.msra.mxu3 %v13805_v33  ;;  %19085 = vst [vmem:[#allocation32_spill] sm:$0xff] %v13954_v35  ;;  %v18803_v7 = vand.u32 4294901760, %v13954_v35 }
 0x3e8   :  { %19084 = vst [vmem:[#allocation31_spill] sm:$0xff] %v13935_v37  ;;  %v13937_v46 = vpop.f32.mrf.mxu3  ;;  %6237 = vmatpush.msra.mxu1 %v6236_v23  ;;  %v6253_v48 = vsub.f32 %v13911_v20, %v18799_v38  ;;  %6326 = vmatpush.msra.mxu2 %v13841_v56  ;;  %v6248_v23 = vand.u32 4294901760, %v6247_v13  ;;  %v13963_v38 = vand.u32 4294901760, %v6069_v10  ;;  %v19086_v13 = vand.u32 4294901760, %v13935_v37 }
 0x3e9   :  { %5682 = vmatmul.f32.gmra.mxu0 %v13505_v49  ;;  %5723 = vmatmul.f32.gmra.mxu1 %v13550_v28  ;;  %v6265_v0 = vsub.f32 %v13954_v35, %v18803_v7 }
 0x3ea   :  { %6387 = vmatpush.msra.mxu3 %v13815_v32  ;;  %6138 = vmatpush.msra.mxu0 %v13805_v33  ;;  %v6254_v45 = vand.u32 4294901760, %v6253_v48  ;;  %v6259_v14 = vsub.f32 %v13935_v37, %v19086_v13 }
 0x3eb   :  { %5772 = vmatmul.f32.gmra.mxu2 %v13593_v30  ;;  %6243 = vmatpush.msra.mxu1 %v6242_v40  ;;  %v6068_v30 = vld [vmem:[%s18778_s5 + $0x8] sm:$0xff]  ;;  %v13979_v40 = vsub.f32 %v6069_v10, %v13963_v38  ;;  %v6067_v10 = vld [vmem:[%s18778_s5] sm:$0xff] }
 0x3ec   :  { %6329 = vmatpush.msra.mxu2 %v13870_v31  ;;  %6140 = vmatpush.msra.mxu0 %v13815_v32  ;;  %v13981_v48 = vand.u32 4294901760, %v6068_v30  ;;  %v18807_v31 = vand.u32 4294901760, %v13971_v3  ;;  %v6260_v7 = vand.u32 4294901760, %v6259_v14 }
 0x3ed   :  { %5829 = vmatmul.f32.gmra.mxu3 %v13550_v28  ;;  %6249 = vmatpush.msra.mxu1 %v6248_v23  ;;  %v14002_v23 = vand.u32 4294901760, %v6067_v10  ;;  %v18808_v5 = vand.u32 4294901760, %v13979_v40 }
 0x3ee   :  { %v13983_v43 = vpop.f32.mrf.mxu0  ;;  %v13985_v13 = vpop.f32.mrf.mxu1  ;;  %6389 = vmatpush.msra.mxu3 %v13828_v59  ;;  %6332 = vmatpush.msra.mxu2 %v13887_v15  ;;  %v14000_v2 = vsub.f32 %v6068_v30, %v13981_v48  ;;  %v6271_v53 = vsub.f32 %v13971_v3, %v18807_v31  ;;  %v6266_v15 = vand.u32 4294901760, %v6265_v0  ;;  %v6098_v0 = vld [vmem:[%s18778_s5 + $0xf8] sm:$0xff] }
 0x3ef   :  { %v13995_v56 = vpop.f32.mrf.mxu2  ;;  %6142 = vmatpush.msra.mxu0 %v13828_v59  ;;  %6255 = vmatpush.msra.mxu1 %v6254_v45  ;;  %v14014_v30 = vsub.f32 %v6067_v10, %v14002_v23  ;;  %v6277_v10 = vsub.f32 %v13979_v40, %v18808_v5  ;;  %v4989_v45 = vadd.f32 %v13789_v52, %v13845_v27  ;;  %v6097_v52 = vld [vmem:[%s18778_s5 + $0xf0] sm:$0xff] }
 0x3f0   :  { %19088 = vst [vmem:[#allocation34_spill] sm:$0xff] %v14000_v2  ;;  %v14004_v36 = vpop.f32.mrf.mxu3  ;;  %6391 = vmatpush.msra.mxu3 %v13843_v18  ;;  %6335 = vmatpush.msra.mxu2 %v13895_v16  ;;  %v6272_v14 = vand.u32 4294901760, %v6271_v53  ;;  %v19090_v5 = vand.u32 4294901760, %v14000_v2 }
 0x3f1   :  { %5686 = vmatmul.f32.gmra.mxu0 %v13550_v28  ;;  %5727 = vmatmul.f32.gmra.mxu1 %v13575_v4  ;;  %19089 = vst [vmem:[#allocation35_spill] sm:$0xff] %v14014_v30  ;;  %v19091_v16 = vand.u32 4294901760, %v14014_v30 }
 0x3f2   :  { %6393 = vmatpush.msra.mxu3 %v13872_v9  ;;  %6144 = vmatpush.msra.mxu0 %v13843_v18  ;;  %v6283_v31 = vsub.f32 %v14000_v2, %v19090_v5  ;;  %v5031_v18 = vadd.f32 %v13860_v39, %v4989_v45  ;;  %v6095_v39 = vld [vmem:[%s18778_s5 + $0xe0] sm:$0xff] }
 0x3f3   :  { %5780 = vmatmul.f32.gmra.mxu2 %v13608_v60  ;;  %6261 = vmatpush.msra.mxu1 %v6260_v7  ;;  %v14033_v60 = vand.u32 4294901760, %v6098_v0  ;;  %v6289_v5 = vsub.f32 %v14014_v30, %v19091_v16 }
 0x3f4   :  { %6338 = vmatpush.msra.mxu2 %v13911_v20  ;;  %6146 = vmatpush.msra.mxu0 %v13872_v9  ;;  %v6284_v16 = vand.u32 4294901760, %v6283_v31  ;;  %v4993_v31 = vadd.f32 %v13847_v6, %v13915_v24  ;;  %v6094_v24 = vld [vmem:[%s18778_s5 + $0xd8] sm:$0xff] }
 0x3f5   :  { %5833 = vmatmul.f32.gmra.mxu3 %v13575_v4  ;;  %6267 = vmatpush.msra.mxu1 %v6266_v15  ;;  %v6278_v15 = vand.u32 4294901760, %v6277_v10  ;;  %v14055_v9 = vsub.f32 %v6098_v0, %v14033_v60  ;;  %v5073_v0 = vadd.f32 %v13866_v17, %v5031_v18 }
 0x3f6   :  { %v14035_v7 = vpop.f32.mrf.mxu0  ;;  %v5160_v53 = vpop.f32.mrf.mxu1  ;;  %6395 = vmatpush.msra.mxu3 %v13882_v42  ;;  %6341 = vmatpush.msra.mxu2 %v13935_v37  ;;  %v14060_v37 = vand.u32 4294901760, %v6097_v52 }
 0x3f7   :  { %v14044_v27 = vpop.f32.mrf.mxu2  ;;  %6148 = vmatpush.msra.mxu0 %v13882_v42  ;;  %6273 = vmatpush.msra.mxu1 %v6272_v14  ;;  %v6096_v14 = vld [vmem:[%s18778_s5 + $0xe8] sm:$0xff]  ;;  %v19092_v6 = vand.u32 4294901760, %v14055_v9 }
 0x3f8   :  { %v14048_v20 = vpop.f32.mrf.mxu3  ;;  %6397 = vmatpush.msra.mxu3 %v13897_v21  ;;  %6344 = vmatpush.msra.mxu2 %v13954_v35  ;;  %v14074_v10 = vand.u32 4294901760, %v6096_v14  ;;  %v14082_v35 = vsub.f32 %v6097_v52, %v14060_v37 }
 0x3f9   :  { %5690 = vmatmul.f32.gmra.mxu0 %v13575_v4  ;;  %5905 = vmatmul.f32.vlgmr.msrb.gmra.mxu1 %v13503_v8  ;;  %v6290_v8 = vand.u32 4294901760, %v6289_v5  ;;  %v14085_v5 = vand.u32 4294901760, %v6095_v39  ;;  %v6633_v17 = vsub.f32 %v14055_v9, %v19092_v6  ;;  %v14117_v6 = vand.u32 4294901760, %v6094_v24 }
 0x3fa   :  { %6399 = vmatpush.msra.mxu3 %v13913_v58  ;;  %6150 = vmatpush.msra.mxu0 %v13897_v21  ;;  %v14106_v52 = vsub.f32 %v6096_v14, %v14074_v10 }
 0x3fb   :  { %5956 = vmatmul.f32.vlgmr.msrb.gmra.mxu2 %v13464_v25  ;;  %6279 = vmatpush.msra.mxu1 %v6278_v15  ;;  %v14120_v14 = vsub.f32 %v6095_v39, %v14085_v5 }
 0x3fc   :  { %6347 = vmatpush.msra.mxu2 %v13971_v3  ;;  %6152 = vmatpush.msra.mxu0 %v13913_v58  ;;  %v18820_v39 = vand.u32 4294901760, %v14106_v52 }
 0x3fd   :  { %5993 = vmatmul.f32.vlgmr.msrb.gmra.mxu3 %v13464_v25  ;;  %6285 = vmatpush.msra.mxu1 %v6284_v16  ;;  %v14097_v25 = vld [vmem:[%s18779_s4] sm:$0xf]  ;;  %v5036_v16 = vadd.f32 %v13926_v62, %v4993_v31  ;;  %v4997_v31 = vadd.f32 %v13917_v54, %v13983_v43 }
 0x3fe   :  { %v5123_v15 = vpop.f32.mrf.mxu0  ;;  %v5164_v21 = vpop.f32.mrf.mxu1  ;;  %6401 = vmatpush.msra.mxu3 %v13940_v41  ;;  %6350 = vmatpush.msra.mxu2 %v13979_v40 }
 0x3ff   :  { %v5124_v45 = vadd.f32 %v5123_v15, %v5073_v0  ;;  %v14087_v3 = vpop.f32.mrf.mxu2  ;;  %6154 = vmatpush.msra.mxu0 %v13940_v41  ;;  %6291 = vmatpush.msra.mxu1 %v6290_v8  ;;  %v18819_v15 = vand.u32 4294901760, %v14082_v35  ;;  %v6093_v8 = vld [vmem:[%s18778_s5 + $0xd0] sm:$0xff] }
 0x400   :  { %v14099_v18 = vpop.f32.mrf.mxu3  ;;  %6403 = vmatpush.msra.mxu3 %v13956_v26  ;;  %6353 = vmatpush.msra.mxu2 %v14000_v2 }
 0x401   :  { %v5161_v0 = vadd.f32 %v5160_v53, %v5124_v45  ;;  %5863 = vmatmul.f32.vlgmr.msrb.gmra.mxu0 %v13475_v47  ;;  %5911 = vmatmul.f32.gmra.mxu1 %v13548_v57  ;;  %v14124_v47 = vperm.slane %v14097_v25, 0  ;;  %v6092_v57 = vld [vmem:[%s18778_s5 + $0xc8] sm:$0xff]  ;;  %v6634_v53 = vand.u32 4294901760, %v6633_v17  ;;  %v14134_v45 = vand.u32 4294901760, %v6093_v8 }
 0x402   :  { %6405 = vmatpush.msra.mxu3 %v13963_v38  ;;  %6156 = vmatpush.msra.mxu0 %v13956_v26  ;;  %v14150_v17 = vsub.f32 %v6094_v24, %v14117_v6  ;;  %v14152_v43 = vand.u32 4294901760, %v6092_v57  ;;  %v6645_v24 = vsub.f32 %v14106_v52, %v18820_v39 }
 0x403   :  { %v6009_v62 = vadd.f32 %v5161_v0, %v13424_v29  ;;  %5960 = vmatmul.f32.gmra.mxu2 %v13505_v49  ;;  %v5079_v29 = vadd.f32 %v13937_v46, %v5036_v16  ;;  %6517 = vmatpush.msrb.mxu1 %v13768_v44  ;;  %v6639_v0 = vsub.f32 %v14082_v35, %v18819_v15  ;;  %v6091_v16 = vld [vmem:[%s18778_s5 + $0xc0] sm:$0xff]  ;;  %v6090_v46 = vld [vmem:[%s18778_s5 + $0xb8] sm:$0xff] }
 0x404   :  { %6356 = vmatpush.msra.mxu2 %v14014_v30  ;;  %6407 = vmatpush.msra.mxu3 %v13981_v48 }
 0x405   :  { %5997 = vmatmul.f32.gmra.mxu3 %v13505_v49  ;;  %6158 = vmatpush.msra.mxu0 %v13963_v38  ;;  %v14155_v49 = vadd.f32 %v14124_v47, %v6009_v62 }
 0x406   :  { %v5127_v30 = vpop.f32.mrf.mxu0  ;;  %v14144_v2 = vpop.f32.mrf.mxu1  ;;  %6409 = vmatpush.msra.mxu3 %v14002_v23  ;;  %6519 = vmatpush.msrb.mxu1 %v13777_v51  ;;  %v5041_v51 = vadd.f32 %v13995_v56, %v4997_v31  ;;  %v18823_v56 = vand.u32 4294901760, %v14150_v17 }
 0x407   :  { %v5128_v44 = vadd.f32 %v5127_v30, %v5079_v29  ;;  %v14157_v54 = vpop.f32.mrf.mxu2  ;;  %6566 = vmatpush.msrb.mxu2 %v14033_v60  ;;  %6160 = vmatpush.msra.mxu0 %v13981_v48  ;;  %v14171_v30 = vsub.f32 %v6093_v8, %v14134_v45  ;;  %v6640_v29 = vand.u32 4294901760, %v6639_v0  ;;  %v6051_v31 = vmax.f32 %v14155_v49, 0.0 }
 0x408   :  { %v14164_v15 = vpop.f32.mrf.mxu3  ;;  %6635 = vmatpush.msrb.mxu3 %v6634_v53  ;;  %6521 = vmatpush.msrb.mxu1 %v13787_v34  ;;  %v19093_v53 = vand.u32 4294901760, %v14120_v14  ;;  %v6646_v0 = vand.u32 4294901760, %v6645_v24  ;;  %v5001_v49 = vadd.f32 %v13985_v13, %v14035_v7 }
 0x409   :  { %v5165_v62 = vadd.f32 %v5164_v21, %v5128_v44  ;;  %5868 = vmatmul.f32.gmra.mxu0 %v13522_v11  ;;  %5917 = vmatmul.f32.gmra.mxu1 %v13573_v22  ;;  %v14185_v21 = vand.u32 4294901760, %v6091_v16  ;;  %v14188_v11 = vsub.f32 %v6092_v57, %v14152_v43  ;;  %v6089_v22 = vld [vmem:[%s18778_s5 + $0xb0] sm:$0xff]  ;;  %v18822_v57 = vand.u32 4294901760, %v14171_v30 }
 0x40a   :  { %6568 = vmatpush.msrb.mxu2 %v14060_v37  ;;  %v6651_v8 = vsub.f32 %v14120_v14, %v19093_v53  ;;  %6162 = vmatpush.msra.mxu0 %v14002_v23  ;;  %v14200_v44 = vand.u32 4294901760, %v6090_v46  ;;  %v5085_v53 = vadd.f32 %v14004_v36, %v5041_v51  ;;  %v6657_v36 = vsub.f32 %v14150_v17, %v18823_v56 }
 0x40b   :  { %19094 = vst [vmem:[#allocation36_spill] sm:$0xff] %v14188_v11  ;;  %v6013_v34 = vadd.f32 %v5165_v62, %v13458_v1  ;;  %5964 = vmatmul.f32.gmra.mxu2 %v13550_v28  ;;  %6523 = vmatpush.msrb.mxu1 %v13805_v33  ;;  %v19096_v1 = vand.u32 4294901760, %v13775_v63  ;;  %v14208_v62 = vand.u32 4294901760, %v6089_v22  ;;  %v18821_v13 = vand.u32 4294901760, %v14188_v11  ;;  %v6088_v63 = vld [vmem:[%s18778_s5 + $0xa8] sm:$0xff] }
 0x40c   :  { %6570 = vmatpush.msrb.mxu2 %v14074_v10  ;;  %19095 = vst [vmem:[#allocation37_spill] sm:$0xff] %v14200_v44  ;;  %6641 = vmatpush.msrb.mxu3 %v6640_v29  ;;  %v6652_v24 = vand.u32 4294901760, %v6651_v8  ;;  %v14223_v7 = vand.u32 4294901760, %v6051_v31  ;;  %v19099_v8 = vand.u32 4294901760, %v13785_v19  ;;  %v14246_v19 = vand.u32 4294901760, %v6088_v63 }
 0x40d   :  { %6001 = vmatmul.f32.gmra.mxu3 %v13550_v28  ;;  %6438 = vmatpush.msrb.mxu0 %v19096_v1  ;;  %v14218_v28 = vsub.f32 %v6091_v16, %v14185_v21  ;;  %v14226_v51 = vadd.f32 %v14124_v47, %v6013_v34  ;;  %v6663_v16 = vsub.f32 %v14171_v30, %v18822_v57  ;;  %v19107_v57 = vld [vmem:[#allocation26_spill] sm:$0xff] }
 0x40e   :  { %v5131_v33 = vpop.f32.mrf.mxu0  ;;  %v14210_v39 = vpop.f32.mrf.mxu1  ;;  %6525 = vmatpush.msrb.mxu1 %v13815_v32  ;;  %19098 = vst [vmem:[#allocation39_spill] sm:$0xff] %v14223_v7  ;;  %6572 = vmatpush.msrb.mxu2 %v14085_v5  ;;  %v14240_v34 = vsub.f32 %v6090_v46, %v14200_v44  ;;  %v6658_v46 = vand.u32 4294901760, %v6657_v36  ;;  %v19104_v36 = vld [vmem:[#allocation23_spill] sm:$0xff] }
 0x40f   :  { %19097 = vst [vmem:[#allocation38_spill] sm:$0xff] %v14218_v28  ;;  %v5132_v32 = vadd.f32 %v5131_v33, %v5085_v53  ;;  %v14228_v29 = vpop.f32.mrf.mxu2  ;;  %6442 = vmatpush.msrb.mxu0 %v19099_v8  ;;  %6647 = vmatpush.msrb.mxu3 %v6646_v0  ;;  %v5046_v53 = vadd.f32 %v14044_v27, %v5001_v49  ;;  %v6055_v27 = vmax.f32 %v14226_v51, 0.0  ;;  %v19103_v49 = vand.u32 4294901760, %v13803_v12  ;;  %v19105_v51 = vld [vmem:[#allocation20_spill] sm:$0xff] }
 0x410   :  { %v14233_v1 = vpop.f32.mrf.mxu3  ;;  %6527 = vmatpush.msrb.mxu1 %v13828_v59  ;;  %19100 = vst [vmem:[#allocation40_spill] sm:$0xff] %v14240_v34  ;;  %v14249_v0 = vsub.f32 %v6089_v22, %v14208_v62  ;;  %v6087_v59 = vld [vmem:[%s18778_s5 + $0xa0] sm:$0xff]  ;;  %6574 = vmatpush.msrb.mxu2 %v14117_v6  ;;  %v19106_v12 = vand.u32 4294901760, %v19105_v51 }
 0x411   :  { %v5169_v33 = vadd.f32 %v14144_v2, %v5132_v32  ;;  %5873 = vmatmul.f32.gmra.mxu0 %v13560_v55  ;;  %5923 = vmatmul.f32.gmra.mxu1 %v13596_v50  ;;  %v6669_v2 = vsub.f32 %v14188_v11, %v18821_v13  ;;  %v18824_v55 = vand.u32 4294901760, %v14218_v28  ;;  %v14260_v50 = vsub.f32 %v6051_v31, %v14223_v7 }
 0x412   :  { %19101 = vst [vmem:[#allocation41_spill] sm:$0xff] %v14249_v0  ;;  %6653 = vmatpush.msrb.mxu3 %v6652_v24  ;;  %6446 = vmatpush.msrb.mxu0 %v19103_v49  ;;  %v6086_v24 = vld [vmem:[%s18778_s5 + $0x98] sm:$0xff]  ;;  %v6664_v32 = vand.u32 4294901760, %v6663_v16  ;;  %v18825_v31 = vand.u32 4294901760, %v14240_v34  ;;  %v14273_v8 = vand.u32 4294901760, %v6087_v59  ;;  %v14281_v49 = vsub.f32 %v6088_v63, %v14246_v19 }
 0x413   :  { %19102 = vst [vmem:[#allocation42_spill] sm:$0xff] %v14260_v50  ;;  %v6017_v22 = vadd.f32 %v5169_v33, %v13493_v61  ;;  %5968 = vmatmul.f32.gmra.mxu2 %v13575_v4  ;;  %6529 = vmatpush.msrb.mxu1 %v19104_v36  ;;  %v5091_v61 = vadd.f32 %v14048_v20, %v5046_v53  ;;  %v18826_v33 = vand.u32 4294901760, %v14249_v0  ;;  %v6670_v20 = vand.u32 4294901760, %v6669_v2 }
 0x414   :  { %6576 = vmatpush.msrb.mxu2 %v14134_v45  ;;  %6450 = vmatpush.msrb.mxu0 %v19106_v12  ;;  %v14292_v53 = vand.u32 4294901760, %v6086_v24  ;;  %v14294_v51 = vand.u32 4294901760, %v6055_v27 }
 0x415   :  { %6005 = vmatmul.f32.gmra.mxu3 %v13575_v4  ;;  %v14284_v36 = vadd.f32 %v14124_v47, %v6017_v22  ;;  %6531 = vmatpush.msrb.mxu1 %v19107_v57  ;;  %v6675_v4 = vsub.f32 %v14218_v28, %v18824_v55  ;;  %v14299_v22 = vand.u32 4294901760, %v14260_v50  ;;  %v6085_v57 = vld [vmem:[%s18778_s5 + $0x90] sm:$0xff]  ;;  %v19120_v28 = vand.u32 4294901760, %v14281_v49 }
 0x416   :  { %v5135_v16 = vpop.f32.mrf.mxu0  ;;  %v14286_v13 = vpop.f32.mrf.mxu1  ;;  %6659 = vmatpush.msrb.mxu3 %v6658_v46  ;;  %19108 = vst [vmem:[#allocation23_spill] sm:$0xff] %v14294_v51  ;;  %6578 = vmatpush.msrb.mxu2 %v14152_v43  ;;  %v19110_v46 = vld [vmem:[#allocation21_spill] sm:$0xff] }
 0x417   :  { %v5136_v63 = vadd.f32 %v5135_v16, %v5091_v61  ;;  %v14296_v12 = vpop.f32.mrf.mxu2  ;;  %19109 = vst [vmem:[#allocation20_spill] sm:$0xff] %v14299_v22  ;;  %v19111_v56 = vand.u32 4294901760, %v19110_v46  ;;  %6533 = vmatpush.msrb.mxu1 %v13882_v42  ;;  %v6681_v61 = vsub.f32 %v14240_v34, %v18825_v31  ;;  %v14314_v16 = vsub.f32 %v6087_v59, %v14273_v8  ;;  %v19112_v46 = vld [vmem:[#allocation13_spill] sm:$0xff]  ;;  %v6084_v42 = vld [vmem:[%s18778_s5 + $0x88] sm:$0xff] }
 0x418   :  { %v14307_v2 = vpop.f32.mrf.mxu3  ;;  %6665 = vmatpush.msrb.mxu3 %v6664_v32  ;;  %v6059_v31 = vmax.f32 %v14284_v36, 0.0  ;;  %6580 = vmatpush.msrb.mxu2 %v14185_v21  ;;  %v14328_v59 = vand.u32 4294901760, %v6085_v57  ;;  %v19115_v36 = vld [vmem:[#allocation22_spill] sm:$0xff] }
 0x419   :  { %6454 = vmatpush.msrb.mxu0 %v19111_v56  ;;  %v5173_v55 = vadd.f32 %v14210_v39, %v5136_v63  ;;  %6293 = vmatmul.f32.vlgmr.msra.gmra.mxu1 %v14223_v7  ;;  %v6687_v56 = vsub.f32 %v14249_v0, %v18826_v33  ;;  %v6676_v39 = vand.u32 4294901760, %v6675_v4  ;;  %v14331_v63 = vsub.f32 %v6086_v24, %v14292_v53  ;;  %v19114_v33 = vld [vmem:[#allocation11_spill] sm:$0xff]  ;;  %v19117_v4 = vld [vmem:[#allocation29_spill] sm:$0xff] }
 0x41a   :  { %5878 = vmatmul.f32.gmra.mxu0 %v19112_v46  ;;  %6671 = vmatpush.msrb.mxu3 %v6670_v20  ;;  %v14334_v46 = vsub.f32 %v6055_v27, %v14294_v51  ;;  %v6166_v0 = vsub.f32 %v14260_v50, %v14299_v22  ;;  %v19116_v34 = vand.u32 4294901760, %v19115_v36  ;;  %v6083_v20 = vld [vmem:[%s18778_s5 + $0x80] sm:$0xff]  ;;  %v6682_v27 = vand.u32 4294901760, %v6681_v61  ;;  %v19118_v36 = vld [vmem:[#allocation25_spill] sm:$0xff] }
 0x41b   :  { %v6021_v32 = vadd.f32 %v5173_v55, %v19114_v33  ;;  %6359 = vmatmul.f32.vlgmr.msra.gmra.mxu2 %v14260_v50  ;;  %6535 = vmatpush.msrb.mxu1 %v19117_v4  ;;  %v14348_v55 = vand.u32 4294901760, %v6084_v42  ;;  %v5267_v33 = vadd.f32 %v14099_v18, %v14087_v3  ;;  %v6688_v50 = vand.u32 4294901760, %v6687_v56 }
 0x41c   :  { %19113 = vst [vmem:[#allocation26_spill] sm:$0xff] %v14334_v46  ;;  %6458 = vmatpush.msrb.mxu0 %v19116_v34  ;;  %6582 = vmatpush.msrb.mxu2 %v14200_v44  ;;  %v19119_v34 = vand.u32 4294901760, %v19118_v36  ;;  %v6693_v4 = vsub.f32 %v14281_v49, %v19120_v28  ;;  %v14358_v11 = vand.u32 4294901760, %v6059_v31  ;;  %v14363_v3 = vsub.f32 %v6085_v57, %v14328_v59 }
 0x41d   :  { %6413 = vmatmul.f32.vlgmr.msra.gmra.mxu3 %v14299_v22  ;;  %6537 = vmatpush.msrb.mxu1 %v13913_v58  ;;  %v14365_v18 = vand.u32 4294901760, %v6083_v20  ;;  %v14368_v56 = vadd.f32 %v14124_v47, %v6021_v32  ;;  %v14370_v28 = vand.u32 4294901760, %v6166_v0  ;;  %v14373_v22 = vand.u32 4294901760, %v14334_v46  ;;  %v19124_v58 = vld [vmem:[#allocation27_spill] sm:$0xff] }
 0x41e   :  { %6462 = vmatpush.msrb.mxu0 %v19119_v34  ;;  %19121 = vst [vmem:[#allocation21_spill] sm:$0xff] %v14358_v11  ;;  %v5308_v61 = vpop.f32.mrf.mxu0  ;;  %v5356_v44 = vpop.f32.mrf.mxu1  ;;  %6677 = vmatpush.msrb.mxu3 %v6676_v39  ;;  %v19125_v39 = vand.u32 4294901760, %v19124_v58  ;;  %v19126_v57 = vand.u32 4294901760, %v14314_v16  ;;  %v14383_v32 = vsub.f32 %v6084_v42, %v14348_v55  ;;  %v18843_v42 = vand.u32 4294901760, %v14363_v3 }
 0x41f   :  { %v5309_v36 = vadd.f32 %v5308_v61, %v5267_v33  ;;  %v5401_v34 = vpop.f32.mrf.mxu2  ;;  %19122 = vst [vmem:[#allocation13_spill] sm:$0xff] %v14370_v28  ;;  %6584 = vmatpush.msrb.mxu2 %v14208_v62  ;;  %6539 = vmatpush.msrb.mxu1 %v13940_v41  ;;  %v6694_v33 = vand.u32 4294901760, %v6693_v4  ;;  %v14389_v61 = vsub.f32 %v6059_v31, %v14358_v11  ;;  %v19128_v41 = vand.u32 4294901760, %v14331_v63  ;;  %v19129_v4 = vld [vmem:[#allocation28_spill] sm:$0xff] }
 0x420   :  { %19123 = vst [vmem:[#allocation11_spill] sm:$0xff] %v14373_v22  ;;  %6466 = vmatpush.msrb.mxu0 %v19125_v39  ;;  %v5438_v24 = vpop.f32.mrf.mxu3  ;;  %6683 = vmatpush.msrb.mxu3 %v6682_v27  ;;  %v6699_v47 = vsub.f32 %v14314_v16, %v19126_v57  ;;  %v14397_v58 = vsub.f32 %v6083_v20, %v14365_v18  ;;  %v19130_v39 = vand.u32 4294901760, %v19129_v4 }
 0x421   :  { %v5351_v0 = vadd.f32 %v14286_v13, %v5309_v36  ;;  %6297 = vmatmul.f32.gmra.mxu1 %v14294_v51  ;;  %19127 = vst [vmem:[#allocation22_spill] sm:$0xff] %v14389_v61  ;;  %6586 = vmatpush.msrb.mxu2 %v14246_v19  ;;  %v6705_v27 = vsub.f32 %v14331_v63, %v19128_v41  ;;  %v6063_v13 = vmax.f32 %v14368_v56, 0.0 }
 0x422   :  { %6168 = vmatmul.f32.vlgmr.msra.gmra.mxu0 %v14370_v28  ;;  %6689 = vmatpush.msrb.mxu3 %v6688_v50  ;;  %v6174_v31 = vsub.f32 %v14334_v46, %v14373_v22  ;;  %v6700_v50 = vand.u32 4294901760, %v6699_v47  ;;  %v5271_v20 = vadd.f32 %v14164_v15, %v14157_v54  ;;  %v6711_v15 = vsub.f32 %v14363_v3, %v18843_v42 }
 0x423   :  { %v5402_v36 = vadd.f32 %v5401_v34, %v5351_v0  ;;  %6364 = vmatmul.f32.gmra.mxu2 %v14334_v46  ;;  %6470 = vmatpush.msrb.mxu0 %v19130_v39  ;;  %v14411_v34 = vperm.slane %v14097_v25, 1  ;;  %v19131_v0 = vld [vmem:[#allocation30_spill] sm:$0xff]  ;;  %v6706_v47 = vand.u32 4294901760, %v6705_v27  ;;  %v14424_v54 = vand.u32 4294901760, %v6063_v13 }
 0x424   :  { %6541 = vmatpush.msrb.mxu1 %v13956_v26  ;;  %6588 = vmatpush.msrb.mxu2 %v14273_v8  ;;  %v19132_v41 = vand.u32 4294901760, %v19131_v0  ;;  %v14417_v26 = vand.u32 4294901760, %v14389_v61  ;;  %v14427_v57 = vand.u32 4294901760, %v6174_v31  ;;  %v19139_v27 = vand.u32 4294901760, %v14383_v32 }
 0x425   :  { %v5439_v56 = vadd.f32 %v5438_v24, %v5402_v36  ;;  %6419 = vmatmul.f32.gmra.mxu3 %v14373_v22  ;;  %19134 = vst [vmem:[#allocation25_spill] sm:$0xff] %v14424_v54  ;;  %v19135_v24 = vld [vmem:[#allocation12_spill] sm:$0xff] }
 0x426   :  { %6474 = vmatpush.msrb.mxu0 %v19132_v41  ;;  %v5313_v4 = vpop.f32.mrf.mxu0  ;;  %v5362_v39 = vpop.f32.mrf.mxu1  ;;  %19133 = vst [vmem:[#allocation29_spill] sm:$0xff] %v14417_v26  ;;  %6695 = vmatpush.msrb.mxu3 %v6694_v33  ;;  %v19137_v33 = vld [vmem:[#allocation31_spill] sm:$0xff]  ;;  %v6717_v42 = vsub.f32 %v14383_v32, %v19139_v27  ;;  %v6182_v31 = vsub.f32 %v14389_v61, %v14417_v26 }
 0x427   :  { %6543 = vmatpush.msrb.mxu1 %v13963_v38  ;;  %v6010_v36 = vadd.f32 %v5439_v56, %v19135_v24  ;;  %v5314_v0 = vadd.f32 %v5313_v4, %v5271_v20  ;;  %v5405_v41 = vpop.f32.mrf.mxu2  ;;  %19136 = vst [vmem:[#allocation27_spill] sm:$0xff] %v14427_v57  ;;  %6590 = vmatpush.msrb.mxu2 %v14292_v53  ;;  %v19138_v22 = vand.u32 4294901760, %v19137_v33  ;;  %v19142_v24 = vld [vmem:[#allocation32_spill] sm:$0xff] }
 0x428   :  { %v5442_v38 = vpop.f32.mrf.mxu3  ;;  %6701 = vmatpush.msrb.mxu3 %v6700_v50  ;;  %v14446_v20 = vsub.f32 %v6063_v13, %v14424_v54  ;;  %v19145_v13 = vld [vmem:[#allocation33_spill] sm:$0xff] }
 0x429   :  { %6478 = vmatpush.msrb.mxu0 %v19138_v22  ;;  %6545 = vmatpush.msrb.mxu1 %v13981_v48  ;;  %v6036_v25 = vadd.f32 %v14411_v34, %v6010_v36  ;;  %v5357_v56 = vadd.f32 %v5356_v44, %v5314_v0  ;;  %v6712_v22 = vand.u32 4294901760, %v6711_v15  ;;  %v19140_v48 = vand.u32 4294901760, %v14397_v58 }
 0x42a   :  { %6176 = vmatmul.f32.gmra.mxu0 %v14427_v57  ;;  %6301 = vmatmul.f32.gmra.mxu1 %v14358_v11  ;;  %19141 = vst [vmem:[#allocation28_spill] sm:$0xff] %v14446_v20  ;;  %v19143_v36 = vand.u32 4294901760, %v19142_v24  ;;  %v5275_v15 = vadd.f32 %v14233_v1, %v14228_v29  ;;  %v19149_v29 = vld [vmem:[#allocation14_spill] sm:$0xff]  ;;  %v19151_v24 = vand.u32 4294901760, %v13979_v40  ;;  %v19199_v57 = vand.u32 4294901760, %v14383_v32 }
 0x42b   :  { %6592 = vmatpush.msrb.mxu2 %v14328_v59  ;;  %6707 = vmatpush.msrb.mxu3 %v6706_v47  ;;  %v6723_v50 = vsub.f32 %v14397_v58, %v19140_v48  ;;  %v6052_v4 = vmax.f32 %v6036_v25, 0.0  ;;  %v5406_v44 = vadd.f32 %v5405_v41, %v5357_v56  ;;  %v6718_v47 = vand.u32 4294901760, %v6717_v42 }
 0x42c   :  { %6369 = vmatmul.f32.gmra.mxu2 %v14389_v61  ;;  %6482 = vmatpush.msrb.mxu0 %v19143_v36  ;;  %v19146_v25 = vand.u32 4294901760, %v19145_v13  ;;  %v14460_v56 = vand.u32 4294901760, %v6182_v31 }
 0x42d   :  { %6547 = vmatpush.msrb.mxu1 %v14002_v23  ;;  %6594 = vmatpush.msrb.mxu2 %v14348_v55  ;;  %v14455_v0 = vand.u32 4294901760, %v6052_v4  ;;  %v5443_v33 = vadd.f32 %v5442_v38, %v5406_v44  ;;  %v6724_v23 = vand.u32 4294901760, %v6723_v50  ;;  %v14468_v44 = vand.u32 4294901760, %v14446_v20 }
 0x42e   :  { %6425 = vmatmul.f32.gmra.mxu3 %v14417_v26  ;;  %6486 = vmatpush.msrb.mxu0 %v19146_v25  ;;  %v5318_v41 = vpop.f32.mrf.mxu0  ;;  %v5368_v27 = vpop.f32.mrf.mxu1  ;;  %19147 = vst [vmem:[#allocation12_spill] sm:$0xff] %v14460_v56  ;;  %v5279_v25 = vadd.f32 %v14307_v2, %v14296_v12  ;;  %v19161_v2 = vld [vmem:[#allocation15_spill] sm:$0xff] }
 0x42f   :  { %19144 = vst [vmem:[#allocation30_spill] sm:$0xff] %v14455_v0  ;;  %6713 = vmatpush.msrb.mxu3 %v6712_v22  ;;  %6596 = vmatpush.msrb.mxu2 %v14365_v18  ;;  %v14464_v42 = vsub.f32 %v6052_v4, %v14455_v0  ;;  %v6014_v1 = vadd.f32 %v5443_v33, %v19149_v29  ;;  %v5409_v38 = vpop.f32.mrf.mxu2  ;;  %v19152_v22 = vand.u32 4294901760, %v14055_v9  ;;  %v19154_v33 = vld [vmem:[#allocation34_spill] sm:$0xff] }
 0x430   :  { %v5319_v48 = vadd.f32 %v5318_v41, %v5275_v15  ;;  %19150 = vst [vmem:[#allocation32_spill] sm:$0xff] %v14468_v44  ;;  %6813 = vmatpush.msra.mxu1 %v14033_v60  ;;  %6490 = vmatpush.msrb.mxu0 %v19151_v24  ;;  %v5446_v31 = vpop.f32.mrf.mxu3  ;;  %v19155_v13 = vand.u32 4294901760, %v19154_v33 }
 0x431   :  { %19148 = vst [vmem:[#allocation31_spill] sm:$0xff] %v14464_v42  ;;  %6719 = vmatpush.msrb.mxu3 %v6718_v47  ;;  %6872 = vmatpush.msra.mxu2 %v19152_v22  ;;  %v6040_v50 = vadd.f32 %v14411_v34, %v6014_v1  ;;  %v14479_v36 = vand.u32 4294901760, %v14464_v42  ;;  %v6190_v47 = vsub.f32 %v14446_v20, %v14468_v44  ;;  %v19158_v1 = vld [vmem:[#allocation35_spill] sm:$0xff] }
 0x432   :  { %v5363_v4 = vadd.f32 %v5362_v39, %v5319_v48  ;;  %6184 = vmatmul.f32.gmra.mxu0 %v14460_v56  ;;  %6305 = vmatmul.f32.gmra.mxu1 %v14424_v54  ;;  %v19156_v39 = vand.u32 4294901760, %v14082_v35  ;;  %v19159_v48 = vand.u32 4294901760, %v19158_v1  ;;  %v19193_v56 = vand.u32 4294901760, %v14331_v63 }
 0x433   :  { %19153 = vst [vmem:[#allocation33_spill] sm:$0xff] %v14479_v36  ;;  %6725 = vmatpush.msrb.mxu3 %v6724_v23  ;;  %6815 = vmatpush.msra.mxu1 %v14060_v37  ;;  %v6056_v40 = vmax.f32 %v6040_v50, 0.0  ;;  %v6600_v29 = vsub.f32 %v14464_v42, %v14479_v36 }
 0x434   :  { %v5410_v15 = vadd.f32 %v5409_v38, %v5363_v4  ;;  %6374 = vmatmul.f32.gmra.mxu2 %v14446_v20  ;;  %6494 = vmatpush.msrb.mxu0 %v19155_v13  ;;  %v14507_v4 = vand.u32 4294901760, %v6190_v47 }
 0x435   :  { %6817 = vmatpush.msra.mxu1 %v14074_v10  ;;  %6876 = vmatpush.msra.mxu2 %v19156_v39  ;;  %v14492_v41 = vand.u32 4294901760, %v6056_v40  ;;  %v14517_v13 = vand.u32 4294901760, %v6600_v29  ;;  %v19166_v39 = vand.u32 4294901760, %v14120_v14 }
 0x436   :  { %v5447_v23 = vadd.f32 %v5446_v31, %v5410_v15  ;;  %6431 = vmatmul.f32.gmra.mxu3 %v14468_v44  ;;  %6498 = vmatpush.msrb.mxu0 %v19159_v48  ;;  %v5323_v38 = vpop.f32.mrf.mxu0  ;;  %v14499_v24 = vpop.f32.mrf.mxu1  ;;  %19162 = vst [vmem:[#allocation35_spill] sm:$0xff] %v14507_v4  ;;  %v19163_v15 = vand.u32 4294901760, %v14106_v52  ;;  %v19170_v48 = vld [vmem:[#allocation7_spill] sm:$0xff] }
 0x437   :  { %19157 = vst [vmem:[#allocation14_spill] sm:$0xff] %v14492_v41  ;;  %6951 = vmatpush.msra.mxu3 %v14033_v60  ;;  %6819 = vmatpush.msra.mxu1 %v14085_v5  ;;  %v14504_v12 = vsub.f32 %v6056_v40, %v14492_v41  ;;  %v5324_v22 = vadd.f32 %v5323_v38, %v5279_v25  ;;  %v5413_v50 = vpop.f32.mrf.mxu2 }
 0x438   :  { %v6018_v31 = vadd.f32 %v5447_v23, %v19161_v2  ;;  %6880 = vmatpush.msra.mxu2 %v19163_v15  ;;  %6745 = vmatpush.msra.mxu0 %v14055_v9  ;;  %v5450_v33 = vpop.f32.mrf.mxu3  ;;  %19164 = vst [vmem:[#allocation15_spill] sm:$0xff] %v14517_v13  ;;  %v19174_v15 = vld [vmem:[#allocation36_spill] sm:$0xff] }
 0x439   :  { %19160 = vst [vmem:[#allocation34_spill] sm:$0xff] %v14504_v12  ;;  %6953 = vmatpush.msra.mxu3 %v14060_v37  ;;  %6821 = vmatpush.msra.mxu1 %v14117_v6  ;;  %v5369_v40 = vadd.f32 %v5368_v27, %v5324_v22  ;;  %v14520_v47 = vand.u32 4294901760, %v14504_v12  ;;  %v19167_v27 = vand.u32 4294901760, %v14150_v17 }
 0x43a   :  { %v6044_v60 = vadd.f32 %v14411_v34, %v6018_v31  ;;  %6192 = vmatmul.f32.gmra.mxu0 %v14507_v4  ;;  %6549 = vmatmul.f32.vlgmr.msrb.gmra.mxu1 %v14223_v7  ;;  %v19171_v31 = vand.u32 4294901760, %v14171_v30  ;;  %v6109_v4 = vld [vmem:[%s18778_s5 + $0x150] sm:$0xff] }
 0x43b   :  { %19165 = vst [vmem:[#allocation43_spill] sm:$0xff] %v14520_v47  ;;  %6884 = vmatpush.msra.mxu2 %v19166_v39  ;;  %6955 = vmatpush.msra.mxu3 %v14074_v10  ;;  %v5414_v37 = vadd.f32 %v5413_v50, %v5369_v40  ;;  %v6608_v29 = vsub.f32 %v14504_v12, %v14520_v47 }
 0x43c   :  { %v6060_v9 = vmax.f32 %v6044_v60, 0.0  ;;  %6602 = vmatmul.f32.vlgmr.msrb.gmra.mxu2 %v14517_v13  ;;  %6748 = vmatpush.msra.mxu0 %v14082_v35  ;;  %v19177_v60 = vld [vmem:[#allocation38_spill] sm:$0xff] }
 0x43d   :  { %6823 = vmatpush.msra.mxu1 %v14134_v45  ;;  %6888 = vmatpush.msra.mxu2 %v19167_v27  ;;  %v5451_v23 = vadd.f32 %v5450_v33, %v5414_v37  ;;  %v14558_v22 = vand.u32 4294901760, %v6608_v29  ;;  %v19175_v33 = vand.u32 4294901760, %v19174_v15  ;;  %v19178_v40 = vand.u32 4294901760, %v19177_v60 }
 0x43e   :  { %v14530_v25 = vand.u32 4294901760, %v6060_v9  ;;  %6727 = vmatmul.f32.vlgmr.msrb.gmra.mxu3 %v14455_v0  ;;  %6751 = vmatpush.msra.mxu0 %v14106_v52  ;;  %v14536_v10 = vpop.f32.mrf.mxu0  ;;  %v14538_v1 = vpop.f32.mrf.mxu1 }
 0x43f   :  { %6957 = vmatpush.msra.mxu3 %v14085_v5  ;;  %6825 = vmatpush.msra.mxu1 %v14152_v43  ;;  %v6022_v38 = vadd.f32 %v5451_v23, %v19170_v48  ;;  %v14546_v2 = vpop.f32.mrf.mxu2  ;;  %19172 = vst [vmem:[#allocation7_spill] sm:$0xff] %v14558_v22  ;;  %v19181_v48 = vld [vmem:[#allocation40_spill] sm:$0xff] }
 0x440   :  { %19168 = vst [vmem:[#allocation44_spill] sm:$0xff] %v14530_v25  ;;  %v14543_v35 = vsub.f32 %v6060_v9, %v14530_v25  ;;  %6892 = vmatpush.msra.mxu2 %v19171_v31  ;;  %6754 = vmatpush.msra.mxu0 %v14120_v14  ;;  %v14551_v52 = vpop.f32.mrf.mxu3  ;;  %v6114_v14 = vld [vmem:[%s18778_s5 + $0x178] sm:$0xff] }
 0x441   :  { %6959 = vmatpush.msra.mxu3 %v14117_v6  ;;  %6827 = vmatpush.msra.mxu1 %v14185_v21  ;;  %v6048_v5 = vadd.f32 %v14411_v34, %v6022_v38  ;;  %v19176_v34 = vld [vmem:[#allocation37_spill] sm:$0xff]  ;;  %v14574_v39 = vand.u32 4294901760, %v6114_v14  ;;  %v19182_v38 = vand.u32 4294901760, %v19181_v48 }
 0x442   :  { %19169 = vst [vmem:[#allocation45_spill] sm:$0xff] %v14543_v35  ;;  %6500 = vmatmul.f32.vlgmr.msrb.gmra.mxu0 %v14223_v7  ;;  %6553 = vmatmul.f32.gmra.mxu1 %v14294_v51  ;;  %v14561_v50 = vand.u32 4294901760, %v14543_v35 }
 0x443   :  { %6896 = vmatpush.msra.mxu2 %v19175_v33  ;;  %6961 = vmatpush.msra.mxu3 %v14134_v45  ;;  %v6064_v6 = vmax.f32 %v6048_v5, 0.0  ;;  %v6113_v45 = vld [vmem:[%s18778_s5 + $0x170] sm:$0xff] }
 0x444   :  { %19173 = vst [vmem:[#allocation46_spill] sm:$0xff] %v14561_v50  ;;  %6610 = vmatmul.f32.gmra.mxu2 %v14558_v22  ;;  %6757 = vmatpush.msra.mxu0 %v14150_v17  ;;  %v6616_v37 = vsub.f32 %v14543_v35, %v14561_v50  ;;  %v14609_v5 = vand.u32 4294901760, %v6113_v45 }
 0x445   :  { %6829 = vmatpush.msra.mxu1 %v19176_v34  ;;  %6900 = vmatpush.msra.mxu2 %v19178_v40  ;;  %v14576_v9 = vand.u32 4294901760, %v6064_v6 }
 0x446   :  { %6731 = vmatmul.f32.gmra.mxu3 %v14492_v41  ;;  %6760 = vmatpush.msra.mxu0 %v14171_v30  ;;  %v14585_v17 = vpop.f32.mrf.mxu0  ;;  %v14587_v27 = vpop.f32.mrf.mxu1  ;;  %v6112_v30 = vld [vmem:[%s18778_s5 + $0x168] sm:$0xff]  ;;  %v14633_v22 = vsub.f32 %v6113_v45, %v14609_v5 }
 0x447   :  { %19179 = vst [vmem:[#allocation36_spill] sm:$0xff] %v14576_v9  ;;  %6963 = vmatpush.msra.mxu3 %v14152_v43  ;;  %6831 = vmatpush.msra.mxu1 %v14208_v62  ;;  %v14592_v23 = vsub.f32 %v6064_v6, %v14576_v9  ;;  %v14594_v29 = vpop.f32.mrf.mxu2  ;;  %v14607_v43 = vsub.f32 %v6114_v14, %v14574_v39  ;;  %v19185_v6 = vld [vmem:[#allocation41_spill] sm:$0xff]  ;;  %v14624_v14 = vand.u32 4294901760, %v6112_v30 }
 0x448   :  { %6904 = vmatpush.msra.mxu2 %v19182_v38  ;;  %6763 = vmatpush.msra.mxu0 %v19174_v15  ;;  %v14602_v31 = vpop.f32.mrf.mxu3  ;;  %v14613_v15 = vand.u32 4294901760, %v6616_v37  ;;  %v19186_v40 = vand.u32 4294901760, %v19185_v6  ;;  %v19187_v37 = vand.u32 4294901760, %v14281_v49  ;;  %v5549_v7 = vadd.f32 %v14538_v1, %v14585_v17 }
 0x449   :  { %19180 = vst [vmem:[#allocation37_spill] sm:$0xff] %v14592_v23  ;;  %6965 = vmatpush.msra.mxu3 %v14185_v21  ;;  %6833 = vmatpush.msra.mxu1 %v14246_v19  ;;  %v14616_v33 = vand.u32 4294901760, %v14592_v23  ;;  %v6111_v21 = vld [vmem:[%s18778_s5 + $0x160] sm:$0xff]  ;;  %v14651_v45 = vsub.f32 %v6112_v30, %v14624_v14 }
 0x44a   :  { %6504 = vmatmul.f32.gmra.mxu0 %v14294_v51  ;;  %6557 = vmatmul.f32.gmra.mxu1 %v14358_v11  ;;  %19183 = vst [vmem:[#allocation38_spill] sm:$0xff] %v14613_v15  ;;  %v14635_v13 = vand.u32 4294901760, %v6111_v21 }
 0x44b   :  { %19184 = vst [vmem:[#allocation40_spill] sm:$0xff] %v14616_v33  ;;  %6908 = vmatpush.msra.mxu2 %v19186_v40  ;;  %6967 = vmatpush.msra.mxu3 %v19176_v34  ;;  %v6110_v34 = vld [vmem:[%s18778_s5 + $0x158] sm:$0xff] }
 0x44c   :  { %6618 = vmatmul.f32.gmra.mxu2 %v14613_v15  ;;  %6766 = vmatpush.msra.mxu0 %v19177_v60  ;;  %v6624_v60 = vsub.f32 %v14592_v23, %v14616_v33  ;;  %19188 = vst [vmem:[#allocation41_spill] sm:$0xff] %v14651_v45  ;;  %v19189_v15 = vand.u32 4294901760, %v14314_v16 }
 0x44d   :  { %6835 = vmatpush.msra.mxu1 %v14273_v8  ;;  %6912 = vmatpush.msra.mxu2 %v19187_v37 }
 0x44e   :  { %6735 = vmatmul.f32.gmra.mxu3 %v14530_v25  ;;  %6769 = vmatpush.msra.mxu0 %v19181_v48  ;;  %v14644_v40 = vpop.f32.mrf.mxu0  ;;  %v14646_v37 = vpop.f32.mrf.mxu1  ;;  %v14658_v48 = vand.u32 4294901760, %v6110_v34  ;;  %v14676_v20 = vand.u32 4294901760, %v6624_v60  ;;  %v6107_v60 = vld [vmem:[%s18778_s5 + $0x140] sm:$0xff] }
 0x44f   :  { %6969 = vmatpush.msra.mxu3 %v14208_v62  ;;  %6837 = vmatpush.msra.mxu1 %v14292_v53  ;;  %v14653_v38 = vpop.f32.mrf.mxu2  ;;  %v19190_v62 = vand.u32 4294901760, %v14607_v43 }
 0x450   :  { %6916 = vmatpush.msra.mxu2 %v19189_v15  ;;  %6772 = vmatpush.msra.mxu0 %v19185_v6  ;;  %v14663_v44 = vpop.f32.mrf.mxu3  ;;  %v14672_v6 = vsub.f32 %v6111_v21, %v14635_v13  ;;  %19192 = vst [vmem:[#allocation48_spill] sm:$0xff] %v14676_v20  ;;  %v14685_v15 = vand.u32 4294901760, %v6109_v4  ;;  %v14690_v21 = vsub.f32 %v6110_v34, %v14658_v48 }
 0x451   :  { %6971 = vmatpush.msra.mxu3 %v14246_v19  ;;  %6839 = vmatpush.msra.mxu1 %v14328_v59  ;;  %v7067_v30 = vsub.f32 %v14607_v43, %v19190_v62  ;;  %v6108_v19 = vld [vmem:[%s18778_s5 + $0x148] sm:$0xff]  ;;  %v19196_v62 = vand.u32 4294901760, %v14633_v22 }
 0x452   :  { %19191 = vst [vmem:[#allocation47_spill] sm:$0xff] %v14672_v6  ;;  %6508 = vmatmul.f32.gmra.mxu0 %v14358_v11  ;;  %6561 = vmatmul.f32.gmra.mxu1 %v14424_v54 }
 0x453   :  { %6920 = vmatpush.msra.mxu2 %v19193_v56  ;;  %6973 = vmatpush.msra.mxu3 %v14273_v8  ;;  %19194 = vst [vmem:[#allocation49_spill] sm:$0xff] %v14690_v21  ;;  %v19195_v56 = vand.u32 4294901760, %v14363_v3  ;;  %v7068_v8 = vand.u32 4294901760, %v7067_v30  ;;  %v7073_v26 = vsub.f32 %v14633_v22, %v19196_v62  ;;  %v19197_v30 = vand.u32 4294901760, %v14651_v45 }
 0x454   :  { %6626 = vmatmul.f32.gmra.mxu2 %v14676_v20  ;;  %6775 = vmatpush.msra.mxu0 %v14281_v49  ;;  %v14702_v49 = vand.u32 4294901760, %v6108_v19  ;;  %v14718_v20 = vand.u32 4294901760, %v6107_v60 }
 0x455   :  { %6841 = vmatpush.msra.mxu1 %v14348_v55  ;;  %6924 = vmatpush.msra.mxu2 %v19195_v56  ;;  %v7079_v62 = vsub.f32 %v14651_v45, %v19197_v30  ;;  %v14716_v56 = vsub.f32 %v6109_v4, %v14685_v15  ;;  %v7074_v4 = vand.u32 4294901760, %v7073_v26  ;;  %v19200_v30 = vand.u32 4294901760, %v14672_v6 }
 0x456   :  { %6739 = vmatmul.f32.gmra.mxu3 %v14576_v9  ;;  %6778 = vmatpush.msra.mxu0 %v14314_v16  ;;  %v14706_v34 = vpop.f32.mrf.mxu0  ;;  %v14708_v61 = vpop.f32.mrf.mxu1  ;;  %v6106_v16 = vld [vmem:[%s18778_s5 + $0x138] sm:$0xff]  ;;  %v14736_v28 = vsub.f32 %v6108_v19, %v14702_v49  ;;  %v19202_v26 = vand.u32 4294901760, %v14397_v58 }
 0x457   :  { %6975 = vmatpush.msra.mxu3 %v14292_v53  ;;  %6843 = vmatpush.msra.mxu1 %v14365_v18  ;;  %19198 = vst [vmem:[#allocation50_spill] sm:$0xff] %v14716_v56  ;;  %v14723_v11 = vpop.f32.mrf.mxu2  ;;  %v18876_v53 = vand.u32 4294901760, %v14690_v21  ;;  %v7085_v51 = vsub.f32 %v14672_v6, %v19200_v30  ;;  %v7080_v19 = vand.u32 4294901760, %v7079_v62  ;;  %v14752_v30 = vsub.f32 %v6107_v60, %v14718_v20  ;;  %v6103_v62 = vld [vmem:[%s18778_s5 + $0x120] sm:$0xff] }
 0x458   :  { %6928 = vmatpush.msra.mxu2 %v19199_v57  ;;  %6781 = vmatpush.msra.mxu0 %v14331_v63  ;;  %v14729_v46 = vpop.f32.mrf.mxu3  ;;  %19201 = vst [vmem:[#allocation51_spill] sm:$0xff] %v14736_v28  ;;  %v14740_v63 = vand.u32 4294901760, %v6106_v16  ;;  %v6105_v57 = vld [vmem:[%s18778_s5 + $0x130] sm:$0xff] }
 0x459   :  { %6977 = vmatpush.msra.mxu3 %v14328_v59  ;;  %7069 = vmatpush.msrb.mxu1 %v7068_v8  ;;  %v5545_v59 = vadd.f32 %v14499_v24, %v14536_v10  ;;  %v18877_v8 = vand.u32 4294901760, %v14716_v56  ;;  %v6104_v24 = vld [vmem:[%s18778_s5 + $0x128] sm:$0xff]  ;;  %v18880_v10 = vand.u32 4294901760, %v14736_v28  ;;  %v14764_v60 = vand.u32 4294901760, %v6105_v57 }
 0x45a   :  { %6512 = vmatmul.f32.gmra.mxu0 %v14424_v54  ;;  %6847 = vmatmul.f32.vlgmr.msra.gmra.mxu1 %v14479_v36  ;;  %v7091_v36 = vsub.f32 %v14690_v21, %v18876_v53 }
 0x45b   :  { %6932 = vmatpush.msra.mxu2 %v19202_v26  ;;  %6979 = vmatpush.msra.mxu3 %v14348_v55  ;;  %v7086_v55 = vand.u32 4294901760, %v7085_v51  ;;  %v5587_v26 = vadd.f32 %v14546_v2, %v5545_v59 }
 0x45c   :  { %6784 = vmatpush.msra.mxu0 %v14363_v3  ;;  %6934 = vmatmul.f32.vlgmr.msra.gmra.mxu2 %v14455_v0  ;;  %v14769_v3 = vsub.f32 %v6106_v16, %v14740_v63  ;;  %v14782_v16 = vand.u32 4294901760, %v6104_v24  ;;  %v7092_v2 = vand.u32 4294901760, %v7091_v36 }
 0x45d   :  { %6981 = vmatpush.msra.mxu3 %v14365_v18  ;;  %7075 = vmatpush.msrb.mxu1 %v7074_v4  ;;  %v7097_v4 = vsub.f32 %v14716_v56, %v18877_v8  ;;  %v14795_v8 = vsub.f32 %v6105_v57, %v14764_v60  ;;  %v5629_v36 = vadd.f32 %v14551_v52, %v5587_v26  ;;  %v6101_v52 = vld [vmem:[%s18778_s5 + $0x110] sm:$0xff] }
 0x45e   :  { %7179 = vmatpush.msrb.mxu2 %v14607_v43  ;;  %6787 = vmatpush.msra.mxu0 %v14383_v32  ;;  %19203 = vst [vmem:[#allocation52_spill] sm:$0xff] %v14769_v3  ;;  %v5679_v51 = vpop.f32.mrf.mxu0  ;;  %v14776_v18 = vpop.f32.mrf.mxu1  ;;  %v14797_v32 = vand.u32 4294901760, %v6103_v62  ;;  %v14812_v54 = vsub.f32 %v6104_v24, %v14782_v16  ;;  %v19207_v1 = vand.u32 4294901760, %v14769_v3  ;;  %v14840_v24 = vand.u32 4294901760, %v6101_v52 }
 0x45f   :  { %6983 = vmatmul.f32.vlgmr.msra.gmra.mxu3 %v14455_v0  ;;  %7081 = vmatpush.msrb.mxu1 %v7080_v19  ;;  %v14784_v53 = vpop.f32.mrf.mxu2  ;;  %v7103_v19 = vsub.f32 %v14736_v28, %v18880_v10  ;;  %19204 = vst [vmem:[#allocation53_spill] sm:$0xff] %v14795_v8  ;;  %v6102_v0 = vld [vmem:[%s18778_s5 + $0x118] sm:$0xff]  ;;  %v7098_v57 = vand.u32 4294901760, %v7097_v4  ;;  %v5680_v26 = vadd.f32 %v5679_v51, %v5629_v36  ;;  %v6100_v51 = vld [vmem:[%s18778_s5 + $0x108] sm:$0xff] }
 0x460   :  { %7182 = vmatpush.msrb.mxu2 %v14633_v22  ;;  %7247 = vmatpush.msrb.mxu3 %v14574_v39  ;;  %v14789_v59 = vpop.f32.mrf.mxu3  ;;  %19206 = vst [vmem:[#allocation54_spill] sm:$0xff] %v14812_v54  ;;  %v7115_v17 = vsub.f32 %v14769_v3, %v19207_v1 }
 0x461   :  { %6790 = vmatpush.msra.mxu0 %v14397_v58  ;;  %7087 = vmatpush.msrb.mxu1 %v7086_v55  ;;  %v19205_v55 = vand.u32 4294901760, %v14752_v30  ;;  %v14817_v58 = vand.u32 4294901760, %v6102_v0  ;;  %v7104_v4 = vand.u32 4294901760, %v7103_v19 }
 0x462   :  { %7185 = vmatpush.msrb.mxu2 %v14651_v45  ;;  %7249 = vmatpush.msrb.mxu3 %v14609_v5 }
 0x463   :  { %6793 = vmatmul.f32.vlgmr.msra.gmra.mxu0 %v14464_v42  ;;  %6853 = vmatmul.f32.gmra.mxu1 %v14520_v47  ;;  %v7109_v10 = vsub.f32 %v14752_v30, %v19205_v55  ;;  %v14826_v55 = vsub.f32 %v6103_v62, %v14797_v32  ;;  %v5592_v47 = vadd.f32 %v14594_v29, %v5549_v7  ;;  %v6099_v42 = vld [vmem:[%s18778_s5 + $0x100] sm:$0xff]  ;;  %v19208_v7 = vand.u32 4294901760, %v14795_v8 }
 0x464   :  { %7000 = vmatpush.msrb.mxu0 %v14574_v39  ;;  %7093 = vmatpush.msrb.mxu1 %v7092_v2 }
 0x465   :  { %7188 = vmatpush.msrb.mxu2 %v14672_v6  ;;  %7251 = vmatpush.msrb.mxu3 %v14624_v14  ;;  %v7110_v62 = vand.u32 4294901760, %v7109_v10  ;;  %v5717_v10 = vadd.f32 %v14708_v61, %v5680_v26  ;;  %v7121_v29 = vsub.f32 %v14795_v8, %v19208_v7  ;;  %v14861_v6 = vand.u32 4294901760, %v6100_v51 }
 0x466   :  { %6938 = vmatmul.f32.gmra.mxu2 %v14492_v41  ;;  %7002 = vmatpush.msrb.mxu0 %v14609_v5  ;;  %v5683_v2 = vpop.f32.mrf.mxu0  ;;  %v14837_v19 = vpop.f32.mrf.mxu1  ;;  %v19209_v61 = vand.u32 4294901760, %v14812_v54  ;;  %v14872_v7 = vand.u32 4294901760, %v6099_v42 }
 0x467   :  { %7099 = vmatpush.msrb.mxu1 %v7098_v57  ;;  %7191 = vmatpush.msrb.mxu2 %v14690_v21  ;;  %v14845_v1 = vpop.f32.mrf.mxu2  ;;  %v14848_v57 = vsub.f32 %v6102_v0, %v14817_v58  ;;  %v7116_v0 = vand.u32 4294901760, %v7115_v17  ;;  %v5635_v21 = vadd.f32 %v14602_v31, %v5592_v47  ;;  %v7122_v47 = vand.u32 4294901760, %v7121_v29 }
 0x468   :  { %7253 = vmatpush.msrb.mxu3 %v14635_v13  ;;  %7004 = vmatpush.msrb.mxu0 %v14624_v14  ;;  %v14855_v36 = vpop.f32.mrf.mxu3  ;;  %v7127_v26 = vsub.f32 %v14812_v54, %v19209_v61  ;;  %v19212_v31 = vand.u32 4294901760, %v14826_v55  ;;  %v14893_v45 = vsub.f32 %v6100_v51, %v14861_v6  ;;  %v14904_v51 = vsub.f32 %v6099_v42, %v14872_v7 }
 0x469   :  { %6987 = vmatmul.f32.gmra.mxu3 %v14492_v41  ;;  %7105 = vmatpush.msrb.mxu1 %v7104_v4  ;;  %v14870_v4 = vsub.f32 %v6101_v52, %v14840_v24  ;;  %v14878_v41 = vld [vmem:[%s18779_s4] sm:$0xf]  ;;  %v19211_v52 = vld [vmem:[#allocation8_spill] sm:$0xff] }
 0x46a   :  { %7194 = vmatpush.msrb.mxu2 %v14716_v56  ;;  %7255 = vmatpush.msrb.mxu3 %v14658_v48  ;;  %v14881_v17 = vperm.slane %v14878_v41, 2  ;;  %v6011_v61 = vadd.f32 %v5717_v10, %v19211_v52  ;;  %v7133_v56 = vsub.f32 %v14826_v55, %v19212_v31  ;;  %19213 = vst [vmem:[#allocation8_spill] sm:$0xff] %v14893_v45  ;;  %v7128_v52 = vand.u32 4294901760, %v7127_v26  ;;  %v6130_v31 = vld [vmem:[%s18778_s5 + $0x1f8] sm:$0xff] }
 0x46b   :  { %7006 = vmatpush.msrb.mxu0 %v14635_v13  ;;  %7111 = vmatpush.msrb.mxu1 %v7110_v62  ;;  %19210 = vst [vmem:[#allocation55_spill] sm:$0xff] %v14870_v4  ;;  %v5684_v62 = vadd.f32 %v5683_v2, %v5635_v21 }
 0x46c   :  { %7197 = vmatpush.msrb.mxu2 %v14736_v28  ;;  %7257 = vmatpush.msrb.mxu3 %v14685_v15  ;;  %v5553_v28 = vadd.f32 %v14587_v27, %v14644_v40  ;;  %19214 = vst [vmem:[#allocation56_spill] sm:$0xff] %v14904_v51  ;;  %v19215_v40 = vand.u32 4294901760, %v14848_v57  ;;  %v14914_v2 = vadd.f32 %v14881_v17, %v6011_v61  ;;  %v7134_v42 = vand.u32 4294901760, %v7133_v56 }
 0x46d   :  { %6798 = vmatmul.f32.gmra.mxu0 %v14504_v12  ;;  %6859 = vmatmul.f32.gmra.mxu1 %v14561_v50  ;;  %v5721_v61 = vadd.f32 %v14776_v18, %v5684_v62  ;;  %v6129_v50 = vld [vmem:[%s18778_s5 + $0x1f0] sm:$0xff]  ;;  %v19217_v62 = vand.u32 4294901760, %v14893_v45 }
 0x46e   :  { %7008 = vmatpush.msrb.mxu0 %v14658_v48  ;;  %7117 = vmatpush.msrb.mxu1 %v7116_v0  ;;  %v5687_v10 = vpop.f32.mrf.mxu0  ;;  %v14900_v29 = vpop.f32.mrf.mxu1  ;;  %v7139_v21 = vsub.f32 %v14848_v57, %v19215_v40  ;;  %v5597_v40 = vadd.f32 %v14653_v38, %v5553_v28  ;;  %v14937_v38 = vand.u32 4294901760, %v6130_v31  ;;  %v6053_v18 = vmax.f32 %v14914_v2, 0.0  ;;  %v19218_v2 = vld [vmem:[#allocation9_spill] sm:$0xff] }
 0x46f   :  { %7200 = vmatpush.msrb.mxu2 %v14752_v30  ;;  %7259 = vmatpush.msrb.mxu3 %v14702_v49  ;;  %v14908_v27 = vpop.f32.mrf.mxu2  ;;  %v6015_v12 = vadd.f32 %v5721_v61, %v19218_v2 }
 0x470   :  { %6942 = vmatmul.f32.gmra.mxu2 %v14530_v25  ;;  %7010 = vmatpush.msrb.mxu0 %v14685_v15  ;;  %v14917_v0 = vpop.f32.mrf.mxu3  ;;  %v7140_v28 = vand.u32 4294901760, %v7139_v21  ;;  %v6128_v21 = vld [vmem:[%s18778_s5 + $0x1e8] sm:$0xff]  ;;  %v5641_v26 = vadd.f32 %v14663_v44, %v5597_v40  ;;  %v14966_v40 = vsub.f32 %v6130_v31, %v14937_v38  ;;  %v14968_v61 = vand.u32 4294901760, %v6053_v18 }
 0x471   :  { %7123 = vmatpush.msrb.mxu1 %v7122_v47  ;;  %7203 = vmatpush.msrb.mxu2 %v14769_v3  ;;  %v19216_v47 = vand.u32 4294901760, %v14870_v4  ;;  %v5557_v3 = vadd.f32 %v14646_v37, %v14706_v34  ;;  %v6127_v37 = vld [vmem:[%s18778_s5 + $0x1e0] sm:$0xff] }
 0x472   :  { %7261 = vmatpush.msrb.mxu3 %v14718_v20  ;;  %7012 = vmatpush.msrb.mxu0 %v14702_v49  ;;  %19220 = vst [vmem:[#allocation9_spill] sm:$0xff] %v14966_v40 }
 0x473   :  { %6991 = vmatmul.f32.gmra.mxu3 %v14530_v25  ;;  %7129 = vmatpush.msrb.mxu1 %v7128_v52  ;;  %v7145_v56 = vsub.f32 %v14870_v4, %v19216_v47  ;;  %v7151_v52 = vsub.f32 %v14893_v45, %v19217_v62  ;;  %v14946_v47 = vand.u32 4294901760, %v6129_v50 }
 0x474   :  { %7206 = vmatpush.msrb.mxu2 %v14795_v8  ;;  %7263 = vmatpush.msrb.mxu3 %v14740_v63 }
 0x475   :  { %7014 = vmatpush.msrb.mxu0 %v14718_v20  ;;  %7135 = vmatpush.msrb.mxu1 %v7134_v42  ;;  %v7146_v42 = vand.u32 4294901760, %v7145_v56  ;;  %v5688_v56 = vadd.f32 %v5687_v10, %v5641_v26  ;;  %v7152_v2 = vand.u32 4294901760, %v7151_v52  ;;  %v14982_v34 = vsub.f32 %v6129_v50, %v14946_v47  ;;  %v6126_v26 = vld [vmem:[%s18778_s5 + $0x1d8] sm:$0xff] }
 0x476   :  { %7209 = vmatpush.msrb.mxu2 %v14812_v54  ;;  %7265 = vmatpush.msrb.mxu3 %v14764_v60  ;;  %v14955_v62 = vpop.f32.mrf.mxu0  ;;  %v5906_v25 = vpop.f32.mrf.mxu1  ;;  %v19219_v54 = vand.u32 4294901760, %v14904_v51  ;;  %v14985_v10 = vadd.f32 %v14881_v17, %v6015_v12  ;;  %v18913_v50 = vand.u32 4294901760, %v14966_v40  ;;  %v14995_v52 = vand.u32 4294901760, %v6127_v37 }
 0x477   :  { %6803 = vmatmul.f32.gmra.mxu0 %v14543_v35  ;;  %6865 = vmatmul.f32.gmra.mxu1 %v14616_v33  ;;  %v14963_v44 = vpop.f32.mrf.mxu2  ;;  %v14974_v33 = vand.u32 4294901760, %v6128_v21  ;;  %19221 = vst [vmem:[#allocation57_spill] sm:$0xff] %v14982_v34  ;;  %v14998_v12 = vsub.f32 %v6053_v18, %v14968_v61 }
 0x478   :  { %v7157_v8 = vsub.f32 %v14904_v51, %v19219_v54  ;;  %7016 = vmatpush.msrb.mxu0 %v14740_v63  ;;  %7141 = vmatpush.msrb.mxu1 %v7140_v28  ;;  %v14972_v54 = vpop.f32.mrf.mxu3  ;;  %v5602_v28 = vadd.f32 %v14723_v11, %v5557_v3  ;;  %v6125_v11 = vld [vmem:[%s18778_s5 + $0x1d0] sm:$0xff]  ;;  %v5823_v3 = vadd.f32 %v14789_v59, %v14784_v53 }
 0x479   :  { %7212 = vmatpush.msrb.mxu2 %v14826_v55  ;;  %7267 = vmatpush.msrb.mxu3 %v14782_v16  ;;  %19222 = vst [vmem:[#allocation58_spill] sm:$0xff] %v14998_v12  ;;  %v7501_v18 = vsub.f32 %v14966_v40, %v18913_v50  ;;  %v15025_v35 = vsub.f32 %v6127_v37, %v14995_v52  ;;  %v19226_v40 = vand.u32 4294901760, %v14982_v34 }
 0x47a   :  { %6946 = vmatmul.f32.gmra.mxu2 %v14576_v9  ;;  %7018 = vmatpush.msrb.mxu0 %v14764_v60  ;;  %v7158_v31 = vand.u32 4294901760, %v7157_v8  ;;  %v15003_v8 = vsub.f32 %v6128_v21, %v14974_v33 }
 0x47b   :  { %7147 = vmatpush.msrb.mxu1 %v7146_v42  ;;  %7215 = vmatpush.msrb.mxu2 %v14848_v57  ;;  %v5725_v42 = vadd.f32 %v14837_v19, %v5688_v56  ;;  %v15013_v19 = vand.u32 4294901760, %v6126_v26  ;;  %v6057_v56 = vmax.f32 %v14985_v10, 0.0  ;;  %v15027_v10 = vand.u32 4294901760, %v6125_v11 }
 0x47c   :  { %7269 = vmatpush.msrb.mxu3 %v14797_v32  ;;  %7020 = vmatpush.msrb.mxu0 %v14782_v16  ;;  %19223 = vst [vmem:[#allocation59_spill] sm:$0xff] %v15003_v8 }
 0x47d   :  { %6995 = vmatmul.f32.gmra.mxu3 %v14576_v9  ;;  %7153 = vmatpush.msrb.mxu1 %v7152_v2  ;;  %v5647_v9 = vadd.f32 %v14729_v46, %v5602_v28  ;;  %v7507_v46 = vsub.f32 %v14982_v34, %v19226_v40  ;;  %v6123_v28 = vld [vmem:[%s18778_s5 + $0x1c0] sm:$0xff]  ;;  %v7502_v40 = vand.u32 4294901760, %v7501_v18 }
 0x47e   :  { %7218 = vmatpush.msrb.mxu2 %v14870_v4  ;;  %7271 = vmatpush.msrb.mxu3 %v14817_v58  ;;  %v5864_v21 = vpop.f32.mrf.mxu0  ;;  %v15017_v2 = vpop.f32.mrf.mxu1  ;;  %v15074_v18 = vand.u32 4294901760, %v6123_v28 }
 0x47f   :  { %7022 = vmatpush.msrb.mxu0 %v14797_v32  ;;  %7159 = vmatpush.msrb.mxu1 %v7158_v31  ;;  %v5865_v53 = vadd.f32 %v5864_v21, %v5823_v3  ;;  %v5957_v59 = vpop.f32.mrf.mxu2  ;;  %v6124_v31 = vld [vmem:[%s18778_s5 + $0x1c8] sm:$0xff]  ;;  %v15037_v3 = vand.u32 4294901760, %v14998_v12  ;;  %v5692_v37 = vadd.f32 %v14955_v62, %v5647_v9  ;;  %v19229_v9 = vand.u32 4294901760, %v15003_v8 }
 0x480   :  { %7221 = vmatpush.msrb.mxu2 %v14893_v45  ;;  %7273 = vmatpush.msrb.mxu3 %v14840_v24  ;;  %v19224_v45 = vld [vmem:[#allocation10_spill] sm:$0xff]  ;;  %v5994_v21 = vpop.f32.mrf.mxu3 }
 0x481   :  { %v6019_v4 = vadd.f32 %v5725_v42, %v19224_v45  ;;  %6808 = vmatmul.f32.gmra.mxu0 %v14592_v23  ;;  %7161 = vmatmul.f32.vlgmr.msrb.gmra.mxu1 %v14968_v61  ;;  %19225 = vst [vmem:[#allocation10_spill] sm:$0xff] %v15037_v3  ;;  %v5907_v50 = vadd.f32 %v5906_v25, %v5865_v53  ;;  %v15051_v42 = vand.u32 4294901760, %v6057_v56  ;;  %v15056_v25 = vand.u32 4294901760, %v6124_v31 }
 0x482   :  { %7024 = vmatpush.msrb.mxu0 %v14817_v58  ;;  %7224 = vmatpush.msrb.mxu2 %v14904_v51  ;;  %v15046_v45 = vsub.f32 %v6126_v26, %v15013_v19  ;;  %v15062_v53 = vsub.f32 %v6125_v11, %v15027_v10  ;;  %v7513_v62 = vsub.f32 %v15003_v8, %v19229_v9  ;;  %v6122_v11 = vld [vmem:[%s18778_s5 + $0x1b8] sm:$0xff]  ;;  %v7508_v26 = vand.u32 4294901760, %v7507_v46 }
 0x483   :  { %19228 = vst [vmem:[#allocation61_spill] sm:$0xff] %v15051_v42  ;;  %7275 = vmatpush.msrb.mxu3 %v14861_v6  ;;  %7385 = vmatpush.msra.mxu1 %v14574_v39  ;;  %v15065_v23 = vadd.f32 %v14881_v17, %v6019_v4  ;;  %v7034_v39 = vsub.f32 %v14998_v12, %v15037_v3 }
 0x484   :  { %19227 = vst [vmem:[#allocation60_spill] sm:$0xff] %v15046_v45  ;;  %7026 = vmatpush.msrb.mxu0 %v14840_v24  ;;  %7227 = vmatmul.f32.vlgmr.msrb.gmra.mxu2 %v14998_v12  ;;  %v5827_v4 = vadd.f32 %v14855_v36, %v14845_v1  ;;  %v15085_v51 = vsub.f32 %v6057_v56, %v15051_v42  ;;  %v6121_v1 = vld [vmem:[%s18778_s5 + $0x1b0] sm:$0xff]  ;;  %v7514_v12 = vand.u32 4294901760, %v7513_v62 }
 0x485   :  { %7277 = vmatpush.msrb.mxu3 %v14872_v7  ;;  %7387 = vmatpush.msra.mxu1 %v14609_v5  ;;  %v5958_v5 = vadd.f32 %v5957_v59, %v5907_v50  ;;  %v5729_v9 = vadd.f32 %v14900_v29, %v5692_v37  ;;  %v15093_v36 = vsub.f32 %v6124_v31, %v15056_v25  ;;  %v19231_v50 = vand.u32 4294901760, %v15025_v35 }
 0x486   :  { %7434 = vmatpush.msra.mxu2 %v14937_v38  ;;  %7028 = vmatpush.msrb.mxu0 %v14861_v6  ;;  %19230 = vst [vmem:[#allocation62_spill] sm:$0xff] %v15085_v51  ;;  %v5869_v8 = vpop.f32.mrf.mxu0  ;;  %v15090_v34 = vpop.f32.mrf.mxu1  ;;  %v15103_v37 = vand.u32 4294901760, %v6122_v11  ;;  %v6061_v31 = vmax.f32 %v15065_v23, 0.0  ;;  %v15108_v46 = vand.u32 4294901760, %v7034_v39  ;;  %v19235_v39 = vld [vmem:[#allocation16_spill] sm:$0xff] }
 0x487   :  { %7281 = vmatmul.f32.vlgmr.msrb.gmra.mxu3 %v15037_v3  ;;  %7389 = vmatpush.msra.mxu1 %v14624_v14  ;;  %v7519_v29 = vsub.f32 %v15025_v35, %v19231_v50  ;;  %v5870_v56 = vadd.f32 %v5869_v8, %v5827_v4  ;;  %v5961_v59 = vpop.f32.mrf.mxu2  ;;  %v18931_v14 = vand.u32 4294901760, %v15062_v53  ;;  %v15113_v3 = vsub.f32 %v6123_v28, %v15074_v18 }
 0x488   :  { %7436 = vmatpush.msra.mxu2 %v14946_v47  ;;  %7503 = vmatpush.msra.mxu3 %v7502_v40  ;;  %19232 = vst [vmem:[#allocation63_spill] sm:$0xff] %v15108_v46  ;;  %v15110_v40 = vpop.f32.mrf.mxu3  ;;  %v5995_v8 = vadd.f32 %v5994_v21, %v5958_v5  ;;  %v19234_v4 = vand.u32 4294901760, %v15046_v45  ;;  %v15119_v50 = vand.u32 4294901760, %v6121_v1  ;;  %v6023_v62 = vadd.f32 %v5729_v9, %v19235_v39 }
 0x489   :  { %7030 = vmatpush.msrb.mxu0 %v14872_v7  ;;  %7391 = vmatpush.msra.mxu1 %v14635_v13  ;;  %19233 = vst [vmem:[#allocation64_spill] sm:$0xff] %v15113_v3  ;;  %v6120_v13 = vld [vmem:[%s18778_s5 + $0x1a8] sm:$0xff]  ;;  %v15128_v21 = vand.u32 4294901760, %v15085_v51  ;;  %v18932_v28 = vand.u32 4294901760, %v15093_v36  ;;  %v7520_v5 = vand.u32 4294901760, %v7519_v29  ;;  %v7531_v9 = vsub.f32 %v15062_v53, %v18931_v14  ;;  %v19240_v29 = vld [vmem:[#allocation17_spill] sm:$0xff] }
 0x48a   :  { %7438 = vmatpush.msra.mxu2 %v14974_v33  ;;  %7509 = vmatpush.msra.mxu3 %v7508_v26  ;;  %v7525_v23 = vsub.f32 %v15046_v45, %v19234_v4  ;;  %v19237_v26 = vand.u32 4294901760, %v14607_v43  ;;  %v5913_v4 = vadd.f32 %v15017_v2, %v5870_v56  ;;  %v15139_v39 = vsub.f32 %v6122_v11, %v15103_v37  ;;  %v6119_v2 = vld [vmem:[%s18778_s5 + $0x1a0] sm:$0xff] }
 0x48b   :  { %7036 = vmatmul.f32.vlgmr.msrb.gmra.mxu0 %v15108_v46  ;;  %7165 = vmatmul.f32.gmra.mxu1 %v15051_v42  ;;  %19236 = vst [vmem:[#allocation16_spill] sm:$0xff] %v15128_v21  ;;  %v15141_v46 = vand.u32 4294901760, %v6061_v31  ;;  %v15144_v45 = vperm.slane %v14878_v41, 3  ;;  %v5831_v11 = vadd.f32 %v14917_v0, %v14908_v27  ;;  %v6012_v56 = vadd.f32 %v5995_v8, %v19240_v29 }
 0x48c   :  { %7306 = vmatpush.msra.mxu0 %v19237_v26  ;;  %7393 = vmatpush.msra.mxu1 %v14658_v48  ;;  %19238 = vst [vmem:[#allocation65_spill] sm:$0xff] %v15139_v39  ;;  %v15148_v48 = vand.u32 4294901760, %v6120_v13  ;;  %v19241_v41 = vand.u32 4294901760, %v14633_v22  ;;  %v7526_v26 = vand.u32 4294901760, %v7525_v23  ;;  %v15163_v14 = vadd.f32 %v14881_v17, %v6023_v62  ;;  %v19243_v17 = vld [vmem:[#allocation41_spill] sm:$0xff] }
 0x48d   :  { %19239 = vst [vmem:[#allocation66_spill] sm:$0xff] %v15141_v46  ;;  %7440 = vmatpush.msra.mxu2 %v14995_v52  ;;  %7515 = vmatpush.msra.mxu3 %v7514_v12  ;;  %v15160_v12 = vsub.f32 %v6121_v1, %v15119_v50  ;;  %v7042_v27 = vsub.f32 %v15085_v51, %v15128_v21  ;;  %v6118_v1 = vld [vmem:[%s18778_s5 + $0x198] sm:$0xff]  ;;  %v19244_v23 = vand.u32 4294901760, %v19243_v17  ;;  %v7532_v62 = vand.u32 4294901760, %v7531_v9 }
 0x48e   :  { %7232 = vmatmul.f32.gmra.mxu2 %v15085_v51  ;;  %7310 = vmatpush.msra.mxu0 %v19241_v41  ;;  %v7537_v0 = vsub.f32 %v15093_v36, %v18932_v28  ;;  %v5874_v22 = vpop.f32.mrf.mxu0  ;;  %v15172_v8 = vpop.f32.mrf.mxu1  ;;  %v15182_v43 = vand.u32 4294901760, %v6119_v2  ;;  %v15185_v28 = vsub.f32 %v6061_v31, %v15141_v46  ;;  %v15201_v31 = vadd.f32 %v15144_v45, %v6012_v56 }
 0x48f   :  { %19242 = vst [vmem:[#allocation17_spill] sm:$0xff] %v15160_v12  ;;  %7395 = vmatpush.msra.mxu1 %v14685_v15  ;;  %7442 = vmatpush.msra.mxu2 %v15013_v19  ;;  %v5962_v15 = vadd.f32 %v5961_v59, %v5913_v4  ;;  %v15179_v29 = vpop.f32.mrf.mxu2  ;;  %v15195_v59 = vsub.f32 %v6120_v13, %v15148_v48  ;;  %v6117_v4 = vld [vmem:[%s18778_s5 + $0x190] sm:$0xff]  ;;  %v18939_v9 = vand.u32 4294901760, %v15160_v12  ;;  %v15205_v41 = vand.u32 4294901760, %v6118_v1 }
 0x490   :  { %7521 = vmatpush.msra.mxu3 %v7520_v5  ;;  %7314 = vmatpush.msra.mxu0 %v19244_v23  ;;  %19245 = vst [vmem:[#allocation41_spill] sm:$0xff] %v15185_v28  ;;  %v19246_v5 = vand.u32 4294901760, %v15113_v3  ;;  %v15192_v23 = vpop.f32.mrf.mxu3  ;;  %v15211_v51 = vand.u32 4294901760, %v7042_v27 }
 0x491   :  { %7287 = vmatmul.f32.gmra.mxu3 %v15128_v21  ;;  %7397 = vmatpush.msra.mxu1 %v14702_v49  ;;  %v5875_v49 = vadd.f32 %v5874_v22, %v5831_v11  ;;  %v19247_v21 = vld [vmem:[#allocation47_spill] sm:$0xff]  ;;  %v5999_v56 = vadd.f32 %v15110_v40, %v5962_v15  ;;  %v19250_v11 = vand.u32 4294901760, %v15139_v39  ;;  %v15219_v22 = vsub.f32 %v6119_v2, %v15182_v43  ;;  %v19252_v2 = vld [vmem:[#allocation49_spill] sm:$0xff] }
 0x492   :  { %v7543_v17 = vsub.f32 %v15113_v3, %v19246_v5  ;;  %7444 = vmatpush.msra.mxu2 %v15027_v10  ;;  %7527 = vmatpush.msra.mxu3 %v7526_v26  ;;  %v6065_v5 = vmax.f32 %v15163_v14, 0.0  ;;  %v19248_v13 = vand.u32 4294901760, %v19247_v21  ;;  %19249 = vst [vmem:[#allocation47_spill] sm:$0xff] %v15211_v51  ;;  %v7538_v3 = vand.u32 4294901760, %v7537_v0 }
 0x493   :  { %7399 = vmatpush.msra.mxu1 %v14718_v20  ;;  %v7549_v26 = vsub.f32 %v15139_v39, %v19250_v11  ;;  %v15221_v14 = vand.u32 4294901760, %v6117_v4  ;;  %v6116_v20 = vld [vmem:[%s18778_s5 + $0x188] sm:$0xff]  ;;  %7044 = vmatmul.f32.gmra.mxu0 %v15211_v51  ;;  %v15229_v21 = vand.u32 4294901760, %v15185_v28  ;;  %v6054_v0 = vmax.f32 %v15201_v31, 0.0  ;;  %v6115_v11 = vld [vmem:[%s18778_s5 + $0x180] sm:$0xff] }
 0x494   :  { %7318 = vmatpush.msra.mxu0 %v19248_v13  ;;  %7446 = vmatpush.msra.mxu2 %v15056_v25  ;;  %v7544_v40 = vand.u32 4294901760, %v7543_v17  ;;  %v19253_v15 = vand.u32 4294901760, %v19252_v2  ;;  %v7555_v13 = vsub.f32 %v15160_v12, %v18939_v9  ;;  %v15241_v17 = vsub.f32 %v6118_v1, %v15205_v41  ;;  %v19257_v1 = vld [vmem:[#allocation50_spill] sm:$0xff]  ;;  %v19261_v51 = vld [vmem:[#allocation51_spill] sm:$0xff] }
 0x495   :  { %7533 = vmatpush.msra.mxu3 %v7532_v62  ;;  %7169 = vmatmul.f32.gmra.mxu1 %v15141_v46  ;;  %19251 = vst [vmem:[#allocation67_spill] sm:$0xff] %v15229_v21  ;;  %v5919_v62 = vadd.f32 %v15090_v34, %v5875_v49  ;;  %v15246_v27 = vand.u32 4294901760, %v6065_v5  ;;  %v15251_v34 = vand.u32 4294901760, %v6116_v20  ;;  %v19256_v49 = vld [vmem:[#allocation18_spill] sm:$0xff]  ;;  %v7550_v9 = vand.u32 4294901760, %v7549_v26 }
 0x496   :  { %7322 = vmatpush.msra.mxu0 %v19253_v15  ;;  %7401 = vmatpush.msra.mxu1 %v14740_v63  ;;  %v15249_v63 = vpop.f32.mrf.mxu1  ;;  %v6016_v2 = vadd.f32 %v5999_v56, %v19256_v49  ;;  %v19258_v15 = vand.u32 4294901760, %v19257_v1  ;;  %v15261_v39 = vsub.f32 %v6117_v4, %v15221_v14  ;;  %v7050_v56 = vsub.f32 %v15185_v28, %v15229_v21 }
 0x497   :  { %19254 = vst [vmem:[#allocation49_spill] sm:$0xff] %v15246_v27  ;;  %7448 = vmatpush.msra.mxu2 %v15074_v18  ;;  %7539 = vmatpush.msra.mxu3 %v7538_v3  ;;  %v5879_v31 = vpop.f32.mrf.mxu0  ;;  %v15258_v12 = vpop.f32.mrf.mxu2  ;;  %v5835_v3 = vadd.f32 %v14972_v54, %v14963_v44  ;;  %v19259_v49 = vand.u32 4294901760, %v15195_v59  ;;  %v15276_v4 = vand.u32 4294901760, %v6054_v0  ;;  %v19262_v44 = vand.u32 4294901760, %v19261_v51 }
 0x498   :  { %19255 = vst [vmem:[#allocation68_spill] sm:$0xff] %v15249_v63  ;;  %7237 = vmatmul.f32.gmra.mxu2 %v15185_v28  ;;  %7326 = vmatpush.msra.mxu0 %v19258_v15  ;;  %v15272_v1 = vpop.f32.mrf.mxu3  ;;  %v15274_v15 = vand.u32 4294901760, %v6115_v11  ;;  %v7556_v54 = vand.u32 4294901760, %v7555_v13  ;;  %v18949_v63 = vand.u32 4294901760, %v15241_v17  ;;  %v15283_v28 = vsub.f32 %v6065_v5, %v15246_v27 }
 0x499   :  { %7403 = vmatpush.msra.mxu1 %v14764_v60  ;;  %7450 = vmatpush.msra.mxu2 %v15103_v37  ;;  %v7561_v26 = vsub.f32 %v15195_v59, %v19259_v49  ;;  %19260 = vst [vmem:[#allocation18_spill] sm:$0xff] %v15276_v4  ;;  %v5966_v60 = vadd.f32 %v15179_v29, %v5919_v62  ;;  %v19264_v51 = vand.u32 4294901760, %v15219_v22  ;;  %v18948_v5 = vand.u32 4294901760, %v15261_v39 }
 0x49a   :  { %7545 = vmatpush.msra.mxu3 %v7544_v40  ;;  %7330 = vmatpush.msra.mxu0 %v19262_v44  ;;  %19263 = vst [vmem:[#allocation50_spill] sm:$0xff] %v15283_v28  ;;  %v15288_v49 = vsub.f32 %v6116_v20, %v15251_v34  ;;  %v6042_v40 = vadd.f32 %v15144_v45, %v6016_v2  ;;  %v19265_v13 = vand.u32 4294901760, %v14752_v30 }
 0x49b   :  { %7293 = vmatmul.f32.gmra.mxu3 %v15229_v21  ;;  %7405 = vmatpush.msra.mxu1 %v14782_v16  ;;  %v7567_v29 = vsub.f32 %v15219_v22, %v19264_v51  ;;  %v5880_v62 = vadd.f32 %v5879_v31, %v5835_v3  ;;  %v15299_v16 = vand.u32 4294901760, %v7050_v56  ;;  %v7562_v20 = vand.u32 4294901760, %v7561_v26  ;;  %v19271_v3 = vld [vmem:[#allocation52_spill] sm:$0xff] }
 0x49c   :  { %7452 = vmatpush.msra.mxu2 %v15119_v50  ;;  %7551 = vmatpush.msra.mxu3 %v7550_v9  ;;  %v15302_v2 = vsub.f32 %v6115_v11, %v15274_v15  ;;  %v15305_v9 = vsub.f32 %v6054_v0, %v15276_v4  ;;  %v6003_v44 = vadd.f32 %v15192_v23, %v5966_v60  ;;  %v18951_v11 = vand.u32 4294901760, %v15288_v49 }
 0x49d   :  { %7334 = vmatpush.msra.mxu0 %v19265_v13  ;;  %7407 = vmatpush.msra.mxu1 %v14797_v32  ;;  %19266 = vst [vmem:[#allocation51_spill] sm:$0xff] %v15299_v16  ;;  %v7573_v30 = vsub.f32 %v15241_v17, %v18949_v63  ;;  %v15315_v32 = vand.u32 4294901760, %v15283_v28  ;;  %v6058_v23 = vmax.f32 %v6042_v40, 0.0  ;;  %v19272_v56 = vand.u32 4294901760, %v19271_v3  ;;  %v19275_v3 = vld [vmem:[#allocation19_spill] sm:$0xff] }
 0x49e   :  { %19267 = vst [vmem:[#allocation69_spill] sm:$0xff] %v15305_v9  ;;  %7454 = vmatpush.msra.mxu2 %v15148_v48  ;;  %7557 = vmatpush.msra.mxu3 %v7556_v54  ;;  %v15320_v31 = vpop.f32.mrf.mxu1  ;;  %v7568_v26 = vand.u32 4294901760, %v7567_v29  ;;  %v5925_v60 = vadd.f32 %v15172_v8, %v5880_v62  ;;  %v7579_v54 = vsub.f32 %v15261_v39, %v18948_v5  ;;  %v18950_v13 = vand.u32 4294901760, %v15302_v2 }
 0x49f   :  { %7052 = vmatmul.f32.gmra.mxu0 %v15299_v16  ;;  %7173 = vmatmul.f32.gmra.mxu1 %v15246_v27  ;;  %19268 = vst [vmem:[#allocation70_spill] sm:$0xff] %v15315_v32  ;;  %v15318_v0 = vpop.f32.mrf.mxu0  ;;  %v15329_v51 = vpop.f32.mrf.mxu2  ;;  %v7574_v8 = vand.u32 4294901760, %v7573_v30  ;;  %v15340_v62 = vand.u32 4294901760, %v15305_v9 }
 0x4a0   :  { %19269 = vst [vmem:[#allocation71_spill] sm:$0xff] %v15318_v0  ;;  %7338 = vmatpush.msra.mxu0 %v19272_v56  ;;  %7409 = vmatpush.msra.mxu1 %v14817_v58  ;;  %v15333_v40 = vpop.f32.mrf.mxu3  ;;  %v6020_v56 = vadd.f32 %v6003_v44, %v19275_v3  ;;  %v19276_v58 = vld [vmem:[#allocation53_spill] sm:$0xff]  ;;  %v7585_v44 = vsub.f32 %v15288_v49, %v18951_v11  ;;  %v15349_v3 = vand.u32 4294901760, %v6058_v23  ;;  %v7580_v5 = vand.u32 4294901760, %v7579_v54 }
 0x4a1   :  { %19270 = vst [vmem:[#allocation72_spill] sm:$0xff] %v15320_v31  ;;  %7456 = vmatpush.msra.mxu2 %v15182_v43  ;;  %7563 = vmatpush.msra.mxu3 %v7562_v20  ;;  %v19277_v29 = vand.u32 4294901760, %v19276_v58  ;;  %v7058_v20 = vsub.f32 %v15283_v28, %v15315_v32  ;;  %v19280_v58 = vld [vmem:[#allocation54_spill] sm:$0xff]  ;;  %v5970_v30 = vadd.f32 %v15258_v12, %v5925_v60 }
 0x4a2   :  { %19273 = vst [vmem:[#allocation52_spill] sm:$0xff] %v15329_v51  ;;  %7242 = vmatmul.f32.gmra.mxu2 %v15283_v28  ;;  %7411 = vmatpush.msra.mxu1 %v14840_v24  ;;  %v7591_v24 = vsub.f32 %v15302_v2, %v18950_v13  ;;  %v6046_v63 = vadd.f32 %v15144_v45, %v6020_v56 }
 0x4a3   :  { %19274 = vst [vmem:[#allocation73_spill] sm:$0xff] %v15333_v40  ;;  %7342 = vmatpush.msra.mxu0 %v19277_v29  ;;  %7458 = vmatpush.msra.mxu2 %v15205_v41  ;;  %v19281_v29 = vand.u32 4294901760, %v19280_v58  ;;  %v19282_v58 = vand.u32 4294901760, %v14826_v55  ;;  %v15366_v12 = vand.u32 4294901760, %v7058_v20  ;;  %v15373_v56 = vsub.f32 %v6058_v23, %v15349_v3 }
 0x4a4   :  { %19278 = vst [vmem:[#allocation19_spill] sm:$0xff] %v15340_v62  ;;  %7569 = vmatpush.msra.mxu3 %v7568_v26  ;;  %7413 = vmatpush.msra.mxu1 %v14861_v6  ;;  %v7468_v26 = vsub.f32 %v15305_v9, %v15340_v62  ;;  %v7586_v6 = vand.u32 4294901760, %v7585_v44  ;;  %v7592_v55 = vand.u32 4294901760, %v7591_v24  ;;  %v6062_v20 = vmax.f32 %v6046_v63, 0.0  ;;  %v19296_v63 = vld [vmem:[#allocation9_spill] sm:$0xff] }
 0x4a5   :  { %19279 = vst [vmem:[#allocation53_spill] sm:$0xff] %v15349_v3  ;;  %7346 = vmatpush.msra.mxu0 %v19281_v29  ;;  %7299 = vmatmul.f32.gmra.mxu3 %v15315_v32  ;;  %v19289_v44 = vand.u32 4294901760, %v14848_v57  ;;  %v15394_v24 = vand.u32 4294901760, %v15373_v56 }
 0x4a6   :  { %7460 = vmatpush.msra.mxu2 %v15221_v14  ;;  %7575 = vmatpush.msra.mxu3 %v7574_v8  ;;  %19283 = vst [vmem:[#allocation54_spill] sm:$0xff] %v15366_v12  ;;  %v6007_v8 = vadd.f32 %v15272_v1, %v5970_v30  ;;  %v15386_v23 = vand.u32 4294901760, %v7468_v26  ;;  %v19291_v1 = vld [vmem:[#allocation24_spill] sm:$0xff]  ;;  %v19292_v30 = vld [vmem:[#allocation55_spill] sm:$0xff]  ;;  %v15397_v57 = vand.u32 4294901760, %v6062_v20  ;;  %v19297_v26 = vand.u32 4294901760, %v19296_v63 }
 0x4a7   :  { %7350 = vmatpush.msra.mxu0 %v19282_v58  ;;  %7415 = vmatpush.msra.mxu1 %v14872_v7  ;;  %v15368_v60 = vpop.f32.mrf.mxu0  ;;  %v15370_v54 = vpop.f32.mrf.mxu1  ;;  %19286 = vst [vmem:[#allocation76_spill] sm:$0xff] %v15373_v56  ;;  %v19293_v58 = vand.u32 4294901760, %v19292_v30  ;;  %v19302_v30 = vld [vmem:[#allocation57_spill] sm:$0xff] }
 0x4a8   :  { %19284 = vst [vmem:[#allocation74_spill] sm:$0xff] %v15368_v60  ;;  %7462 = vmatpush.msra.mxu2 %v15251_v34  ;;  %7581 = vmatpush.msra.mxu3 %v7580_v5  ;;  %v15377_v29 = vpop.f32.mrf.mxu2  ;;  %v15381_v7 = vpop.f32.mrf.mxu3  ;;  %v6024_v5 = vadd.f32 %v6007_v8, %v19291_v1 }
 0x4a9   :  { %19285 = vst [vmem:[#allocation75_spill] sm:$0xff] %v15370_v54  ;;  %7060 = vmatmul.f32.gmra.mxu0 %v15366_v12  ;;  %7417 = vmatmul.f32.vlgmr.msra.gmra.mxu1 %v14968_v61  ;;  %v19334_v54 = vld [vmem:[#allocation17_spill] sm:$0xff] }
 0x4aa   :  { %19287 = vst [vmem:[#allocation77_spill] sm:$0xff] %v15377_v29  ;;  %7354 = vmatpush.msra.mxu0 %v19289_v44  ;;  %7464 = vmatpush.msra.mxu2 %v15274_v15  ;;  %v11609_v12 = vld [vmem:[%s18778_s5 + $0x2b8] sm:$0xff] }
 0x4ab   :  { %19288 = vst [vmem:[#allocation78_spill] sm:$0xff] %v15381_v7  ;;  %7587 = vmatpush.msra.mxu3 %v7586_v6  ;;  %7681 = vmatpush.msrb.mxu1 %v14937_v38  ;;  %v19298_v6 = vld [vmem:[#allocation8_spill] sm:$0xff]  ;;  %v15423_v7 = vsub.f32 %v6062_v20, %v15397_v57  ;;  %v15946_v28 = vand.u32 4294901760, %v11609_v12 }
 0x4ac   :  { %19290 = vst [vmem:[#allocation79_spill] sm:$0xff] %v15386_v23  ;;  %7358 = vmatpush.msra.mxu0 %v19293_v58  ;;  %7470 = vmatmul.f32.vlgmr.msra.gmra.mxu2 %v15386_v23  ;;  %v19299_v44 = vand.u32 4294901760, %v19298_v6  ;;  %v19303_v58 = vand.u32 4294901760, %v19302_v30  ;;  %v19314_v20 = vld [vmem:[#allocation60_spill] sm:$0xff] }
 0x4ad   :  { %19294 = vst [vmem:[#allocation24_spill] sm:$0xff] %v15394_v24  ;;  %7593 = vmatpush.msra.mxu3 %v7592_v55  ;;  %7683 = vmatpush.msrb.mxu1 %v14946_v47  ;;  %v6050_v55 = vadd.f32 %v15144_v45, %v6024_v5  ;;  %v19309_v45 = vld [vmem:[#allocation59_spill] sm:$0xff] }
 0x4ae   :  { %19295 = vst [vmem:[#allocation55_spill] sm:$0xff] %v15397_v57  ;;  %7740 = vmatpush.msrb.mxu2 %v19297_v26  ;;  %7362 = vmatpush.msra.mxu0 %v19299_v44  ;;  %v7476_v26 = vsub.f32 %v15373_v56, %v15394_v24  ;;  %v19305_v44 = vld [vmem:[#allocation56_spill] sm:$0xff]  ;;  %v19310_v5 = vand.u32 4294901760, %v19309_v45 }
 0x4af   :  { %7595 = vmatmul.f32.vlgmr.msra.gmra.mxu3 %v15276_v4  ;;  %7685 = vmatpush.msrb.mxu1 %v14974_v33  ;;  %v15405_v8 = vpop.f32.mrf.mxu0  ;;  %v15407_v1 = vpop.f32.mrf.mxu1  ;;  %v19306_v13 = vand.u32 4294901760, %v19305_v44  ;;  %19308 = vst [vmem:[#allocation80_spill] sm:$0xff] %v15423_v7 }
 0x4b0   :  { %19300 = vst [vmem:[#allocation9_spill] sm:$0xff] %v15405_v8  ;;  %7744 = vmatpush.msrb.mxu2 %v19303_v58  ;;  %7819 = vmatpush.msrb.mxu3 %v14937_v38  ;;  %v15415_v6 = vpop.f32.mrf.mxu2  ;;  %v6066_v38 = vmax.f32 %v6050_v55, 0.0  ;;  %v19312_v58 = vand.u32 4294901760, %v15025_v35  ;;  %v19335_v8 = vand.u32 4294901760, %v19334_v54 }
 0x4b1   :  { %19301 = vst [vmem:[#allocation8_spill] sm:$0xff] %v15407_v1  ;;  %7366 = vmatpush.msra.mxu0 %v19306_v13  ;;  %7687 = vmatpush.msrb.mxu1 %v14995_v52  ;;  %v15420_v11 = vpop.f32.mrf.mxu3  ;;  %v15432_v13 = vand.u32 4294901760, %v7476_v26 }
 0x4b2   :  { %19304 = vst [vmem:[#allocation57_spill] sm:$0xff] %v15415_v6  ;;  %7748 = vmatpush.msrb.mxu2 %v19310_v5  ;;  %7821 = vmatpush.msrb.mxu3 %v14946_v47  ;;  %v15440_v47 = vand.u32 4294901760, %v15423_v7  ;;  %v15449_v44 = vand.u32 4294901760, %v6066_v38  ;;  %v19321_v5 = vand.u32 4294901760, %v15062_v53 }
 0x4b3   :  { %19307 = vst [vmem:[#allocation56_spill] sm:$0xff] %v15420_v11  ;;  %7368 = vmatmul.f32.vlgmr.msra.gmra.mxu0 %v14968_v61  ;;  %7421 = vmatmul.f32.gmra.mxu1 %v15051_v42 }
 0x4b4   :  { %7613 = vmatpush.msrb.mxu0 %v19296_v63  ;;  %7689 = vmatpush.msrb.mxu1 %v15013_v19  ;;  %19311 = vst [vmem:[#allocation59_spill] sm:$0xff] %v15432_v13  ;;  %v19315_v63 = vand.u32 4294901760, %v19314_v20 }
 0x4b5   :  { %7752 = vmatpush.msrb.mxu2 %v19312_v58  ;;  %7823 = vmatpush.msrb.mxu3 %v14974_v33  ;;  %19313 = vst [vmem:[#allocation81_spill] sm:$0xff] %v15440_v47  ;;  %v7484_v58 = vsub.f32 %v15423_v7, %v15440_v47 }
 0x4b6   :  { %7478 = vmatmul.f32.gmra.mxu2 %v15432_v13  ;;  %7616 = vmatpush.msrb.mxu0 %v19302_v30  ;;  %19318 = vst [vmem:[#allocation83_spill] sm:$0xff] %v15449_v44 }
 0x4b7   :  { %7691 = vmatpush.msrb.mxu1 %v15027_v10  ;;  %7756 = vmatpush.msrb.mxu2 %v19315_v63  ;;  %v15445_v55 = vpop.f32.mrf.mxu0  ;;  %v15447_v26 = vpop.f32.mrf.mxu1  ;;  %v11601_v63 = vld [vmem:[%s18778_s5 + $0x278] sm:$0xff] }
 0x4b8   :  { %19316 = vst [vmem:[#allocation60_spill] sm:$0xff] %v15445_v55  ;;  %7825 = vmatpush.msrb.mxu3 %v14995_v52  ;;  %7619 = vmatpush.msrb.mxu0 %v19309_v45  ;;  %v15453_v33 = vpop.f32.mrf.mxu2  ;;  %v15467_v52 = vsub.f32 %v6066_v38, %v15449_v44  ;;  %v19323_v45 = vand.u32 4294901760, %v15093_v36  ;;  %v19325_v38 = vld [vmem:[#allocation64_spill] sm:$0xff] }
 0x4b9   :  { %19317 = vst [vmem:[#allocation82_spill] sm:$0xff] %v15447_v26  ;;  %7599 = vmatmul.f32.gmra.mxu3 %v15349_v3  ;;  %7693 = vmatpush.msrb.mxu1 %v15056_v25  ;;  %v15457_v30 = vpop.f32.mrf.mxu3 }
 0x4ba   :  { %19319 = vst [vmem:[#allocation84_spill] sm:$0xff] %v15453_v33  ;;  %7760 = vmatpush.msrb.mxu2 %v19321_v5  ;;  %7827 = vmatpush.msrb.mxu3 %v15013_v19  ;;  %v11600_v19 = vld [vmem:[%s18778_s5 + $0x270] sm:$0xff]  ;;  %v15487_v5 = vand.u32 4294901760, %v11601_v63  ;;  %v11587_v33 = vld [vmem:[%s18778_s5 + $0x208] sm:$0xff] }
 0x4bb   :  { %19320 = vst [vmem:[#allocation85_spill] sm:$0xff] %v15457_v30  ;;  %7622 = vmatpush.msrb.mxu0 %v15025_v35  ;;  %7695 = vmatpush.msrb.mxu1 %v15074_v18  ;;  %v15479_v35 = vand.u32 4294901760, %v7484_v58  ;;  %v15506_v26 = vand.u32 4294901760, %v11600_v19  ;;  %v15748_v55 = vand.u32 4294901760, %v11587_v33 }
 0x4bc   :  { %19322 = vst [vmem:[#allocation86_spill] sm:$0xff] %v15467_v52  ;;  %7764 = vmatpush.msrb.mxu2 %v19323_v45  ;;  %7829 = vmatpush.msrb.mxu3 %v15027_v10  ;;  %v19326_v10 = vand.u32 4294901760, %v19325_v38 }
 0x4bd   :  { %7372 = vmatmul.f32.gmra.mxu0 %v15051_v42  ;;  %7425 = vmatmul.f32.gmra.mxu1 %v15141_v46  ;;  %19324 = vst [vmem:[#allocation87_spill] sm:$0xff] %v15479_v35 }
 0x4be   :  { %7625 = vmatpush.msrb.mxu0 %v19314_v20  ;;  %7697 = vmatpush.msrb.mxu1 %v15103_v37  ;;  %v15496_v20 = vand.u32 4294901760, %v15467_v52 }
 0x4bf   :  { %7768 = vmatpush.msrb.mxu2 %v19326_v10  ;;  %7831 = vmatpush.msrb.mxu3 %v15056_v25  ;;  %v15489_v45 = vpop.f32.mrf.mxu0  ;;  %v15491_v11 = vpop.f32.mrf.mxu1  ;;  %v11599_v10 = vld [vmem:[%s18778_s5 + $0x268] sm:$0xff]  ;;  %v19331_v25 = vld [vmem:[#allocation65_spill] sm:$0xff] }
 0x4c0   :  { %19327 = vst [vmem:[#allocation64_spill] sm:$0xff] %v15489_v45  ;;  %7486 = vmatmul.f32.gmra.mxu2 %v15479_v35  ;;  %7628 = vmatpush.msrb.mxu0 %v15062_v53  ;;  %v15498_v58 = vpop.f32.mrf.mxu2  ;;  %v19332_v6 = vand.u32 4294901760, %v19331_v25  ;;  %v11598_v53 = vld [vmem:[%s18778_s5 + $0x260] sm:$0xff]  ;;  %v11596_v45 = vld [vmem:[%s18778_s5 + $0x250] sm:$0xff] }
 0x4c1   :  { %19328 = vst [vmem:[#allocation88_spill] sm:$0xff] %v15491_v11  ;;  %7699 = vmatpush.msrb.mxu1 %v15119_v50  ;;  %v15508_v11 = vpop.f32.mrf.mxu3  ;;  %7833 = vmatpush.msrb.mxu3 %v15074_v18  ;;  %v7492_v18 = vsub.f32 %v15467_v52, %v15496_v20 }
 0x4c2   :  { %19329 = vst [vmem:[#allocation89_spill] sm:$0xff] %v15496_v20  ;;  %7772 = vmatpush.msrb.mxu2 %v19332_v6  ;;  %7631 = vmatpush.msrb.mxu0 %v15093_v36  ;;  %v15520_v6 = vand.u32 4294901760, %v11599_v10  ;;  %v15530_v36 = vsub.f32 %v11600_v19, %v15506_v26 }
 0x4c3   :  { %19330 = vst [vmem:[#allocation90_spill] sm:$0xff] %v15498_v58  ;;  %7603 = vmatmul.f32.gmra.mxu3 %v15397_v57  ;;  %7701 = vmatpush.msrb.mxu1 %v15148_v48  ;;  %v15518_v58 = vsub.f32 %v11601_v63, %v15487_v5  ;;  %v11597_v63 = vld [vmem:[%s18778_s5 + $0x258] sm:$0xff] }
 0x4c4   :  { %19333 = vst [vmem:[#allocation65_spill] sm:$0xff] %v15508_v11  ;;  %7776 = vmatpush.msrb.mxu2 %v19335_v8  ;;  %7835 = vmatpush.msrb.mxu3 %v15103_v37  ;;  %v15532_v11 = vand.u32 4294901760, %v11598_v53  ;;  %v19336_v8 = vand.u32 4294901760, %v15195_v59  ;;  %v15544_v19 = vsub.f32 %v11599_v10, %v15520_v6  ;;  %v19341_v10 = vand.u32 4294901760, %v15219_v22 }
 0x4c5   :  { %7634 = vmatpush.msrb.mxu0 %v19325_v38  ;;  %7703 = vmatpush.msrb.mxu1 %v15182_v43  ;;  %v19395_v16 = vand.u32 4294901760, %v15518_v58 }
 0x4c6   :  { %7780 = vmatpush.msrb.mxu2 %v19336_v8  ;;  %7837 = vmatpush.msrb.mxu3 %v15119_v50  ;;  %v15552_v8 = vand.u32 4294901760, %v7492_v18  ;;  %v15554_v50 = vand.u32 4294901760, %v11597_v63  ;;  %v19347_v31 = vand.u32 4294901760, %v15544_v19 }
 0x4c7   :  { %7376 = vmatmul.f32.gmra.mxu0 %v15141_v46  ;;  %7429 = vmatmul.f32.gmra.mxu1 %v15246_v27  ;;  %v15546_v38 = vpop.f32.mrf.mxu0  ;;  %v15548_v29 = vpop.f32.mrf.mxu1  ;;  %v15976_v46 = vsub.f32 %v11609_v12, %v15946_v28 }
 0x4c8   :  { %19337 = vst [vmem:[#allocation17_spill] sm:$0xff] %v15546_v38  ;;  %7637 = vmatpush.msrb.mxu0 %v19331_v25  ;;  %7705 = vmatpush.msrb.mxu1 %v15205_v41  ;;  %v15559_v37 = vpop.f32.mrf.mxu2  ;;  %v15566_v25 = vsub.f32 %v11598_v53, %v15532_v11  ;;  %v11594_v38 = vld [vmem:[%s18778_s5 + $0x240] sm:$0xff]  ;;  %v8028_v60 = vsub.f32 %v15544_v19, %v19347_v31 }
 0x4c9   :  { %19338 = vst [vmem:[#allocation91_spill] sm:$0xff] %v15548_v29  ;;  %7784 = vmatpush.msrb.mxu2 %v19341_v10  ;;  %7839 = vmatpush.msrb.mxu3 %v15148_v48  ;;  %v15568_v18 = vpop.f32.mrf.mxu3  ;;  %v19343_v10 = vand.u32 4294901760, %v15241_v17  ;;  %v19344_v48 = vand.u32 4294901760, %v15518_v58  ;;  %v15611_v29 = vand.u32 4294901760, %v11594_v38 }
 0x4ca   :  { %19339 = vst [vmem:[#allocation92_spill] sm:$0xff] %v15552_v8  ;;  %7494 = vmatmul.f32.gmra.mxu2 %v15552_v8  ;;  %7640 = vmatpush.msrb.mxu0 %v19334_v54  ;;  %v15587_v54 = vsub.f32 %v11597_v63, %v15554_v50  ;;  %v19352_v30 = vand.u32 4294901760, %v15566_v25 }
 0x4cb   :  { %19340 = vst [vmem:[#allocation93_spill] sm:$0xff] %v15559_v37  ;;  %v11595_v37 = vld [vmem:[%s18778_s5 + $0x248] sm:$0xff]  ;;  %7707 = vmatpush.msrb.mxu1 %v15221_v14  ;;  %7788 = vmatpush.msrb.mxu2 %v19343_v10  ;;  %v8016_v53 = vsub.f32 %v15518_v58, %v19344_v48  ;;  %v19345_v10 = vand.u32 4294901760, %v15530_v36 }
 0x4cc   :  { %19342 = vst [vmem:[#allocation94_spill] sm:$0xff] %v15568_v18  ;;  %v15582_v18 = vand.u32 4294901760, %v11596_v45  ;;  %7841 = vmatpush.msrb.mxu3 %v15182_v43  ;;  %7643 = vmatpush.msrb.mxu0 %v15195_v59  ;;  %v15598_v43 = vand.u32 4294901760, %v11595_v37  ;;  %v19346_v59 = vand.u32 4294901760, %v15261_v39 }
 0x4cd   :  { %7607 = vmatmul.f32.gmra.mxu3 %v15449_v44  ;;  %7709 = vmatpush.msrb.mxu1 %v15251_v34  ;;  %v8022_v48 = vsub.f32 %v15530_v36, %v19345_v10  ;;  %v8017_v63 = vand.u32 4294901760, %v8016_v53 }
 0x4ce   :  { %7792 = vmatpush.msrb.mxu2 %v19346_v59  ;;  %7843 = vmatpush.msrb.mxu3 %v15205_v41  ;;  %v15609_v10 = vsub.f32 %v11596_v45, %v15582_v18  ;;  %v11593_v59 = vld [vmem:[%s18778_s5 + $0x238] sm:$0xff]  ;;  %v19349_v41 = vand.u32 4294901760, %v15288_v49  ;;  %v15632_v51 = vsub.f32 %v11595_v37, %v15598_v43 }
 0x4cf   :  { %7646 = vmatpush.msrb.mxu0 %v15219_v22  ;;  %7711 = vmatpush.msrb.mxu1 %v15274_v15  ;;  %v15616_v40 = vpop.f32.mrf.mxu0  ;;  %v15622_v53 = vpop.f32.mrf.mxu1  ;;  %v8023_v45 = vand.u32 4294901760, %v8022_v48  ;;  %v15639_v22 = vand.u32 4294901760, %v11593_v59  ;;  %v11592_v48 = vld [vmem:[%s18778_s5 + $0x230] sm:$0xff] }
 0x4d0   :  { %19348 = vst [vmem:[#allocation95_spill] sm:$0xff] %v15616_v40  ;;  %7796 = vmatpush.msrb.mxu2 %v19349_v41  ;;  %7845 = vmatpush.msrb.mxu3 %v15221_v14  ;;  %v15624_v31 = vpop.f32.mrf.mxu2  ;;  %v8034_v40 = vsub.f32 %v15566_v25, %v19352_v30  ;;  %v19354_v14 = vand.u32 4294901760, %v15302_v2  ;;  %v8029_v30 = vand.u32 4294901760, %v8028_v60  ;;  %v18952_v37 = vand.u32 4294901760, %v15609_v10 }
 0x4d1   :  { %19350 = vst [vmem:[#allocation96_spill] sm:$0xff] %v15622_v53  ;;  %7380 = vmatmul.f32.gmra.mxu0 %v15246_v27  ;;  %7715 = vmatmul.f32.vlgmr.msrb.gmra.mxu1 %v15340_v62  ;;  %v15634_v41 = vpop.f32.mrf.mxu3  ;;  %v18953_v60 = vand.u32 4294901760, %v15632_v51  ;;  %v11589_v53 = vld [vmem:[%s18778_s5 + $0x218] sm:$0xff] }
 0x4d2   :  { %19351 = vst [vmem:[#allocation97_spill] sm:$0xff] %v15624_v31  ;;  %7649 = vmatpush.msrb.mxu0 %v15241_v17  ;;  %7800 = vmatpush.msrb.mxu2 %v19354_v14  ;;  %v15647_v31 = vsub.f32 %v11594_v38, %v15611_v29  ;;  %v19355_v17 = vand.u32 4294901760, %v15587_v54  ;;  %v15659_v38 = vand.u32 4294901760, %v11592_v48 }
 0x4d3   :  { %19353 = vst [vmem:[#allocation98_spill] sm:$0xff] %v15634_v41  ;;  %7847 = vmatpush.msrb.mxu3 %v15251_v34  ;;  %8018 = vmatpush.msra.mxu1 %v8017_v63  ;;  %v11591_v41 = vld [vmem:[%s18778_s5 + $0x228] sm:$0xff]  ;;  %v8035_v34 = vand.u32 4294901760, %v8034_v40  ;;  %v11590_v63 = vld [vmem:[%s18778_s5 + $0x220] sm:$0xff] }
 0x4d4   :  { %7652 = vmatpush.msrb.mxu0 %v15261_v39  ;;  %7802 = vmatmul.f32.vlgmr.msrb.gmra.mxu2 %v15276_v4  ;;  %v8040_v14 = vsub.f32 %v15587_v54, %v19355_v17  ;;  %v15664_v39 = vsub.f32 %v11593_v59, %v15639_v22  ;;  %v15689_v40 = vand.u32 4294901760, %v11590_v63 }
 0x4d5   :  { %7849 = vmatpush.msrb.mxu3 %v15274_v15  ;;  %8024 = vmatpush.msra.mxu1 %v8023_v45  ;;  %v8046_v15 = vsub.f32 %v15609_v10, %v18952_v37  ;;  %v15674_v45 = vand.u32 4294901760, %v11591_v41  ;;  %v15687_v37 = vsub.f32 %v11592_v48, %v15659_v38 }
 0x4d6   :  { %8128 = vmatpush.msra.mxu2 %v15518_v58  ;;  %7655 = vmatpush.msrb.mxu0 %v15288_v49  ;;  %v8041_v49 = vand.u32 4294901760, %v8040_v14  ;;  %v11606_v58 = vld [vmem:[%s18778_s5 + $0x2a0] sm:$0xff] }
 0x4d7   :  { %7851 = vmatmul.f32.vlgmr.msrb.gmra.mxu3 %v15276_v4  ;;  %8030 = vmatpush.msra.mxu1 %v8029_v30  ;;  %v15676_v17 = vpop.f32.mrf.mxu0  ;;  %v8052_v30 = vsub.f32 %v15632_v51, %v18953_v60  ;;  %v15699_v14 = vpop.f32.mrf.mxu1  ;;  %v8047_v48 = vand.u32 4294901760, %v8046_v15 }
 0x4d8   :  { %19356 = vst [vmem:[#allocation99_spill] sm:$0xff] %v15676_v17  ;;  %8131 = vmatpush.msra.mxu2 %v15530_v36  ;;  %8196 = vmatpush.msra.mxu3 %v15487_v5  ;;  %v15680_v59 = vpop.f32.mrf.mxu2 }
 0x4d9   :  { %19357 = vst [vmem:[#allocation100_spill] sm:$0xff] %v15680_v59  ;;  %7658 = vmatpush.msrb.mxu0 %v15302_v2  ;;  %8036 = vmatpush.msra.mxu1 %v8035_v34  ;;  %v15694_v17 = vpop.f32.mrf.mxu3  ;;  %v19360_v34 = vand.u32 4294901760, %v15647_v31  ;;  %v15707_v59 = vsub.f32 %v11591_v41, %v15674_v45  ;;  %v11588_v2 = vld [vmem:[%s18778_s5 + $0x210] sm:$0xff]  ;;  %v8053_v15 = vand.u32 4294901760, %v8052_v30  ;;  %v19361_v41 = vand.u32 4294901760, %v15664_v39 }
 0x4da   :  { %19358 = vst [vmem:[#allocation101_spill] sm:$0xff] %v15694_v17  ;;  %8134 = vmatpush.msra.mxu2 %v15544_v19  ;;  %8198 = vmatpush.msra.mxu3 %v15506_v26  ;;  %v15710_v17 = vand.u32 4294901760, %v11589_v53 }
 0x4db   :  { %19359 = vst [vmem:[#allocation102_spill] sm:$0xff] %v15699_v14  ;;  %7661 = vmatmul.f32.vlgmr.msrb.gmra.mxu0 %v15305_v9  ;;  %7721 = vmatmul.f32.gmra.mxu1 %v15394_v24  ;;  %v8058_v60 = vsub.f32 %v15647_v31, %v19360_v34  ;;  %v15719_v34 = vsub.f32 %v11590_v63, %v15689_v40  ;;  %v15731_v63 = vand.u32 4294901760, %v11588_v2 }
 0x4dc   :  { %7949 = vmatpush.msra.mxu0 %v15487_v5  ;;  %8042 = vmatpush.msra.mxu1 %v8041_v49  ;;  %v8064_v49 = vsub.f32 %v15664_v39, %v19361_v41  ;;  %v15736_v0 = vsub.f32 %v11589_v53, %v15710_v17  ;;  %v11586_v41 = vld [vmem:[%s18778_s5 + $0x200] sm:$0xff] }
 0x4dd   :  { %8137 = vmatpush.msra.mxu2 %v15566_v25  ;;  %8200 = vmatpush.msra.mxu3 %v15520_v6  ;;  %v8059_v30 = vand.u32 4294901760, %v8058_v60  ;;  %v19363_v60 = vand.u32 4294901760, %v15687_v37  ;;  %v15761_v14 = vsub.f32 %v11588_v2, %v15731_v63 }
 0x4de   :  { %7806 = vmatmul.f32.gmra.mxu2 %v15349_v3  ;;  %7951 = vmatpush.msra.mxu0 %v15506_v26  ;;  %v8065_v53 = vand.u32 4294901760, %v8064_v49 }
 0x4df   :  { %8048 = vmatpush.msra.mxu1 %v8047_v48  ;;  %8140 = vmatpush.msra.mxu2 %v15587_v54  ;;  %v8070_v48 = vsub.f32 %v15687_v37, %v19363_v60 }
 0x4e0   :  { %8202 = vmatpush.msra.mxu3 %v15532_v11  ;;  %7953 = vmatpush.msra.mxu0 %v15520_v6  ;;  %v15741_v1 = vpop.f32.mrf.mxu0  ;;  %v15750_v24 = vpop.f32.mrf.mxu2 }
 0x4e1   :  { %19362 = vst [vmem:[#allocation103_spill] sm:$0xff] %v15741_v1  ;;  %7855 = vmatmul.f32.gmra.mxu3 %v15349_v3  ;;  %8054 = vmatpush.msra.mxu1 %v8053_v15  ;;  %v19366_v15 = vand.u32 4294901760, %v15707_v59  ;;  %v15763_v1 = vand.u32 4294901760, %v11586_v41  ;;  %v11610_v3 = vld [vmem:[%s18778_s5 + $0x2c0] sm:$0xff] }
 0x4e2   :  { %19364 = vst [vmem:[#allocation104_spill] sm:$0xff] %v15750_v24  ;;  %8143 = vmatpush.msra.mxu2 %v15609_v10  ;;  %8204 = vmatpush.msra.mxu3 %v15554_v50  ;;  %v15754_v9 = vpop.f32.mrf.mxu3  ;;  %v15768_v24 = vpop.f32.mrf.mxu1 }
 0x4e3   :  { %19365 = vst [vmem:[#allocation105_spill] sm:$0xff] %v15754_v9  ;;  %7955 = vmatpush.msra.mxu0 %v15532_v11  ;;  %8060 = vmatpush.msra.mxu1 %v8059_v30  ;;  %v8076_v60 = vsub.f32 %v15707_v59, %v19366_v15  ;;  %v8071_v30 = vand.u32 4294901760, %v8070_v48  ;;  %v19368_v15 = vand.u32 4294901760, %v15719_v34  ;;  %v15776_v9 = vsub.f32 %v11587_v33, %v15748_v55 }
 0x4e4   :  { %8146 = vmatpush.msra.mxu2 %v15632_v51  ;;  %8206 = vmatpush.msra.mxu3 %v15582_v18  ;;  %19367 = vst [vmem:[#allocation106_spill] sm:$0xff] %v15768_v24  ;;  %v19369_v33 = vand.u32 4294901760, %v15736_v0 }
 0x4e5   :  { %7666 = vmatmul.f32.gmra.mxu0 %v15373_v56  ;;  %7727 = vmatmul.f32.gmra.mxu1 %v15440_v47  ;;  %v8082_v2 = vsub.f32 %v15719_v34, %v19368_v15  ;;  %v8077_v49 = vand.u32 4294901760, %v8076_v60  ;;  %v15783_v47 = vsub.f32 %v11586_v41, %v15763_v1  ;;  %v11617_v60 = vld [vmem:[%s18778_s5 + $0x2f8] sm:$0xff]  ;;  %v11616_v15 = vld [vmem:[%s18778_s5 + $0x2f0] sm:$0xff] }
 0x4e6   :  { %7957 = vmatpush.msra.mxu0 %v15554_v50  ;;  %8066 = vmatpush.msra.mxu1 %v8065_v53  ;;  %v8088_v48 = vsub.f32 %v15736_v0, %v19369_v33  ;;  %v15811_v56 = vand.u32 4294901760, %v11617_v60  ;;  %v15821_v33 = vand.u32 4294901760, %v11616_v15 }
 0x4e7   :  { %8149 = vmatpush.msra.mxu2 %v15647_v31  ;;  %8208 = vmatpush.msra.mxu3 %v15598_v43  ;;  %v8083_v53 = vand.u32 4294901760, %v8082_v2 }
 0x4e8   :  { %7810 = vmatmul.f32.gmra.mxu2 %v15397_v57  ;;  %7959 = vmatpush.msra.mxu0 %v15582_v18  ;;  %v15835_v8 = vsub.f32 %v11617_v60, %v15811_v56 }
 0x4e9   :  { %8072 = vmatpush.msra.mxu1 %v8071_v30  ;;  %8152 = vmatpush.msra.mxu2 %v15664_v39  ;;  %v15795_v41 = vpop.f32.mrf.mxu2  ;;  %v19372_v30 = vand.u32 4294901760, %v15761_v14 }
 0x4ea   :  { %19370 = vst [vmem:[#allocation107_spill] sm:$0xff] %v15795_v41  ;;  %8210 = vmatpush.msra.mxu3 %v15611_v29  ;;  %7961 = vmatpush.msra.mxu0 %v15598_v43  ;;  %v15799_v24 = vpop.f32.mrf.mxu0  ;;  %v8089_v41 = vand.u32 4294901760, %v8088_v48  ;;  %v11615_v48 = vld [vmem:[%s18778_s5 + $0x2e8] sm:$0xff]  ;;  %v15826_v62 = vpop.f32.mrf.mxu1 }
 0x4eb   :  { %19371 = vst [vmem:[#allocation108_spill] sm:$0xff] %v15799_v24  ;;  %7859 = vmatmul.f32.gmra.mxu3 %v15397_v57  ;;  %8078 = vmatpush.msra.mxu1 %v8077_v49  ;;  %v8094_v2 = vsub.f32 %v15761_v14, %v19372_v30  ;;  %v19374_v49 = vand.u32 4294901760, %v15776_v9  ;;  %v15839_v57 = vand.u32 4294901760, %v11615_v48 }
 0x4ec   :  { %8155 = vmatpush.msra.mxu2 %v15687_v37  ;;  %8212 = vmatpush.msra.mxu3 %v15639_v22  ;;  %v15813_v24 = vpop.f32.mrf.mxu3  ;;  %19375 = vst [vmem:[#allocation110_spill] sm:$0xff] %v15826_v62 }
 0x4ed   :  { %19373 = vst [vmem:[#allocation109_spill] sm:$0xff] %v15813_v24  ;;  %7963 = vmatpush.msra.mxu0 %v15611_v29  ;;  %8084 = vmatpush.msra.mxu1 %v8083_v53  ;;  %v8100_v30 = vsub.f32 %v15776_v9, %v19374_v49  ;;  %v8095_v53 = vand.u32 4294901760, %v8094_v2  ;;  %v19376_v24 = vand.u32 4294901760, %v15783_v47  ;;  %v11614_v2 = vld [vmem:[%s18778_s5 + $0x2e0] sm:$0xff] }
 0x4ee   :  { %8158 = vmatpush.msra.mxu2 %v15707_v59  ;;  %8214 = vmatpush.msra.mxu3 %v15659_v38 }
 0x4ef   :  { %7671 = vmatmul.f32.gmra.mxu0 %v15423_v7  ;;  %7733 = vmatmul.f32.gmra.mxu1 %v15496_v20  ;;  %v8106_v49 = vsub.f32 %v15783_v47, %v19376_v24  ;;  %v8101_v62 = vand.u32 4294901760, %v8100_v30  ;;  %v15847_v24 = vsub.f32 %v11616_v15, %v15821_v33  ;;  %v15858_v7 = vand.u32 4294901760, %v11614_v2  ;;  %v11611_v20 = vld [vmem:[%s18778_s5 + $0x2c8] sm:$0xff] }
 0x4f0   :  { %7965 = vmatpush.msra.mxu0 %v15639_v22  ;;  %8090 = vmatpush.msra.mxu1 %v8089_v41  ;;  %v11613_v41 = vld [vmem:[%s18778_s5 + $0x2d8] sm:$0xff] }
 0x4f1   :  { %8161 = vmatpush.msra.mxu2 %v15719_v34  ;;  %8216 = vmatpush.msra.mxu3 %v15674_v45  ;;  %v8107_v60 = vand.u32 4294901760, %v8106_v49  ;;  %v11612_v49 = vld [vmem:[%s18778_s5 + $0x2d0] sm:$0xff] }
 0x4f2   :  { %7814 = vmatmul.f32.gmra.mxu2 %v15449_v44  ;;  %7967 = vmatpush.msra.mxu0 %v15659_v38 }
 0x4f3   :  { %8096 = vmatpush.msra.mxu1 %v8095_v53  ;;  %8164 = vmatpush.msra.mxu2 %v15736_v0  ;;  %v15853_v30 = vpop.f32.mrf.mxu2  ;;  %v15864_v53 = vsub.f32 %v11615_v48, %v15839_v57 }
 0x4f4   :  { %19377 = vst [vmem:[#allocation111_spill] sm:$0xff] %v15853_v30  ;;  %8218 = vmatpush.msra.mxu3 %v15689_v40  ;;  %7969 = vmatpush.msra.mxu0 %v15674_v45  ;;  %v15860_v15 = vpop.f32.mrf.mxu0  ;;  %v15872_v30 = vand.u32 4294901760, %v11613_v41 }
 0x4f5   :  { %19378 = vst [vmem:[#allocation112_spill] sm:$0xff] %v15860_v15  ;;  %7863 = vmatmul.f32.gmra.mxu3 %v15449_v44  ;;  %8102 = vmatpush.msra.mxu1 %v8101_v62  ;;  %v19380_v62 = vand.u32 4294901760, %v15835_v8  ;;  %v15883_v15 = vsub.f32 %v11614_v2, %v15858_v7  ;;  %v15885_v44 = vand.u32 4294901760, %v11612_v49  ;;  %v19383_v2 = vand.u32 4294901760, %v15847_v24 }
 0x4f6   :  { %8167 = vmatpush.msra.mxu2 %v15761_v14  ;;  %8220 = vmatpush.msra.mxu3 %v15710_v17  ;;  %v15874_v35 = vpop.f32.mrf.mxu3  ;;  %v15901_v13 = vsub.f32 %v11613_v41, %v15872_v30 }
 0x4f7   :  { %19379 = vst [vmem:[#allocation113_spill] sm:$0xff] %v15874_v35  ;;  %7971 = vmatpush.msra.mxu0 %v15689_v40  ;;  %8108 = vmatpush.msra.mxu1 %v8107_v60  ;;  %v8450_v48 = vsub.f32 %v15835_v8, %v19380_v62  ;;  %v15890_v35 = vpop.f32.mrf.mxu1  ;;  %v19382_v60 = vld [vmem:[#allocation39_spill] sm:$0xff]  ;;  %v8456_v62 = vsub.f32 %v15847_v24, %v19383_v2  ;;  %v15929_v2 = vand.u32 4294901760, %v11610_v3 }
 0x4f8   :  { %8170 = vmatpush.msra.mxu2 %v15776_v9  ;;  %8222 = vmatpush.msra.mxu3 %v15731_v63  ;;  %19381 = vst [vmem:[#allocation114_spill] sm:$0xff] %v15890_v35  ;;  %v15905_v35 = vand.u32 4294901760, %v11611_v20  ;;  %v15914_v41 = vsub.f32 %v11612_v49, %v15885_v44 }
 0x4f9   :  { %7676 = vmatmul.f32.gmra.mxu0 %v15467_v52  ;;  %8110 = vmatmul.f32.vlgmr.msra.gmra.mxu1 %v19382_v60  ;;  %v19384_v52 = vld [vmem:[#allocation42_spill] sm:$0xff]  ;;  %v8451_v4 = vand.u32 4294901760, %v8450_v48  ;;  %v8457_v49 = vand.u32 4294901760, %v8456_v62  ;;  %v19389_v62 = vand.u32 4294901760, %v15883_v15 }
 0x4fa   :  { %7973 = vmatpush.msra.mxu0 %v15710_v17  ;;  %8173 = vmatpush.msra.mxu2 %v15783_v47 }
 0x4fb   :  { %8224 = vmatpush.msra.mxu3 %v15748_v55  ;;  %8334 = vmatpush.msrb.mxu1 %v15487_v5  ;;  %v19385_v5 = vand.u32 4294901760, %v15864_v53  ;;  %v8468_v48 = vsub.f32 %v15883_v15, %v19389_v62  ;;  %v15957_v62 = vsub.f32 %v11610_v3, %v15929_v2 }
 0x4fc   :  { %7975 = vmatpush.msra.mxu0 %v15731_v63  ;;  %8176 = vmatmul.f32.vlgmr.msra.gmra.mxu2 %v19384_v52  ;;  %v19388_v52 = vld [vmem:[#allocation20_spill] sm:$0xff] }
 0x4fd   :  { %8226 = vmatpush.msra.mxu3 %v15763_v1  ;;  %8336 = vmatpush.msrb.mxu1 %v15506_v26  ;;  %v8462_v23 = vsub.f32 %v15864_v53, %v19385_v5  ;;  %v15924_v32 = vpop.f32.mrf.mxu2  ;;  %v15936_v5 = vsub.f32 %v11611_v20, %v15905_v35  ;;  %v8469_v3 = vand.u32 4294901760, %v8468_v48 }
 0x4fe   :  { %19386 = vst [vmem:[#allocation39_spill] sm:$0xff] %v15924_v32  ;;  %8383 = vmatpush.msrb.mxu2 %v15811_v56  ;;  %7977 = vmatpush.msra.mxu0 %v15748_v55  ;;  %v15931_v26 = vpop.f32.mrf.mxu0  ;;  %v11608_v32 = vld [vmem:[%s18778_s5 + $0x2b0] sm:$0xff] }
 0x4ff   :  { %19387 = vst [vmem:[#allocation115_spill] sm:$0xff] %v15931_v26  ;;  %8230 = vmatmul.f32.vlgmr.msra.gmra.mxu3 %v19388_v52  ;;  %8338 = vmatpush.msrb.mxu1 %v15520_v6  ;;  %v8463_v20 = vand.u32 4294901760, %v8462_v23  ;;  %v15959_v26 = vand.u32 4294901760, %v11608_v32  ;;  %v15964_v27 = vpop.f32.mrf.mxu1  ;;  %v19394_v23 = vld [vmem:[#allocation23_spill] sm:$0xff] }
 0x500   :  { %8385 = vmatpush.msrb.mxu2 %v15821_v33  ;;  %8452 = vmatpush.msrb.mxu3 %v8451_v4  ;;  %v15948_v52 = vpop.f32.mrf.mxu3  ;;  %v19391_v4 = vand.u32 4294901760, %v15901_v13  ;;  %19392 = vst [vmem:[#allocation117_spill] sm:$0xff] %v15964_v27 }
 0x501   :  { %19390 = vst [vmem:[#allocation116_spill] sm:$0xff] %v15948_v52  ;;  %7979 = vmatpush.msra.mxu0 %v15763_v1  ;;  %8340 = vmatpush.msrb.mxu1 %v15532_v11  ;;  %v11607_v52 = vld [vmem:[%s18778_s5 + $0x2a8] sm:$0xff]  ;;  %v19393_v11 = vld [vmem:[#allocation13_spill] sm:$0xff]  ;;  %v15989_v12 = vsub.f32 %v11608_v32, %v15959_v26 }
 0x502   :  { %8387 = vmatpush.msrb.mxu2 %v15839_v57  ;;  %8458 = vmatpush.msrb.mxu3 %v8457_v49  ;;  %v8474_v6 = vsub.f32 %v15901_v13, %v19391_v4  ;;  %v19000_v49 = vand.u32 4294901760, %v15936_v5  ;;  %v19396_v4 = vand.u32 4294901760, %v15914_v41  ;;  %v15979_v27 = vand.u32 4294901760, %v11607_v52 }
 0x503   :  { %7985 = vmatmul.f32.vlgmr.msra.gmra.mxu0 %v19393_v11  ;;  %8114 = vmatmul.f32.gmra.mxu1 %v19394_v23  ;;  %v19402_v11 = vld [vmem:[#allocation11_spill] sm:$0xff] }
 0x504   :  { %8255 = vmatpush.msrb.mxu0 %v19395_v16  ;;  %8342 = vmatpush.msrb.mxu1 %v15554_v50  ;;  %v8480_v21 = vsub.f32 %v15914_v41, %v19396_v4  ;;  %v19397_v16 = vld [vmem:[#allocation26_spill] sm:$0xff]  ;;  %v19398_v50 = vand.u32 4294901760, %v15530_v36  ;;  %v8475_v48 = vand.u32 4294901760, %v8474_v6  ;;  %v19400_v6 = vand.u32 4294901760, %v15544_v19 }
 0x505   :  { %8389 = vmatpush.msrb.mxu2 %v15858_v7  ;;  %8464 = vmatpush.msrb.mxu3 %v8463_v20  ;;  %v8486_v20 = vsub.f32 %v15936_v5, %v19000_v49  ;;  %v16011_v49 = vsub.f32 %v11607_v52, %v15979_v27  ;;  %v19405_v52 = vand.u32 4294901760, %v15566_v25  ;;  %v11603_v25 = vld [vmem:[%s18778_s5 + $0x288] sm:$0xff] }
 0x506   :  { %8181 = vmatmul.f32.gmra.mxu2 %v19397_v16  ;;  %8259 = vmatpush.msrb.mxu0 %v19398_v50  ;;  %v11605_v16 = vld [vmem:[%s18778_s5 + $0x298] sm:$0xff]  ;;  %v8481_v32 = vand.u32 4294901760, %v8480_v21  ;;  %v19403_v21 = vand.u32 4294901760, %v15957_v62 }
 0x507   :  { %8344 = vmatpush.msrb.mxu1 %v15582_v18  ;;  %8391 = vmatpush.msrb.mxu2 %v15872_v30  ;;  %v15999_v36 = vpop.f32.mrf.mxu2  ;;  %v16004_v18 = vand.u32 4294901760, %v11606_v58  ;;  %v16021_v50 = vand.u32 4294901760, %v11605_v16 }
 0x508   :  { %19399 = vst [vmem:[#allocation118_spill] sm:$0xff] %v15999_v36  ;;  %8470 = vmatpush.msrb.mxu3 %v8469_v3  ;;  %8263 = vmatpush.msrb.mxu0 %v19400_v6  ;;  %v16006_v4 = vpop.f32.mrf.mxu0  ;;  %v11604_v3 = vld [vmem:[%s18778_s5 + $0x290] sm:$0xff]  ;;  %v8492_v19 = vsub.f32 %v15957_v62, %v19403_v21 }
 0x509   :  { %19401 = vst [vmem:[#allocation119_spill] sm:$0xff] %v16006_v4  ;;  %8236 = vmatmul.f32.gmra.mxu3 %v19402_v11  ;;  %8346 = vmatpush.msrb.mxu1 %v15598_v43  ;;  %v8487_v43 = vand.u32 4294901760, %v8486_v20  ;;  %v16033_v21 = vsub.f32 %v11606_v58, %v16004_v18  ;;  %v16035_v6 = vand.u32 4294901760, %v11604_v3  ;;  %v19409_v20 = vld [vmem:[#allocation21_spill] sm:$0xff]  ;;  %v16052_v42 = vsub.f32 %v11605_v16, %v16021_v50 }
 0x50a   :  { %8393 = vmatpush.msrb.mxu2 %v15885_v44  ;;  %8476 = vmatpush.msrb.mxu3 %v8475_v48  ;;  %v16023_v36 = vpop.f32.mrf.mxu3  ;;  %v19406_v48 = vand.u32 4294901760, %v15976_v46  ;;  %v8493_v58 = vand.u32 4294901760, %v8492_v19 }
 0x50b   :  { %19404 = vst [vmem:[#allocation120_spill] sm:$0xff] %v16023_v36  ;;  %8267 = vmatpush.msrb.mxu0 %v19405_v52  ;;  %8348 = vmatpush.msrb.mxu1 %v15611_v29  ;;  %v16040_v52 = vpop.f32.mrf.mxu1  ;;  %v19408_v29 = vld [vmem:[#allocation27_spill] sm:$0xff]  ;;  %v19410_v36 = vand.u32 4294901760, %v15587_v54  ;;  %v19412_v54 = vld [vmem:[#allocation22_spill] sm:$0xff]  ;;  %v16065_v16 = vsub.f32 %v11604_v3, %v16035_v6  ;;  %v19003_v3 = vand.u32 4294901760, %v16052_v42 }
 0x50c   :  { %8395 = vmatpush.msrb.mxu2 %v15905_v35  ;;  %8482 = vmatpush.msrb.mxu3 %v8481_v32  ;;  %v8498_v4 = vsub.f32 %v15976_v46, %v19406_v48  ;;  %19407 = vst [vmem:[#allocation121_spill] sm:$0xff] %v16040_v52  ;;  %v19411_v48 = vand.u32 4294901760, %v15989_v12  ;;  %v11602_v52 = vld [vmem:[%s18778_s5 + $0x280] sm:$0xff]  ;;  %v16058_v32 = vand.u32 4294901760, %v11603_v25 }
 0x50d   :  { %7993 = vmatmul.f32.gmra.mxu0 %v19408_v29  ;;  %8118 = vmatmul.f32.gmra.mxu1 %v19409_v20  ;;  %v16072_v29 = vand.u32 4294901760, %v11602_v52 }
 0x50e   :  { %8271 = vmatpush.msrb.mxu0 %v19410_v36  ;;  %8350 = vmatpush.msrb.mxu1 %v15639_v22  ;;  %v8504_v11 = vsub.f32 %v15989_v12, %v19411_v48  ;;  %v19413_v22 = vand.u32 4294901760, %v15609_v10  ;;  %v8499_v36 = vand.u32 4294901760, %v8498_v4  ;;  %v19414_v48 = vand.u32 4294901760, %v16011_v49 }
 0x50f   :  { %8397 = vmatpush.msrb.mxu2 %v15929_v2  ;;  %8488 = vmatpush.msrb.mxu3 %v8487_v43  ;;  %v19416_v10 = vand.u32 4294901760, %v15632_v51  ;;  %v16084_v19 = vsub.f32 %v11603_v25, %v16058_v32  ;;  %v16097_v25 = vsub.f32 %v11602_v52, %v16072_v29 }
 0x510   :  { %8186 = vmatmul.f32.gmra.mxu2 %v19412_v54  ;;  %8275 = vmatpush.msrb.mxu0 %v19413_v22  ;;  %v8510_v43 = vsub.f32 %v16011_v49, %v19414_v48  ;;  %v8505_v4 = vand.u32 4294901760, %v8504_v11  ;;  %v16079_v22 = vpop.f32.mrf.mxu0  ;;  %v19423_v11 = vld [vmem:[#allocation12_spill] sm:$0xff] }
 0x511   :  { %8352 = vmatpush.msrb.mxu1 %v15659_v38  ;;  %8399 = vmatpush.msrb.mxu2 %v15946_v28  ;;  %v16074_v54 = vpop.f32.mrf.mxu2  ;;  %19417 = vst [vmem:[#allocation123_spill] sm:$0xff] %v16079_v22  ;;  %v19418_v38 = vld [vmem:[#allocation29_spill] sm:$0xff] }
 0x512   :  { %19415 = vst [vmem:[#allocation122_spill] sm:$0xff] %v16074_v54  ;;  %8494 = vmatpush.msrb.mxu3 %v8493_v58  ;;  %8279 = vmatpush.msrb.mxu0 %v19416_v10  ;;  %v19419_v58 = vand.u32 4294901760, %v16033_v21  ;;  %v19421_v10 = vand.u32 4294901760, %v15647_v31 }
 0x513   :  { %8242 = vmatmul.f32.gmra.mxu3 %v19418_v38  ;;  %8354 = vmatpush.msrb.mxu1 %v15674_v45  ;;  %v8511_v45 = vand.u32 4294901760, %v8510_v43  ;;  %v19426_v43 = vand.u32 4294901760, %v16065_v16 }
 0x514   :  { %8401 = vmatpush.msrb.mxu2 %v15959_v26  ;;  %8500 = vmatpush.msrb.mxu3 %v8499_v36  ;;  %v8516_v51 = vsub.f32 %v16033_v21, %v19419_v58  ;;  %v16091_v48 = vpop.f32.mrf.mxu3  ;;  %v8522_v36 = vsub.f32 %v16052_v42, %v19003_v3  ;;  %v16103_v58 = vpop.f32.mrf.mxu1  ;;  %v19427_v3 = vld [vmem:[#allocation28_spill] sm:$0xff] }
 0x515   :  { %19420 = vst [vmem:[#allocation124_spill] sm:$0xff] %v16091_v48  ;;  %8283 = vmatpush.msrb.mxu0 %v19421_v10  ;;  %8356 = vmatpush.msrb.mxu1 %v15689_v40  ;;  %v19424_v48 = vld [vmem:[#allocation25_spill] sm:$0xff]  ;;  %v19425_v40 = vand.u32 4294901760, %v15664_v39  ;;  %v19004_v10 = vand.u32 4294901760, %v16097_v25  ;;  %v19429_v39 = vand.u32 4294901760, %v16084_v19 }
 0x516   :  { %8403 = vmatpush.msrb.mxu2 %v15979_v27  ;;  %8506 = vmatpush.msrb.mxu3 %v8505_v4  ;;  %19422 = vst [vmem:[#allocation125_spill] sm:$0xff] %v16103_v58  ;;  %v8517_v52 = vand.u32 4294901760, %v8516_v51  ;;  %v8528_v4 = vsub.f32 %v16065_v16, %v19426_v43  ;;  %v19428_v58 = vand.u32 4294901760, %v15687_v37  ;;  %v8523_v31 = vand.u32 4294901760, %v8522_v36  ;;  %v19433_v37 = vld [vmem:[#allocation32_spill] sm:$0xff] }
 0x517   :  { %8001 = vmatmul.f32.gmra.mxu0 %v19423_v11  ;;  %8122 = vmatmul.f32.gmra.mxu1 %v19424_v48 }
 0x518   :  { %8287 = vmatpush.msrb.mxu0 %v19425_v40  ;;  %8358 = vmatpush.msrb.mxu1 %v15710_v17  ;;  %v8534_v17 = vsub.f32 %v16084_v19, %v19429_v39  ;;  %v8529_v40 = vand.u32 4294901760, %v8528_v4 }
 0x519   :  { %8405 = vmatpush.msrb.mxu2 %v16004_v18  ;;  %8512 = vmatpush.msrb.mxu3 %v8511_v45  ;;  %v19431_v45 = vand.u32 4294901760, %v15707_v59 }
 0x51a   :  { %8191 = vmatmul.f32.gmra.mxu2 %v19427_v3  ;;  %8291 = vmatpush.msrb.mxu0 %v19428_v58  ;;  %v19435_v58 = vand.u32 4294901760, %v15719_v34  ;;  %v8535_v59 = vand.u32 4294901760, %v8534_v17  ;;  %v19440_v34 = vld [vmem:[#allocation15_spill] sm:$0xff]  ;;  %v19442_v17 = vand.u32 4294901760, %v15835_v8 }
 0x51b   :  { %8360 = vmatpush.msrb.mxu1 %v15731_v63  ;;  %8407 = vmatpush.msrb.mxu2 %v16021_v50  ;;  %v16124_v51 = vpop.f32.mrf.mxu2  ;;  %v8540_v63 = vsub.f32 %v16097_v25, %v19004_v10  ;;  %v19472_v10 = vld [vmem:[#allocation48_spill] sm:$0xff] }
 0x51c   :  { %19430 = vst [vmem:[#allocation126_spill] sm:$0xff] %v16124_v51  ;;  %8518 = vmatpush.msrb.mxu3 %v8517_v52  ;;  %8295 = vmatpush.msrb.mxu0 %v19431_v45  ;;  %v16128_v43 = vpop.f32.mrf.mxu0  ;;  %v16142_v52 = vpop.f32.mrf.mxu1 }
 0x51d   :  { %19432 = vst [vmem:[#allocation127_spill] sm:$0xff] %v16128_v43  ;;  %8248 = vmatmul.f32.gmra.mxu3 %v19433_v37  ;;  %8362 = vmatpush.msrb.mxu1 %v15748_v55  ;;  %v19437_v55 = vld [vmem:[#allocation35_spill] sm:$0xff]  ;;  %v8541_v4 = vand.u32 4294901760, %v8540_v63 }
 0x51e   :  { %8409 = vmatpush.msrb.mxu2 %v16035_v6  ;;  %8524 = vmatpush.msrb.mxu3 %v8523_v31  ;;  %v16136_v36 = vpop.f32.mrf.mxu3  ;;  %19436 = vst [vmem:[#allocation129_spill] sm:$0xff] %v16142_v52  ;;  %v19438_v31 = vand.u32 4294901760, %v15736_v0  ;;  %v19443_v0 = vand.u32 4294901760, %v15776_v9  ;;  %v19449_v9 = vand.u32 4294901760, %v15864_v53 }
 0x51f   :  { %19434 = vst [vmem:[#allocation128_spill] sm:$0xff] %v16136_v36  ;;  %8299 = vmatpush.msrb.mxu0 %v19435_v58  ;;  %8364 = vmatpush.msrb.mxu1 %v15763_v1  ;;  %v19439_v1 = vand.u32 4294901760, %v15761_v14  ;;  %v19446_v14 = vand.u32 4294901760, %v15847_v24  ;;  %v19448_v58 = vand.u32 4294901760, %v15783_v47  ;;  %v19452_v47 = vld [vmem:[#allocation7_spill] sm:$0xff] }
 0x520   :  { %8411 = vmatpush.msrb.mxu2 %v16058_v32  ;;  %8530 = vmatpush.msrb.mxu3 %v8529_v40  ;;  %v19445_v40 = vld [vmem:[#allocation30_spill] sm:$0xff] }
 0x521   :  { %8009 = vmatmul.f32.gmra.mxu0 %v19437_v55  ;;  %8366 = vmatmul.f32.vlgmr.msrb.gmra.mxu1 %v19382_v60  ;;  %v11641_v55 = vld [vmem:[%s18778_s5 + $0x3b8] sm:$0xff] }
 0x522   :  { %8303 = vmatpush.msrb.mxu0 %v19438_v31  ;;  %8413 = vmatpush.msrb.mxu2 %v16072_v29  ;;  %v19456_v31 = vld [vmem:[#allocation14_spill] sm:$0xff]  ;;  %v16666_v3 = vand.u32 4294901760, %v11641_v55 }
 0x523   :  { %8536 = vmatpush.msrb.mxu3 %v8535_v59  ;;  %8630 = vmatpush.msra.mxu1 %v15811_v56 }
 0x524   :  { %8307 = vmatpush.msrb.mxu0 %v19439_v1  ;;  %8419 = vmatmul.f32.vlgmr.msrb.gmra.mxu2 %v19440_v34 }
 0x525   :  { %8542 = vmatpush.msrb.mxu3 %v8541_v4  ;;  %8632 = vmatpush.msra.mxu1 %v15821_v33  ;;  %v16154_v39 = vpop.f32.mrf.mxu2 }
 0x526   :  { %19441 = vst [vmem:[#allocation130_spill] sm:$0xff] %v16154_v39  ;;  %8689 = vmatpush.msra.mxu2 %v19442_v17  ;;  %8311 = vmatpush.msrb.mxu0 %v19443_v0  ;;  %v16160_v45 = vpop.f32.mrf.mxu0  ;;  %v16175_v59 = vpop.f32.mrf.mxu1  ;;  %v19462_v17 = vld [vmem:[#allocation38_spill] sm:$0xff]  ;;  %v19463_v0 = vand.u32 4294901760, %v15976_v46 }
 0x527   :  { %19444 = vst [vmem:[#allocation131_spill] sm:$0xff] %v16160_v45  ;;  %8544 = vmatmul.f32.vlgmr.msrb.gmra.mxu3 %v19445_v40  ;;  %8634 = vmatpush.msra.mxu1 %v15839_v57 }
 0x528   :  { %8693 = vmatpush.msra.mxu2 %v19446_v14  ;;  %8768 = vmatpush.msra.mxu3 %v15811_v56  ;;  %v16167_v63 = vpop.f32.mrf.mxu3  ;;  %19450 = vst [vmem:[#allocation133_spill] sm:$0xff] %v16175_v59  ;;  %v19451_v56 = vand.u32 4294901760, %v15883_v15 }
 0x529   :  { %19447 = vst [vmem:[#allocation132_spill] sm:$0xff] %v16167_v63  ;;  %8315 = vmatpush.msrb.mxu0 %v19448_v58  ;;  %8636 = vmatpush.msra.mxu1 %v15858_v7 }
 0x52a   :  { %8697 = vmatpush.msra.mxu2 %v19449_v9  ;;  %8770 = vmatpush.msra.mxu3 %v15821_v33  ;;  %v19453_v33 = vand.u32 4294901760, %v15901_v13  ;;  %v19466_v9 = vld [vmem:[#allocation44_spill] sm:$0xff] }
 0x52b   :  { %8317 = vmatmul.f32.vlgmr.msrb.gmra.mxu0 %v19382_v60  ;;  %8370 = vmatmul.f32.gmra.mxu1 %v19394_v23 }
 0x52c   :  { %8562 = vmatpush.msra.mxu0 %v15835_v8  ;;  %8638 = vmatpush.msra.mxu1 %v15872_v30 }
 0x52d   :  { %8701 = vmatpush.msra.mxu2 %v19451_v56  ;;  %8772 = vmatpush.msra.mxu3 %v15839_v57  ;;  %v19457_v57 = vand.u32 4294901760, %v15914_v41 }
 0x52e   :  { %8427 = vmatmul.f32.gmra.mxu2 %v19452_v47  ;;  %8565 = vmatpush.msra.mxu0 %v15847_v24 }
 0x52f   :  { %8640 = vmatpush.msra.mxu1 %v15885_v44  ;;  %8705 = vmatpush.msra.mxu2 %v19453_v33  ;;  %v16189_v4 = vpop.f32.mrf.mxu2 }
 0x530   :  { %19454 = vst [vmem:[#allocation134_spill] sm:$0xff] %v16189_v4  ;;  %8774 = vmatpush.msra.mxu3 %v15858_v7  ;;  %8568 = vmatpush.msra.mxu0 %v15864_v53  ;;  %v16193_v8 = vpop.f32.mrf.mxu0  ;;  %v19459_v7 = vand.u32 4294901760, %v15936_v5  ;;  %v11633_v53 = vld [vmem:[%s18778_s5 + $0x378] sm:$0xff]  ;;  %v16210_v1 = vpop.f32.mrf.mxu1  ;;  %v11623_v4 = vld [vmem:[%s18778_s5 + $0x328] sm:$0xff] }
 0x531   :  { %19455 = vst [vmem:[#allocation135_spill] sm:$0xff] %v16193_v8  ;;  %8548 = vmatmul.f32.gmra.mxu3 %v19456_v31  ;;  %8642 = vmatpush.msra.mxu1 %v15905_v35  ;;  %v11619_v8 = vld [vmem:[%s18778_s5 + $0x308] sm:$0xff] }
 0x532   :  { %8709 = vmatpush.msra.mxu2 %v19457_v57  ;;  %8776 = vmatpush.msra.mxu3 %v15872_v30  ;;  %v16200_v24 = vpop.f32.mrf.mxu3  ;;  %19460 = vst [vmem:[#allocation137_spill] sm:$0xff] %v16210_v1  ;;  %v11632_v30 = vld [vmem:[%s18778_s5 + $0x370] sm:$0xff]  ;;  %v19467_v57 = vand.u32 4294901760, %v15989_v12  ;;  %v16470_v63 = vand.u32 4294901760, %v11619_v8 }
 0x533   :  { %19458 = vst [vmem:[#allocation136_spill] sm:$0xff] %v16200_v24  ;;  %8571 = vmatpush.msra.mxu0 %v15883_v15  ;;  %8644 = vmatpush.msra.mxu1 %v15929_v2  ;;  %v16222_v15 = vand.u32 4294901760, %v11633_v53  ;;  %v16232_v14 = vand.u32 4294901760, %v11632_v30 }
 0x534   :  { %8713 = vmatpush.msra.mxu2 %v19459_v7  ;;  %8778 = vmatpush.msra.mxu3 %v15885_v44  ;;  %v19461_v44 = vand.u32 4294901760, %v15957_v62  ;;  %v16496_v45 = vsub.f32 %v11619_v8, %v16470_v63 }
 0x535   :  { %8321 = vmatmul.f32.gmra.mxu0 %v19394_v23  ;;  %8374 = vmatmul.f32.gmra.mxu1 %v19409_v20  ;;  %v16246_v56 = vsub.f32 %v11633_v53, %v16222_v15  ;;  %v11629_v53 = vld [vmem:[%s18778_s5 + $0x358] sm:$0xff] }
 0x536   :  { %8574 = vmatpush.msra.mxu0 %v15901_v13  ;;  %8646 = vmatpush.msra.mxu1 %v15946_v28  ;;  %v11631_v13 = vld [vmem:[%s18778_s5 + $0x368] sm:$0xff] }
 0x537   :  { %8717 = vmatpush.msra.mxu2 %v19461_v44  ;;  %8780 = vmatpush.msra.mxu3 %v15905_v35  ;;  %v11630_v35 = vld [vmem:[%s18778_s5 + $0x360] sm:$0xff]  ;;  %v16248_v33 = vand.u32 4294901760, %v11631_v13  ;;  %v19469_v44 = vand.u32 4294901760, %v16011_v49  ;;  %v19534_v11 = vand.u32 4294901760, %v16246_v56 }
 0x538   :  { %8435 = vmatmul.f32.gmra.mxu2 %v19462_v17  ;;  %8577 = vmatpush.msra.mxu0 %v15914_v41  ;;  %v16260_v7 = vand.u32 4294901760, %v11630_v35 }
 0x539   :  { %8648 = vmatpush.msra.mxu1 %v15959_v26  ;;  %8721 = vmatpush.msra.mxu2 %v19463_v0  ;;  %v16234_v58 = vpop.f32.mrf.mxu2  ;;  %v16278_v0 = vand.u32 4294901760, %v11629_v53 }
 0x53a   :  { %19464 = vst [vmem:[#allocation138_spill] sm:$0xff] %v16234_v58  ;;  %8782 = vmatpush.msra.mxu3 %v15929_v2  ;;  %8580 = vmatpush.msra.mxu0 %v15936_v5  ;;  %v16241_v41 = vpop.f32.mrf.mxu0  ;;  %v16258_v5 = vsub.f32 %v11632_v30, %v16232_v14  ;;  %v16274_v30 = vsub.f32 %v11631_v13, %v16248_v33 }
 0x53b   :  { %19465 = vst [vmem:[#allocation139_spill] sm:$0xff] %v16241_v41  ;;  %8552 = vmatmul.f32.gmra.mxu3 %v19466_v9  ;;  %8650 = vmatpush.msra.mxu1 %v15979_v27  ;;  %v16288_v13 = vsub.f32 %v11630_v35, %v16260_v7 }
 0x53c   :  { %8725 = vmatpush.msra.mxu2 %v19467_v57  ;;  %8784 = vmatpush.msra.mxu3 %v15946_v28  ;;  %v16253_v2 = vpop.f32.mrf.mxu3  ;;  %v16268_v28 = vpop.f32.mrf.mxu1  ;;  %v19471_v57 = vand.u32 4294901760, %v16033_v21  ;;  %v19478_v35 = vand.u32 4294901760, %v16258_v5  ;;  %v19481_v1 = vand.u32 4294901760, %v16274_v30 }
 0x53d   :  { %19468 = vst [vmem:[#allocation140_spill] sm:$0xff] %v16253_v2  ;;  %8583 = vmatpush.msra.mxu0 %v15957_v62  ;;  %8652 = vmatpush.msra.mxu1 %v16004_v18  ;;  %v19473_v62 = vand.u32 4294901760, %v16052_v42 }
 0x53e   :  { %8729 = vmatpush.msra.mxu2 %v19469_v44  ;;  %8786 = vmatpush.msra.mxu3 %v15959_v26  ;;  %19470 = vst [vmem:[#allocation141_spill] sm:$0xff] %v16268_v28  ;;  %v11628_v26 = vld [vmem:[%s18778_s5 + $0x350] sm:$0xff] }
 0x53f   :  { %8325 = vmatmul.f32.gmra.mxu0 %v19409_v20  ;;  %8378 = vmatmul.f32.gmra.mxu1 %v19424_v48  ;;  %v16302_v44 = vand.u32 4294901760, %v11628_v26  ;;  %v16696_v20 = vsub.f32 %v11641_v55, %v16666_v3 }
 0x540   :  { %8586 = vmatpush.msra.mxu0 %v15976_v46  ;;  %8654 = vmatpush.msra.mxu1 %v16021_v50  ;;  %v11627_v46 = vld [vmem:[%s18778_s5 + $0x348] sm:$0xff] }
 0x541   :  { %8733 = vmatpush.msra.mxu2 %v19471_v57  ;;  %8788 = vmatpush.msra.mxu3 %v15979_v27  ;;  %v19474_v27 = vand.u32 4294901760, %v16246_v56 }
 0x542   :  { %8443 = vmatmul.f32.gmra.mxu2 %v19472_v10  ;;  %8589 = vmatpush.msra.mxu0 %v15989_v12  ;;  %v16309_v12 = vsub.f32 %v11629_v53, %v16278_v0  ;;  %v19479_v53 = vand.u32 4294901760, %v16065_v16 }
 0x543   :  { %8656 = vmatpush.msra.mxu1 %v16035_v6  ;;  %8737 = vmatpush.msra.mxu2 %v19473_v62  ;;  %v8884_v57 = vsub.f32 %v16246_v56, %v19474_v27  ;;  %v16304_v2 = vpop.f32.mrf.mxu2  ;;  %v11626_v62 = vld [vmem:[%s18778_s5 + $0x340] sm:$0xff]  ;;  %v19477_v27 = vld [vmem:[#allocation36_spill] sm:$0xff] }
 0x544   :  { %19475 = vst [vmem:[#allocation142_spill] sm:$0xff] %v16304_v2  ;;  %8790 = vmatpush.msra.mxu3 %v16004_v18  ;;  %8592 = vmatpush.msra.mxu0 %v16011_v49  ;;  %v16314_v28 = vpop.f32.mrf.mxu0  ;;  %v8890_v2 = vsub.f32 %v16258_v5, %v19478_v35  ;;  %v16322_v49 = vand.u32 4294901760, %v11627_v46  ;;  %v8896_v35 = vsub.f32 %v16274_v30, %v19481_v1  ;;  %v16337_v24 = vand.u32 4294901760, %v11626_v62  ;;  %v19484_v1 = vld [vmem:[#allocation33_spill] sm:$0xff] }
 0x545   :  { %19476 = vst [vmem:[#allocation143_spill] sm:$0xff] %v16314_v28  ;;  %8556 = vmatmul.f32.gmra.mxu3 %v19477_v27  ;;  %8658 = vmatpush.msra.mxu1 %v16058_v32  ;;  %v8885_v28 = vand.u32 4294901760, %v8884_v57  ;;  %v16335_v18 = vsub.f32 %v11628_v26, %v16302_v44  ;;  %v16346_v57 = vpop.f32.mrf.mxu1 }
 0x546   :  { %8741 = vmatpush.msra.mxu2 %v19479_v53  ;;  %8792 = vmatpush.msra.mxu3 %v16021_v50  ;;  %v16327_v58 = vpop.f32.mrf.mxu3  ;;  %v11625_v50 = vld [vmem:[%s18778_s5 + $0x338] sm:$0xff]  ;;  %v19482_v53 = vand.u32 4294901760, %v16084_v19  ;;  %19483 = vst [vmem:[#allocation145_spill] sm:$0xff] %v16346_v57  ;;  %v8891_v26 = vand.u32 4294901760, %v8890_v2  ;;  %v16354_v41 = vsub.f32 %v11627_v46, %v16322_v49  ;;  %v8897_v2 = vand.u32 4294901760, %v8896_v35 }
 0x547   :  { %19480 = vst [vmem:[#allocation144_spill] sm:$0xff] %v16327_v58  ;;  %8595 = vmatpush.msra.mxu0 %v16033_v21  ;;  %8660 = vmatpush.msra.mxu1 %v16072_v29  ;;  %v19485_v58 = vand.u32 4294901760, %v16288_v13  ;;  %v11624_v21 = vld [vmem:[%s18778_s5 + $0x330] sm:$0xff]  ;;  %v16367_v46 = vsub.f32 %v11626_v62, %v16337_v24 }
 0x548   :  { %8745 = vmatpush.msra.mxu2 %v19482_v53  ;;  %8794 = vmatpush.msra.mxu3 %v16035_v6  ;;  %v19486_v6 = vand.u32 4294901760, %v16097_v25  ;;  %v16359_v53 = vand.u32 4294901760, %v11625_v50  ;;  %v16379_v62 = vand.u32 4294901760, %v11624_v21 }
 0x549   :  { %8329 = vmatmul.f32.gmra.mxu0 %v19424_v48  ;;  %8664 = vmatmul.f32.vlgmr.msra.gmra.mxu1 %v19484_v1  ;;  %v8902_v36 = vsub.f32 %v16288_v13, %v19485_v58  ;;  %v19005_v58 = vand.u32 4294901760, %v16335_v18 }
 0x54a   :  { %8598 = vmatpush.msra.mxu0 %v16052_v42  ;;  %8749 = vmatpush.msra.mxu2 %v19486_v6  ;;  %v19487_v42 = vand.u32 4294901760, %v16309_v12 }
 0x54b   :  { %8796 = vmatpush.msra.mxu3 %v16058_v32  ;;  %8886 = vmatpush.msrb.mxu1 %v8885_v28  ;;  %v8903_v32 = vand.u32 4294901760, %v8902_v36  ;;  %v8914_v36 = vsub.f32 %v16335_v18, %v19005_v58  ;;  %v16398_v28 = vand.u32 4294901760, %v11623_v4  ;;  %v16409_v58 = vsub.f32 %v11624_v21, %v16379_v62 }
 0x54c   :  { %8601 = vmatpush.msra.mxu0 %v16065_v16  ;;  %8751 = vmatmul.f32.vlgmr.msra.gmra.mxu2 %v19445_v40  ;;  %v8908_v6 = vsub.f32 %v16309_v12, %v19487_v42  ;;  %v16386_v16 = vsub.f32 %v11625_v50, %v16359_v53  ;;  %v11622_v42 = vld [vmem:[%s18778_s5 + $0x320] sm:$0xff] }
 0x54d   :  { %8798 = vmatpush.msra.mxu3 %v16072_v29  ;;  %8892 = vmatpush.msrb.mxu1 %v8891_v26  ;;  %v16381_v35 = vpop.f32.mrf.mxu2  ;;  %v16411_v26 = vand.u32 4294901760, %v11622_v42  ;;  %v8915_v21 = vand.u32 4294901760, %v8914_v36  ;;  %v16427_v54 = vsub.f32 %v11623_v4, %v16398_v28 }
 0x54e   :  { %19488 = vst [vmem:[#allocation146_spill] sm:$0xff] %v16381_v35  ;;  %8996 = vmatpush.msrb.mxu2 %v16246_v56  ;;  %8604 = vmatpush.msra.mxu0 %v16084_v19  ;;  %v16391_v29 = vpop.f32.mrf.mxu0  ;;  %v8909_v19 = vand.u32 4294901760, %v8908_v6  ;;  %v11621_v35 = vld [vmem:[%s18778_s5 + $0x318] sm:$0xff]  ;;  %v16419_v6 = vpop.f32.mrf.mxu1  ;;  %v19496_v4 = vand.u32 4294901760, %v16386_v16  ;;  %v11638_v56 = vld [vmem:[%s18778_s5 + $0x3a0] sm:$0xff] }
 0x54f   :  { %19489 = vst [vmem:[#allocation147_spill] sm:$0xff] %v16391_v29  ;;  %8800 = vmatmul.f32.vlgmr.msra.gmra.mxu3 %v19445_v40  ;;  %8898 = vmatpush.msrb.mxu1 %v8897_v2  ;;  %v19491_v2 = vand.u32 4294901760, %v16354_v41  ;;  %v16430_v57 = vand.u32 4294901760, %v11621_v35 }
 0x550   :  { %8999 = vmatpush.msrb.mxu2 %v16258_v5  ;;  %9064 = vmatpush.msrb.mxu3 %v16222_v15  ;;  %v16402_v50 = vpop.f32.mrf.mxu3  ;;  %19492 = vst [vmem:[#allocation149_spill] sm:$0xff] %v16419_v6 }
 0x551   :  { %19490 = vst [vmem:[#allocation148_spill] sm:$0xff] %v16402_v50  ;;  %8607 = vmatpush.msra.mxu0 %v16097_v25  ;;  %8904 = vmatpush.msrb.mxu1 %v8903_v32  ;;  %v8920_v51 = vsub.f32 %v16354_v41, %v19491_v2  ;;  %v19493_v32 = vld [vmem:[#allocation31_spill] sm:$0xff]  ;;  %v19495_v50 = vand.u32 4294901760, %v16367_v46  ;;  %v11620_v25 = vld [vmem:[%s18778_s5 + $0x310] sm:$0xff] }
 0x552   :  { %9002 = vmatpush.msrb.mxu2 %v16274_v30  ;;  %9066 = vmatpush.msrb.mxu3 %v16232_v14  ;;  %v19494_v2 = vld [vmem:[#allocation43_spill] sm:$0xff] }
 0x553   :  { %8610 = vmatmul.f32.vlgmr.msra.gmra.mxu0 %v19493_v32  ;;  %8670 = vmatmul.f32.gmra.mxu1 %v19494_v2  ;;  %v8926_v59 = vsub.f32 %v16367_v46, %v19495_v50  ;;  %v8921_v36 = vand.u32 4294901760, %v8920_v51  ;;  %v16439_v50 = vsub.f32 %v11622_v42, %v16411_v26  ;;  %v16451_v42 = vand.u32 4294901760, %v11620_v25  ;;  %v19514_v32 = vld [vmem:[#allocation40_spill] sm:$0xff] }
 0x554   :  { %8817 = vmatpush.msrb.mxu0 %v16222_v15  ;;  %8910 = vmatpush.msrb.mxu1 %v8909_v19  ;;  %v8932_v19 = vsub.f32 %v16386_v16, %v19496_v4  ;;  %v16458_v4 = vsub.f32 %v11621_v35, %v16430_v57 }
 0x555   :  { %9005 = vmatpush.msrb.mxu2 %v16288_v13  ;;  %9068 = vmatpush.msrb.mxu3 %v16248_v33  ;;  %v8927_v51 = vand.u32 4294901760, %v8926_v59  ;;  %v19499_v59 = vand.u32 4294901760, %v16409_v58 }
 0x556   :  { %8755 = vmatmul.f32.gmra.mxu2 %v19456_v31  ;;  %8819 = vmatpush.msrb.mxu0 %v16232_v14  ;;  %v8933_v35 = vand.u32 4294901760, %v8932_v19  ;;  %v19506_v8 = vand.u32 4294901760, %v16458_v4 }
 0x557   :  { %8916 = vmatpush.msrb.mxu1 %v8915_v21  ;;  %9008 = vmatpush.msrb.mxu2 %v16309_v12  ;;  %v16453_v43 = vpop.f32.mrf.mxu2  ;;  %v11618_v21 = vld [vmem:[%s18778_s5 + $0x300] sm:$0xff]  ;;  %v8938_v6 = vsub.f32 %v16409_v58, %v19499_v59  ;;  %v16481_v59 = vsub.f32 %v11620_v25, %v16451_v42 }
 0x558   :  { %19497 = vst [vmem:[#allocation150_spill] sm:$0xff] %v16453_v43  ;;  %9070 = vmatpush.msrb.mxu3 %v16260_v7  ;;  %8821 = vmatpush.msrb.mxu0 %v16248_v33  ;;  %v16463_v29 = vpop.f32.mrf.mxu0  ;;  %v16483_v43 = vand.u32 4294901760, %v11618_v21  ;;  %v16488_v39 = vpop.f32.mrf.mxu1 }
 0x559   :  { %19498 = vst [vmem:[#allocation151_spill] sm:$0xff] %v16463_v29  ;;  %8804 = vmatmul.f32.gmra.mxu3 %v19456_v31  ;;  %8922 = vmatpush.msrb.mxu1 %v8921_v36  ;;  %v19501_v36 = vand.u32 4294901760, %v16427_v54  ;;  %v8939_v52 = vand.u32 4294901760, %v8938_v6  ;;  %v8956_v6 = vsub.f32 %v16458_v4, %v19506_v8  ;;  %v11642_v31 = vld [vmem:[%s18778_s5 + $0x3c0] sm:$0xff] }
 0x55a   :  { %9011 = vmatpush.msrb.mxu2 %v16335_v18  ;;  %9072 = vmatpush.msrb.mxu3 %v16278_v0  ;;  %v16474_v22 = vpop.f32.mrf.mxu3  ;;  %19502 = vst [vmem:[#allocation153_spill] sm:$0xff] %v16488_v39 }
 0x55b   :  { %19500 = vst [vmem:[#allocation152_spill] sm:$0xff] %v16474_v22  ;;  %8823 = vmatpush.msrb.mxu0 %v16260_v7  ;;  %8928 = vmatpush.msrb.mxu1 %v8927_v51  ;;  %v8944_v29 = vsub.f32 %v16427_v54, %v19501_v36  ;;  %v19503_v22 = vld [vmem:[#allocation34_spill] sm:$0xff]  ;;  %v19505_v36 = vand.u32 4294901760, %v16439_v50 }
 0x55c   :  { %9014 = vmatpush.msrb.mxu2 %v16354_v41  ;;  %9074 = vmatpush.msrb.mxu3 %v16302_v44  ;;  %v19504_v51 = vld [vmem:[#allocation46_spill] sm:$0xff] }
 0x55d   :  { %8615 = vmatmul.f32.gmra.mxu0 %v19503_v22  ;;  %8676 = vmatmul.f32.gmra.mxu1 %v19504_v51  ;;  %v8950_v25 = vsub.f32 %v16439_v50, %v19505_v36  ;;  %v8945_v19 = vand.u32 4294901760, %v8944_v29  ;;  %v16503_v51 = vsub.f32 %v11618_v21, %v16483_v43  ;;  %v11649_v29 = vld [vmem:[%s18778_s5 + $0x3f8] sm:$0xff]  ;;  %v11648_v36 = vld [vmem:[%s18778_s5 + $0x3f0] sm:$0xff] }
 0x55e   :  { %8825 = vmatpush.msrb.mxu0 %v16278_v0  ;;  %8934 = vmatpush.msrb.mxu1 %v8933_v35  ;;  %v16531_v22 = vand.u32 4294901760, %v11649_v29  ;;  %v16541_v8 = vand.u32 4294901760, %v11648_v36 }
 0x55f   :  { %9017 = vmatpush.msrb.mxu2 %v16367_v46  ;;  %9076 = vmatpush.msrb.mxu3 %v16322_v49  ;;  %v8951_v35 = vand.u32 4294901760, %v8950_v25  ;;  %v19515_v1 = vand.u32 4294901760, %v16503_v51 }
 0x560   :  { %8759 = vmatmul.f32.gmra.mxu2 %v19466_v9  ;;  %8827 = vmatpush.msrb.mxu0 %v16302_v44  ;;  %v16555_v10 = vsub.f32 %v11649_v29, %v16531_v22 }
 0x561   :  { %8940 = vmatpush.msrb.mxu1 %v8939_v52  ;;  %9020 = vmatpush.msrb.mxu2 %v16386_v16  ;;  %v16515_v21 = vpop.f32.mrf.mxu2  ;;  %v19509_v52 = vand.u32 4294901760, %v16481_v59 }
 0x562   :  { %19507 = vst [vmem:[#allocation154_spill] sm:$0xff] %v16515_v21  ;;  %9078 = vmatpush.msrb.mxu3 %v16337_v24  ;;  %8829 = vmatpush.msrb.mxu0 %v16322_v49  ;;  %v16519_v39 = vpop.f32.mrf.mxu0  ;;  %v8957_v21 = vand.u32 4294901760, %v8956_v6  ;;  %v11647_v6 = vld [vmem:[%s18778_s5 + $0x3e8] sm:$0xff]  ;;  %v16546_v2 = vpop.f32.mrf.mxu1 }
 0x563   :  { %19508 = vst [vmem:[#allocation155_spill] sm:$0xff] %v16519_v39  ;;  %8808 = vmatmul.f32.gmra.mxu3 %v19466_v9  ;;  %8946 = vmatpush.msrb.mxu1 %v8945_v19  ;;  %v8962_v25 = vsub.f32 %v16481_v59, %v19509_v52  ;;  %v19511_v19 = vand.u32 4294901760, %v16496_v45  ;;  %v16559_v9 = vand.u32 4294901760, %v11647_v6 }
 0x564   :  { %9023 = vmatpush.msrb.mxu2 %v16409_v58  ;;  %9080 = vmatpush.msrb.mxu3 %v16359_v53  ;;  %v16533_v39 = vpop.f32.mrf.mxu3  ;;  %19512 = vst [vmem:[#allocation157_spill] sm:$0xff] %v16546_v2 }
 0x565   :  { %19510 = vst [vmem:[#allocation156_spill] sm:$0xff] %v16533_v39  ;;  %8831 = vmatpush.msrb.mxu0 %v16337_v24  ;;  %8952 = vmatpush.msrb.mxu1 %v8951_v35  ;;  %v8968_v52 = vsub.f32 %v16496_v45, %v19511_v19  ;;  %v19513_v39 = vld [vmem:[#allocation45_spill] sm:$0xff]  ;;  %v8963_v35 = vand.u32 4294901760, %v8962_v25  ;;  %v8974_v19 = vsub.f32 %v16503_v51, %v19515_v1  ;;  %v11646_v25 = vld [vmem:[%s18778_s5 + $0x3e0] sm:$0xff] }
 0x566   :  { %9026 = vmatpush.msrb.mxu2 %v16427_v54  ;;  %9082 = vmatpush.msrb.mxu3 %v16379_v62  ;;  %v16567_v1 = vsub.f32 %v11648_v36, %v16541_v8 }
 0x567   :  { %8620 = vmatmul.f32.gmra.mxu0 %v19513_v39  ;;  %8682 = vmatmul.f32.gmra.mxu1 %v19514_v32  ;;  %v8969_v2 = vand.u32 4294901760, %v8968_v52  ;;  %v8975_v29 = vand.u32 4294901760, %v8974_v19  ;;  %v16578_v39 = vand.u32 4294901760, %v11646_v25  ;;  %v11644_v19 = vld [vmem:[%s18778_s5 + $0x3d0] sm:$0xff]  ;;  %v11643_v32 = vld [vmem:[%s18778_s5 + $0x3c8] sm:$0xff] }
 0x568   :  { %8833 = vmatpush.msrb.mxu0 %v16359_v53  ;;  %8958 = vmatpush.msrb.mxu1 %v8957_v21  ;;  %v11645_v21 = vld [vmem:[%s18778_s5 + $0x3d8] sm:$0xff] }
 0x569   :  { %9029 = vmatpush.msrb.mxu2 %v16439_v50  ;;  %9084 = vmatpush.msrb.mxu3 %v16398_v28 }
 0x56a   :  { %8763 = vmatmul.f32.gmra.mxu2 %v19477_v27  ;;  %8835 = vmatpush.msrb.mxu0 %v16379_v62 }
 0x56b   :  { %8964 = vmatpush.msrb.mxu1 %v8963_v35  ;;  %9032 = vmatpush.msrb.mxu2 %v16458_v4  ;;  %v16573_v52 = vpop.f32.mrf.mxu2  ;;  %v16584_v35 = vsub.f32 %v11647_v6, %v16559_v9 }
 0x56c   :  { %19516 = vst [vmem:[#allocation158_spill] sm:$0xff] %v16573_v52  ;;  %9086 = vmatpush.msrb.mxu3 %v16411_v26  ;;  %8837 = vmatpush.msrb.mxu0 %v16398_v28  ;;  %v16580_v36 = vpop.f32.mrf.mxu0  ;;  %v16592_v52 = vand.u32 4294901760, %v11645_v21 }
 0x56d   :  { %19517 = vst [vmem:[#allocation159_spill] sm:$0xff] %v16580_v36  ;;  %8812 = vmatmul.f32.gmra.mxu3 %v19477_v27  ;;  %8970 = vmatpush.msrb.mxu1 %v8969_v2  ;;  %v19519_v2 = vand.u32 4294901760, %v16555_v10  ;;  %v16603_v36 = vsub.f32 %v11646_v25, %v16578_v39  ;;  %v16605_v27 = vand.u32 4294901760, %v11644_v19  ;;  %v19522_v25 = vand.u32 4294901760, %v16567_v1 }
 0x56e   :  { %9035 = vmatpush.msrb.mxu2 %v16481_v59  ;;  %9088 = vmatpush.msrb.mxu3 %v16430_v57  ;;  %v16594_v17 = vpop.f32.mrf.mxu3  ;;  %v16621_v47 = vsub.f32 %v11645_v21, %v16592_v52 }
 0x56f   :  { %19518 = vst [vmem:[#allocation160_spill] sm:$0xff] %v16594_v17  ;;  %8839 = vmatpush.msrb.mxu0 %v16411_v26  ;;  %8976 = vmatpush.msrb.mxu1 %v8975_v29  ;;  %v9318_v6 = vsub.f32 %v16555_v10, %v19519_v2  ;;  %v16610_v17 = vpop.f32.mrf.mxu1  ;;  %v19521_v29 = vld [vmem:[#allocation37_spill] sm:$0xff]  ;;  %v9324_v2 = vsub.f32 %v16567_v1, %v19522_v25  ;;  %v16649_v25 = vand.u32 4294901760, %v11642_v31 }
 0x570   :  { %9038 = vmatpush.msrb.mxu2 %v16496_v45  ;;  %9090 = vmatpush.msrb.mxu3 %v16451_v42  ;;  %19520 = vst [vmem:[#allocation161_spill] sm:$0xff] %v16610_v17  ;;  %v16625_v17 = vand.u32 4294901760, %v11643_v32  ;;  %v16634_v21 = vsub.f32 %v11644_v19, %v16605_v27 }
 0x571   :  { %8625 = vmatmul.f32.gmra.mxu0 %v19521_v29  ;;  %8978 = vmatmul.f32.vlgmr.msrb.gmra.mxu1 %v14968_v61  ;;  %v19523_v29 = vld [vmem:[#allocation58_spill] sm:$0xff]  ;;  %v9319_v40 = vand.u32 4294901760, %v9318_v6  ;;  %v9325_v19 = vand.u32 4294901760, %v9324_v2  ;;  %v19528_v2 = vand.u32 4294901760, %v16603_v36 }
 0x572   :  { %8841 = vmatpush.msrb.mxu0 %v16430_v57  ;;  %9041 = vmatpush.msrb.mxu2 %v16503_v51 }
 0x573   :  { %9092 = vmatpush.msrb.mxu3 %v16470_v63  ;;  %9202 = vmatpush.msra.mxu1 %v16222_v15  ;;  %v19524_v15 = vand.u32 4294901760, %v16584_v35  ;;  %v9336_v6 = vsub.f32 %v16603_v36, %v19528_v2  ;;  %v16677_v2 = vsub.f32 %v11642_v31, %v16649_v25 }
 0x574   :  { %8843 = vmatpush.msrb.mxu0 %v16451_v42  ;;  %9044 = vmatmul.f32.vlgmr.msrb.gmra.mxu2 %v19523_v29  ;;  %v19527_v29 = vld [vmem:[#allocation10_spill] sm:$0xff] }
 0x575   :  { %9094 = vmatpush.msrb.mxu3 %v16483_v43  ;;  %9204 = vmatpush.msra.mxu1 %v16232_v14  ;;  %v9330_v34 = vsub.f32 %v16584_v35, %v19524_v15  ;;  %v16644_v37 = vpop.f32.mrf.mxu2  ;;  %v16656_v15 = vsub.f32 %v11643_v32, %v16625_v17  ;;  %v9337_v31 = vand.u32 4294901760, %v9336_v6 }
 0x576   :  { %19525 = vst [vmem:[#allocation162_spill] sm:$0xff] %v16644_v37  ;;  %9251 = vmatpush.msra.mxu2 %v16531_v22  ;;  %8845 = vmatpush.msrb.mxu0 %v16470_v63  ;;  %v16651_v14 = vpop.f32.mrf.mxu0  ;;  %v11640_v37 = vld [vmem:[%s18778_s5 + $0x3b0] sm:$0xff] }
 0x577   :  { %19526 = vst [vmem:[#allocation163_spill] sm:$0xff] %v16651_v14  ;;  %9098 = vmatmul.f32.vlgmr.msrb.gmra.mxu3 %v19527_v29  ;;  %9206 = vmatpush.msra.mxu1 %v16248_v33  ;;  %v9331_v33 = vand.u32 4294901760, %v9330_v34  ;;  %v16679_v14 = vand.u32 4294901760, %v11640_v37  ;;  %v16684_v48 = vpop.f32.mrf.mxu1  ;;  %v19533_v34 = vld [vmem:[#allocation61_spill] sm:$0xff] }
 0x578   :  { %9253 = vmatpush.msra.mxu2 %v16541_v8  ;;  %9320 = vmatpush.msra.mxu3 %v9319_v40  ;;  %v16668_v29 = vpop.f32.mrf.mxu3  ;;  %v19530_v40 = vand.u32 4294901760, %v16621_v47  ;;  %19531 = vst [vmem:[#allocation165_spill] sm:$0xff] %v16684_v48 }
 0x579   :  { %19529 = vst [vmem:[#allocation164_spill] sm:$0xff] %v16668_v29  ;;  %8847 = vmatpush.msrb.mxu0 %v16483_v43  ;;  %9208 = vmatpush.msra.mxu1 %v16260_v7  ;;  %v11639_v29 = vld [vmem:[%s18778_s5 + $0x3a8] sm:$0xff]  ;;  %v16709_v55 = vsub.f32 %v11640_v37, %v16679_v14 }
 0x57a   :  { %9255 = vmatpush.msra.mxu2 %v16559_v9  ;;  %9326 = vmatpush.msra.mxu3 %v9325_v19  ;;  %v9342_v32 = vsub.f32 %v16621_v47, %v19530_v40  ;;  %v19532_v7 = vld [vmem:[#allocation63_spill] sm:$0xff]  ;;  %v19012_v19 = vand.u32 4294901760, %v16656_v15  ;;  %v19535_v40 = vand.u32 4294901760, %v16634_v21  ;;  %v16699_v48 = vand.u32 4294901760, %v11639_v29 }
 0x57b   :  { %8853 = vmatmul.f32.vlgmr.msrb.gmra.mxu0 %v19532_v7  ;;  %8982 = vmatmul.f32.gmra.mxu1 %v19533_v34  ;;  %v19541_v7 = vld [vmem:[#allocation16_spill] sm:$0xff] }
 0x57c   :  { %9123 = vmatpush.msra.mxu0 %v19534_v11  ;;  %9210 = vmatpush.msra.mxu1 %v16278_v0  ;;  %v9348_v38 = vsub.f32 %v16634_v21, %v19535_v40  ;;  %v19536_v11 = vld [vmem:[#allocation62_spill] sm:$0xff]  ;;  %v19537_v0 = vand.u32 4294901760, %v16258_v5  ;;  %v9343_v6 = vand.u32 4294901760, %v9342_v32  ;;  %v19539_v32 = vand.u32 4294901760, %v16274_v30 }
 0x57d   :  { %9257 = vmatpush.msra.mxu2 %v16578_v39  ;;  %9332 = vmatpush.msra.mxu3 %v9331_v33  ;;  %v9354_v33 = vsub.f32 %v16656_v15, %v19012_v19  ;;  %v16731_v19 = vsub.f32 %v11639_v29, %v16699_v48 }
 0x57e   :  { %9049 = vmatmul.f32.gmra.mxu2 %v19536_v11  ;;  %9127 = vmatpush.msra.mxu0 %v19537_v0  ;;  %v11637_v11 = vld [vmem:[%s18778_s5 + $0x398] sm:$0xff]  ;;  %v9349_v37 = vand.u32 4294901760, %v9348_v38  ;;  %v19542_v38 = vand.u32 4294901760, %v16677_v2 }
 0x57f   :  { %9212 = vmatpush.msra.mxu1 %v16302_v44  ;;  %9259 = vmatpush.msra.mxu2 %v16592_v52  ;;  %v16719_v5 = vpop.f32.mrf.mxu2  ;;  %v16724_v44 = vand.u32 4294901760, %v11638_v56  ;;  %v16741_v0 = vand.u32 4294901760, %v11637_v11  ;;  %v9355_v29 = vand.u32 4294901760, %v9354_v33  ;;  %v19548_v33 = vld [vmem:[#allocation66_spill] sm:$0xff] }
 0x580   :  { %19538 = vst [vmem:[#allocation166_spill] sm:$0xff] %v16719_v5  ;;  %9338 = vmatpush.msra.mxu3 %v9337_v31  ;;  %9131 = vmatpush.msra.mxu0 %v19539_v32  ;;  %v16726_v40 = vpop.f32.mrf.mxu0  ;;  %v11636_v31 = vld [vmem:[%s18778_s5 + $0x390] sm:$0xff]  ;;  %v9360_v30 = vsub.f32 %v16677_v2, %v19542_v38 }
 0x581   :  { %19540 = vst [vmem:[#allocation167_spill] sm:$0xff] %v16726_v40  ;;  %9104 = vmatmul.f32.gmra.mxu3 %v19541_v7  ;;  %9214 = vmatpush.msra.mxu1 %v16322_v49  ;;  %v19544_v49 = vand.u32 4294901760, %v16288_v13  ;;  %v16753_v38 = vsub.f32 %v11638_v56, %v16724_v44  ;;  %v16755_v32 = vand.u32 4294901760, %v11636_v31  ;;  %v11635_v13 = vld [vmem:[%s18778_s5 + $0x388] sm:$0xff]  ;;  %v16772_v23 = vsub.f32 %v11637_v11, %v16741_v0 }
 0x582   :  { %9261 = vmatpush.msra.mxu2 %v16605_v27  ;;  %9344 = vmatpush.msra.mxu3 %v9343_v6  ;;  %v16743_v5 = vpop.f32.mrf.mxu3  ;;  %v19545_v6 = vand.u32 4294901760, %v16696_v20  ;;  %v9361_v56 = vand.u32 4294901760, %v9360_v30 }
 0x583   :  { %19543 = vst [vmem:[#allocation168_spill] sm:$0xff] %v16743_v5  ;;  %9135 = vmatpush.msra.mxu0 %v19544_v49  ;;  %9216 = vmatpush.msra.mxu1 %v16337_v24  ;;  %v16760_v49 = vpop.f32.mrf.mxu1  ;;  %v19547_v24 = vld [vmem:[#allocation47_spill] sm:$0xff]  ;;  %v19549_v5 = vand.u32 4294901760, %v16309_v12  ;;  %v19551_v12 = vld [vmem:[#allocation41_spill] sm:$0xff]  ;;  %v16785_v11 = vsub.f32 %v11636_v31, %v16755_v32  ;;  %v19014_v31 = vand.u32 4294901760, %v16772_v23 }
 0x584   :  { %9263 = vmatpush.msra.mxu2 %v16625_v17  ;;  %9350 = vmatpush.msra.mxu3 %v9349_v37  ;;  %v9366_v40 = vsub.f32 %v16696_v20, %v19545_v6  ;;  %19546 = vst [vmem:[#allocation169_spill] sm:$0xff] %v16760_v49  ;;  %v19550_v6 = vand.u32 4294901760, %v16709_v55  ;;  %v11634_v49 = vld [vmem:[%s18778_s5 + $0x380] sm:$0xff]  ;;  %v16778_v37 = vand.u32 4294901760, %v11635_v13 }
 0x585   :  { %8861 = vmatmul.f32.gmra.mxu0 %v19547_v24  ;;  %8986 = vmatmul.f32.gmra.mxu1 %v19548_v33  ;;  %v16792_v24 = vand.u32 4294901760, %v11634_v49 }
 0x586   :  { %9139 = vmatpush.msra.mxu0 %v19549_v5  ;;  %9218 = vmatpush.msra.mxu1 %v16359_v53  ;;  %v9372_v7 = vsub.f32 %v16709_v55, %v19550_v6  ;;  %v19552_v53 = vand.u32 4294901760, %v16335_v18  ;;  %v9367_v5 = vand.u32 4294901760, %v9366_v40  ;;  %v19553_v6 = vand.u32 4294901760, %v16731_v19 }
 0x587   :  { %9265 = vmatpush.msra.mxu2 %v16649_v25  ;;  %9356 = vmatpush.msra.mxu3 %v9355_v29  ;;  %v19555_v18 = vand.u32 4294901760, %v16354_v41  ;;  %v16804_v30 = vsub.f32 %v11635_v13, %v16778_v37  ;;  %v16817_v13 = vsub.f32 %v11634_v49, %v16792_v24 }
 0x588   :  { %9054 = vmatmul.f32.gmra.mxu2 %v19551_v12  ;;  %9143 = vmatpush.msra.mxu0 %v19552_v53  ;;  %v9378_v29 = vsub.f32 %v16731_v19, %v19553_v6  ;;  %v9373_v40 = vand.u32 4294901760, %v9372_v7  ;;  %v19562_v7 = vld [vmem:[#allocation51_spill] sm:$0xff] }
 0x589   :  { %9220 = vmatpush.msra.mxu1 %v16379_v62  ;;  %9267 = vmatpush.msra.mxu2 %v16666_v3  ;;  %v16794_v12 = vpop.f32.mrf.mxu2  ;;  %v19557_v62 = vld [vmem:[#allocation67_spill] sm:$0xff] }
 0x58a   :  { %19554 = vst [vmem:[#allocation170_spill] sm:$0xff] %v16794_v12  ;;  %9362 = vmatpush.msra.mxu3 %v9361_v56  ;;  %9147 = vmatpush.msra.mxu0 %v19555_v18  ;;  %v16799_v53 = vpop.f32.mrf.mxu0  ;;  %v19558_v56 = vand.u32 4294901760, %v16753_v38  ;;  %v19560_v18 = vand.u32 4294901760, %v16367_v46 }
 0x58b   :  { %19556 = vst [vmem:[#allocation171_spill] sm:$0xff] %v16799_v53  ;;  %9110 = vmatmul.f32.gmra.mxu3 %v19557_v62  ;;  %9222 = vmatpush.msra.mxu1 %v16398_v28  ;;  %v9379_v28 = vand.u32 4294901760, %v9378_v29  ;;  %v19565_v29 = vand.u32 4294901760, %v16785_v11 }
 0x58c   :  { %9269 = vmatpush.msra.mxu2 %v16679_v14  ;;  %9368 = vmatpush.msra.mxu3 %v9367_v5  ;;  %v9384_v41 = vsub.f32 %v16753_v38, %v19558_v56  ;;  %v16811_v6 = vpop.f32.mrf.mxu3  ;;  %v9390_v5 = vsub.f32 %v16772_v23, %v19014_v31  ;;  %v16823_v56 = vpop.f32.mrf.mxu1  ;;  %v19566_v31 = vld [vmem:[#allocation50_spill] sm:$0xff] }
 0x58d   :  { %19559 = vst [vmem:[#allocation172_spill] sm:$0xff] %v16811_v6  ;;  %9151 = vmatpush.msra.mxu0 %v19560_v18  ;;  %9224 = vmatpush.msra.mxu1 %v16411_v26  ;;  %v19563_v6 = vld [vmem:[#allocation49_spill] sm:$0xff]  ;;  %v19564_v26 = vand.u32 4294901760, %v16386_v16  ;;  %v19015_v18 = vand.u32 4294901760, %v16817_v13 }
 0x58e   :  { %9271 = vmatpush.msra.mxu2 %v16699_v48  ;;  %9374 = vmatpush.msra.mxu3 %v9373_v40  ;;  %19561 = vst [vmem:[#allocation173_spill] sm:$0xff] %v16823_v56  ;;  %v9385_v49 = vand.u32 4294901760, %v9384_v41  ;;  %v9396_v40 = vsub.f32 %v16785_v11, %v19565_v29  ;;  %v19567_v56 = vand.u32 4294901760, %v16409_v58  ;;  %v9391_v46 = vand.u32 4294901760, %v9390_v5  ;;  %v19572_v58 = vld [vmem:[#allocation70_spill] sm:$0xff] }
 0x58f   :  { %8869 = vmatmul.f32.gmra.mxu0 %v19562_v7  ;;  %8990 = vmatmul.f32.gmra.mxu1 %v19563_v6 }
 0x590   :  { %9155 = vmatpush.msra.mxu0 %v19564_v26  ;;  %9226 = vmatpush.msra.mxu1 %v16430_v57  ;;  %v19568_v57 = vand.u32 4294901760, %v16804_v30  ;;  %v9397_v26 = vand.u32 4294901760, %v9396_v40 }
 0x591   :  { %9273 = vmatpush.msra.mxu2 %v16724_v44  ;;  %9380 = vmatpush.msra.mxu3 %v9379_v28  ;;  %v19570_v28 = vand.u32 4294901760, %v16427_v54 }
 0x592   :  { %9059 = vmatmul.f32.gmra.mxu2 %v19566_v31  ;;  %9159 = vmatpush.msra.mxu0 %v19567_v56  ;;  %v9402_v16 = vsub.f32 %v16804_v30, %v19568_v57  ;;  %v19574_v56 = vand.u32 4294901760, %v16439_v50  ;;  %v19579_v50 = vld [vmem:[#allocation79_spill] sm:$0xff] }
 0x593   :  { %9228 = vmatpush.msra.mxu1 %v16451_v42  ;;  %9275 = vmatpush.msra.mxu2 %v16741_v0  ;;  %v16844_v41 = vpop.f32.mrf.mxu2  ;;  %v9408_v42 = vsub.f32 %v16817_v13, %v19015_v18  ;;  %v19611_v18 = vld [vmem:[#allocation92_spill] sm:$0xff] }
 0x594   :  { %19569 = vst [vmem:[#allocation174_spill] sm:$0xff] %v16844_v41  ;;  %9386 = vmatpush.msra.mxu3 %v9385_v49  ;;  %9163 = vmatpush.msra.mxu0 %v19570_v28  ;;  %v16848_v29 = vpop.f32.mrf.mxu0  ;;  %v9403_v54 = vand.u32 4294901760, %v9402_v16  ;;  %v16862_v49 = vpop.f32.mrf.mxu1  ;;  %v19581_v16 = vand.u32 4294901760, %v16555_v10 }
 0x595   :  { %19571 = vst [vmem:[#allocation175_spill] sm:$0xff] %v16848_v29  ;;  %9116 = vmatmul.f32.gmra.mxu3 %v19572_v58  ;;  %9230 = vmatpush.msra.mxu1 %v16470_v63  ;;  %v19576_v63 = vld [vmem:[#allocation54_spill] sm:$0xff]  ;;  %v9409_v40 = vand.u32 4294901760, %v9408_v42 }
 0x596   :  { %9277 = vmatpush.msra.mxu2 %v16755_v32  ;;  %9392 = vmatpush.msra.mxu3 %v9391_v46  ;;  %v16856_v5 = vpop.f32.mrf.mxu3  ;;  %19575 = vst [vmem:[#allocation177_spill] sm:$0xff] %v16862_v49  ;;  %v19577_v46 = vand.u32 4294901760, %v16458_v4  ;;  %v19582_v4 = vand.u32 4294901760, %v16496_v45  ;;  %v19588_v45 = vand.u32 4294901760, %v16584_v35 }
 0x597   :  { %19573 = vst [vmem:[#allocation176_spill] sm:$0xff] %v16856_v5  ;;  %9167 = vmatpush.msra.mxu0 %v19574_v56  ;;  %9232 = vmatpush.msra.mxu1 %v16483_v43  ;;  %v19578_v43 = vand.u32 4294901760, %v16481_v59  ;;  %v19585_v59 = vand.u32 4294901760, %v16567_v1  ;;  %v19587_v56 = vand.u32 4294901760, %v16503_v51  ;;  %v19591_v51 = vld [vmem:[#allocation59_spill] sm:$0xff] }
 0x598   :  { %9279 = vmatpush.msra.mxu2 %v16778_v37  ;;  %9398 = vmatpush.msra.mxu3 %v9397_v26  ;;  %v19584_v26 = vld [vmem:[#allocation18_spill] sm:$0xff] }
 0x599   :  { %8877 = vmatmul.f32.gmra.mxu0 %v19576_v63  ;;  %9234 = vmatmul.f32.vlgmr.msra.gmra.mxu1 %v14968_v61  ;;  %v11673_v63 = vld [vmem:[%s18778_s5 + $0x4b8] sm:$0xff] }
 0x59a   :  { %9171 = vmatpush.msra.mxu0 %v19577_v46  ;;  %9281 = vmatpush.msra.mxu2 %v16792_v24  ;;  %v19595_v46 = vld [vmem:[#allocation53_spill] sm:$0xff]  ;;  %v17386_v31 = vand.u32 4294901760, %v11673_v63 }
 0x59b   :  { %9404 = vmatpush.msra.mxu3 %v9403_v54  ;;  %9498 = vmatpush.msrb.mxu1 %v16531_v22 }
 0x59c   :  { %9175 = vmatpush.msra.mxu0 %v19578_v43  ;;  %9287 = vmatmul.f32.vlgmr.msra.gmra.mxu2 %v19579_v50 }
 0x59d   :  { %9410 = vmatpush.msra.mxu3 %v9409_v40  ;;  %9500 = vmatpush.msrb.mxu1 %v16541_v8  ;;  %v16874_v57 = vpop.f32.mrf.mxu2 }
 0x59e   :  { %19580 = vst [vmem:[#allocation178_spill] sm:$0xff] %v16874_v57  ;;  %9557 = vmatpush.msrb.mxu2 %v19581_v16  ;;  %9179 = vmatpush.msra.mxu0 %v19582_v4  ;;  %v16880_v28 = vpop.f32.mrf.mxu0  ;;  %v16895_v54 = vpop.f32.mrf.mxu1  ;;  %v19601_v16 = vld [vmem:[#allocation87_spill] sm:$0xff]  ;;  %v19602_v4 = vand.u32 4294901760, %v16696_v20 }
 0x59f   :  { %19583 = vst [vmem:[#allocation179_spill] sm:$0xff] %v16880_v28  ;;  %9412 = vmatmul.f32.vlgmr.msra.gmra.mxu3 %v19584_v26  ;;  %9502 = vmatpush.msrb.mxu1 %v16559_v9 }
 0x5a0   :  { %9561 = vmatpush.msrb.mxu2 %v19585_v59  ;;  %9636 = vmatpush.msrb.mxu3 %v16531_v22  ;;  %v16887_v42 = vpop.f32.mrf.mxu3  ;;  %19589 = vst [vmem:[#allocation181_spill] sm:$0xff] %v16895_v54  ;;  %v19590_v22 = vand.u32 4294901760, %v16603_v36 }
 0x5a1   :  { %19586 = vst [vmem:[#allocation180_spill] sm:$0xff] %v16887_v42  ;;  %9183 = vmatpush.msra.mxu0 %v19587_v56  ;;  %9504 = vmatpush.msrb.mxu1 %v16578_v39 }
 0x5a2   :  { %9565 = vmatpush.msrb.mxu2 %v19588_v45  ;;  %9638 = vmatpush.msrb.mxu3 %v16541_v8  ;;  %v19592_v8 = vand.u32 4294901760, %v16621_v47  ;;  %v19605_v45 = vld [vmem:[#allocation55_spill] sm:$0xff] }
 0x5a3   :  { %9185 = vmatmul.f32.vlgmr.msra.gmra.mxu0 %v14968_v61  ;;  %9238 = vmatmul.f32.gmra.mxu1 %v19533_v34 }
 0x5a4   :  { %9430 = vmatpush.msrb.mxu0 %v16555_v10  ;;  %9506 = vmatpush.msrb.mxu1 %v16592_v52 }
 0x5a5   :  { %9569 = vmatpush.msrb.mxu2 %v19590_v22  ;;  %9640 = vmatpush.msrb.mxu3 %v16559_v9  ;;  %v19596_v9 = vand.u32 4294901760, %v16634_v21 }
 0x5a6   :  { %9295 = vmatmul.f32.gmra.mxu2 %v19591_v51  ;;  %9433 = vmatpush.msrb.mxu0 %v16567_v1 }
 0x5a7   :  { %9508 = vmatpush.msrb.mxu1 %v16605_v27  ;;  %9573 = vmatpush.msrb.mxu2 %v19592_v8  ;;  %v16909_v40 = vpop.f32.mrf.mxu2 }
 0x5a8   :  { %19593 = vst [vmem:[#allocation182_spill] sm:$0xff] %v16909_v40  ;;  %9642 = vmatpush.msrb.mxu3 %v16578_v39  ;;  %9436 = vmatpush.msrb.mxu0 %v16584_v35  ;;  %v16913_v10 = vpop.f32.mrf.mxu0  ;;  %v19598_v39 = vand.u32 4294901760, %v16656_v15  ;;  %v11665_v35 = vld [vmem:[%s18778_s5 + $0x478] sm:$0xff]  ;;  %v16930_v43 = vpop.f32.mrf.mxu1  ;;  %v11651_v40 = vld [vmem:[%s18778_s5 + $0x408] sm:$0xff] }
 0x5a9   :  { %19594 = vst [vmem:[#allocation183_spill] sm:$0xff] %v16913_v10  ;;  %9416 = vmatmul.f32.gmra.mxu3 %v19595_v46  ;;  %9510 = vmatpush.msrb.mxu1 %v16625_v17  ;;  %v17190_v29 = vand.u32 4294901760, %v11651_v40 }
 0x5aa   :  { %9577 = vmatpush.msrb.mxu2 %v19596_v9  ;;  %9644 = vmatpush.msrb.mxu3 %v16592_v52  ;;  %v16920_v1 = vpop.f32.mrf.mxu3  ;;  %19599 = vst [vmem:[#allocation185_spill] sm:$0xff] %v16930_v43  ;;  %v11664_v52 = vld [vmem:[%s18778_s5 + $0x470] sm:$0xff]  ;;  %v19606_v9 = vand.u32 4294901760, %v16709_v55 }
 0x5ab   :  { %19597 = vst [vmem:[#allocation184_spill] sm:$0xff] %v16920_v1  ;;  %9439 = vmatpush.msrb.mxu0 %v16603_v36  ;;  %9512 = vmatpush.msrb.mxu1 %v16649_v25  ;;  %v16942_v36 = vand.u32 4294901760, %v11665_v35  ;;  %v16952_v59 = vand.u32 4294901760, %v11664_v52  ;;  %v17216_v53 = vsub.f32 %v11651_v40, %v17190_v29 }
 0x5ac   :  { %9581 = vmatpush.msrb.mxu2 %v19598_v39  ;;  %9646 = vmatpush.msrb.mxu3 %v16605_v27  ;;  %v19600_v27 = vand.u32 4294901760, %v16677_v2 }
 0x5ad   :  { %9189 = vmatmul.f32.gmra.mxu0 %v19533_v34  ;;  %9242 = vmatmul.f32.gmra.mxu1 %v19548_v33  ;;  %v16966_v22 = vsub.f32 %v11665_v35, %v16942_v36  ;;  %v11661_v35 = vld [vmem:[%s18778_s5 + $0x458] sm:$0xff] }
 0x5ae   :  { %9442 = vmatpush.msrb.mxu0 %v16621_v47  ;;  %9514 = vmatpush.msrb.mxu1 %v16666_v3  ;;  %v11663_v47 = vld [vmem:[%s18778_s5 + $0x468] sm:$0xff] }
 0x5af   :  { %9585 = vmatpush.msrb.mxu2 %v19600_v27  ;;  %9648 = vmatpush.msrb.mxu3 %v16625_v17  ;;  %v11662_v17 = vld [vmem:[%s18778_s5 + $0x460] sm:$0xff]  ;;  %v16968_v8 = vand.u32 4294901760, %v11663_v47  ;;  %v19608_v27 = vand.u32 4294901760, %v16731_v19  ;;  %v19673_v7 = vand.u32 4294901760, %v16966_v22 }
 0x5b0   :  { %9303 = vmatmul.f32.gmra.mxu2 %v19601_v16  ;;  %9445 = vmatpush.msrb.mxu0 %v16634_v21  ;;  %v16980_v39 = vand.u32 4294901760, %v11662_v17 }
 0x5b1   :  { %9516 = vmatpush.msrb.mxu1 %v16679_v14  ;;  %9589 = vmatpush.msrb.mxu2 %v19602_v4  ;;  %v16954_v56 = vpop.f32.mrf.mxu2  ;;  %v16998_v4 = vand.u32 4294901760, %v11661_v35 }
 0x5b2   :  { %19603 = vst [vmem:[#allocation186_spill] sm:$0xff] %v16954_v56  ;;  %9650 = vmatpush.msrb.mxu3 %v16649_v25  ;;  %9448 = vmatpush.msrb.mxu0 %v16656_v15  ;;  %v16961_v21 = vpop.f32.mrf.mxu0  ;;  %v16978_v15 = vsub.f32 %v11664_v52, %v16952_v59  ;;  %v16994_v52 = vsub.f32 %v11663_v47, %v16968_v8 }
 0x5b3   :  { %19604 = vst [vmem:[#allocation187_spill] sm:$0xff] %v16961_v21  ;;  %9420 = vmatmul.f32.gmra.mxu3 %v19605_v45  ;;  %9518 = vmatpush.msrb.mxu1 %v16699_v48  ;;  %v17008_v47 = vsub.f32 %v11662_v17, %v16980_v39 }
 0x5b4   :  { %9593 = vmatpush.msrb.mxu2 %v19606_v9  ;;  %9652 = vmatpush.msrb.mxu3 %v16666_v3  ;;  %v16973_v25 = vpop.f32.mrf.mxu3  ;;  %v16988_v3 = vpop.f32.mrf.mxu1  ;;  %v19610_v9 = vand.u32 4294901760, %v16753_v38  ;;  %v19617_v17 = vand.u32 4294901760, %v16978_v15  ;;  %v19620_v42 = vand.u32 4294901760, %v16994_v52 }
 0x5b5   :  { %19607 = vst [vmem:[#allocation188_spill] sm:$0xff] %v16973_v25  ;;  %9451 = vmatpush.msrb.mxu0 %v16677_v2  ;;  %9520 = vmatpush.msrb.mxu1 %v16724_v44  ;;  %v19612_v2 = vand.u32 4294901760, %v16772_v23 }
 0x5b6   :  { %9597 = vmatpush.msrb.mxu2 %v19608_v27  ;;  %9654 = vmatpush.msrb.mxu3 %v16679_v14  ;;  %19609 = vst [vmem:[#allocation189_spill] sm:$0xff] %v16988_v3  ;;  %v11660_v14 = vld [vmem:[%s18778_s5 + $0x450] sm:$0xff] }
 0x5b7   :  { %9193 = vmatmul.f32.gmra.mxu0 %v19548_v33  ;;  %9246 = vmatmul.f32.gmra.mxu1 %v19563_v6  ;;  %v17022_v27 = vand.u32 4294901760, %v11660_v14  ;;  %v17416_v33 = vsub.f32 %v11673_v63, %v17386_v31 }
 0x5b8   :  { %9454 = vmatpush.msrb.mxu0 %v16696_v20  ;;  %9522 = vmatpush.msrb.mxu1 %v16741_v0  ;;  %v11659_v20 = vld [vmem:[%s18778_s5 + $0x448] sm:$0xff] }
 0x5b9   :  { %9601 = vmatpush.msrb.mxu2 %v19610_v9  ;;  %9656 = vmatpush.msrb.mxu3 %v16699_v48  ;;  %v19613_v48 = vand.u32 4294901760, %v16966_v22 }
 0x5ba   :  { %9311 = vmatmul.f32.gmra.mxu2 %v19611_v18  ;;  %9457 = vmatpush.msrb.mxu0 %v16709_v55  ;;  %v17029_v55 = vsub.f32 %v11661_v35, %v16998_v4  ;;  %v19618_v35 = vand.u32 4294901760, %v16785_v11 }
 0x5bb   :  { %9524 = vmatpush.msrb.mxu1 %v16755_v32  ;;  %9605 = vmatpush.msrb.mxu2 %v19612_v2  ;;  %v9821_v9 = vsub.f32 %v16966_v22, %v19613_v48  ;;  %v17024_v3 = vpop.f32.mrf.mxu2  ;;  %v11658_v2 = vld [vmem:[%s18778_s5 + $0x440] sm:$0xff]  ;;  %v19616_v48 = vld [vmem:[#allocation83_spill] sm:$0xff] }
 0x5bc   :  { %19614 = vst [vmem:[#allocation190_spill] sm:$0xff] %v17024_v3  ;;  %9658 = vmatpush.msrb.mxu3 %v16724_v44  ;;  %9460 = vmatpush.msrb.mxu0 %v16731_v19  ;;  %v17034_v25 = vpop.f32.mrf.mxu0  ;;  %v9827_v3 = vsub.f32 %v16978_v15, %v19617_v17  ;;  %v17042_v19 = vand.u32 4294901760, %v11659_v20  ;;  %v9833_v17 = vsub.f32 %v16994_v52, %v19620_v42  ;;  %v17057_v5 = vand.u32 4294901760, %v11658_v2  ;;  %v19623_v42 = vld [vmem:[#allocation19_spill] sm:$0xff] }
 0x5bd   :  { %19615 = vst [vmem:[#allocation191_spill] sm:$0xff] %v17034_v25  ;;  %9424 = vmatmul.f32.gmra.mxu3 %v19616_v48  ;;  %9526 = vmatpush.msrb.mxu1 %v16778_v37  ;;  %v9822_v25 = vand.u32 4294901760, %v9821_v9  ;;  %v17055_v44 = vsub.f32 %v11660_v14, %v17022_v27  ;;  %v17066_v9 = vpop.f32.mrf.mxu1 }
 0x5be   :  { %9609 = vmatpush.msrb.mxu2 %v19618_v35  ;;  %9660 = vmatpush.msrb.mxu3 %v16741_v0  ;;  %v17047_v56 = vpop.f32.mrf.mxu3  ;;  %v11657_v0 = vld [vmem:[%s18778_s5 + $0x438] sm:$0xff]  ;;  %v19621_v35 = vand.u32 4294901760, %v16804_v30  ;;  %19622 = vst [vmem:[#allocation193_spill] sm:$0xff] %v17066_v9  ;;  %v9828_v14 = vand.u32 4294901760, %v9827_v3  ;;  %v17074_v1 = vsub.f32 %v11659_v20, %v17042_v19  ;;  %v9834_v3 = vand.u32 4294901760, %v9833_v17  ;;  %v11655_v9 = vld [vmem:[%s18778_s5 + $0x428] sm:$0xff] }
 0x5bf   :  { %19619 = vst [vmem:[#allocation192_spill] sm:$0xff] %v17047_v56  ;;  %9463 = vmatpush.msrb.mxu0 %v16753_v38  ;;  %9528 = vmatpush.msrb.mxu1 %v16792_v24  ;;  %v19624_v56 = vand.u32 4294901760, %v17008_v47  ;;  %v11656_v38 = vld [vmem:[%s18778_s5 + $0x430] sm:$0xff]  ;;  %v17087_v20 = vsub.f32 %v11658_v2, %v17057_v5 }
 0x5c0   :  { %9613 = vmatpush.msrb.mxu2 %v19621_v35  ;;  %9662 = vmatpush.msrb.mxu3 %v16755_v32  ;;  %v19625_v32 = vand.u32 4294901760, %v16817_v13  ;;  %v17079_v35 = vand.u32 4294901760, %v11657_v0  ;;  %v17099_v2 = vand.u32 4294901760, %v11656_v38 }
 0x5c1   :  { %9197 = vmatmul.f32.gmra.mxu0 %v19563_v6  ;;  %9532 = vmatmul.f32.vlgmr.msrb.gmra.mxu1 %v19623_v42  ;;  %v9839_v43 = vsub.f32 %v17008_v47, %v19624_v56  ;;  %v19016_v56 = vand.u32 4294901760, %v17055_v44 }
 0x5c2   :  { %9466 = vmatpush.msrb.mxu0 %v16772_v23  ;;  %9617 = vmatpush.msrb.mxu2 %v19625_v32  ;;  %v19626_v23 = vand.u32 4294901760, %v17029_v55 }
 0x5c3   :  { %9664 = vmatpush.msrb.mxu3 %v16778_v37  ;;  %9823 = vmatpush.msra.mxu1 %v9822_v25  ;;  %v9840_v37 = vand.u32 4294901760, %v9839_v43  ;;  %v9851_v43 = vsub.f32 %v17055_v44, %v19016_v56  ;;  %v17118_v25 = vand.u32 4294901760, %v11655_v9  ;;  %v17129_v56 = vsub.f32 %v11656_v38, %v17099_v2 }
 0x5c4   :  { %9469 = vmatpush.msrb.mxu0 %v16785_v11  ;;  %9619 = vmatmul.f32.vlgmr.msrb.gmra.mxu2 %v19584_v26  ;;  %v9845_v32 = vsub.f32 %v17029_v55, %v19626_v23  ;;  %v17106_v11 = vsub.f32 %v11657_v0, %v17079_v35  ;;  %v11654_v23 = vld [vmem:[%s18778_s5 + $0x420] sm:$0xff] }
 0x5c5   :  { %9666 = vmatpush.msrb.mxu3 %v16792_v24  ;;  %9829 = vmatpush.msra.mxu1 %v9828_v14  ;;  %v17101_v17 = vpop.f32.mrf.mxu2  ;;  %v17131_v14 = vand.u32 4294901760, %v11654_v23  ;;  %v9852_v38 = vand.u32 4294901760, %v9851_v43  ;;  %v17147_v41 = vsub.f32 %v11655_v9, %v17118_v25 }
 0x5c6   :  { %19627 = vst [vmem:[#allocation194_spill] sm:$0xff] %v17101_v17  ;;  %9933 = vmatpush.msra.mxu2 %v16966_v22  ;;  %9472 = vmatpush.msrb.mxu0 %v16804_v30  ;;  %v17111_v24 = vpop.f32.mrf.mxu0  ;;  %v9846_v30 = vand.u32 4294901760, %v9845_v32  ;;  %v17139_v32 = vpop.f32.mrf.mxu1  ;;  %v19635_v9 = vand.u32 4294901760, %v17106_v11  ;;  %v11670_v22 = vld [vmem:[%s18778_s5 + $0x4a0] sm:$0xff] }
 0x5c7   :  { %19628 = vst [vmem:[#allocation195_spill] sm:$0xff] %v17111_v24  ;;  %9668 = vmatmul.f32.vlgmr.msrb.gmra.mxu3 %v19584_v26  ;;  %9835 = vmatpush.msra.mxu1 %v9834_v3  ;;  %v19630_v3 = vand.u32 4294901760, %v17074_v1  ;;  %v11653_v24 = vld [vmem:[%s18778_s5 + $0x418] sm:$0xff] }
 0x5c8   :  { %9936 = vmatpush.msra.mxu2 %v16978_v15  ;;  %10001 = vmatpush.msra.mxu3 %v16942_v36  ;;  %v17122_v0 = vpop.f32.mrf.mxu3  ;;  %19631 = vst [vmem:[#allocation197_spill] sm:$0xff] %v17139_v32  ;;  %v17150_v21 = vand.u32 4294901760, %v11653_v24 }
 0x5c9   :  { %19629 = vst [vmem:[#allocation196_spill] sm:$0xff] %v17122_v0  ;;  %9475 = vmatpush.msrb.mxu0 %v16817_v13  ;;  %9841 = vmatpush.msra.mxu1 %v9840_v37  ;;  %v9857_v17 = vsub.f32 %v17074_v1, %v19630_v3  ;;  %v19632_v37 = vld [vmem:[#allocation69_spill] sm:$0xff]  ;;  %v19633_v3 = vld [vmem:[#allocation24_spill] sm:$0xff]  ;;  %v19634_v0 = vand.u32 4294901760, %v17087_v20 }
 0x5ca   :  { %9939 = vmatpush.msra.mxu2 %v16994_v52  ;;  %10003 = vmatpush.msra.mxu3 %v16952_v59  ;;  %v11652_v13 = vld [vmem:[%s18778_s5 + $0x410] sm:$0xff] }
 0x5cb   :  { %9478 = vmatmul.f32.vlgmr.msrb.gmra.mxu0 %v19632_v37  ;;  %9538 = vmatmul.f32.gmra.mxu1 %v19633_v3  ;;  %v9863_v57 = vsub.f32 %v17087_v20, %v19634_v0  ;;  %v9858_v43 = vand.u32 4294901760, %v9857_v17  ;;  %v17159_v0 = vsub.f32 %v11654_v23, %v17131_v14  ;;  %v17171_v23 = vand.u32 4294901760, %v11652_v13  ;;  %v19653_v37 = vld [vmem:[#allocation89_spill] sm:$0xff] }
 0x5cc   :  { %9754 = vmatpush.msra.mxu0 %v16942_v36  ;;  %9847 = vmatpush.msra.mxu1 %v9846_v30  ;;  %v9869_v30 = vsub.f32 %v17106_v11, %v19635_v9  ;;  %v17178_v9 = vsub.f32 %v11653_v24, %v17150_v21 }
 0x5cd   :  { %9942 = vmatpush.msra.mxu2 %v17008_v47  ;;  %10005 = vmatpush.msra.mxu3 %v16968_v8  ;;  %v9864_v17 = vand.u32 4294901760, %v9863_v57  ;;  %v19638_v57 = vand.u32 4294901760, %v17129_v56 }
 0x5ce   :  { %9623 = vmatmul.f32.gmra.mxu2 %v19595_v46  ;;  %9756 = vmatpush.msra.mxu0 %v16952_v59  ;;  %v9870_v24 = vand.u32 4294901760, %v9869_v30  ;;  %v19645_v40 = vand.u32 4294901760, %v17178_v9 }
 0x5cf   :  { %9853 = vmatpush.msra.mxu1 %v9852_v38  ;;  %9945 = vmatpush.msra.mxu2 %v17029_v55  ;;  %v17173_v49 = vpop.f32.mrf.mxu2  ;;  %v11650_v38 = vld [vmem:[%s18778_s5 + $0x400] sm:$0xff]  ;;  %v9875_v32 = vsub.f32 %v17129_v56, %v19638_v57  ;;  %v17201_v57 = vsub.f32 %v11652_v13, %v17171_v23 }
 0x5d0   :  { %19636 = vst [vmem:[#allocation198_spill] sm:$0xff] %v17173_v49  ;;  %10007 = vmatpush.msra.mxu3 %v16980_v39  ;;  %9758 = vmatpush.msra.mxu0 %v16968_v8  ;;  %v17183_v28 = vpop.f32.mrf.mxu0  ;;  %v17203_v49 = vand.u32 4294901760, %v11650_v38  ;;  %v17208_v12 = vpop.f32.mrf.mxu1 }
 0x5d1   :  { %19637 = vst [vmem:[#allocation199_spill] sm:$0xff] %v17183_v28  ;;  %9672 = vmatmul.f32.gmra.mxu3 %v19595_v46  ;;  %9859 = vmatpush.msra.mxu1 %v9858_v43  ;;  %v19640_v43 = vand.u32 4294901760, %v17147_v41  ;;  %v9876_v10 = vand.u32 4294901760, %v9875_v32  ;;  %v9893_v32 = vsub.f32 %v17178_v9, %v19645_v40  ;;  %v11674_v46 = vld [vmem:[%s18778_s5 + $0x4c0] sm:$0xff] }
 0x5d2   :  { %9948 = vmatpush.msra.mxu2 %v17055_v44  ;;  %10009 = vmatpush.msra.mxu3 %v16998_v4  ;;  %v17194_v54 = vpop.f32.mrf.mxu3  ;;  %19641 = vst [vmem:[#allocation201_spill] sm:$0xff] %v17208_v12 }
 0x5d3   :  { %19639 = vst [vmem:[#allocation200_spill] sm:$0xff] %v17194_v54  ;;  %9760 = vmatpush.msra.mxu0 %v16980_v39  ;;  %9865 = vmatpush.msra.mxu1 %v9864_v17  ;;  %v9881_v28 = vsub.f32 %v17147_v41, %v19640_v43  ;;  %v19642_v54 = vld [vmem:[#allocation76_spill] sm:$0xff]  ;;  %v19643_v17 = vld [vmem:[#allocation81_spill] sm:$0xff]  ;;  %v19644_v43 = vand.u32 4294901760, %v17159_v0 }
 0x5d4   :  { %9951 = vmatpush.msra.mxu2 %v17074_v1  ;;  %10011 = vmatpush.msra.mxu3 %v17022_v27 }
 0x5d5   :  { %9483 = vmatmul.f32.gmra.mxu0 %v19642_v54  ;;  %9544 = vmatmul.f32.gmra.mxu1 %v19643_v17  ;;  %v9887_v13 = vsub.f32 %v17159_v0, %v19644_v43  ;;  %v9882_v30 = vand.u32 4294901760, %v9881_v28  ;;  %v17223_v17 = vsub.f32 %v11650_v38, %v17203_v49  ;;  %v11681_v28 = vld [vmem:[%s18778_s5 + $0x4f8] sm:$0xff]  ;;  %v11680_v43 = vld [vmem:[%s18778_s5 + $0x4f0] sm:$0xff] }
 0x5d6   :  { %9762 = vmatpush.msra.mxu0 %v16998_v4  ;;  %9871 = vmatpush.msra.mxu1 %v9870_v24  ;;  %v17251_v54 = vand.u32 4294901760, %v11681_v28  ;;  %v17261_v40 = vand.u32 4294901760, %v11680_v43 }
 0x5d7   :  { %9954 = vmatpush.msra.mxu2 %v17087_v20  ;;  %10013 = vmatpush.msra.mxu3 %v17042_v19  ;;  %v9888_v24 = vand.u32 4294901760, %v9887_v13  ;;  %v19654_v42 = vand.u32 4294901760, %v17223_v17 }
 0x5d8   :  { %9627 = vmatmul.f32.gmra.mxu2 %v19605_v45  ;;  %9764 = vmatpush.msra.mxu0 %v17022_v27  ;;  %v17275_v18 = vsub.f32 %v11681_v28, %v17251_v54 }
 0x5d9   :  { %9877 = vmatpush.msra.mxu1 %v9876_v10  ;;  %9957 = vmatpush.msra.mxu2 %v17106_v11  ;;  %v17235_v38 = vpop.f32.mrf.mxu2  ;;  %v19648_v10 = vand.u32 4294901760, %v17201_v57 }
 0x5da   :  { %19646 = vst [vmem:[#allocation202_spill] sm:$0xff] %v17235_v38  ;;  %10015 = vmatpush.msra.mxu3 %v17057_v5  ;;  %9766 = vmatpush.msra.mxu0 %v17042_v19  ;;  %v17239_v12 = vpop.f32.mrf.mxu0  ;;  %v9894_v38 = vand.u32 4294901760, %v9893_v32  ;;  %v11679_v32 = vld [vmem:[%s18778_s5 + $0x4e8] sm:$0xff]  ;;  %v17266_v3 = vpop.f32.mrf.mxu1 }
 0x5db   :  { %19647 = vst [vmem:[#allocation203_spill] sm:$0xff] %v17239_v12  ;;  %9676 = vmatmul.f32.gmra.mxu3 %v19605_v45  ;;  %9883 = vmatpush.msra.mxu1 %v9882_v30  ;;  %v9899_v13 = vsub.f32 %v17201_v57, %v19648_v10  ;;  %v19650_v30 = vand.u32 4294901760, %v17216_v53  ;;  %v17279_v45 = vand.u32 4294901760, %v11679_v32 }
 0x5dc   :  { %9960 = vmatpush.msra.mxu2 %v17129_v56  ;;  %10017 = vmatpush.msra.mxu3 %v17079_v35  ;;  %v17253_v12 = vpop.f32.mrf.mxu3  ;;  %19651 = vst [vmem:[#allocation205_spill] sm:$0xff] %v17266_v3 }
 0x5dd   :  { %19649 = vst [vmem:[#allocation204_spill] sm:$0xff] %v17253_v12  ;;  %9768 = vmatpush.msra.mxu0 %v17057_v5  ;;  %9889 = vmatpush.msra.mxu1 %v9888_v24  ;;  %v9905_v10 = vsub.f32 %v17216_v53, %v19650_v30  ;;  %v19652_v12 = vld [vmem:[#allocation80_spill] sm:$0xff]  ;;  %v9900_v24 = vand.u32 4294901760, %v9899_v13  ;;  %v9911_v30 = vsub.f32 %v17223_v17, %v19654_v42  ;;  %v11678_v13 = vld [vmem:[%s18778_s5 + $0x4e0] sm:$0xff] }
 0x5de   :  { %9963 = vmatpush.msra.mxu2 %v17147_v41  ;;  %10019 = vmatpush.msra.mxu3 %v17099_v2  ;;  %v17287_v42 = vsub.f32 %v11680_v43, %v17261_v40 }
 0x5df   :  { %9488 = vmatmul.f32.gmra.mxu0 %v19652_v12  ;;  %9550 = vmatmul.f32.gmra.mxu1 %v19653_v37  ;;  %v9906_v3 = vand.u32 4294901760, %v9905_v10  ;;  %v9912_v28 = vand.u32 4294901760, %v9911_v30  ;;  %v17298_v12 = vand.u32 4294901760, %v11678_v13  ;;  %v11676_v30 = vld [vmem:[%s18778_s5 + $0x4d0] sm:$0xff]  ;;  %v11675_v37 = vld [vmem:[%s18778_s5 + $0x4c8] sm:$0xff] }
 0x5e0   :  { %9770 = vmatpush.msra.mxu0 %v17079_v35  ;;  %9895 = vmatpush.msra.mxu1 %v9894_v38  ;;  %v11677_v38 = vld [vmem:[%s18778_s5 + $0x4d8] sm:$0xff] }
 0x5e1   :  { %9966 = vmatpush.msra.mxu2 %v17159_v0  ;;  %10021 = vmatpush.msra.mxu3 %v17118_v25 }
 0x5e2   :  { %9631 = vmatmul.f32.gmra.mxu2 %v19616_v48  ;;  %9772 = vmatpush.msra.mxu0 %v17099_v2 }
 0x5e3   :  { %9901 = vmatpush.msra.mxu1 %v9900_v24  ;;  %9969 = vmatpush.msra.mxu2 %v17178_v9  ;;  %v17293_v10 = vpop.f32.mrf.mxu2  ;;  %v17304_v24 = vsub.f32 %v11679_v32, %v17279_v45 }
 0x5e4   :  { %19655 = vst [vmem:[#allocation206_spill] sm:$0xff] %v17293_v10  ;;  %10023 = vmatpush.msra.mxu3 %v17131_v14  ;;  %9774 = vmatpush.msra.mxu0 %v17118_v25  ;;  %v17300_v43 = vpop.f32.mrf.mxu0  ;;  %v17312_v10 = vand.u32 4294901760, %v11677_v38 }
 0x5e5   :  { %19656 = vst [vmem:[#allocation207_spill] sm:$0xff] %v17300_v43  ;;  %9680 = vmatmul.f32.gmra.mxu3 %v19616_v48  ;;  %9907 = vmatpush.msra.mxu1 %v9906_v3  ;;  %v19658_v3 = vand.u32 4294901760, %v17275_v18  ;;  %v17323_v43 = vsub.f32 %v11678_v13, %v17298_v12  ;;  %v17325_v48 = vand.u32 4294901760, %v11676_v30  ;;  %v19661_v13 = vand.u32 4294901760, %v17287_v42 }
 0x5e6   :  { %9972 = vmatpush.msra.mxu2 %v17201_v57  ;;  %10025 = vmatpush.msra.mxu3 %v17150_v21  ;;  %v17314_v16 = vpop.f32.mrf.mxu3  ;;  %v17341_v51 = vsub.f32 %v11677_v38, %v17312_v10 }
 0x5e7   :  { %19657 = vst [vmem:[#allocation208_spill] sm:$0xff] %v17314_v16  ;;  %9776 = vmatpush.msra.mxu0 %v17131_v14  ;;  %9913 = vmatpush.msra.mxu1 %v9912_v28  ;;  %v10255_v32 = vsub.f32 %v17275_v18, %v19658_v3  ;;  %v17330_v16 = vpop.f32.mrf.mxu1  ;;  %v19660_v28 = vld [vmem:[#allocation86_spill] sm:$0xff]  ;;  %v10261_v3 = vsub.f32 %v17287_v42, %v19661_v13  ;;  %v19666_v13 = vld [vmem:[#allocation20_spill] sm:$0xff] }
 0x5e8   :  { %9975 = vmatpush.msra.mxu2 %v17216_v53  ;;  %10027 = vmatpush.msra.mxu3 %v17171_v23  ;;  %19659 = vst [vmem:[#allocation209_spill] sm:$0xff] %v17330_v16  ;;  %v17345_v16 = vand.u32 4294901760, %v11675_v37  ;;  %v17354_v38 = vsub.f32 %v11676_v30, %v17325_v48 }
 0x5e9   :  { %9493 = vmatmul.f32.gmra.mxu0 %v19660_v28  ;;  %9915 = vmatmul.f32.vlgmr.msra.gmra.mxu1 %v19382_v60  ;;  %v19662_v28 = vld [vmem:[#allocation42_spill] sm:$0xff]  ;;  %v10256_v26 = vand.u32 4294901760, %v10255_v32  ;;  %v10262_v30 = vand.u32 4294901760, %v10261_v3  ;;  %v19667_v3 = vand.u32 4294901760, %v17323_v43 }
 0x5ea   :  { %9778 = vmatpush.msra.mxu0 %v17150_v21  ;;  %9978 = vmatpush.msra.mxu2 %v17223_v17 }
 0x5eb   :  { %10029 = vmatpush.msra.mxu3 %v17190_v29  ;;  %10139 = vmatpush.msrb.mxu1 %v16942_v36  ;;  %v19663_v36 = vand.u32 4294901760, %v17304_v24  ;;  %v10273_v32 = vsub.f32 %v17323_v43, %v19667_v3 }
 0x5ec   :  { %9780 = vmatpush.msra.mxu0 %v17171_v23  ;;  %9981 = vmatmul.f32.vlgmr.msra.gmra.mxu2 %v19662_v28  ;;  %v17369_v28 = vand.u32 4294901760, %v11674_v46 }
 0x5ed   :  { %10031 = vmatpush.msra.mxu3 %v17203_v49  ;;  %10141 = vmatpush.msrb.mxu1 %v16952_v59  ;;  %v10267_v50 = vsub.f32 %v17304_v24, %v19663_v36  ;;  %v17364_v58 = vpop.f32.mrf.mxu2  ;;  %v17376_v36 = vsub.f32 %v11675_v37, %v17345_v16 }
 0x5ee   :  { %19664 = vst [vmem:[#allocation42_spill] sm:$0xff] %v17364_v58  ;;  %10188 = vmatpush.msrb.mxu2 %v17251_v54  ;;  %9782 = vmatpush.msra.mxu0 %v17190_v29  ;;  %v17371_v59 = vpop.f32.mrf.mxu0  ;;  %v11672_v58 = vld [vmem:[%s18778_s5 + $0x4b0] sm:$0xff]  ;;  %v17397_v3 = vsub.f32 %v11674_v46, %v17369_v28  ;;  %v10274_v46 = vand.u32 4294901760, %v10273_v32 }
 0x5ef   :  { %19665 = vst [vmem:[#allocation210_spill] sm:$0xff] %v17371_v59  ;;  %10035 = vmatmul.f32.vlgmr.msra.gmra.mxu3 %v19666_v13  ;;  %10143 = vmatpush.msrb.mxu1 %v16968_v8  ;;  %v10268_v8 = vand.u32 4294901760, %v10267_v50  ;;  %v17399_v59 = vand.u32 4294901760, %v11672_v58  ;;  %v17404_v6 = vpop.f32.mrf.mxu1  ;;  %v19672_v50 = vld [vmem:[#allocation23_spill] sm:$0xff] }
 0x5f0   :  { %10190 = vmatpush.msrb.mxu2 %v17261_v40  ;;  %10257 = vmatpush.msrb.mxu3 %v10256_v26  ;;  %v17388_v13 = vpop.f32.mrf.mxu3  ;;  %v19669_v26 = vand.u32 4294901760, %v17341_v51  ;;  %19670 = vst [vmem:[#allocation211_spill] sm:$0xff] %v17404_v6  ;;  %v19680_v6 = vld [vmem:[#allocation11_spill] sm:$0xff] }
 0x5f1   :  { %19668 = vst [vmem:[#allocation20_spill] sm:$0xff] %v17388_v13  ;;  %9784 = vmatpush.msra.mxu0 %v17203_v49  ;;  %10145 = vmatpush.msrb.mxu1 %v16980_v39  ;;  %v11671_v13 = vld [vmem:[%s18778_s5 + $0x4a8] sm:$0xff]  ;;  %v19671_v39 = vld [vmem:[#allocation13_spill] sm:$0xff]  ;;  %v17429_v63 = vsub.f32 %v11672_v58, %v17399_v59 }
 0x5f2   :  { %10192 = vmatpush.msrb.mxu2 %v17279_v45  ;;  %10263 = vmatpush.msrb.mxu3 %v10262_v30  ;;  %v10279_v37 = vsub.f32 %v17341_v51, %v19669_v26  ;;  %v19023_v30 = vand.u32 4294901760, %v17376_v36  ;;  %v19674_v26 = vand.u32 4294901760, %v17354_v38 }
 0x5f3   :  { %9790 = vmatmul.f32.vlgmr.msra.gmra.mxu0 %v19671_v39  ;;  %9919 = vmatmul.f32.gmra.mxu1 %v19672_v50  ;;  %v17419_v39 = vand.u32 4294901760, %v11671_v13 }
 0x5f4   :  { %10060 = vmatpush.msrb.mxu0 %v19673_v7  ;;  %10147 = vmatpush.msrb.mxu1 %v16998_v4  ;;  %v10285_v62 = vsub.f32 %v17354_v38, %v19674_v26  ;;  %v19675_v7 = vld [vmem:[#allocation26_spill] sm:$0xff]  ;;  %v19676_v4 = vand.u32 4294901760, %v16978_v15  ;;  %v10280_v32 = vand.u32 4294901760, %v10279_v37  ;;  %v19678_v37 = vand.u32 4294901760, %v16994_v52 }
 0x5f5   :  { %10194 = vmatpush.msrb.mxu2 %v17298_v12  ;;  %10269 = vmatpush.msrb.mxu3 %v10268_v8  ;;  %v10291_v8 = vsub.f32 %v17376_v36, %v19023_v30  ;;  %v17451_v30 = vsub.f32 %v11671_v13, %v17419_v39 }
 0x5f6   :  { %9986 = vmatmul.f32.gmra.mxu2 %v19675_v7  ;;  %10064 = vmatpush.msrb.mxu0 %v19676_v4  ;;  %v11669_v7 = vld [vmem:[%s18778_s5 + $0x498] sm:$0xff]  ;;  %v10286_v58 = vand.u32 4294901760, %v10285_v62  ;;  %v19681_v62 = vand.u32 4294901760, %v17397_v3 }
 0x5f7   :  { %10149 = vmatpush.msrb.mxu1 %v17022_v27  ;;  %10196 = vmatpush.msrb.mxu2 %v17312_v10  ;;  %v17439_v15 = vpop.f32.mrf.mxu2  ;;  %v17444_v27 = vand.u32 4294901760, %v11670_v22  ;;  %v17461_v4 = vand.u32 4294901760, %v11669_v7  ;;  %v10292_v13 = vand.u32 4294901760, %v10291_v8  ;;  %v19687_v8 = vld [vmem:[#allocation21_spill] sm:$0xff] }
 0x5f8   :  { %19677 = vst [vmem:[#allocation13_spill] sm:$0xff] %v17439_v15  ;;  %10275 = vmatpush.msrb.mxu3 %v10274_v46  ;;  %10068 = vmatpush.msrb.mxu0 %v19678_v37  ;;  %v17446_v26 = vpop.f32.mrf.mxu0  ;;  %v11668_v46 = vld [vmem:[%s18778_s5 + $0x490] sm:$0xff]  ;;  %v10297_v52 = vsub.f32 %v17397_v3, %v19681_v62 }
 0x5f9   :  { %19679 = vst [vmem:[#allocation23_spill] sm:$0xff] %v17446_v26  ;;  %10041 = vmatmul.f32.gmra.mxu3 %v19680_v6  ;;  %10151 = vmatpush.msrb.mxu1 %v17042_v19  ;;  %v19683_v19 = vand.u32 4294901760, %v17008_v47  ;;  %v17473_v62 = vsub.f32 %v11670_v22, %v17444_v27  ;;  %v17475_v37 = vand.u32 4294901760, %v11668_v46  ;;  %v11667_v47 = vld [vmem:[%s18778_s5 + $0x488] sm:$0xff]  ;;  %v17492_v34 = vsub.f32 %v11669_v7, %v17461_v4 }
 0x5fa   :  { %10198 = vmatpush.msrb.mxu2 %v17325_v48  ;;  %10281 = vmatpush.msrb.mxu3 %v10280_v32  ;;  %v17463_v6 = vpop.f32.mrf.mxu3  ;;  %v19684_v32 = vand.u32 4294901760, %v17416_v33  ;;  %v10298_v22 = vand.u32 4294901760, %v10297_v52 }
 0x5fb   :  { %19682 = vst [vmem:[#allocation26_spill] sm:$0xff] %v17463_v6  ;;  %10072 = vmatpush.msrb.mxu0 %v19683_v19  ;;  %10153 = vmatpush.msrb.mxu1 %v17057_v5  ;;  %v17480_v19 = vpop.f32.mrf.mxu1  ;;  %v19686_v5 = vld [vmem:[#allocation27_spill] sm:$0xff]  ;;  %v19688_v6 = vand.u32 4294901760, %v17029_v55  ;;  %v19690_v55 = vld [vmem:[#allocation22_spill] sm:$0xff]  ;;  %v17505_v7 = vsub.f32 %v11668_v46, %v17475_v37  ;;  %v19025_v46 = vand.u32 4294901760, %v17492_v34 }
 0x5fc   :  { %10200 = vmatpush.msrb.mxu2 %v17345_v16  ;;  %10287 = vmatpush.msrb.mxu3 %v10286_v58  ;;  %v10303_v15 = vsub.f32 %v17416_v33, %v19684_v32  ;;  %19685 = vst [vmem:[#allocation11_spill] sm:$0xff] %v17480_v19  ;;  %v19689_v32 = vand.u32 4294901760, %v17429_v63  ;;  %v17498_v58 = vand.u32 4294901760, %v11667_v47 }
 0x5fd   :  { %9798 = vmatmul.f32.gmra.mxu0 %v19686_v5  ;;  %9923 = vmatmul.f32.gmra.mxu1 %v19687_v8  ;;  %v11666_v5 = vld [vmem:[%s18778_s5 + $0x480] sm:$0xff] }
 0x5fe   :  { %10076 = vmatpush.msrb.mxu0 %v19688_v6  ;;  %10155 = vmatpush.msrb.mxu1 %v17079_v35  ;;  %v10309_v26 = vsub.f32 %v17429_v63, %v19689_v32  ;;  %v19691_v35 = vand.u32 4294901760, %v17055_v44  ;;  %v10304_v52 = vand.u32 4294901760, %v10303_v15  ;;  %v19692_v32 = vand.u32 4294901760, %v17451_v30 }
 0x5ff   :  { %10202 = vmatpush.msrb.mxu2 %v17369_v28  ;;  %10293 = vmatpush.msrb.mxu3 %v10292_v13  ;;  %v17512_v19 = vand.u32 4294901760, %v11666_v5  ;;  %v19694_v44 = vand.u32 4294901760, %v17074_v1  ;;  %v17524_v6 = vsub.f32 %v11667_v47, %v17498_v58 }
 0x600   :  { %9991 = vmatmul.f32.gmra.mxu2 %v19690_v55  ;;  %10080 = vmatpush.msrb.mxu0 %v19691_v35  ;;  %v10315_v13 = vsub.f32 %v17451_v30, %v19692_v32  ;;  %v10310_v15 = vand.u32 4294901760, %v10309_v26  ;;  %v19702_v26 = vld [vmem:[#allocation25_spill] sm:$0xff] }
 0x601   :  { %10157 = vmatpush.msrb.mxu1 %v17099_v2  ;;  %10204 = vmatpush.msrb.mxu2 %v17386_v31  ;;  %v17514_v55 = vpop.f32.mrf.mxu2  ;;  %v19696_v2 = vld [vmem:[#allocation29_spill] sm:$0xff]  ;;  %v17537_v47 = vsub.f32 %v11666_v5, %v17512_v19 }
 0x602   :  { %19693 = vst [vmem:[#allocation27_spill] sm:$0xff] %v17514_v55  ;;  %10299 = vmatpush.msrb.mxu3 %v10298_v22  ;;  %10084 = vmatpush.msrb.mxu0 %v19694_v44  ;;  %v17519_v35 = vpop.f32.mrf.mxu0  ;;  %v19697_v22 = vand.u32 4294901760, %v17473_v62  ;;  %v19699_v44 = vand.u32 4294901760, %v17087_v20 }
 0x603   :  { %19695 = vst [vmem:[#allocation21_spill] sm:$0xff] %v17519_v35  ;;  %10047 = vmatmul.f32.gmra.mxu3 %v19696_v2  ;;  %10159 = vmatpush.msrb.mxu1 %v17118_v25  ;;  %v10316_v25 = vand.u32 4294901760, %v10315_v13  ;;  %v17543_v2 = vpop.f32.mrf.mxu1  ;;  %v19704_v13 = vand.u32 4294901760, %v17505_v7 }
 0x604   :  { %10206 = vmatpush.msrb.mxu2 %v17399_v59  ;;  %10305 = vmatpush.msrb.mxu3 %v10304_v52  ;;  %v10321_v1 = vsub.f32 %v17473_v62, %v19697_v22  ;;  %v17531_v32 = vpop.f32.mrf.mxu3  ;;  %v10327_v52 = vsub.f32 %v17492_v34, %v19025_v46  ;;  %19700 = vst [vmem:[#allocation29_spill] sm:$0xff] %v17543_v2  ;;  %v19701_v22 = vld [vmem:[#allocation12_spill] sm:$0xff]  ;;  %v19706_v46 = vand.u32 4294901760, %v17129_v56 }
 0x605   :  { %19698 = vst [vmem:[#allocation22_spill] sm:$0xff] %v17531_v32  ;;  %10088 = vmatpush.msrb.mxu0 %v19699_v44  ;;  %10161 = vmatpush.msrb.mxu1 %v17131_v14  ;;  %v19703_v14 = vand.u32 4294901760, %v17106_v11  ;;  %v19029_v44 = vand.u32 4294901760, %v17537_v47  ;;  %v19711_v56 = vld [vmem:[#allocation32_spill] sm:$0xff] }
 0x606   :  { %10208 = vmatpush.msrb.mxu2 %v17419_v39  ;;  %10311 = vmatpush.msrb.mxu3 %v10310_v15  ;;  %v10322_v5 = vand.u32 4294901760, %v10321_v1  ;;  %v10333_v15 = vsub.f32 %v17505_v7, %v19704_v13  ;;  %v10328_v20 = vand.u32 4294901760, %v10327_v52  ;;  %v19713_v52 = vand.u32 4294901760, %v17159_v0  ;;  %v19718_v0 = vld [vmem:[#allocation15_spill] sm:$0xff] }
 0x607   :  { %9806 = vmatmul.f32.gmra.mxu0 %v19701_v22  ;;  %9927 = vmatmul.f32.gmra.mxu1 %v19702_v26  ;;  %v19705_v22 = vld [vmem:[#allocation28_spill] sm:$0xff] }
 0x608   :  { %10092 = vmatpush.msrb.mxu0 %v19703_v14  ;;  %10163 = vmatpush.msrb.mxu1 %v17150_v21  ;;  %v19707_v21 = vand.u32 4294901760, %v17524_v6  ;;  %v10334_v14 = vand.u32 4294901760, %v10333_v15 }
 0x609   :  { %10210 = vmatpush.msrb.mxu2 %v17444_v27  ;;  %10317 = vmatpush.msrb.mxu3 %v10316_v25  ;;  %v19709_v25 = vand.u32 4294901760, %v17147_v41 }
 0x60a   :  { %9996 = vmatmul.f32.gmra.mxu2 %v19705_v22  ;;  %10096 = vmatpush.msrb.mxu0 %v19706_v46  ;;  %v10339_v11 = vsub.f32 %v17524_v6, %v19707_v21  ;;  %v19720_v21 = vand.u32 4294901760, %v17275_v18 }
 0x60b   :  { %10165 = vmatpush.msrb.mxu1 %v17171_v23  ;;  %10212 = vmatpush.msrb.mxu2 %v17461_v4  ;;  %v17564_v1 = vpop.f32.mrf.mxu2  ;;  %v10345_v23 = vsub.f32 %v17537_v47, %v19029_v44 }
 0x60c   :  { %19708 = vst [vmem:[#allocation12_spill] sm:$0xff] %v17564_v1  ;;  %10323 = vmatpush.msrb.mxu3 %v10322_v5  ;;  %10100 = vmatpush.msrb.mxu0 %v19709_v25  ;;  %v17568_v13 = vpop.f32.mrf.mxu0  ;;  %v10340_v41 = vand.u32 4294901760, %v10339_v11  ;;  %v17582_v5 = vpop.f32.mrf.mxu1  ;;  %v19723_v25 = vld [vmem:[#allocation30_spill] sm:$0xff] }
 0x60d   :  { %19710 = vst [vmem:[#allocation25_spill] sm:$0xff] %v17568_v13  ;;  %10053 = vmatmul.f32.gmra.mxu3 %v19711_v56  ;;  %10167 = vmatpush.msrb.mxu1 %v17190_v29  ;;  %v19715_v29 = vld [vmem:[#allocation35_spill] sm:$0xff]  ;;  %v10346_v15 = vand.u32 4294901760, %v10345_v23  ;;  %v19726_v56 = vand.u32 4294901760, %v17223_v17 }
 0x60e   :  { %10214 = vmatpush.msrb.mxu2 %v17475_v37  ;;  %10329 = vmatpush.msrb.mxu3 %v10328_v20  ;;  %v17576_v46 = vpop.f32.mrf.mxu3  ;;  %19714 = vst [vmem:[#allocation32_spill] sm:$0xff] %v17582_v5  ;;  %v19716_v20 = vand.u32 4294901760, %v17178_v9  ;;  %v19721_v9 = vand.u32 4294901760, %v17216_v53  ;;  %v19727_v53 = vand.u32 4294901760, %v17304_v24  ;;  %v19730_v17 = vld [vmem:[#allocation7_spill] sm:$0xff]  ;;  %v11705_v5 = vld [vmem:[%s18778_s5 + $0x5b8] sm:$0xff] }
 0x60f   :  { %19712 = vst [vmem:[#allocation28_spill] sm:$0xff] %v17576_v46  ;;  %10104 = vmatpush.msrb.mxu0 %v19713_v52  ;;  %10169 = vmatpush.msrb.mxu1 %v17203_v49  ;;  %v19717_v49 = vand.u32 4294901760, %v17201_v57  ;;  %v19724_v57 = vand.u32 4294901760, %v17287_v42  ;;  %v19734_v52 = vld [vmem:[#allocation14_spill] sm:$0xff]  ;;  %v18106_v32 = vand.u32 4294901760, %v11705_v5 }
 0x610   :  { %10216 = vmatpush.msrb.mxu2 %v17498_v58  ;;  %10335 = vmatpush.msrb.mxu3 %v10334_v14 }
 0x611   :  { %9814 = vmatmul.f32.gmra.mxu0 %v19715_v29  ;;  %10171 = vmatmul.f32.vlgmr.msrb.gmra.mxu1 %v19382_v60  ;;  %v19740_v29 = vld [vmem:[#allocation38_spill] sm:$0xff]  ;;  %v18134_v55 = vsub.f32 %v11705_v5, %v18106_v32 }
 0x612   :  { %10108 = vmatpush.msrb.mxu0 %v19716_v20  ;;  %10218 = vmatpush.msrb.mxu2 %v17512_v19 }
 0x613   :  { %10341 = vmatpush.msrb.mxu3 %v10340_v41  ;;  %10435 = vmatpush.msra.mxu1 %v17251_v54 }
 0x614   :  { %10112 = vmatpush.msrb.mxu0 %v19717_v49  ;;  %10224 = vmatmul.f32.vlgmr.msrb.gmra.mxu2 %v19718_v0  ;;  %v19744_v49 = vld [vmem:[#allocation44_spill] sm:$0xff] }
 0x615   :  { %10347 = vmatpush.msrb.mxu3 %v10346_v15  ;;  %10437 = vmatpush.msra.mxu1 %v17261_v40  ;;  %v17594_v22 = vpop.f32.mrf.mxu2 }
 0x616   :  { %19719 = vst [vmem:[#allocation35_spill] sm:$0xff] %v17594_v22  ;;  %10494 = vmatpush.msra.mxu2 %v19720_v21  ;;  %10116 = vmatpush.msrb.mxu0 %v19721_v9  ;;  %v17600_v11 = vpop.f32.mrf.mxu0  ;;  %v17615_v23 = vpop.f32.mrf.mxu1  ;;  %v19745_v9 = vand.u32 4294901760, %v17429_v63  ;;  %v11706_v22 = vld [vmem:[%s18778_s5 + $0x5c0] sm:$0xff] }
 0x617   :  { %19722 = vst [vmem:[#allocation15_spill] sm:$0xff] %v17600_v11  ;;  %10349 = vmatmul.f32.vlgmr.msrb.gmra.mxu3 %v19723_v25  ;;  %10439 = vmatpush.msra.mxu1 %v17279_v45  ;;  %v19804_v11 = vld [vmem:[#allocation63_spill] sm:$0xff] }
 0x618   :  { %10498 = vmatpush.msra.mxu2 %v19724_v57  ;;  %10573 = vmatpush.msra.mxu3 %v17251_v54  ;;  %v17607_v14 = vpop.f32.mrf.mxu3  ;;  %19728 = vst [vmem:[#allocation212_spill] sm:$0xff] %v17615_v23  ;;  %v19729_v54 = vand.u32 4294901760, %v17323_v43 }
 0x619   :  { %19725 = vst [vmem:[#allocation30_spill] sm:$0xff] %v17607_v14  ;;  %10120 = vmatpush.msrb.mxu0 %v19726_v56  ;;  %10441 = vmatpush.msra.mxu1 %v17298_v12  ;;  %v11693_v56 = vld [vmem:[%s18778_s5 + $0x558] sm:$0xff]  ;;  %v19786_v14 = vld [vmem:[#allocation40_spill] sm:$0xff] }
 0x61a   :  { %10502 = vmatpush.msra.mxu2 %v19727_v53  ;;  %10575 = vmatpush.msra.mxu3 %v17261_v40  ;;  %v19731_v40 = vand.u32 4294901760, %v17341_v51  ;;  %v19747_v53 = vand.u32 4294901760, %v17451_v30  ;;  %19808 = vst [vmem:[#allocation63_spill] sm:$0xff] %v18134_v55 }
 0x61b   :  { %10122 = vmatmul.f32.vlgmr.msrb.gmra.mxu0 %v19382_v60  ;;  %10175 = vmatmul.f32.gmra.mxu1 %v19672_v50 }
 0x61c   :  { %10367 = vmatpush.msra.mxu0 %v17275_v18  ;;  %10443 = vmatpush.msra.mxu1 %v17312_v10 }
 0x61d   :  { %10506 = vmatpush.msra.mxu2 %v19729_v54  ;;  %10577 = vmatpush.msra.mxu3 %v17279_v45  ;;  %v19735_v45 = vand.u32 4294901760, %v17354_v38 }
 0x61e   :  { %10232 = vmatmul.f32.gmra.mxu2 %v19730_v17  ;;  %10370 = vmatpush.msra.mxu0 %v17287_v42  ;;  %v17718_v17 = vand.u32 4294901760, %v11693_v56 }
 0x61f   :  { %10445 = vmatpush.msra.mxu1 %v17325_v48  ;;  %10510 = vmatpush.msra.mxu2 %v19731_v40  ;;  %v17629_v60 = vpop.f32.mrf.mxu2  ;;  %v19749_v40 = vand.u32 4294901760, %v17473_v62 }
 0x620   :  { %19732 = vst [vmem:[#allocation7_spill] sm:$0xff] %v17629_v60  ;;  %10579 = vmatpush.msra.mxu3 %v17298_v12  ;;  %10373 = vmatpush.msra.mxu0 %v17304_v24  ;;  %v17633_v18 = vpop.f32.mrf.mxu0  ;;  %v19737_v12 = vand.u32 4294901760, %v17376_v36  ;;  %v11697_v24 = vld [vmem:[%s18778_s5 + $0x578] sm:$0xff]  ;;  %v17650_v41 = vpop.f32.mrf.mxu1 }
 0x621   :  { %19733 = vst [vmem:[#allocation213_spill] sm:$0xff] %v17633_v18  ;;  %10353 = vmatmul.f32.gmra.mxu3 %v19734_v52  ;;  %10447 = vmatpush.msra.mxu1 %v17345_v16  ;;  %v19812_v18 = vld [vmem:[#allocation16_spill] sm:$0xff] }
 0x622   :  { %10514 = vmatpush.msra.mxu2 %v19735_v45  ;;  %10581 = vmatpush.msra.mxu3 %v17312_v10  ;;  %v17640_v42 = vpop.f32.mrf.mxu3  ;;  %19738 = vst [vmem:[#allocation214_spill] sm:$0xff] %v17650_v41  ;;  %v11696_v10 = vld [vmem:[%s18778_s5 + $0x570] sm:$0xff] }
 0x623   :  { %19736 = vst [vmem:[#allocation14_spill] sm:$0xff] %v17640_v42  ;;  %10376 = vmatpush.msra.mxu0 %v17323_v43  ;;  %10449 = vmatpush.msra.mxu1 %v17369_v28  ;;  %v17662_v43 = vand.u32 4294901760, %v11697_v24  ;;  %v17672_v15 = vand.u32 4294901760, %v11696_v10 }
 0x624   :  { %10518 = vmatpush.msra.mxu2 %v19737_v12  ;;  %10583 = vmatpush.msra.mxu3 %v17325_v48  ;;  %v19739_v48 = vand.u32 4294901760, %v17397_v3  ;;  %v19750_v12 = vld [vmem:[#allocation48_spill] sm:$0xff] }
 0x625   :  { %10126 = vmatmul.f32.gmra.mxu0 %v19672_v50  ;;  %10179 = vmatmul.f32.gmra.mxu1 %v19687_v8  ;;  %v19741_v50 = vand.u32 4294901760, %v17416_v33  ;;  %v17686_v0 = vsub.f32 %v11697_v24, %v17662_v43  ;;  %v19751_v24 = vand.u32 4294901760, %v17492_v34 }
 0x626   :  { %10379 = vmatpush.msra.mxu0 %v17341_v51  ;;  %10451 = vmatpush.msra.mxu1 %v17386_v31  ;;  %v11695_v51 = vld [vmem:[%s18778_s5 + $0x568] sm:$0xff] }
 0x627   :  { %10522 = vmatpush.msra.mxu2 %v19739_v48  ;;  %10585 = vmatpush.msra.mxu3 %v17345_v16  ;;  %v11694_v16 = vld [vmem:[%s18778_s5 + $0x560] sm:$0xff]  ;;  %v17688_v21 = vand.u32 4294901760, %v11695_v51 }
 0x628   :  { %10240 = vmatmul.f32.gmra.mxu2 %v19740_v29  ;;  %10382 = vmatpush.msra.mxu0 %v17354_v38  ;;  %v17700_v57 = vand.u32 4294901760, %v11694_v16 }
 0x629   :  { %10453 = vmatpush.msra.mxu1 %v17399_v59  ;;  %10526 = vmatpush.msra.mxu2 %v19741_v50  ;;  %v17674_v20 = vpop.f32.mrf.mxu2  ;;  %v17714_v54 = vsub.f32 %v11695_v51, %v17688_v21  ;;  %v11690_v51 = vld [vmem:[%s18778_s5 + $0x540] sm:$0xff] }
 0x62a   :  { %19742 = vst [vmem:[#allocation38_spill] sm:$0xff] %v17674_v20  ;;  %10587 = vmatpush.msra.mxu3 %v17369_v28  ;;  %10385 = vmatpush.msra.mxu0 %v17376_v36  ;;  %v17681_v38 = vpop.f32.mrf.mxu0  ;;  %v17698_v36 = vsub.f32 %v11696_v10, %v17672_v15  ;;  %v17728_v45 = vsub.f32 %v11694_v16, %v17700_v57  ;;  %v19754_v16 = vld [vmem:[#allocation36_spill] sm:$0xff] }
 0x62b   :  { %19743 = vst [vmem:[#allocation215_spill] sm:$0xff] %v17681_v38  ;;  %10357 = vmatmul.f32.gmra.mxu3 %v19744_v49  ;;  %10455 = vmatpush.msra.mxu1 %v17419_v39  ;;  %v19027_v10 = vand.u32 4294901760, %v17714_v54 }
 0x62c   :  { %10530 = vmatpush.msra.mxu2 %v19745_v9  ;;  %10589 = vmatpush.msra.mxu3 %v17386_v31  ;;  %v17693_v28 = vpop.f32.mrf.mxu3  ;;  %v17708_v31 = vpop.f32.mrf.mxu1 }
 0x62d   :  { %19746 = vst [vmem:[#allocation44_spill] sm:$0xff] %v17693_v28  ;;  %10388 = vmatpush.msra.mxu0 %v17397_v3  ;;  %10457 = vmatpush.msra.mxu1 %v17444_v27  ;;  %v19028_v3 = vand.u32 4294901760, %v17686_v0 }
 0x62e   :  { %10534 = vmatpush.msra.mxu2 %v19747_v53  ;;  %10591 = vmatpush.msra.mxu3 %v17399_v59  ;;  %19748 = vst [vmem:[#allocation216_spill] sm:$0xff] %v17708_v31  ;;  %v11692_v59 = vld [vmem:[%s18778_s5 + $0x550] sm:$0xff] }
 0x62f   :  { %10130 = vmatmul.f32.gmra.mxu0 %v19687_v8  ;;  %10183 = vmatmul.f32.gmra.mxu1 %v19702_v26  ;;  %v19026_v8 = vand.u32 4294901760, %v17698_v36  ;;  %v17742_v48 = vand.u32 4294901760, %v11692_v59 }
 0x630   :  { %10391 = vmatpush.msra.mxu0 %v17416_v33  ;;  %10459 = vmatpush.msra.mxu1 %v17461_v4  ;;  %v11691_v33 = vld [vmem:[%s18778_s5 + $0x548] sm:$0xff] }
 0x631   :  { %10538 = vmatpush.msra.mxu2 %v19749_v40  ;;  %10593 = vmatpush.msra.mxu3 %v17419_v39  ;;  %v10689_v39 = vsub.f32 %v17686_v0, %v19028_v3  ;;  %v10695_v9 = vsub.f32 %v17698_v36, %v19026_v8  ;;  %v17777_v8 = vand.u32 4294901760, %v11690_v51 }
 0x632   :  { %10248 = vmatmul.f32.gmra.mxu2 %v19750_v12  ;;  %10394 = vmatpush.msra.mxu0 %v17429_v63  ;;  %v17749_v63 = vsub.f32 %v11693_v56, %v17718_v17  ;;  %v19755_v56 = vand.u32 4294901760, %v17505_v7  ;;  %v10701_v12 = vsub.f32 %v17714_v54, %v19027_v10  ;;  %v19759_v10 = vld [vmem:[#allocation33_spill] sm:$0xff] }
 0x633   :  { %10461 = vmatpush.msra.mxu1 %v17475_v37  ;;  %10542 = vmatpush.msra.mxu2 %v19751_v24  ;;  %v17744_v29 = vpop.f32.mrf.mxu2  ;;  %v10690_v40 = vand.u32 4294901760, %v10689_v39  ;;  %v17775_v24 = vsub.f32 %v11692_v59, %v17742_v48  ;;  %v10696_v59 = vand.u32 4294901760, %v10695_v9 }
 0x634   :  { %19752 = vst [vmem:[#allocation48_spill] sm:$0xff] %v17744_v29  ;;  %10595 = vmatpush.msra.mxu3 %v17444_v27  ;;  %10397 = vmatpush.msra.mxu0 %v17451_v30  ;;  %v17754_v50 = vpop.f32.mrf.mxu0  ;;  %v19031_v27 = vand.u32 4294901760, %v17728_v45  ;;  %v17762_v30 = vand.u32 4294901760, %v11691_v33  ;;  %v17786_v39 = vpop.f32.mrf.mxu1 }
 0x635   :  { %19753 = vst [vmem:[#allocation217_spill] sm:$0xff] %v17754_v50  ;;  %10361 = vmatmul.f32.gmra.mxu3 %v19754_v16  ;;  %10463 = vmatpush.msra.mxu1 %v17498_v58  ;;  %v19032_v9 = vand.u32 4294901760, %v17775_v24 }
 0x636   :  { %10546 = vmatpush.msra.mxu2 %v19755_v56  ;;  %10597 = vmatpush.msra.mxu3 %v17461_v4  ;;  %v17767_v53 = vpop.f32.mrf.mxu3  ;;  %v11689_v4 = vld [vmem:[%s18778_s5 + $0x538] sm:$0xff]  ;;  %v19757_v56 = vand.u32 4294901760, %v17524_v6  ;;  %19758 = vst [vmem:[#allocation218_spill] sm:$0xff] %v17786_v39  ;;  %v10707_v3 = vsub.f32 %v17728_v45, %v19031_v27  ;;  %v17794_v44 = vsub.f32 %v11691_v33, %v17762_v30 }
 0x637   :  { %19756 = vst [vmem:[#allocation36_spill] sm:$0xff] %v17767_v53  ;;  %10400 = vmatpush.msra.mxu0 %v17473_v62  ;;  %10465 = vmatpush.msra.mxu1 %v17512_v19  ;;  %v19030_v62 = vand.u32 4294901760, %v17749_v63  ;;  %v17807_v33 = vsub.f32 %v11690_v51, %v17777_v8 }
 0x638   :  { %10550 = vmatpush.msra.mxu2 %v19757_v56  ;;  %10599 = vmatpush.msra.mxu3 %v17475_v37  ;;  %v19760_v37 = vand.u32 4294901760, %v17537_v47  ;;  %v17799_v56 = vand.u32 4294901760, %v11689_v4 }
 0x639   :  { %10134 = vmatmul.f32.gmra.mxu0 %v19702_v26  ;;  %10469 = vmatmul.f32.vlgmr.msra.gmra.mxu1 %v19759_v10  ;;  %v11688_v26 = vld [vmem:[%s18778_s5 + $0x530] sm:$0xff]  ;;  %v10702_v10 = vand.u32 4294901760, %v10701_v12 }
 0x63a   :  { %10403 = vmatpush.msra.mxu0 %v17492_v34  ;;  %10554 = vmatpush.msra.mxu2 %v19760_v37  ;;  %v10713_v34 = vsub.f32 %v17749_v63, %v19030_v62  ;;  %v11687_v37 = vld [vmem:[%s18778_s5 + $0x528] sm:$0xff]  ;;  %v17819_v51 = vand.u32 4294901760, %v11688_v26  ;;  %v11686_v62 = vld [vmem:[%s18778_s5 + $0x520] sm:$0xff] }
 0x63b   :  { %10601 = vmatpush.msra.mxu3 %v17498_v58  ;;  %10691 = vmatpush.msrb.mxu1 %v10690_v40  ;;  %v10708_v58 = vand.u32 4294901760, %v10707_v3  ;;  %v19033_v40 = vand.u32 4294901760, %v17794_v44  ;;  %v10719_v3 = vsub.f32 %v17775_v24, %v19032_v9  ;;  %v17838_v27 = vand.u32 4294901760, %v11687_v37 }
 0x63c   :  { %10406 = vmatpush.msra.mxu0 %v17505_v7  ;;  %10556 = vmatmul.f32.vlgmr.msra.gmra.mxu2 %v19723_v25  ;;  %v17826_v7 = vsub.f32 %v11689_v4, %v17799_v56  ;;  %v17851_v9 = vand.u32 4294901760, %v11686_v62 }
 0x63d   :  { %10603 = vmatpush.msra.mxu3 %v17512_v19  ;;  %10697 = vmatpush.msrb.mxu1 %v10696_v59  ;;  %v17821_v12 = vpop.f32.mrf.mxu2  ;;  %v11685_v59 = vld [vmem:[%s18778_s5 + $0x518] sm:$0xff] }
 0x63e   :  { %19761 = vst [vmem:[#allocation33_spill] sm:$0xff] %v17821_v12  ;;  %10801 = vmatpush.msrb.mxu2 %v17686_v0  ;;  %10409 = vmatpush.msra.mxu0 %v17524_v6  ;;  %v17831_v19 = vpop.f32.mrf.mxu0  ;;  %v10714_v6 = vand.u32 4294901760, %v10713_v34  ;;  %v17859_v34 = vpop.f32.mrf.mxu1  ;;  %v17867_v12 = vsub.f32 %v11687_v37, %v17838_v27  ;;  %v17870_v29 = vand.u32 4294901760, %v11685_v59  ;;  %v19768_v37 = vand.u32 4294901760, %v17826_v7 }
 0x63f   :  { %19762 = vst [vmem:[#allocation219_spill] sm:$0xff] %v17831_v19  ;;  %10605 = vmatmul.f32.vlgmr.msra.gmra.mxu3 %v19723_v25  ;;  %10703 = vmatpush.msrb.mxu1 %v10702_v10  ;;  %v10725_v25 = vsub.f32 %v17794_v44, %v19033_v40  ;;  %v17849_v10 = vsub.f32 %v11688_v26, %v17819_v51  ;;  %v19766_v40 = vld [vmem:[#allocation43_spill] sm:$0xff]  ;;  %v10720_v26 = vand.u32 4294901760, %v10719_v3 }
 0x640   :  { %10804 = vmatpush.msrb.mxu2 %v17698_v36  ;;  %10869 = vmatpush.msrb.mxu3 %v17662_v43  ;;  %v17842_v4 = vpop.f32.mrf.mxu3  ;;  %19764 = vst [vmem:[#allocation221_spill] sm:$0xff] %v17859_v34 }
 0x641   :  { %19763 = vst [vmem:[#allocation220_spill] sm:$0xff] %v17842_v4  ;;  %10412 = vmatpush.msra.mxu0 %v17537_v47  ;;  %10709 = vmatpush.msrb.mxu1 %v10708_v58  ;;  %v19765_v58 = vld [vmem:[#allocation31_spill] sm:$0xff]  ;;  %v19767_v4 = vand.u32 4294901760, %v17807_v33  ;;  %v11684_v47 = vld [vmem:[%s18778_s5 + $0x510] sm:$0xff] }
 0x642   :  { %10807 = vmatpush.msrb.mxu2 %v17714_v54  ;;  %10871 = vmatpush.msrb.mxu3 %v17672_v15 }
 0x643   :  { %10415 = vmatmul.f32.vlgmr.msra.gmra.mxu0 %v19765_v58  ;;  %10475 = vmatmul.f32.gmra.mxu1 %v19766_v40  ;;  %v10731_v53 = vsub.f32 %v17807_v33, %v19767_v4  ;;  %v10726_v40 = vand.u32 4294901760, %v10725_v25  ;;  %v17879_v4 = vsub.f32 %v11686_v62, %v17851_v9  ;;  %v11683_v58 = vld [vmem:[%s18778_s5 + $0x508] sm:$0xff]  ;;  %v17891_v62 = vand.u32 4294901760, %v11684_v47 }
 0x644   :  { %10622 = vmatpush.msrb.mxu0 %v17662_v43  ;;  %10715 = vmatpush.msrb.mxu1 %v10714_v6  ;;  %v10737_v6 = vsub.f32 %v17826_v7, %v19768_v37  ;;  %v17898_v37 = vsub.f32 %v11685_v59, %v17870_v29  ;;  %v17910_v28 = vand.u32 4294901760, %v11683_v58 }
 0x645   :  { %10810 = vmatpush.msrb.mxu2 %v17728_v45  ;;  %10873 = vmatpush.msrb.mxu3 %v17688_v21  ;;  %v10732_v25 = vand.u32 4294901760, %v10731_v53  ;;  %v19771_v53 = vand.u32 4294901760, %v17849_v10 }
 0x646   :  { %10560 = vmatmul.f32.gmra.mxu2 %v19734_v52  ;;  %10624 = vmatpush.msrb.mxu0 %v17672_v15  ;;  %v10738_v59 = vand.u32 4294901760, %v10737_v6  ;;  %v17936_v20 = vsub.f32 %v11683_v58, %v17910_v28 }
 0x647   :  { %10721 = vmatpush.msrb.mxu1 %v10720_v26  ;;  %10813 = vmatpush.msrb.mxu2 %v17749_v63  ;;  %v17893_v39 = vpop.f32.mrf.mxu2  ;;  %v11682_v26 = vld [vmem:[%s18778_s5 + $0x500] sm:$0xff]  ;;  %v10743_v3 = vsub.f32 %v17849_v10, %v19771_v53  ;;  %v17921_v53 = vsub.f32 %v11684_v47, %v17891_v62 }
 0x648   :  { %19769 = vst [vmem:[#allocation31_spill] sm:$0xff] %v17893_v39  ;;  %10875 = vmatpush.msrb.mxu3 %v17700_v57  ;;  %10626 = vmatpush.msrb.mxu0 %v17688_v21  ;;  %v17903_v31 = vpop.f32.mrf.mxu0  ;;  %v17923_v39 = vand.u32 4294901760, %v11682_v26  ;;  %v17928_v19 = vpop.f32.mrf.mxu1 }
 0x649   :  { %19770 = vst [vmem:[#allocation43_spill] sm:$0xff] %v17903_v31  ;;  %10609 = vmatmul.f32.gmra.mxu3 %v19734_v52  ;;  %10727 = vmatpush.msrb.mxu1 %v10726_v40  ;;  %v19773_v52 = vand.u32 4294901760, %v17867_v12  ;;  %v10744_v50 = vand.u32 4294901760, %v10743_v3  ;;  %v19778_v3 = vand.u32 4294901760, %v17898_v37 }
 0x64a   :  { %10816 = vmatpush.msrb.mxu2 %v17775_v24  ;;  %10877 = vmatpush.msrb.mxu3 %v17718_v17  ;;  %v17914_v34 = vpop.f32.mrf.mxu3  ;;  %19774 = vst [vmem:[#allocation223_spill] sm:$0xff] %v17928_v19 }
 0x64b   :  { %19772 = vst [vmem:[#allocation222_spill] sm:$0xff] %v17914_v34  ;;  %10628 = vmatpush.msrb.mxu0 %v17700_v57  ;;  %10733 = vmatpush.msrb.mxu1 %v10732_v25  ;;  %v10749_v40 = vsub.f32 %v17867_v12, %v19773_v52  ;;  %v19775_v34 = vld [vmem:[#allocation34_spill] sm:$0xff]  ;;  %v19777_v52 = vand.u32 4294901760, %v17879_v4  ;;  %v10761_v58 = vsub.f32 %v17898_v37, %v19778_v3 }
 0x64c   :  { %10819 = vmatpush.msrb.mxu2 %v17794_v44  ;;  %10879 = vmatpush.msrb.mxu3 %v17742_v48  ;;  %v19776_v25 = vld [vmem:[#allocation46_spill] sm:$0xff] }
 0x64d   :  { %10420 = vmatmul.f32.gmra.mxu0 %v19775_v34  ;;  %10481 = vmatmul.f32.gmra.mxu1 %v19776_v25  ;;  %v10755_v47 = vsub.f32 %v17879_v4, %v19777_v52  ;;  %v10750_v6 = vand.u32 4294901760, %v10749_v40  ;;  %v17943_v25 = vsub.f32 %v11682_v26, %v17923_v39  ;;  %v11713_v40 = vld [vmem:[%s18778_s5 + $0x5f8] sm:$0xff]  ;;  %v11712_v52 = vld [vmem:[%s18778_s5 + $0x5f0] sm:$0xff] }
 0x64e   :  { %10630 = vmatpush.msrb.mxu0 %v17718_v17  ;;  %10739 = vmatpush.msrb.mxu1 %v10738_v59  ;;  %v17971_v19 = vand.u32 4294901760, %v11713_v40 }
 0x64f   :  { %10822 = vmatpush.msrb.mxu2 %v17807_v33  ;;  %10881 = vmatpush.msrb.mxu3 %v17762_v30  ;;  %v10756_v59 = vand.u32 4294901760, %v10755_v47  ;;  %v19787_v31 = vand.u32 4294901760, %v17943_v25 }
 0x650   :  { %10564 = vmatmul.f32.gmra.mxu2 %v19744_v49  ;;  %10632 = vmatpush.msrb.mxu0 %v17742_v48  ;;  %v17995_v46 = vsub.f32 %v11713_v40, %v17971_v19  ;;  %v11709_v40 = vld [vmem:[%s18778_s5 + $0x5d8] sm:$0xff] }
 0x651   :  { %10745 = vmatpush.msrb.mxu1 %v10744_v50  ;;  %10825 = vmatpush.msrb.mxu2 %v17826_v7  ;;  %v17955_v26 = vpop.f32.mrf.mxu2  ;;  %v19781_v50 = vand.u32 4294901760, %v17921_v53 }
 0x652   :  { %19779 = vst [vmem:[#allocation34_spill] sm:$0xff] %v17955_v26  ;;  %10883 = vmatpush.msrb.mxu3 %v17777_v8  ;;  %10634 = vmatpush.msrb.mxu0 %v17762_v30  ;;  %v17959_v34 = vpop.f32.mrf.mxu0  ;;  %v10762_v26 = vand.u32 4294901760, %v10761_v58  ;;  %v11711_v58 = vld [vmem:[%s18778_s5 + $0x5e8] sm:$0xff]  ;;  %v17986_v3 = vpop.f32.mrf.mxu1 }
 0x653   :  { %19780 = vst [vmem:[#allocation46_spill] sm:$0xff] %v17959_v34  ;;  %10613 = vmatmul.f32.gmra.mxu3 %v19744_v49  ;;  %10751 = vmatpush.msrb.mxu1 %v10750_v6  ;;  %v10767_v47 = vsub.f32 %v17921_v53, %v19781_v50  ;;  %v19783_v49 = vand.u32 4294901760, %v17936_v20  ;;  %v17981_v50 = vand.u32 4294901760, %v11712_v52  ;;  %v17999_v41 = vand.u32 4294901760, %v11711_v58 }
 0x654   :  { %10828 = vmatpush.msrb.mxu2 %v17849_v10  ;;  %10885 = vmatpush.msrb.mxu3 %v17799_v56  ;;  %v17973_v34 = vpop.f32.mrf.mxu3  ;;  %19784 = vst [vmem:[#allocation225_spill] sm:$0xff] %v17986_v3 }
 0x655   :  { %19782 = vst [vmem:[#allocation224_spill] sm:$0xff] %v17973_v34  ;;  %10636 = vmatpush.msrb.mxu0 %v17777_v8  ;;  %10757 = vmatpush.msrb.mxu1 %v10756_v59  ;;  %v10773_v6 = vsub.f32 %v17936_v20, %v19783_v49  ;;  %v19785_v34 = vld [vmem:[#allocation45_spill] sm:$0xff]  ;;  %v10768_v59 = vand.u32 4294901760, %v10767_v47  ;;  %v10779_v49 = vsub.f32 %v17943_v25, %v19787_v31  ;;  %v11707_v47 = vld [vmem:[%s18778_s5 + $0x5c8] sm:$0xff] }
 0x656   :  { %10831 = vmatpush.msrb.mxu2 %v17867_v12  ;;  %10887 = vmatpush.msrb.mxu3 %v17819_v51  ;;  %v18007_v31 = vsub.f32 %v11712_v52, %v17981_v50 }
 0x657   :  { %10425 = vmatmul.f32.gmra.mxu0 %v19785_v34  ;;  %10487 = vmatmul.f32.gmra.mxu1 %v19786_v14  ;;  %v10774_v3 = vand.u32 4294901760, %v10773_v6  ;;  %v11710_v14 = vld [vmem:[%s18778_s5 + $0x5e0] sm:$0xff]  ;;  %v10780_v34 = vand.u32 4294901760, %v10779_v49  ;;  %v11708_v49 = vld [vmem:[%s18778_s5 + $0x5d0] sm:$0xff] }
 0x658   :  { %10638 = vmatpush.msrb.mxu0 %v17799_v56  ;;  %10763 = vmatpush.msrb.mxu1 %v10762_v26  ;;  %v18018_v6 = vand.u32 4294901760, %v11710_v14 }
 0x659   :  { %10834 = vmatpush.msrb.mxu2 %v17879_v4  ;;  %10889 = vmatpush.msrb.mxu3 %v17838_v27 }
 0x65a   :  { %10568 = vmatmul.f32.gmra.mxu2 %v19754_v16  ;;  %10640 = vmatpush.msrb.mxu0 %v17819_v51 }
 0x65b   :  { %10769 = vmatpush.msrb.mxu1 %v10768_v59  ;;  %10837 = vmatpush.msrb.mxu2 %v17898_v37  ;;  %v18013_v26 = vpop.f32.mrf.mxu2  ;;  %v18024_v59 = vsub.f32 %v11711_v58, %v17999_v41  ;;  %v18043_v58 = vsub.f32 %v11710_v14, %v18018_v6  ;;  %v19794_v14 = vand.u32 4294901760, %v18007_v31 }
 0x65c   :  { %19788 = vst [vmem:[#allocation45_spill] sm:$0xff] %v18013_v26  ;;  %10891 = vmatpush.msrb.mxu3 %v17851_v9  ;;  %10642 = vmatpush.msrb.mxu0 %v17838_v27  ;;  %v18020_v52 = vpop.f32.mrf.mxu0  ;;  %v18032_v26 = vand.u32 4294901760, %v11709_v40 }
 0x65d   :  { %19789 = vst [vmem:[#allocation40_spill] sm:$0xff] %v18020_v52  ;;  %10617 = vmatmul.f32.gmra.mxu3 %v19754_v16  ;;  %10775 = vmatpush.msrb.mxu1 %v10774_v3  ;;  %v19791_v16 = vand.u32 4294901760, %v17995_v46  ;;  %v18045_v52 = vand.u32 4294901760, %v11708_v49 }
 0x65e   :  { %10840 = vmatpush.msrb.mxu2 %v17921_v53  ;;  %10893 = vmatpush.msrb.mxu3 %v17870_v29  ;;  %v18034_v42 = vpop.f32.mrf.mxu3  ;;  %v18061_v1 = vsub.f32 %v11709_v40, %v18032_v26 }
 0x65f   :  { %19790 = vst [vmem:[#allocation226_spill] sm:$0xff] %v18034_v42  ;;  %10644 = vmatpush.msrb.mxu0 %v17851_v9  ;;  %10781 = vmatpush.msrb.mxu1 %v10780_v34  ;;  %v11123_v3 = vsub.f32 %v17995_v46, %v19791_v16  ;;  %v18050_v42 = vpop.f32.mrf.mxu1  ;;  %v19793_v34 = vld [vmem:[#allocation37_spill] sm:$0xff]  ;;  %v11129_v16 = vsub.f32 %v18007_v31, %v19794_v14  ;;  %v19799_v14 = vld [vmem:[#allocation10_spill] sm:$0xff] }
 0x660   :  { %10843 = vmatpush.msrb.mxu2 %v17936_v20  ;;  %10895 = vmatpush.msrb.mxu3 %v17891_v62  ;;  %19792 = vst [vmem:[#allocation227_spill] sm:$0xff] %v18050_v42  ;;  %v19795_v42 = vld [vmem:[#allocation58_spill] sm:$0xff]  ;;  %v18074_v40 = vsub.f32 %v11708_v49, %v18045_v52 }
 0x661   :  { %10430 = vmatmul.f32.gmra.mxu0 %v19793_v34  ;;  %10783 = vmatmul.f32.vlgmr.msrb.gmra.mxu1 %v14968_v61  ;;  %v18065_v34 = vand.u32 4294901760, %v11707_v47  ;;  %v11124_v38 = vand.u32 4294901760, %v11123_v3  ;;  %v18089_v3 = vand.u32 4294901760, %v11706_v22 }
 0x662   :  { %10646 = vmatpush.msrb.mxu0 %v17870_v29  ;;  %10846 = vmatpush.msrb.mxu2 %v17943_v25 }
 0x663   :  { %10897 = vmatpush.msrb.mxu3 %v17910_v28  ;;  %11007 = vmatpush.msra.mxu1 %v17662_v43  ;;  %v19796_v43 = vand.u32 4294901760, %v18024_v59 }
 0x664   :  { %10648 = vmatpush.msrb.mxu0 %v17891_v62  ;;  %10849 = vmatmul.f32.vlgmr.msrb.gmra.mxu2 %v19795_v42  ;;  %v11130_v42 = vand.u32 4294901760, %v11129_v16  ;;  %v19801_v16 = vand.u32 4294901760, %v18043_v58 }
 0x665   :  { %10899 = vmatpush.msrb.mxu3 %v17923_v39  ;;  %11009 = vmatpush.msra.mxu1 %v17672_v15  ;;  %v11135_v60 = vsub.f32 %v18024_v59, %v19796_v43  ;;  %v18084_v2 = vpop.f32.mrf.mxu2  ;;  %v18096_v43 = vsub.f32 %v11707_v47, %v18065_v34 }
 0x666   :  { %19797 = vst [vmem:[#allocation37_spill] sm:$0xff] %v18084_v2  ;;  %11056 = vmatpush.msra.mxu2 %v17971_v19  ;;  %10650 = vmatpush.msrb.mxu0 %v17910_v28  ;;  %v18091_v15 = vpop.f32.mrf.mxu0  ;;  %v11704_v2 = vld [vmem:[%s18778_s5 + $0x5b0] sm:$0xff]  ;;  %v11141_v49 = vsub.f32 %v18043_v58, %v19801_v16  ;;  %v18117_v16 = vsub.f32 %v11706_v22, %v18089_v3 }
 0x667   :  { %19798 = vst [vmem:[#allocation58_spill] sm:$0xff] %v18091_v15  ;;  %10903 = vmatmul.f32.vlgmr.msrb.gmra.mxu3 %v19799_v14  ;;  %11011 = vmatpush.msra.mxu1 %v17688_v21  ;;  %v11136_v21 = vand.u32 4294901760, %v11135_v60  ;;  %v18119_v15 = vand.u32 4294901760, %v11704_v2  ;;  %v9916_v23 = vpop.f32.mrf.mxu1  ;;  %v19805_v60 = vld [vmem:[#allocation61_spill] sm:$0xff] }
 0x668   :  { %19800 = vst [vmem:[#allocation10_spill] sm:$0xff] %v18096_v43  ;;  %11058 = vmatpush.msra.mxu2 %v17981_v50  ;;  %11125 = vmatpush.msra.mxu3 %v11124_v38  ;;  %v18108_v14 = vpop.f32.mrf.mxu3  ;;  %v19803_v38 = vand.u32 4294901760, %v18061_v1  ;;  %v11142_v22 = vand.u32 4294901760, %v11141_v49 }
 0x669   :  { %19802 = vst [vmem:[#allocation228_spill] sm:$0xff] %v18108_v14  ;;  %10652 = vmatpush.msrb.mxu0 %v17923_v39  ;;  %11013 = vmatpush.msra.mxu1 %v17700_v57  ;;  %v11703_v14 = vld [vmem:[%s18778_s5 + $0x5a8] sm:$0xff]  ;;  %v19034_v57 = vand.u32 4294901760, %v18096_v43  ;;  %v18147_v5 = vsub.f32 %v11704_v2, %v18119_v15 }
 0x66a   :  { %11060 = vmatpush.msra.mxu2 %v17999_v41  ;;  %11131 = vmatpush.msra.mxu3 %v11130_v42  ;;  %v11147_v47 = vsub.f32 %v18061_v1, %v19803_v38  ;;  %v19806_v42 = vand.u32 4294901760, %v17686_v0  ;;  %v19807_v38 = vand.u32 4294901760, %v18074_v40  ;;  %v11702_v0 = vld [vmem:[%s18778_s5 + $0x5a0] sm:$0xff] }
 0x66b   :  { %10658 = vmatmul.f32.vlgmr.msrb.gmra.mxu0 %v19804_v11  ;;  %10787 = vmatmul.f32.gmra.mxu1 %v19805_v60  ;;  %v18137_v11 = vand.u32 4294901760, %v11703_v14 }
 0x66c   :  { %10928 = vmatpush.msra.mxu0 %v19806_v42  ;;  %11015 = vmatpush.msra.mxu1 %v17718_v17  ;;  %v11153_v13 = vsub.f32 %v18074_v40, %v19807_v38  ;;  %v19809_v42 = vld [vmem:[#allocation62_spill] sm:$0xff]  ;;  %v19810_v17 = vand.u32 4294901760, %v17698_v36  ;;  %v11148_v49 = vand.u32 4294901760, %v11147_v47  ;;  %v19811_v47 = vand.u32 4294901760, %v17714_v54 }
 0x66d   :  { %11062 = vmatpush.msra.mxu2 %v18018_v6  ;;  %11137 = vmatpush.msra.mxu3 %v11136_v21  ;;  %v11159_v21 = vsub.f32 %v18096_v43, %v19034_v57  ;;  %v18160_v38 = vand.u32 4294901760, %v11702_v0  ;;  %v18165_v57 = vsub.f32 %v11703_v14, %v18137_v11  ;;  %v19814_v14 = vand.u32 4294901760, %v17728_v45  ;;  %v11699_v45 = vld [vmem:[%s18778_s5 + $0x588] sm:$0xff] }
 0x66e   :  { %10854 = vmatmul.f32.gmra.mxu2 %v19809_v42  ;;  %10932 = vmatpush.msra.mxu0 %v19810_v17  ;;  %v11701_v42 = vld [vmem:[%s18778_s5 + $0x598] sm:$0xff]  ;;  %v11154_v17 = vand.u32 4294901760, %v11153_v13  ;;  %v19813_v13 = vand.u32 4294901760, %v18117_v16 }
 0x66f   :  { %11017 = vmatpush.msra.mxu1 %v17742_v48  ;;  %11064 = vmatpush.msra.mxu2 %v18032_v26  ;;  %v9982_v36 = vpop.f32.mrf.mxu2  ;;  %v11160_v2 = vand.u32 4294901760, %v11159_v21  ;;  %v19040_v21 = vand.u32 4294901760, %v18165_v57 }
 0x670   :  { %11143 = vmatpush.msra.mxu3 %v11142_v22  ;;  %10936 = vmatpush.msra.mxu0 %v19811_v47  ;;  %v9791_v48 = vpop.f32.mrf.mxu0  ;;  %v11700_v22 = vld [vmem:[%s18778_s5 + $0x590] sm:$0xff]  ;;  %v11165_v54 = vsub.f32 %v18117_v16, %v19813_v13  ;;  %v19039_v47 = vand.u32 4294901760, %v18147_v5 }
 0x671   :  { %10909 = vmatmul.f32.gmra.mxu3 %v19812_v18  ;;  %11019 = vmatpush.msra.mxu1 %v17762_v30  ;;  %v9917_v35 = vadd.f32 %v9916_v23, %v9791_v48  ;;  %v18175_v18 = vand.u32 4294901760, %v11701_v42  ;;  %v19815_v23 = vand.u32 4294901760, %v18134_v55  ;;  %v18185_v48 = vsub.f32 %v11702_v0, %v18160_v38 }
 0x672   :  { %11066 = vmatpush.msra.mxu2 %v18045_v52  ;;  %11149 = vmatpush.msra.mxu3 %v11148_v49  ;;  %v10036_v30 = vpop.f32.mrf.mxu3  ;;  %v18187_v13 = vand.u32 4294901760, %v11700_v22  ;;  %v11166_v0 = vand.u32 4294901760, %v11165_v54 }
 0x673   :  { %10940 = vmatpush.msra.mxu0 %v19814_v14  ;;  %11021 = vmatpush.msra.mxu1 %v17777_v8  ;;  %v9983_v43 = vadd.f32 %v9982_v36, %v9917_v35  ;;  %v11171_v49 = vsub.f32 %v18134_v55, %v19815_v23  ;;  %v9920_v14 = vpop.f32.mrf.mxu1  ;;  %v19816_v8 = vld [vmem:[#allocation47_spill] sm:$0xff]  ;;  %v19817_v35 = vld [vmem:[#allocation66_spill] sm:$0xff]  ;;  %v11177_v23 = vsub.f32 %v18147_v5, %v19039_v47 }
 0x674   :  { %11068 = vmatpush.msra.mxu2 %v18065_v34  ;;  %11155 = vmatpush.msra.mxu3 %v11154_v17  ;;  %v19818_v17 = vand.u32 4294901760, %v17749_v63  ;;  %v18204_v55 = vsub.f32 %v11701_v42, %v18175_v18  ;;  %v19819_v63 = vld [vmem:[#allocation41_spill] sm:$0xff]  ;;  %v18217_v42 = vsub.f32 %v11700_v22, %v18187_v13  ;;  %v19822_v47 = vld [vmem:[#allocation67_spill] sm:$0xff] }
 0x675   :  { %10666 = vmatmul.f32.gmra.mxu0 %v19816_v8  ;;  %10791 = vmatmul.f32.gmra.mxu1 %v19817_v35  ;;  %v18195_v36 = vadd.f32 %v10036_v30, %v9983_v43  ;;  %v11698_v8 = vld [vmem:[%s18778_s5 + $0x580] sm:$0xff]  ;;  %v18210_v43 = vand.u32 4294901760, %v11699_v45  ;;  %v11172_v54 = vand.u32 4294901760, %v11171_v49  ;;  %v11178_v49 = vand.u32 4294901760, %v11177_v23 }
 0x676   :  { %10944 = vmatpush.msra.mxu0 %v19818_v17  ;;  %11023 = vmatpush.msra.mxu1 %v17799_v56  ;;  %v19820_v56 = vand.u32 4294901760, %v17775_v24  ;;  %v18224_v17 = vand.u32 4294901760, %v11698_v8  ;;  %v19821_v24 = vand.u32 4294901760, %v17794_v44  ;;  %v11200_v23 = vand.u32 4294901760, %v18217_v42 }
 0x677   :  { %11070 = vmatpush.msra.mxu2 %v18089_v3  ;;  %11161 = vmatpush.msra.mxu3 %v11160_v2  ;;  %v11183_v2 = vsub.f32 %v18165_v57, %v19040_v21  ;;  %v19824_v21 = vand.u32 4294901760, %v17807_v33 }
 0x678   :  { %10859 = vmatmul.f32.gmra.mxu2 %v19819_v63  ;;  %10948 = vmatpush.msra.mxu0 %v19820_v56  ;;  %v11194_v56 = vand.u32 4294901760, %v18204_v55 }
 0x679   :  { %11025 = vmatpush.msra.mxu1 %v17819_v51  ;;  %11072 = vmatpush.msra.mxu2 %v18106_v32  ;;  %v9987_v63 = vpop.f32.mrf.mxu2  ;;  %v18232_v51 = vsub.f32 %v11699_v45, %v18210_v43 }
 0x67a   :  { %11167 = vmatpush.msra.mxu3 %v11166_v0  ;;  %10952 = vmatpush.msra.mxu0 %v19821_v24  ;;  %v9799_v22 = vpop.f32.mrf.mxu0  ;;  %v19823_v0 = vand.u32 4294901760, %v18185_v48 }
 0x67b   :  { %10915 = vmatmul.f32.gmra.mxu3 %v19822_v47  ;;  %11027 = vmatpush.msra.mxu1 %v17838_v27  ;;  %v9921_v30 = vadd.f32 %v9920_v14, %v9799_v22  ;;  %v11184_v27 = vand.u32 4294901760, %v11183_v2  ;;  %v18243_v47 = vsub.f32 %v11698_v8, %v18224_v17  ;;  %v11195_v14 = vsub.f32 %v18204_v55, %v11194_v56  ;;  %v19825_v22 = vld [vmem:[#allocation51_spill] sm:$0xff] }
 0x67c   :  { %11074 = vmatpush.msra.mxu2 %v18119_v15  ;;  %11173 = vmatpush.msra.mxu3 %v11172_v54  ;;  %v11189_v44 = vsub.f32 %v18185_v48, %v19823_v0  ;;  %v10042_v24 = vpop.f32.mrf.mxu3  ;;  %v9924_v54 = vpop.f32.mrf.mxu1  ;;  %v19826_v0 = vld [vmem:[#allocation49_spill] sm:$0xff]  ;;  %v11206_v33 = vand.u32 4294901760, %v18232_v51 }
 0x67d   :  { %10956 = vmatpush.msra.mxu0 %v19824_v21  ;;  %11029 = vmatpush.msra.mxu1 %v17851_v9  ;;  %v9988_v45 = vadd.f32 %v9987_v63, %v9921_v30  ;;  %v19827_v21 = vand.u32 4294901760, %v17826_v7  ;;  %v11201_v30 = vsub.f32 %v18217_v42, %v11200_v23  ;;  %v11212_v2 = vand.u32 4294901760, %v18243_v47  ;;  %v19828_v63 = vld [vmem:[#allocation50_spill] sm:$0xff] }
 0x67e   :  { %11076 = vmatpush.msra.mxu2 %v18137_v11  ;;  %11179 = vmatpush.msra.mxu3 %v11178_v49  ;;  %v11190_v8 = vand.u32 4294901760, %v11189_v44  ;;  %v19829_v49 = vand.u32 4294901760, %v17849_v10  ;;  %v19830_v44 = vand.u32 4294901760, %v17867_v12 }
 0x67f   :  { %10674 = vmatmul.f32.gmra.mxu0 %v19825_v22  ;;  %10795 = vmatmul.f32.gmra.mxu1 %v19826_v0  ;;  %v18252_v9 = vadd.f32 %v10042_v24, %v9988_v45  ;;  %v11196_v24 = vand.u32 4294901760, %v11195_v14  ;;  %v19831_v22 = vld [vmem:[#allocation70_spill] sm:$0xff]  ;;  %v11213_v10 = vsub.f32 %v18243_v47, %v11212_v2 }
 0x680   :  { %10960 = vmatpush.msra.mxu0 %v19827_v21  ;;  %11031 = vmatpush.msra.mxu1 %v17870_v29  ;;  %v11207_v29 = vsub.f32 %v18232_v51, %v11206_v33  ;;  %v19832_v21 = vand.u32 4294901760, %v17879_v4  ;;  %v19836_v4 = vld [vmem:[#allocation79_spill] sm:$0xff] }
 0x681   :  { %11078 = vmatpush.msra.mxu2 %v18160_v38  ;;  %11185 = vmatpush.msra.mxu3 %v11184_v27  ;;  %v11202_v27 = vand.u32 4294901760, %v11201_v30  ;;  %v19833_v30 = vld [vmem:[#allocation54_spill] sm:$0xff] }
 0x682   :  { %10864 = vmatmul.f32.gmra.mxu2 %v19828_v63  ;;  %10964 = vmatpush.msra.mxu0 %v19829_v49  ;;  %v11208_v12 = vand.u32 4294901760, %v11207_v29  ;;  %v19834_v49 = vand.u32 4294901760, %v17898_v37  ;;  %v19837_v29 = vand.u32 4294901760, %v17995_v46  ;;  %v19838_v37 = vand.u32 4294901760, %v17936_v20 }
 0x683   :  { %11033 = vmatpush.msra.mxu1 %v17891_v62  ;;  %11080 = vmatpush.msra.mxu2 %v18175_v18  ;;  %v9992_v7 = vpop.f32.mrf.mxu2  ;;  %v19842_v20 = vand.u32 4294901760, %v18024_v59 }
 0x684   :  { %11191 = vmatpush.msra.mxu3 %v11190_v8  ;;  %10968 = vmatpush.msra.mxu0 %v19830_v44  ;;  %v9807_v45 = vpop.f32.mrf.mxu0  ;;  %v19839_v44 = vld [vmem:[#allocation18_spill] sm:$0xff] }
 0x685   :  { %10921 = vmatmul.f32.gmra.mxu3 %v19831_v22  ;;  %11035 = vmatpush.msra.mxu1 %v17910_v28  ;;  %v9925_v62 = vadd.f32 %v9924_v54, %v9807_v45  ;;  %v9928_v28 = vpop.f32.mrf.mxu1  ;;  %v11214_v54 = vand.u32 4294901760, %v11213_v10  ;;  %v19841_v22 = vand.u32 4294901760, %v17943_v25  ;;  %v19844_v25 = vld [vmem:[#allocation59_spill] sm:$0xff] }
 0x686   :  { %11082 = vmatpush.msra.mxu2 %v18187_v13  ;;  %11197 = vmatpush.msra.mxu3 %v11196_v24  ;;  %v10048_v14 = vpop.f32.mrf.mxu3 }
 0x687   :  { %10972 = vmatpush.msra.mxu0 %v19832_v21  ;;  %11037 = vmatpush.msra.mxu1 %v17923_v39  ;;  %v9993_v8 = vadd.f32 %v9992_v7, %v9925_v62  ;;  %v19835_v39 = vand.u32 4294901760, %v17921_v53  ;;  %v19840_v53 = vand.u32 4294901760, %v18007_v31  ;;  %v19846_v21 = vld [vmem:[#allocation53_spill] sm:$0xff] }
 0x688   :  { %11084 = vmatpush.msra.mxu2 %v18210_v43  ;;  %11203 = vmatpush.msra.mxu3 %v11202_v27 }
 0x689   :  { %10682 = vmatmul.f32.gmra.mxu0 %v19833_v30  ;;  %11039 = vmatmul.f32.vlgmr.msra.gmra.mxu1 %v14968_v61  ;;  %v18284_v63 = vadd.f32 %v10048_v14, %v9993_v8  ;;  %v19848_v8 = vld [vmem:[#allocation10_spill] sm:$0xff]  ;;  %v19851_v30 = vld [vmem:[#allocation87_spill] sm:$0xff] }
 0x68a   :  { %10976 = vmatpush.msra.mxu0 %v19834_v49  ;;  %11086 = vmatpush.msra.mxu2 %v18224_v17  ;;  %v19854_v49 = vld [vmem:[#allocation55_spill] sm:$0xff] }
 0x68b   :  { %11209 = vmatpush.msra.mxu3 %v11208_v12  ;;  %11303 = vmatpush.msrb.mxu1 %v17971_v19  ;;  %v19847_v12 = vand.u32 4294901760, %v18074_v40 }
 0x68c   :  { %10980 = vmatpush.msra.mxu0 %v19835_v39  ;;  %11092 = vmatmul.f32.vlgmr.msra.gmra.mxu2 %v19836_v4  ;;  %v19855_v39 = vand.u32 4294901760, %v18147_v5  ;;  %v19856_v4 = vand.u32 4294901760, %v18165_v57 }
 0x68d   :  { %11215 = vmatpush.msra.mxu3 %v11214_v54  ;;  %11305 = vmatpush.msrb.mxu1 %v17981_v50  ;;  %v9997_v24 = vpop.f32.mrf.mxu2 }
 0x68e   :  { %11362 = vmatpush.msrb.mxu2 %v19837_v29  ;;  %10984 = vmatpush.msra.mxu0 %v19838_v37  ;;  %v9815_v7 = vpop.f32.mrf.mxu0  ;;  %v10172_v62 = vpop.f32.mrf.mxu1  ;;  %v19858_v29 = vld [vmem:[#allocation92_spill] sm:$0xff]  ;;  %v19859_v37 = vld [vmem:[#allocation83_spill] sm:$0xff] }
 0x68f   :  { %11217 = vmatmul.f32.vlgmr.msra.gmra.mxu3 %v19839_v44  ;;  %11307 = vmatpush.msrb.mxu1 %v17999_v41  ;;  %v9929_v27 = vadd.f32 %v9928_v28, %v9815_v7 }
 0x690   :  { %11366 = vmatpush.msrb.mxu2 %v19840_v53  ;;  %11441 = vmatpush.msrb.mxu3 %v17971_v19  ;;  %v10054_v45 = vpop.f32.mrf.mxu3  ;;  %v19843_v19 = vand.u32 4294901760, %v18043_v58 }
 0x691   :  { %10988 = vmatpush.msra.mxu0 %v19841_v22  ;;  %11309 = vmatpush.msrb.mxu1 %v18018_v6  ;;  %v9998_v10 = vadd.f32 %v9997_v24, %v9929_v27  ;;  %v19864_v27 = vld [vmem:[#allocation81_spill] sm:$0xff] }
 0x692   :  { %11370 = vmatpush.msrb.mxu2 %v19842_v20  ;;  %11443 = vmatpush.msrb.mxu3 %v17981_v50 }
 0x693   :  { %10990 = vmatmul.f32.vlgmr.msra.gmra.mxu0 %v14968_v61  ;;  %11043 = vmatmul.f32.gmra.mxu1 %v19805_v60  ;;  %v18311_v14 = vadd.f32 %v10054_v45, %v9998_v10  ;;  %v19845_v61 = vand.u32 4294901760, %v18061_v1 }
 0x694   :  { %11235 = vmatpush.msrb.mxu0 %v17995_v46  ;;  %11311 = vmatpush.msrb.mxu1 %v18032_v26 }
 0x695   :  { %11374 = vmatpush.msrb.mxu2 %v19843_v19  ;;  %11445 = vmatpush.msrb.mxu3 %v17999_v41 }
 0x696   :  { %11100 = vmatmul.f32.gmra.mxu2 %v19844_v25  ;;  %11238 = vmatpush.msrb.mxu0 %v18007_v31 }
 0x697   :  { %11313 = vmatpush.msrb.mxu1 %v18045_v52  ;;  %11378 = vmatpush.msrb.mxu2 %v19845_v61  ;;  %v10225_v50 = vpop.f32.mrf.mxu2 }
 0x698   :  { %11447 = vmatpush.msrb.mxu3 %v18018_v6  ;;  %11241 = vmatpush.msrb.mxu0 %v18024_v59  ;;  %v10123_v46 = vpop.f32.mrf.mxu0  ;;  %v19849_v59 = vand.u32 4294901760, %v19848_v8  ;;  %v10176_v28 = vpop.f32.mrf.mxu1 }
 0x699   :  { %11221 = vmatmul.f32.gmra.mxu3 %v19846_v21  ;;  %11315 = vmatpush.msrb.mxu1 %v18065_v34  ;;  %v10124_v41 = vadd.f32 %v10123_v46, %v18195_v36 }
 0x69a   :  { %11382 = vmatpush.msrb.mxu2 %v19847_v12  ;;  %11449 = vmatpush.msrb.mxu3 %v18032_v26  ;;  %v10350_v31 = vpop.f32.mrf.mxu3  ;;  %v19850_v26 = vand.u32 4294901760, %v18117_v16  ;;  %v19867_v12 = vld [vmem:[#allocation86_spill] sm:$0xff] }
 0x69b   :  { %11244 = vmatpush.msrb.mxu0 %v18043_v58  ;;  %11317 = vmatpush.msrb.mxu1 %v18089_v3  ;;  %v10173_v6 = vadd.f32 %v10172_v62, %v10124_v41  ;;  %v19865_v62 = vld [vmem:[#allocation80_spill] sm:$0xff] }
 0x69c   :  { %11386 = vmatpush.msrb.mxu2 %v19849_v59  ;;  %11451 = vmatpush.msrb.mxu3 %v18045_v52  ;;  %v19852_v52 = vld [vmem:[#allocation63_spill] sm:$0xff] }
 0x69d   :  { %10994 = vmatmul.f32.gmra.mxu0 %v19805_v60  ;;  %11047 = vmatmul.f32.gmra.mxu1 %v19817_v35  ;;  %v10226_v36 = vadd.f32 %v10225_v50, %v10173_v6  ;;  %v19853_v60 = vand.u32 4294901760, %v19852_v52 }
 0x69e   :  { %11247 = vmatpush.msrb.mxu0 %v18061_v1  ;;  %11319 = vmatpush.msrb.mxu1 %v18106_v32 }
 0x69f   :  { %11390 = vmatpush.msrb.mxu2 %v19850_v26  ;;  %11453 = vmatpush.msrb.mxu3 %v18065_v34  ;;  %v18343_v58 = vadd.f32 %v10350_v31, %v10226_v36 }
 0x6a0   :  { %11108 = vmatmul.f32.gmra.mxu2 %v19851_v30  ;;  %11250 = vmatpush.msrb.mxu0 %v18074_v40 }
 0x6a1   :  { %11321 = vmatpush.msrb.mxu1 %v18119_v15  ;;  %11394 = vmatpush.msrb.mxu2 %v19853_v60  ;;  %v10233_v54 = vpop.f32.mrf.mxu2 }
 0x6a2   :  { %11455 = vmatpush.msrb.mxu3 %v18089_v3  ;;  %11253 = vmatpush.msrb.mxu0 %v19848_v8  ;;  %v10127_v1 = vpop.f32.mrf.mxu0  ;;  %v10180_v24 = vpop.f32.mrf.mxu1 }
 0x6a3   :  { %11225 = vmatmul.f32.gmra.mxu3 %v19854_v49  ;;  %11323 = vmatpush.msrb.mxu1 %v18137_v11  ;;  %v10128_v34 = vadd.f32 %v10127_v1, %v18252_v9 }
 0x6a4   :  { %11398 = vmatpush.msrb.mxu2 %v19855_v39  ;;  %11457 = vmatpush.msrb.mxu3 %v18106_v32  ;;  %v10354_v40 = vpop.f32.mrf.mxu3  ;;  %v19857_v32 = vand.u32 4294901760, %v18185_v48 }
 0x6a5   :  { %11256 = vmatpush.msrb.mxu0 %v18117_v16  ;;  %11325 = vmatpush.msrb.mxu1 %v18160_v38  ;;  %v10177_v3 = vadd.f32 %v10176_v28, %v10128_v34 }
 0x6a6   :  { %11402 = vmatpush.msrb.mxu2 %v19856_v4  ;;  %11459 = vmatpush.msrb.mxu3 %v18119_v15 }
 0x6a7   :  { %10998 = vmatmul.f32.gmra.mxu0 %v19817_v35  ;;  %11051 = vmatmul.f32.gmra.mxu1 %v19826_v0  ;;  %v10234_v9 = vadd.f32 %v10233_v54, %v10177_v3 }
 0x6a8   :  { %11259 = vmatpush.msrb.mxu0 %v19852_v52  ;;  %11327 = vmatpush.msrb.mxu1 %v18175_v18 }
 0x6a9   :  { %11406 = vmatpush.msrb.mxu2 %v19857_v32  ;;  %11461 = vmatpush.msrb.mxu3 %v18137_v11  ;;  %v18370_v16 = vadd.f32 %v10354_v40, %v10234_v9  ;;  %v19868_v9 = vld [vmem:[#allocation60_spill] sm:$0xff] }
 0x6aa   :  { %11116 = vmatmul.f32.gmra.mxu2 %v19858_v29  ;;  %11262 = vmatpush.msrb.mxu0 %v18147_v5  ;;  %v19869_v32 = vld [vmem:[#allocation8_spill] sm:$0xff] }
 0x6ab   :  { %11329 = vmatpush.msrb.mxu1 %v18187_v13  ;;  %11410 = vmatpush.msrb.mxu2 %v11194_v56  ;;  %v10241_v15 = vpop.f32.mrf.mxu2  ;;  %v19860_v56 = vld [vmem:[#allocation19_spill] sm:$0xff] }
 0x6ac   :  { %11463 = vmatpush.msrb.mxu3 %v18160_v38  ;;  %11265 = vmatpush.msrb.mxu0 %v18165_v57  ;;  %v10131_v35 = vpop.f32.mrf.mxu0  ;;  %v10184_v57 = vpop.f32.mrf.mxu1 }
 0x6ad   :  { %11229 = vmatmul.f32.gmra.mxu3 %v19859_v37  ;;  %11331 = vmatpush.msrb.mxu1 %v18210_v43  ;;  %v10132_v11 = vadd.f32 %v10131_v35, %v18284_v63  ;;  %v19871_v35 = vld [vmem:[#allocation68_spill] sm:$0xff] }
 0x6ae   :  { %11414 = vmatpush.msrb.mxu2 %v11200_v23  ;;  %11465 = vmatpush.msrb.mxu3 %v18175_v18  ;;  %v10358_v5 = vpop.f32.mrf.mxu3 }
 0x6af   :  { %11268 = vmatpush.msrb.mxu0 %v18185_v48  ;;  %11333 = vmatpush.msrb.mxu1 %v18224_v17  ;;  %v10181_v38 = vadd.f32 %v10180_v24, %v10132_v11  ;;  %v19872_v11 = vld [vmem:[#allocation84_spill] sm:$0xff] }
 0x6b0   :  { %11418 = vmatpush.msrb.mxu2 %v11206_v33  ;;  %11467 = vmatpush.msrb.mxu3 %v18187_v13 }
 0x6b1   :  { %11002 = vmatmul.f32.gmra.mxu0 %v19826_v0  ;;  %11337 = vmatmul.f32.vlgmr.msrb.gmra.mxu1 %v19860_v56  ;;  %v10242_v63 = vadd.f32 %v10241_v15, %v10181_v38  ;;  %v19861_v0 = vld [vmem:[#allocation69_spill] sm:$0xff]  ;;  %v19870_v15 = vld [vmem:[#allocation71_spill] sm:$0xff]  ;;  %v19873_v56 = vld [vmem:[#allocation52_spill] sm:$0xff] }
 0x6b2   :  { %11271 = vmatpush.msrb.mxu0 %v18204_v55  ;;  %11422 = vmatpush.msrb.mxu2 %v11212_v2 }
 0x6b3   :  { %11469 = vmatpush.msrb.mxu3 %v18210_v43  ;;  %11424 = vmatmul.f32.vlgmr.msrb.gmra.mxu2 %v19839_v44  ;;  %v10359_v18 = vadd.f32 %v10358_v5, %v10242_v63  ;;  %v19862_v43 = vld [vmem:[#allocation24_spill] sm:$0xff] }
 0x6b4   :  { %11274 = vmatpush.msrb.mxu0 %v18217_v42 }
 0x6b5   :  { %11471 = vmatpush.msrb.mxu3 %v18224_v17  ;;  %v10249_v48 = vpop.f32.mrf.mxu2 }
 0x6b6   :  { %11277 = vmatpush.msrb.mxu0 %v18232_v51  ;;  %11473 = vmatmul.f32.vlgmr.msrb.gmra.mxu3 %v19839_v44  ;;  %v10135_v13 = vpop.f32.mrf.mxu0  ;;  %v10470_v2 = vpop.f32.mrf.mxu1  ;;  %v19863_v44 = vld [vmem:[#allocation76_spill] sm:$0xff] }
 0x6b7   :  { %v10136_v55 = vadd.f32 %v10135_v13, %v18311_v14  ;;  %v19866_v14 = vld [vmem:[#allocation89_spill] sm:$0xff] }
 0x6b8   :  { %11280 = vmatpush.msrb.mxu0 %v18243_v47  ;;  %v10362_v23 = vpop.f32.mrf.mxu3 }
 0x6b9   :  { %11283 = vmatmul.f32.vlgmr.msrb.gmra.mxu0 %v19861_v0  ;;  %11343 = vmatmul.f32.gmra.mxu1 %v19862_v43  ;;  %v10185_v33 = vadd.f32 %v10184_v57, %v10136_v55  ;;  %v19875_v55 = vld [vmem:[#allocation99_spill] sm:$0xff]  ;;  %v19877_v43 = vld [vmem:[#allocation165_spill] sm:$0xff] }
 0x6ba   :  { %v19876_v0 = vld [vmem:[#allocation167_spill] sm:$0xff] }
 0x6bb   :  { %11428 = vmatmul.f32.gmra.mxu2 %v19846_v21  ;;  %v10250_v42 = vadd.f32 %v10249_v48, %v10185_v33  ;;  %v8112_v33 = vadd.f32 %v19877_v43, %v19876_v0  ;;  %v19902_v43 = vld [vmem:[#allocation65_spill] sm:$0xff] }
 0x6bd   :  { %v10363_v17 = vadd.f32 %v10362_v23, %v10250_v42  ;;  %v19878_v42 = vld [vmem:[#allocation73_spill] sm:$0xff] }
 0x6be   :  { %11477 = vmatmul.f32.gmra.mxu3 %v19846_v21 }
 0x6bf   :  { %v10557_v51 = vpop.f32.mrf.mxu2 }
 0x6c0   :  { %v10416_v7 = vpop.f32.mrf.mxu0  ;;  %v10476_v22 = vpop.f32.mrf.mxu1 }
 0x6c1   :  { %11288 = vmatmul.f32.gmra.mxu0 %v19863_v44  ;;  %11349 = vmatmul.f32.gmra.mxu1 %v19864_v27  ;;  %v10417_v47 = vadd.f32 %v10416_v7, %v18343_v58  ;;  %v19880_v7 = vld [vmem:[#allocation72_spill] sm:$0xff] }
 0x6c2   :  { %v10606_v53 = vpop.f32.mrf.mxu3  ;;  %v19881_v27 = vld [vmem:[#allocation64_spill] sm:$0xff] }
 0x6c3   :  { %11432 = vmatmul.f32.gmra.mxu2 %v19854_v49  ;;  %v10471_v45 = vadd.f32 %v10470_v2, %v10417_v47 }
 0x6c5   :  { %v10558_v10 = vadd.f32 %v10557_v51, %v10471_v45  ;;  %v19879_v51 = vld [vmem:[#allocation74_spill] sm:$0xff] }
 0x6c6   :  { %11481 = vmatmul.f32.gmra.mxu3 %v19854_v49  ;;  %v6299_v44 = vadd.f32 %v19880_v7, %v19879_v51  ;;  %v19904_v7 = vld [vmem:[#allocation95_spill] sm:$0xff] }
 0x6c7   :  { %v18412_v20 = vadd.f32 %v10606_v53, %v10558_v10  ;;  %v19882_v53 = vld [vmem:[#allocation96_spill] sm:$0xff] }
 0x6c9   :  { %11293 = vmatmul.f32.gmra.mxu0 %v19865_v62  ;;  %11355 = vmatmul.f32.gmra.mxu1 %v19866_v14  ;;  %v10561_v19 = vpop.f32.mrf.mxu2  ;;  %v19884_v14 = vld [vmem:[#allocation77_spill] sm:$0xff] }
 0x6ca   :  { %v10421_v25 = vpop.f32.mrf.mxu0  ;;  %v10482_v21 = vpop.f32.mrf.mxu1 }
 0x6cb   :  { %11436 = vmatmul.f32.gmra.mxu2 %v19859_v37  ;;  %v10422_v61 = vadd.f32 %v10421_v25, %v18370_v16  ;;  %v6307_v16 = vadd.f32 %v19869_v32, %v19868_v9  ;;  %v19885_v25 = vld [vmem:[#allocation9_spill] sm:$0xff]  ;;  %v19895_v32 = vld [vmem:[#allocation90_spill] sm:$0xff] }
 0x6cc   :  { %v10610_v50 = vpop.f32.mrf.mxu3 }
 0x6cd   :  { %v10477_v46 = vadd.f32 %v10476_v22, %v10422_v61  ;;  %v6376_v5 = vadd.f32 %v19872_v11, %v6307_v16  ;;  %v19883_v22 = vld [vmem:[#allocation166_spill] sm:$0xff]  ;;  %v19886_v61 = vld [vmem:[#allocation75_spill] sm:$0xff] }
 0x6ce   :  { %11485 = vmatmul.f32.gmra.mxu3 %v19859_v37  ;;  %v6295_v37 = vadd.f32 %v19871_v35, %v19870_v15  ;;  %v8178_v10 = vadd.f32 %v19883_v22, %v8112_v33  ;;  %v19896_v15 = vld [vmem:[#allocation17_spill] sm:$0xff] }
 0x6cf   :  { %v10562_v41 = vadd.f32 %v10561_v19, %v10477_v46  ;;  %v6366_v19 = vadd.f32 %v19884_v14, %v6299_v44  ;;  %v19908_v14 = vld [vmem:[#allocation103_spill] sm:$0xff] }
 0x6d0   :  { %v6361_v63 = vadd.f32 %v19873_v56, %v6295_v37  ;;  %v19897_v37 = vld [vmem:[#allocation101_spill] sm:$0xff] }
 0x6d1   :  { %11298 = vmatmul.f32.gmra.mxu0 %v19867_v12  ;;  %v18420_v31 = vadd.f32 %v10610_v50, %v10562_v41  ;;  %v6303_v50 = vadd.f32 %v19886_v61, %v19885_v25  ;;  %v19888_v12 = vld [vmem:[#allocation100_spill] sm:$0xff]  ;;  %v19909_v25 = vld [vmem:[#allocation179_spill] sm:$0xff]  ;;  %v19910_v61 = vld [vmem:[#allocation177_spill] sm:$0xff] }
 0x6d3   :  { %v10565_v6 = vpop.f32.mrf.mxu2 }
 0x6d4   :  { %v10426_v8 = vpop.f32.mrf.mxu0  ;;  %v10488_v26 = vpop.f32.mrf.mxu1 }
 0x6d5   :  { %v10427_v59 = vadd.f32 %v10426_v8, %v10359_v18  ;;  %v19874_v18 = vld [vmem:[#allocation85_spill] sm:$0xff]  ;;  %v19889_v8 = vld [vmem:[#allocation168_spill] sm:$0xff] }
 0x6d6   :  { %v10614_v28 = vpop.f32.mrf.mxu3  ;;  %v6433_v48 = vadd.f32 %v19874_v18, %v6376_v5  ;;  %v19898_v5 = vld [vmem:[#allocation170_spill] sm:$0xff] }
 0x6d7   :  { %v10483_v36 = vadd.f32 %v10482_v21, %v10427_v59  ;;  %v19887_v21 = vld [vmem:[#allocation82_spill] sm:$0xff]  ;;  %v8232_v59 = vadd.f32 %v19889_v8, %v8178_v10  ;;  %v19913_v8 = vld [vmem:[#allocation187_spill] sm:$0xff] }
 0x6d8   :  { %v6514_v23 = vadd.f32 %v19875_v55, %v6433_v48  ;;  %v19900_v48 = vld [vmem:[#allocation115_spill] sm:$0xff] }
 0x6d9   :  { %v10566_v58 = vadd.f32 %v10565_v6, %v10483_v36  ;;  %v19891_v36 = vld [vmem:[#allocation169_spill] sm:$0xff] }
 0x6da   :  { %v6563_v45 = vadd.f32 %v19882_v53, %v6514_v23  ;;  %v19901_v23 = vld [vmem:[#allocation181_spill] sm:$0xff]  ;;  %v19906_v53 = vld [vmem:[#allocation175_spill] sm:$0xff] }
 0x6db   :  { %v18422_v30 = vadd.f32 %v10614_v28, %v10566_v58  ;;  %v19890_v28 = vld [vmem:[#allocation171_spill] sm:$0xff] }
 0x6dc   :  { %v6628_v6 = vadd.f32 %v19888_v12, %v6563_v45  ;;  %v19907_v45 = vld [vmem:[#allocation173_spill] sm:$0xff]  ;;  %v19912_v12 = vld [vmem:[#allocation182_spill] sm:$0xff] }
 0x6dd   :  { %v10569_v52 = vpop.f32.mrf.mxu2  ;;  %v8120_v22 = vadd.f32 %v19907_v45, %v19906_v53  ;;  %v19928_v53 = vld [vmem:[#allocation108_spill] sm:$0xff] }
 0x6de   :  { %v10431_v60 = vpop.f32.mrf.mxu0  ;;  %v18424_v34 = vpop.f32.mrf.mxu1  ;;  %v6741_v11 = vadd.f32 %v19897_v37, %v6628_v6 }
 0x6df   :  { %v10432_v54 = vadd.f32 %v10431_v60, %v10363_v17  ;;  %v6415_v17 = vadd.f32 %v19878_v42, %v6361_v63  ;;  %v19899_v63 = vld [vmem:[#allocation56_spill] sm:$0xff] }
 0x6e0   :  { %v10618_v1 = vpop.f32.mrf.mxu3  ;;  %v6810_v55 = vadd.f32 %v19900_v48, %v6741_v11  ;;  %v19920_v11 = vld [vmem:[#allocation184_spill] sm:$0xff] }
 0x6e1   :  { %v10489_v49 = vadd.f32 %v10488_v26, %v10432_v54  ;;  %v6502_v47 = vadd.f32 %v19881_v27, %v6415_v17  ;;  %v8116_v26 = vadd.f32 %v19891_v36, %v19890_v28  ;;  %v19893_v54 = vld [vmem:[#allocation57_spill] sm:$0xff]  ;;  %v19903_v17 = vld [vmem:[#allocation88_spill] sm:$0xff] }
 0x6e2   :  { %v19905_v27 = vld [vmem:[#allocation172_spill] sm:$0xff]  ;;  %v19914_v36 = vld [vmem:[#allocation93_spill] sm:$0xff] }
 0x6e3   :  { %v10570_v39 = vadd.f32 %v10569_v52, %v10489_v49  ;;  %v6551_v41 = vadd.f32 %v19887_v21, %v6502_v47  ;;  %v19892_v52 = vld [vmem:[#allocation78_spill] sm:$0xff]  ;;  %v19894_v49 = vld [vmem:[#allocation183_spill] sm:$0xff]  ;;  %v8183_v56 = vadd.f32 %v19898_v5, %v8116_v26 }
 0x6e4   :  { %v6421_v60 = vadd.f32 %v19892_v52, %v6366_v19  ;;  %v19911_v21 = vld [vmem:[#allocation114_spill] sm:$0xff]  ;;  %v19915_v52 = vld [vmem:[#allocation91_spill] sm:$0xff] }
 0x6e5   :  { %v18426_v40 = vadd.f32 %v10618_v1, %v10570_v39  ;;  %v6371_v1 = vadd.f32 %v19893_v54, %v6303_v50  ;;  %v8319_v39 = vadd.f32 %v19894_v49, %v8232_v59  ;;  %v6604_v16 = vadd.f32 %v19895_v32, %v6551_v41  ;;  %v19916_v54 = vld [vmem:[#allocation174_spill] sm:$0xff] }
 0x6e6   :  { %v6506_v35 = vadd.f32 %v19896_v15, %v6421_v60  ;;  %v8238_v47 = vadd.f32 %v19905_v27, %v8183_v56  ;;  %v8124_v50 = vadd.f32 %v19910_v61, %v19909_v25  ;;  %v6867_v41 = vadd.f32 %v19911_v21, %v6810_v55  ;;  %v19921_v56 = vld [vmem:[#allocation185_spill] sm:$0xff]  ;;  %v19931_v61 = vld [vmem:[#allocation191_spill] sm:$0xff] }
 0x6e7   :  { %v18428_v3 = vpop.f32.mrf.mxu2  ;;  %v6427_v18 = vadd.f32 %v19899_v63, %v6371_v1  ;;  %v8368_v0 = vadd.f32 %v19901_v23, %v8319_v39  ;;  %v6729_v33 = vadd.f32 %v19902_v43, %v6604_v16  ;;  %v8188_v1 = vadd.f32 %v19916_v54, %v8120_v22  ;;  %v19917_v39 = vld [vmem:[#allocation102_spill] sm:$0xff]  ;;  %v19923_v55 = vld [vmem:[#allocation97_spill] sm:$0xff]  ;;  %v19929_v22 = vld [vmem:[#allocation116_spill] sm:$0xff] }
 0x6e8   :  { %v18430_v4 = vpop.f32.mrf.mxu0  ;;  %v18436_v29 = vpop.f32.mrf.mxu1  ;;  %v6555_v51 = vadd.f32 %v19903_v17, %v6506_v35  ;;  %v8323_v59 = vadd.f32 %v19913_v8, %v8238_v47  ;;  %v19918_v16 = vld [vmem:[#allocation178_spill] sm:$0xff]  ;;  %v19919_v35 = vld [vmem:[#allocation39_spill] sm:$0xff]  ;;  %v19936_v54 = vld [vmem:[#allocation105_spill] sm:$0xff] }
 0x6e9   :  { %v6510_v44 = vadd.f32 %v19904_v7, %v6427_v18  ;;  %v6795_v19 = vadd.f32 %v19908_v14, %v6729_v33  ;;  %v8421_v6 = vadd.f32 %v19912_v12, %v8368_v0  ;;  %v8193_v15 = vadd.f32 %v19918_v16, %v8124_v50  ;;  %v19922_v18 = vld [vmem:[#allocation94_spill] sm:$0xff]  ;;  %v19924_v0 = vld [vmem:[#allocation176_spill] sm:$0xff]  ;;  %v19925_v33 = vld [vmem:[#allocation199_spill] sm:$0xff] }
 0x6ea   :  { %v18432_v24 = vpop.f32.mrf.mxu3  ;;  %v6612_v26 = vadd.f32 %v19914_v36, %v6555_v51  ;;  %v6948_v37 = vadd.f32 %v19919_v35, %v6867_v41  ;;  %v8372_v63 = vadd.f32 %v19921_v56, %v8323_v59  ;;  %v8244_v43 = vadd.f32 %v19924_v0, %v8188_v1  ;;  %v19926_v51 = vld [vmem:[#allocation104_spill] sm:$0xff]  ;;  %v19932_v41 = vld [vmem:[#allocation195_spill] sm:$0xff] }
 0x6eb   :  { %v6559_v60 = vadd.f32 %v19915_v52, %v6510_v44  ;;  %v6849_v32 = vadd.f32 %v19917_v39, %v6795_v19  ;;  %v8546_v5 = vadd.f32 %v19920_v11, %v8421_v6  ;;  %v19927_v44 = vld [vmem:[#allocation180_spill] sm:$0xff]  ;;  %v19930_v19 = vld [vmem:[#allocation186_spill] sm:$0xff]  ;;  %v19934_v59 = vld [vmem:[#allocation131_spill] sm:$0xff] }
 0x6ec   :  { %v6733_v48 = vadd.f32 %v19922_v18, %v6612_v26  ;;  %v8250_v27 = vadd.f32 %v19927_v44, %v8193_v15  ;;  %v6997_v14 = vadd.f32 %v19929_v22, %v6948_v37  ;;  %v8429_v25 = vadd.f32 %v19930_v19, %v8372_v63  ;;  %v19933_v6 = vld [vmem:[#allocation98_spill] sm:$0xff]  ;;  %v19935_v26 = vld [vmem:[#allocation197_spill] sm:$0xff]  ;;  %v19938_v16 = vld [vmem:[#allocation112_spill] sm:$0xff] }
 0x6ed   :  { %v6620_v23 = vadd.f32 %v19923_v55, %v6559_v60  ;;  %v8612_v17 = vadd.f32 %v19925_v33, %v8546_v5  ;;  %v6936_v7 = vadd.f32 %v19926_v51, %v6849_v32  ;;  %v8327_v50 = vadd.f32 %v19931_v61, %v8244_v43  ;;  %v19937_v39 = vld [vmem:[#allocation106_spill] sm:$0xff]  ;;  %v19939_v35 = vld [vmem:[#allocation188_spill] sm:$0xff]  ;;  %v19940_v11 = vld [vmem:[#allocation189_spill] sm:$0xff] }
 0x6ee   :  { %v6800_v45 = vadd.f32 %v19928_v53, %v6733_v48  ;;  %v8331_v12 = vadd.f32 %v19932_v41, %v8250_v27  ;;  %v7062_v36 = vadd.f32 %v19934_v59, %v6997_v14  ;;  %v8550_v37 = vadd.f32 %v19939_v35, %v8429_v25  ;;  %v19941_v63 = vld [vmem:[#allocation119_spill] sm:$0xff]  ;;  %v19942_v48 = vld [vmem:[#allocation193_spill] sm:$0xff]  ;;  %v19944_v43 = vld [vmem:[#allocation198_spill] sm:$0xff] }
 0x6ef   :  { %v6737_v8 = vadd.f32 %v19933_v6, %v6620_v23  ;;  %v8666_v52 = vadd.f32 %v19935_v26, %v8612_v17  ;;  %v6985_v1 = vadd.f32 %v19936_v54, %v6936_v7  ;;  %v8376_v5 = vadd.f32 %v19940_v11, %v8327_v50  ;;  %v19943_v23 = vld [vmem:[#allocation129_spill] sm:$0xff]  ;;  %v19945_v17 = vld [vmem:[#allocation203_spill] sm:$0xff]  ;;  %v19947_v27 = vld [vmem:[#allocation110_spill] sm:$0xff] }
 0x6f0   :  { %v6855_v32 = vadd.f32 %v19937_v39, %v6800_v45  ;;  %v8380_v55 = vadd.f32 %v19942_v48, %v8331_v12  ;;  %v7175_v0 = vadd.f32 %v19943_v23, %v7062_v36  ;;  %v8617_v51 = vadd.f32 %v19945_v17, %v8550_v37  ;;  %v19946_v7 = vld [vmem:[#allocation107_spill] sm:$0xff]  ;;  %v19948_v45 = vld [vmem:[#allocation190_spill] sm:$0xff]  ;;  %v19949_v14 = vld [vmem:[#allocation117_spill] sm:$0xff] }
 0x6f1   :  { %v18441_v38 = vpop.f32.mrf.mxu2  ;;  %v6805_v15 = vadd.f32 %v19938_v16, %v6737_v8  ;;  %v7038_v18 = vadd.f32 %v19941_v63, %v6985_v1  ;;  %v8753_v33 = vadd.f32 %v19944_v43, %v8666_v52  ;;  %v8437_v22 = vadd.f32 %v19948_v45, %v8376_v5  ;;  %v19950_v25 = vld [vmem:[#allocation194_spill] sm:$0xff]  ;;  %v19952_v6 = vld [vmem:[#allocation200_spill] sm:$0xff]  ;;  %v19953_v59 = vld [vmem:[#allocation201_spill] sm:$0xff] }
 0x6f2   :  { %v18443_v57 = vpop.f32.mrf.mxu0  ;;  %v18452_v2 = vpop.f32.mrf.mxu1  ;;  %v6940_v44 = vadd.f32 %v19946_v7, %v6855_v32  ;;  %v8445_v61 = vadd.f32 %v19950_v25, %v8380_v55  ;;  %v19951_v41 = vld [vmem:[#allocation130_spill] sm:$0xff]  ;;  %v8672_v36 = vadd.f32 %v19953_v59, %v8617_v51  ;;  %v10660_v52 = vadd.f32 %v18430_v4, %v18412_v20  ;;  %v19954_v54 = vld [vmem:[#allocation109_spill] sm:$0xff]  ;;  %v19955_v39 = vld [vmem:[#allocation111_spill] sm:$0xff] }
 0x6f3   :  { %v6861_v53 = vadd.f32 %v19947_v27, %v6805_v15  ;;  %v7163_v19 = vadd.f32 %v19949_v14, %v7038_v18  ;;  %v7244_v12 = vadd.f32 %v19951_v41, %v7175_v0  ;;  %v8802_v8 = vadd.f32 %v19952_v6, %v8753_v33  ;;  %v19956_v16 = vld [vmem:[#allocation192_spill] sm:$0xff]  ;;  %v19957_v35 = vld [vmem:[#allocation23_spill] sm:$0xff]  ;;  %v19958_v5 = vld [vmem:[#allocation118_spill] sm:$0xff] }
 0x6f4   :  { %v18447_v13 = vpop.f32.mrf.mxu3  ;;  %v6989_v1 = vadd.f32 %v19954_v54, %v6940_v44  ;;  %v8554_v15 = vadd.f32 %v19956_v16, %v8437_v22  ;;  %v19959_v18 = vld [vmem:[#allocation196_spill] sm:$0xff]  ;;  %v19960_v55 = vld [vmem:[#allocation123_spill] sm:$0xff]  ;;  %v19962_v33 = vld [vmem:[#allocation202_spill] sm:$0xff]  ;;  %v10785_v27 = vadd.f32 %v18424_v34, %v10660_v52 }
 0x6f5   :  { %v6944_v32 = vadd.f32 %v19955_v39, %v6861_v53  ;;  %v8855_v37 = vadd.f32 %v19957_v35, %v8802_v8  ;;  %v7229_v63 = vadd.f32 %v19958_v5, %v7163_v19  ;;  %v8558_v48 = vadd.f32 %v19959_v18, %v8445_v61  ;;  %v19961_v0 = vld [vmem:[#allocation132_spill] sm:$0xff]  ;;  %v19963_v4 = vld [vmem:[#allocation207_spill] sm:$0xff]  ;;  %v19964_v7 = vld [vmem:[#allocation210_spill] sm:$0xff] }
 0x6f6   :  { %v7046_v23 = vadd.f32 %v19960_v55, %v6989_v1  ;;  %v7301_v43 = vadd.f32 %v19961_v0, %v7244_v12  ;;  %v8757_v20 = vadd.f32 %v19962_v33, %v8672_v36  ;;  %v8622_v17 = vadd.f32 %v19963_v4, %v8554_v15  ;;  %v19965_v53 = vld [vmem:[#allocation113_spill] sm:$0xff]  ;;  %v19966_v22 = vld [vmem:[#allocation147_spill] sm:$0xff]  ;;  %v19968_v61 = vld [vmem:[#allocation120_spill] sm:$0xff] }
 0x6f7   :  { %v8627_v44 = vadd.f32 %v19964_v7, %v8558_v48  ;;  %v6993_v45 = vadd.f32 %v19965_v53, %v6944_v32  ;;  %v19967_v19 = vld [vmem:[#allocation211_spill] sm:$0xff]  ;;  %v7283_v41 = vadd.f32 %v19968_v61, %v7229_v63  ;;  %v19969_v6 = vld [vmem:[#allocation121_spill] sm:$0xff]  ;;  %v19971_v36 = vld [vmem:[#allocation204_spill] sm:$0xff]  ;;  %v10851_v52 = vadd.f32 %v18428_v3, %v10785_v27 }
 0x6f8   :  { %v7382_v14 = vadd.f32 %v19966_v22, %v7301_v43  ;;  %v8980_v25 = vadd.f32 %v19967_v19, %v8855_v37  ;;  %v7167_v12 = vadd.f32 %v19969_v6, %v7046_v23  ;;  %v19970_v8 = vld [vmem:[#allocation127_spill] sm:$0xff]  ;;  %v8806_v54 = vadd.f32 %v19971_v36, %v8757_v20  ;;  %v19972_v1 = vld [vmem:[#allocation205_spill] sm:$0xff]  ;;  %v19978_v43 = vld [vmem:[#allocation122_spill] sm:$0xff] }
 0x6f9   :  { %v7054_v59 = vadd.f32 %v19970_v8, %v6993_v45  ;;  %v8678_v39 = vadd.f32 %v19972_v1, %v8622_v17  ;;  %v19973_v16 = vld [vmem:[#allocation135_spill] sm:$0xff]  ;;  %v19974_v35 = vld [vmem:[#allocation209_spill] sm:$0xff]  ;;  %v10668_v32 = vadd.f32 %v18443_v57, %v18420_v31  ;;  %v19980_v17 = vld [vmem:[#allocation206_spill] sm:$0xff]  ;;  %v10905_v53 = vadd.f32 %v18432_v24, %v10851_v52 }
 0x6fa   :  { %v7370_v15 = vadd.f32 %v19973_v16, %v7283_v41  ;;  %v8684_v34 = vadd.f32 %v19974_v35, %v8627_v44  ;;  %v19975_v5 = vld [vmem:[#allocation145_spill] sm:$0xff]  ;;  %v7234_v33 = vadd.f32 %v19978_v43, %v7167_v12  ;;  %v19982_v57 = vld [vmem:[#allocation42_spill] sm:$0xff]  ;;  %v19985_v61 = vld [vmem:[#allocation11_spill] sm:$0xff] }
 0x6fb   :  { %v18460_v62 = vpop.f32.mrf.mxu2  ;;  %v7431_v63 = vadd.f32 %v19975_v5, %v7382_v14  ;;  %v19976_v18 = vld [vmem:[#allocation13_spill] sm:$0xff]  ;;  %v8761_v7 = vadd.f32 %v19980_v17, %v8678_v39  ;;  %v10789_v45 = vadd.f32 %v18436_v29, %v10668_v32  ;;  %v19983_v22 = vld [vmem:[#allocation146_spill] sm:$0xff]  ;;  %v19986_v8 = vld [vmem:[#allocation124_spill] sm:$0xff] }
 0x6fc   :  { %v18465_v46 = vpop.f32.mrf.mxu0  ;;  %v18477_v9 = vpop.f32.mrf.mxu1  ;;  %v9046_v48 = vadd.f32 %v19976_v18, %v8980_v25  ;;  %v19977_v55 = vld [vmem:[#allocation21_spill] sm:$0xff]  ;;  %v8765_v27 = vadd.f32 %v19982_v57, %v8684_v34  ;;  %v19984_v19 = vld [vmem:[#allocation26_spill] sm:$0xff]  ;;  %v19988_v1 = vld [vmem:[#allocation208_spill] sm:$0xff] }
 0x6fd   :  { %v8863_v23 = vadd.f32 %v19977_v55, %v8806_v54  ;;  %v19979_v20 = vld [vmem:[#allocation125_spill] sm:$0xff]  ;;  %v7496_v14 = vadd.f32 %v19983_v22, %v7431_v63  ;;  %v19987_v36 = vld [vmem:[#allocation126_spill] sm:$0xff]  ;;  %v8810_v39 = vadd.f32 %v19988_v1, %v8761_v7  ;;  %v19991_v35 = vld [vmem:[#allocation20_spill] sm:$0xff]  ;;  %v10856_v52 = vadd.f32 %v18441_v38, %v10789_v45 }
 0x6fe   :  { %v18472_v58 = vpop.f32.mrf.mxu3  ;;  %v7171_v4 = vadd.f32 %v19979_v20, %v7054_v59  ;;  %v19981_v44 = vld [vmem:[#allocation133_spill] sm:$0xff]  ;;  %v9100_v25 = vadd.f32 %v19984_v19, %v9046_v48  ;;  %v7289_v59 = vadd.f32 %v19986_v8, %v7234_v33  ;;  %v8814_v34 = vadd.f32 %v19991_v35, %v8765_v27  ;;  %v19992_v5 = vld [vmem:[#allocation139_spill] sm:$0xff]  ;;  %v19997_v7 = vld [vmem:[#allocation128_spill] sm:$0xff] }
 0x6ff   :  { %v7419_v31 = vadd.f32 %v19981_v44, %v7370_v15  ;;  %v8984_v41 = vadd.f32 %v19985_v61, %v8863_v23  ;;  %v19989_v16 = vld [vmem:[#allocation213_spill] sm:$0xff]  ;;  %v19990_v15 = vld [vmem:[#allocation134_spill] sm:$0xff]  ;;  %v10676_v32 = vadd.f32 %v18465_v46, %v18422_v30  ;;  %v19994_v48 = vld [vmem:[#allocation27_spill] sm:$0xff]  ;;  %v10911_v45 = vadd.f32 %v18447_v13, %v10856_v52 }
 0x700   :  { %v7239_v54 = vadd.f32 %v19987_v36, %v7171_v4  ;;  %v9187_v24 = vadd.f32 %v19989_v16, %v9100_v25  ;;  %v7374_v63 = vadd.f32 %v19992_v5, %v7289_v59  ;;  %v19995_v23 = vld [vmem:[#allocation25_spill] sm:$0xff]  ;;  %v19996_v33 = vld [vmem:[#allocation15_spill] sm:$0xff]  ;;  %v19999_v57 = vld [vmem:[#allocation212_spill] sm:$0xff] }
 0x701   :  { %v7472_v29 = vadd.f32 %v19990_v15, %v7419_v31  ;;  %v9051_v55 = vadd.f32 %v19994_v48, %v8984_v41  ;;  %v8871_v43 = vadd.f32 %v19995_v23, %v8810_v39  ;;  %v8879_v20 = vadd.f32 %v19996_v33, %v8814_v34  ;;  %v19998_v38 = vld [vmem:[#allocation163_spill] sm:$0xff]  ;;  %v20000_v27 = vld [vmem:[#allocation136_spill] sm:$0xff]  ;;  %v20003_v61 = vld [vmem:[#allocation22_spill] sm:$0xff] }
 0x702   :  { %v7295_v44 = vadd.f32 %v19997_v7, %v7239_v54  ;;  %v9236_v30 = vadd.f32 %v19999_v57, %v9187_v24  ;;  %v10793_v22 = vadd.f32 %v18452_v2, %v10676_v32  ;;  %v20002_v25 = vld [vmem:[#allocation143_spill] sm:$0xff]  ;;  %v20006_v1 = vld [vmem:[#allocation32_spill] sm:$0xff]  ;;  %v20007_v24 = vld [vmem:[#allocation161_spill] sm:$0xff] }
 0x703   :  { %v9106_v41 = vadd.f32 %v20003_v61, %v9051_v55  ;;  %v20005_v36 = vld [vmem:[#allocation151_spill] sm:$0xff]  ;;  %v8992_v39 = vadd.f32 %v20006_v1, %v8879_v20  ;;  %v20012_v55 = vld [vmem:[#allocation12_spill] sm:$0xff]  ;;  %v20013_v23 = vld [vmem:[#allocation149_spill] sm:$0xff] }
 0x704   :  { %v20008_v15 = vld [vmem:[#allocation7_spill] sm:$0xff]  ;;  %v10861_v32 = vadd.f32 %v18460_v62, %v10793_v22  ;;  %v20015_v7 = vld [vmem:[#allocation162_spill] sm:$0xff] }
 0x705   :  { %v18487_v42 = vpop.f32.mrf.mxu2  ;;  %v20009_v35 = vld [vmem:[#allocation215_spill] sm:$0xff]  ;;  %v20016_v62 = vld [vmem:[#allocation14_spill] sm:$0xff] }
 0x706   :  { %v18494_v10 = vpop.f32.mrf.mxu0  ;;  %v18507_v49 = vpop.f32.mrf.mxu1  ;;  %v9191_v34 = vadd.f32 %v20009_v35, %v9106_v41  ;;  %v10917_v57 = vadd.f32 %v18472_v58, %v10861_v32  ;;  %v20022_v61 = vld [vmem:[#allocation150_spill] sm:$0xff] }
 0x707   :  { %v10684_v5 = vadd.f32 %v18494_v10, %v18426_v40 }
 0x708   :  { %v18502_v28 = vpop.f32.mrf.mxu3 }
 0x70f   :  { %v18520_v47 = vpop.f32.mrf.mxu2 }
 0x710   :  { %v18526_v21 = vpop.f32.mrf.mxu0  ;;  %v18539_v56 = vpop.f32.mrf.mxu1 }
 0x711   :  { %v10992_v12 = vadd.f32 %v18526_v21, %v10905_v53  ;;  %v19993_v21 = vld [vmem:[#allocation148_spill] sm:$0xff]  ;;  %v7597_v53 = vadd.f32 %v20000_v27, %v7472_v29  ;;  %v9289_v29 = vadd.f32 %v20008_v15, %v9236_v30  ;;  %v10797_v30 = vadd.f32 %v18477_v9, %v10684_v5  ;;  %v20024_v9 = vld [vmem:[#allocation155_spill] sm:$0xff]  ;;  %v20029_v5 = vld [vmem:[#allocation221_spill] sm:$0xff] }
 0x712   :  { %v18532_v60 = vpop.f32.mrf.mxu3  ;;  %v7609_v18 = vadd.f32 %v19993_v21, %v7496_v14  ;;  %v20001_v14 = vld [vmem:[#allocation137_spill] sm:$0xff] }
 0x713   :  { %v11041_v4 = vadd.f32 %v18507_v49, %v10992_v12  ;;  %v7423_v19 = vadd.f32 %v20001_v14, %v7374_v63  ;;  %v7378_v49 = vadd.f32 %v20002_v25, %v7295_v44  ;;  %v20004_v12 = vld [vmem:[#allocation29_spill] sm:$0xff]  ;;  %v7663_v54 = vadd.f32 %v20005_v36, %v7597_v53  ;;  %v20010_v63 = vld [vmem:[#allocation138_spill] sm:$0xff] }
 0x714   :  { %v7678_v31 = vadd.f32 %v19998_v38, %v7609_v18  ;;  %v8988_v8 = vadd.f32 %v20004_v12, %v8871_v43  ;;  %v20011_v18 = vld [vmem:[#allocation141_spill] sm:$0xff]  ;;  %v20014_v43 = vld [vmem:[#allocation35_spill] sm:$0xff]  ;;  %v9414_v38 = vadd.f32 %v20016_v62, %v9289_v29  ;;  %v20019_v14 = vld [vmem:[#allocation142_spill] sm:$0xff] }
 0x715   :  { %v11094_v16 = vadd.f32 %v18520_v47, %v11041_v4  ;;  %v7480_v21 = vadd.f32 %v20010_v63, %v7423_v19  ;;  %v7427_v48 = vadd.f32 %v20011_v18, %v7378_v49  ;;  %v9061_v33 = vadd.f32 %v20014_v43, %v8992_v39  ;;  %v20023_v12 = vld [vmem:[#allocation30_spill] sm:$0xff]  ;;  %v20025_v39 = vld [vmem:[#allocation164_spill] sm:$0xff]  ;;  %v20028_v29 = vld [vmem:[#allocation219_spill] sm:$0xff] }
 0x716   :  { %v7735_v2 = vadd.f32 %v20007_v24, %v7678_v31  ;;  %v9056_v47 = vadd.f32 %v20012_v55, %v8988_v8  ;;  %v20017_v31 = vld [vmem:[#allocation214_spill] sm:$0xff]  ;;  %v20031_v18 = vld [vmem:[#allocation152_spill] sm:$0xff] }
 0x717   :  { %v11219_v20 = vadd.f32 %v18532_v60, %v11094_v16  ;;  %v9240_v40 = vadd.f32 %v20017_v31, %v9191_v34  ;;  %v7488_v19 = vadd.f32 %v20019_v14, %v7427_v48  ;;  %v20020_v60 = vld [vmem:[#allocation28_spill] sm:$0xff]  ;;  %v9118_v8 = vadd.f32 %v20023_v12, %v9061_v33 }
 0x718   :  { %v7816_v44 = vadd.f32 %v20015_v7, %v7735_v2  ;;  %v9112_v25 = vadd.f32 %v20020_v60, %v9056_v47  ;;  %v20027_v2 = vld [vmem:[#allocation217_spill] sm:$0xff]  ;;  %v10866_v34 = vadd.f32 %v18487_v42, %v10797_v30  ;;  %v20033_v33 = vld [vmem:[#allocation44_spill] sm:$0xff]  ;;  %v20035_v7 = vld [vmem:[#allocation218_spill] sm:$0xff] }
 0x719   :  { %v18551_v50 = vpop.f32.mrf.mxu2  ;;  %v9199_v35 = vadd.f32 %v20028_v29, %v9118_v8  ;;  %v20034_v42 = vld [vmem:[#allocation216_spill] sm:$0xff]  ;;  %v20038_v30 = vld [vmem:[#allocation46_spill] sm:$0xff] }
 0x71a   :  { %v18556_v26 = vpop.f32.mrf.mxu0  ;;  %v18572_v51 = vpop.f32.mrf.mxu1  ;;  %v18674_v16 = vadd.f32 %v20025_v39, %v7816_v44  ;;  %v9195_v15 = vadd.f32 %v20027_v2, %v9112_v25  ;;  %v10923_v62 = vadd.f32 %v18502_v28, %v10866_v34  ;;  %v20039_v25 = vld [vmem:[#allocation154_spill] sm:$0xff]  ;;  %v20040_v28 = vld [vmem:[#allocation48_spill] sm:$0xff] }
 0x71b   :  { %v10996_v13 = vadd.f32 %v18556_v26, %v10911_v45  ;;  %v7717_v26 = vadd.f32 %v20013_v23, %v7663_v54  ;;  %v20018_v45 = vld [vmem:[#allocation140_spill] sm:$0xff]  ;;  %v20032_v23 = vld [vmem:[#allocation153_spill] sm:$0xff]  ;;  %v9248_v44 = vadd.f32 %v20035_v7, %v9199_v35 }
 0x71c   :  { %v18564_v11 = vpop.f32.mrf.mxu3  ;;  %v7601_v22 = vadd.f32 %v20018_v45, %v7480_v21  ;;  %v20030_v21 = vld [vmem:[#allocation144_spill] sm:$0xff]  ;;  %v7870_v43 = vrot.slane %v18674_v16, 7 }
 0x71d   :  { %v11045_v4 = vadd.f32 %v18539_v56, %v10996_v13  ;;  %v20021_v56 = vld [vmem:[#allocation43_spill] sm:$0xff]  ;;  %v7804_v41 = vadd.f32 %v20022_v61, %v7717_v26  ;;  %v20026_v13 = vld [vmem:[#allocation38_spill] sm:$0xff]  ;;  %v20047_v35 = vld [vmem:[#allocation36_spill] sm:$0xff] }
 0x71e   :  { %v9480_v49 = vadd.f32 %v20021_v56, %v9414_v38  ;;  %v7668_v1 = vadd.f32 %v20024_v9, %v7601_v22  ;;  %v9297_v24 = vadd.f32 %v20026_v13, %v9240_v40  ;;  %v20044_v9 = vld [vmem:[#allocation222_spill] sm:$0xff] }
 0x71f   :  { %v11102_v36 = vadd.f32 %v18551_v50, %v11045_v4  ;;  %v18683_v48 = vadd.f32 %v20031_v18, %v7804_v41 }
 0x720   :  { %v9534_v63 = vadd.f32 %v20029_v5, %v9480_v49  ;;  %v7723_v26 = vadd.f32 %v20032_v23, %v7668_v1  ;;  %v20041_v49 = vld [vmem:[#allocation33_spill] sm:$0xff]  ;;  %v20045_v1 = vld [vmem:[#allocation223_spill] sm:$0xff] }
 0x721   :  { %v11223_v55 = vadd.f32 %v18564_v11, %v11102_v36  ;;  %v7867_v45 = vrot.slane %v18683_v48, 7  ;;  %v9313_v61 = vadd.f32 %v20041_v49, %v9248_v44 }
 0x722   :  { %v7808_v56 = vadd.f32 %v20039_v25, %v7723_v26  ;;  %v20052_v26 = vld [vmem:[#allocation40_spill] sm:$0xff] }
 0x723   :  { %v18589_v37 = vpop.f32.mrf.mxu2  ;;  %v7874_v12 = vsel %vm206_vm5, %v7870_v43, %v7867_v45 }
 0x724   :  { %v18594_v0 = vpop.f32.mrf.mxu0  ;;  %v18608_v6 = vpop.f32.mrf.mxu1 }
 0x725   :  { %v11000_v58 = vadd.f32 %v18594_v0, %v10917_v57  ;;  %v7605_v0 = vadd.f32 %v20030_v21, %v7488_v19  ;;  %v20037_v57 = vld [vmem:[#allocation31_spill] sm:$0xff] }
 0x726   :  { %v18599_v3 = vpop.f32.mrf.mxu3 }
 0x727   :  { %v11049_v47 = vadd.f32 %v18572_v51, %v11000_v58  ;;  %v9621_v51 = vadd.f32 %v20037_v57, %v9534_v63  ;;  %v20043_v58 = vld [vmem:[#allocation157_spill] sm:$0xff] }
 0x729   :  { %v11110_v22 = vadd.f32 %v18589_v37, %v11049_v47 }
 0x72b   :  { %v11227_v13 = vadd.f32 %v18599_v3, %v11110_v22  ;;  %v20056_v22 = vld [vmem:[#allocation224_spill] sm:$0xff] }
 0x72d   :  { %v18626_v17 = vpop.f32.mrf.mxu2 }
 0x72e   :  { %v18631_v46 = vpop.f32.mrf.mxu0  ;;  %v11338_v52 = vpop.f32.mrf.mxu1 }
 0x72f   :  { %v11004_v14 = vadd.f32 %v18631_v46, %v10923_v62  ;;  %v9670_v46 = vadd.f32 %v20044_v9, %v9621_v51  ;;  %v20055_v51 = vld [vmem:[#allocation225_spill] sm:$0xff] }
 0x730   :  { %v18640_v59 = vpop.f32.mrf.mxu3 }
 0x736   :  { %v11284_v10 = vpop.f32.mrf.mxu0  ;;  %v11425_v53 = vpop.f32.mrf.mxu2 }
 0x737   :  { %v11285_v27 = vadd.f32 %v11284_v10, %v11219_v20  ;;  %v11344_v50 = vpop.f32.mrf.mxu1  ;;  %v9418_v20 = vadd.f32 %v20033_v33, %v9297_v24  ;;  %v20036_v10 = vld [vmem:[#allocation159_spill] sm:$0xff]  ;;  %v11053_v24 = vadd.f32 %v18608_v6, %v11004_v14  ;;  %v20051_v6 = vld [vmem:[#allocation34_spill] sm:$0xff] }
 0x738   :  { %v7673_v11 = vadd.f32 %v20036_v10, %v7605_v0 }
 0x739   :  { %v11474_v54 = vpop.f32.mrf.mxu3  ;;  %v11339_v32 = vadd.f32 %v11338_v52, %v11285_v27  ;;  %v9244_v52 = vadd.f32 %v20034_v42, %v9195_v15  ;;  %v9485_v27 = vadd.f32 %v20038_v30, %v9418_v20  ;;  %v20046_v15 = vld [vmem:[#allocation156_spill] sm:$0xff]  ;;  %v11715_v20 = vld [vmem:[%s18780_s6] ss:$0 sm:$0xff]  ;;  %v11118_v7 = vadd.f32 %v18626_v17, %v11053_v24 }
 0x73a   :  { %v7729_v37 = vadd.f32 %v20043_v58, %v7673_v11  ;;  %v7857_v29 = vadd.f32 %v20046_v15, %v7808_v56  ;;  %v20054_v11 = vld [vmem:[#allocation160_spill] sm:$0xff] }
 0x73b   :  { %v11426_v38 = vadd.f32 %v11425_v53, %v11339_v32  ;;  %v9305_v53 = vadd.f32 %v20040_v28, %v9244_v52  ;;  %v9540_v39 = vadd.f32 %v20045_v1, %v9485_v27  ;;  %v20053_v52 = vld [vmem:[#allocation58_spill] sm:$0xff]  ;;  %v11231_v17 = vadd.f32 %v18640_v59, %v11118_v7 }
 0x73c   :  { %v7868_v10 = vrot.slane %v7857_v29, 7 }
 0x73d   :  { %v18706_v8 = vadd.f32 %v11474_v54, %v11426_v38  ;;  %v9422_v34 = vadd.f32 %v20047_v35, %v9305_v53  ;;  %v7875_v54 = vsel %vm215_vm6, %v7874_v12, 0.0  ;;  %v9625_v23 = vadd.f32 %v20051_v6, %v9540_v39  ;;  %v20058_v12 = vld [vmem:[#allocation45_spill] sm:$0xff] }
 0x73e   :  { %v11289_v4 = vpop.f32.mrf.mxu0  ;;  %v11429_v40 = vpop.f32.mrf.mxu2  ;;  %v9684_v47 = vadd.f32 %v9670_v46, %v7875_v54 }
 0x73f   :  { %v11290_v31 = vadd.f32 %v11289_v4, %v11223_v55  ;;  %v11350_v5 = vpop.f32.mrf.mxu1  ;;  %v11489_v0 = vrot.slane %v18706_v8, 1  ;;  %v20050_v55 = vld [vmem:[#allocation158_spill] sm:$0xff]  ;;  %v9490_v33 = vadd.f32 %v20052_v26, %v9422_v34  ;;  %v9674_v14 = vadd.f32 %v20056_v22, %v9625_v23  ;;  %v20062_v34 = vld [vmem:[#allocation228_spill] sm:$0xff] }
 0x740   :  { %v7812_v3 = vadd.f32 %v20050_v55, %v7729_v37  ;;  %v20059_v37 = vld [vmem:[#allocation37_spill] sm:$0xff] }
 0x741   :  { %v11345_v19 = vadd.f32 %v11344_v50, %v11290_v31  ;;  %v11478_v60 = vpop.f32.mrf.mxu3  ;;  %v20049_v50 = vld [vmem:[#allocation220_spill] sm:$0xff]  ;;  %v9546_v30 = vadd.f32 %v20055_v51, %v9490_v33 }
 0x742   :  { %v9426_v21 = vadd.f32 %v20049_v50, %v9313_v61  ;;  %v7861_v57 = vadd.f32 %v20054_v11, %v7812_v3  ;;  %v7873_v61 = vsel %vm206_vm5, %v7867_v45, %v7868_v10  ;;  %v20061_v45 = vld [vmem:[#allocation226_spill] sm:$0xff] }
 0x743   :  { %v11430_v36 = vadd.f32 %v11429_v40, %v11345_v19  ;;  %v20057_v19 = vld [vmem:[#allocation227_spill] sm:$0xff]  ;;  %v9629_v8 = vadd.f32 %v20058_v12, %v9546_v30  ;;  %v9685_v58 = vadd.f32 %v9674_v14, %v7873_v61 }
 0x744   :  { %v9495_v4 = vadd.f32 %v20053_v52, %v9426_v21  ;;  %v7869_v49 = vrot.slane %v7861_v57, 7 }
 0x745   :  { %v11479_v2 = vadd.f32 %v11478_v60, %v11430_v36  ;;  %v9678_v29 = vadd.f32 %v20061_v45, %v9629_v8 }
 0x746   :  { %v11294_v63 = vpop.f32.mrf.mxu0  ;;  %v11433_v42 = vpop.f32.mrf.mxu2  ;;  %v9552_v60 = vadd.f32 %v20057_v19, %v9495_v4  ;;  %v7872_v15 = vsel %vm206_vm5, %v7868_v10, %v7869_v49 }
 0x747   :  { %v11490_v18 = vrot.slane %v11479_v2, 1  ;;  %v11295_v48 = vadd.f32 %v11294_v63, %v11227_v13  ;;  %v11356_v36 = vpop.f32.mrf.mxu1  ;;  %v7877_v50 = vsel %vm217_vm7, %v7872_v15, 0.0 }
 0x748   :  { %v9633_v9 = vadd.f32 %v20059_v37, %v9552_v60 }
 0x749   :  { %v11495_v44 = vsel %vm3657_vm11, %v11489_v0, %v11490_v18  ;;  %v11351_v62 = vadd.f32 %v11350_v5, %v11295_v48  ;;  %v11482_v31 = vpop.f32.mrf.mxu3  ;;  %v7871_v48 = vsel %vm206_vm5, %v7869_v49, %v7870_v43 }
 0x74a   :  { %v11501_v38 = vadd.f32 %v11495_v44, %v9684_v47  ;;  %v9682_v32 = vadd.f32 %v20062_v34, %v9633_v9 }
 0x74b   :  { %v11434_v40 = vadd.f32 %v11433_v42, %v11351_v62 }
 0x74c   :  { %v11509_v27 = vadd.f32 %v11715_v20, %v11501_v38  ;;  %v9687_v55 = vadd.f32 %v9682_v32, %v7871_v48 }
 0x74d   :  { %v11483_v25 = vadd.f32 %v11482_v31, %v11434_v40 }
 0x74e   :  { %11514 = vst.msk [vmem:[%s18781_s7] sm:$0xff] %vm11513_vm0, %v11509_v27  ;;  %v11299_v56 = vpop.f32.mrf.mxu0  ;;  %v11437_v13 = vpop.f32.mrf.mxu2 }
 0x74f   :  { %v11491_v28 = vrot.slane %v11483_v25, 1  ;;  %v11300_v53 = vadd.f32 %v11299_v56, %v11231_v17 }
 0x751   :  { %v11494_v59 = vsel %vm3657_vm11, %v11490_v18, %v11491_v28  ;;  %v11357_v46 = vadd.f32 %v11356_v36, %v11300_v53  ;;  %v11486_v35 = vpop.f32.mrf.mxu3  ;;  %v9686_v18 = vadd.f32 %v9678_v29, %v7877_v50 }
 0x752   :  { %v11498_v39 = vsel %vm3671_vm12, %v11494_v59, 0.0 }
 0x753   :  { %v11502_v24 = vadd.f32 %v11498_v39, %v9685_v58  ;;  %v11438_v2 = vadd.f32 %v11437_v13, %v11357_v46 }
 0x755   :  { %v11510_v54 = vadd.f32 %v11715_v20, %v11502_v24  ;;  %v11487_v5 = vadd.f32 %v11486_v35, %v11438_v2 }
 0x757   :  { %11515 = vst.msk [vmem:[%s18781_s7 + $0x8] sm:$0xff] %vm11513_vm0, %v11510_v54  ;;  %v11492_v21 = vrot.slane %v11487_v5, 1 }
 0x759   :  { %v11493_v3 = vsel %vm3657_vm11, %v11491_v28, %v11492_v21  ;;  %v11496_v47 = vsel %vm3657_vm11, %v11492_v21, %v11489_v0 }
 0x75a   :  { %v11500_v23 = vsel %vm3673_vm13, %v11496_v47, 0.0  ;;  %v11503_v26 = vadd.f32 %v11493_v3, %v9686_v18 }
 0x75b   :  { %v11504_v33 = vadd.f32 %v11500_v23, %v9687_v55 }
 0x75c   :  { %v11511_v42 = vadd.f32 %v11715_v20, %v11503_v26 }
 0x75d   :  { %v11512_v52 = vadd.f32 %v11715_v20, %v11504_v33 }
 0x75e   :  { %11516 = vst.msk [vmem:[%s18781_s7 + $0x10] sm:$0xff] %vm11513_vm0, %v11511_v42 }
 0x75f   :  { %11517 = vst.msk [vmem:[%s18781_s7 + $0x18] sm:$0xff] %vm11513_vm0, %v11512_v52 }

</bundles_post_ra>
